<compile_context>
chip_gen: v7x
topology: tpu7x:2x2x1
jax: 0.10.0
libtpu: 0.0.40
codegen_flags: <defaults>
</compile_context>

<pallas_src>
import functools

import jax
import jax.numpy as jnp
from jax.experimental import pallas as pl
from jax.experimental.pallas import tpu as pltpu

BN_EPS = 1e-5
LEAKY_SLOPE = 0.2
OUT_CHANNELS = (64, 128, 256, 512, 512)   # fixed architecture of PassiveSepEncCNN


def _round_up(x, m):
    return (x + m - 1) // m * m


# ----------------------------------------------------------------------------
# Pallas kernel: tiled GEMM (im2col patches @ weight) with the full layer
# epilogue fused in: +bias -> BatchNorm2d (batch statistics over the valid M
# rows, biased variance, eps=1e-5) -> LeakyReLU(0.2).
# grid = (K_tiles,); the whole (Mp, N) output is one accumulator tile, so the
# BN statistics computed in the final grid step are exact.
# ----------------------------------------------------------------------------
def _conv_bn_lrelu_kernel(a_ref, b_ref, bias_ref, gamma_ref, beta_ref,
                          o_ref, acc_ref, *, m_valid, m_pad):
    k = pl.program_id(0)

    @pl.when(k == 0)
    def _():
        acc_ref[...] = jnp.zeros_like(acc_ref)

    acc_ref[...] += jnp.dot(a_ref[...], b_ref[...],
                            preferred_element_type=jnp.float32)

    @pl.when(k == pl.num_programs(0) - 1)
    def _():
        y = acc_ref[...] + bias_ref[...]
        if m_valid == m_pad:
            mean = jnp.mean(y, axis=0, keepdims=True)
            diff = y - mean
            var = jnp.mean(diff * diff, axis=0, keepdims=True)   # biased var
        else:
            # exclude zero-padded rows from the batch statistics
            row = jax.lax.broadcasted_iota(jnp.int32, y.shape, 0)
            valid = (row < m_valid).astype(jnp.float32)
            inv_cnt = 1.0 / float(m_valid)
            mean = jnp.sum(y * valid, axis=0, keepdims=True) * inv_cnt
            diff = (y - mean) * valid
            var = jnp.sum(diff * diff, axis=0, keepdims=True) * inv_cnt
        inv = jax.lax.rsqrt(var + BN_EPS)
        yhat = (y - mean) * inv * gamma_ref[...] + beta_ref[...]
        o_ref[...] = jnp.where(yhat >= 0.0, yhat, LEAKY_SLOPE * yhat)


def conv_bn_lrelu(patches, w_mat, bias, gamma, beta, cout):
    """patches: (M, K) bf16, w_mat: (K, N) bf16, bias/gamma/beta: (1, N) f32.

    Returns the fused Conv(+bias)+BN+LeakyReLU output, (M, cout) f32.
    """
    M, K = patches.shape
    _, N = w_mat.shape

    Mp = _round_up(M, 16)                       # bf16-friendly sublane multiple
    a = patches if Mp == M else jnp.pad(patches, ((0, Mp - M), (0, 0)))
    tk = K if K <= 2048 else 2048               # keep bf16 B tiles <= 2 MiB
    assert K % tk == 0
    grid = (K // tk,)

    kernel = functools.partial(_conv_bn_lrelu_kernel, m_valid=M, m_pad=Mp)

    out = pl.pallas_call(
        kernel,
        out_shape=jax.ShapeDtypeStruct((Mp, N), jnp.float32),
        grid_spec=pltpu.PrefetchScalarGridSpec(
            num_scalar_prefetch=0,
            grid=grid,
            in_specs=[
                pl.BlockSpec((Mp, tk), lambda k: (0, k)),
                pl.BlockSpec((tk, N), lambda k: (k, 0)),
                pl.BlockSpec((1, N), lambda k: (0, 0)),
                pl.BlockSpec((1, N), lambda k: (0, 0)),
                pl.BlockSpec((1, N), lambda k: (0, 0)),
            ],
            out_specs=pl.BlockSpec((Mp, N), lambda k: (0, 0)),
            scratch_shapes=[pltpu.VMEM((Mp, N), jnp.float32)],
        ),
        compiler_params=pltpu.CompilerParams(
            dimension_semantics=("arbitrary",)),
    )(a, w_mat, bias, gamma, beta)
    return out[:M, :cout]


# ----------------------------------------------------------------------------
# One unet_conv block: Conv2d(k4,s2,p1) -> BatchNorm2d -> LeakyReLU(0.2)
# x_nhwc: (B, H, W, Cin) f32; w_mat: (16*Cin, Npad) bf16 (pre-reshaped HWIO).
# ----------------------------------------------------------------------------
def unet_conv_layer(x_nhwc, w_mat, bias, gamma, beta, cout):
    B, H, W, Cin = x_nhwc.shape
    KH = KW = 4
    stride = 2
    xpad = jnp.pad(x_nhwc, ((0, 0), (1, 1), (1, 1), (0, 0)))
    Hp, Wp = H + 2, W + 2
    Ho = (Hp - KH) // stride + 1
    Wo = (Wp - KW) // stride + 1

    # im2col (XLA glue): patches[b, ho, wo, (kh, kw), c] = xpad[b, 2*ho+kh, 2*wo+kw, c]
    cols = []
    for kh in range(KH):
        for kw in range(KW):
            cols.append(jax.lax.slice(
                xpad,
                (0, kh, kw, 0),
                (B, kh + stride * (Ho - 1) + 1, kw + stride * (Wo - 1) + 1, Cin),
                (1, stride, stride, 1)))
    patches = jnp.stack(cols, axis=3).reshape(B * Ho * Wo, KH * KW * Cin)
    patches = patches.astype(jnp.bfloat16)

    y = conv_bn_lrelu(patches, w_mat, bias, gamma, beta, cout)  # fused Pallas layer
    return y.reshape(B, Ho, Wo, cout)


# ----------------------------------------------------------------------------
# Parameters (deterministic synthetic init; shapes follow the module __init__)
# ----------------------------------------------------------------------------
def init_params(key, convert_bin2mono=False):
    in_c = 2 if convert_bin2mono else 1
    chans = [in_c] + list(OUT_CHANNELS)
    params = []
    for l in range(5):
        key, k1, k2, k3, k4 = jax.random.split(key, 5)
        cin, cout = chans[l], chans[l + 1]
        w = 0.05 * jax.random.normal(k1, (4, 4, cin, cout), jnp.float32)
        b = 0.01 * jax.random.normal(k2, (cout,), jnp.float32)
        gamma = 1.0 + 0.1 * jax.random.normal(k3, (cout,), jnp.float32)
        beta = 0.02 * jax.random.normal(k4, (cout,), jnp.float32)
        params.append((w, b, gamma, beta))
    return params


def prepare_params(raw_params):
    """One-time prep outside the forward: reshape HWIO weights to GEMM layout,
    cast to bf16, and pad the channel axis to a lane-dense multiple of 128."""
    prepped = []
    for (w, b, gamma, beta) in raw_params:
        KH, KW, cin, cout = w.shape
        N = max(_round_up(cout, 128), 128)
        w_mat = w.reshape(KH * KW * cin, cout).astype(jnp.bfloat16)
        if N != cout:
            w_mat = jnp.pad(w_mat, ((0, 0), (0, N - cout)))
            b = jnp.pad(b, (0, N - cout))
            gamma = jnp.pad(gamma, (0, N - cout), constant_values=1.0)
            beta = jnp.pad(beta, (0, N - cout))
        prepped.append((w_mat,
                        b.reshape(1, N).astype(jnp.float32),
                        gamma.reshape(1, N).astype(jnp.float32),
                        beta.reshape(1, N).astype(jnp.float32)))
    return prepped


# ----------------------------------------------------------------------------
# PassiveSepEnc.forward equivalent
# observations: NCHW (B, Cin, H, W), as PyTorch conv input.
# returns (bottleneck_feats NCHW, [skip1..skip4] NCHW), like
#   (conv5, [conv1, conv2, conv3, conv4]).
# ----------------------------------------------------------------------------
@jax.jit
def passive_sep_enc_forward(observations_nchw, params, mixed_audio=None):
    del mixed_audio  # unused when convert_bin2mono=False
    x = jnp.transpose(observations_nchw, (0, 2, 3, 1))  # NCHW -> NHWC
    feats = []
    for l, (w_mat, b, gamma, beta) in enumerate(params):
        x = unet_conv_layer(x, w_mat, b, gamma, beta, OUT_CHANNELS[l])
        feats.append(x)
    to_nchw = lambda t: jnp.transpose(t, (0, 3, 1, 2))  # reference returns NCHW
    bottleneck_feats = to_nchw(feats[-1])
    lst_skip_feats = [to_nchw(f) for f in feats[:-1]]
    return bottleneck_feats, lst_skip_feats


if __name__ == "__main__":
    key = jax.random.PRNGKey(0)
    k_obs, k_par = jax.random.split(key)

    # Small mono magnitude-spectrogram-like input: (batch=2, 1 channel, 32x32)
    observations = jnp.abs(jax.random.normal(k_obs, (2, 1, 32, 32), jnp.float32))
    params = prepare_params(init_params(k_par, convert_bin2mono=False))

    bottleneck, skips = passive_sep_enc_forward(observations, params)
    jax.block_until_ready(bottleneck)
    for s in skips:
        jax.block_until_ready(s)

    assert bottleneck.shape == (2, 512, 1, 1)
    assert [s.shape for s in skips] == [(2, 64, 16, 16), (2, 128, 8, 8),
                                        (2, 256, 4, 4), (2, 512, 2, 2)]
    assert bool(jnp.all(jnp.isfinite(bottleneck)))
    print("KERNEL_OK")
</pallas_src>

<mosaic_0001>
module attributes {stable_mosaic.version = 11 : i64} {
  func.func @_conv_bn_lrelu_kernel(%arg0: i32, %arg1: memref<512x16xbf16, #tpu.memory_space<vmem>>, %arg2: memref<16x128xbf16, #tpu.memory_space<vmem>>, %arg3: memref<1x128xf32, #tpu.memory_space<vmem>>, %arg4: memref<1x128xf32, #tpu.memory_space<vmem>>, %arg5: memref<1x128xf32, #tpu.memory_space<vmem>>, %arg6: memref<512x128xf32, #tpu.memory_space<vmem>>, %arg7: memref<512x128xf32, #tpu.memory_space<vmem>>) attributes {dimension_semantics = [#tpu.dimension_semantics<arbitrary>], iteration_bounds = array<i64: 1>, scalar_prefetch = 0 : i64, scratch_operands = 1 : i64, tpu.core_type = #tpu.core_type<tc>, window_params = [{transform_indices = @transform_0, window_bounds = array<i64: 512, 16>}, {transform_indices = @transform_1, window_bounds = array<i64: 16, 128>}, {pipeline_mode = #tpu.pipeline_mode<synchronous>, transform_indices = @transform_2, window_bounds = array<i64: 1, 128>}, {pipeline_mode = #tpu.pipeline_mode<synchronous>, transform_indices = @transform_3, window_bounds = array<i64: 1, 128>}, {pipeline_mode = #tpu.pipeline_mode<synchronous>, transform_indices = @transform_4, window_bounds = array<i64: 1, 128>}, {pipeline_mode = #tpu.pipeline_mode<synchronous>, transform_indices = @transform_5, window_bounds = array<i64: 512, 128>}]} {
    %c0_i32 = arith.constant 0 : i32
    %0 = arith.cmpi eq, %arg0, %c0_i32 : i32
    %1 = arith.extui %0 : i1 to i32
    %c0_i32_0 = arith.constant 0 : i32
    %2 = arith.cmpi ne, %1, %c0_i32_0 : i32
    scf.if %2 {
      %cst_10 = arith.constant 0.000000e+00 : f32
      %12 = vector.broadcast %cst_10 : f32 to vector<512x128xf32>
      %c0_11 = arith.constant 0 : index
      %c0_12 = arith.constant 0 : index
      %13 = vector.load %arg7[%c0_11, %c0_12] : memref<512x128xf32, #tpu.memory_space<vmem>>, vector<512x128xf32>
      tpu.vector_store %arg7[%c0_11, %c0_12], %12 {strides = array<i32>} : memref<512x128xf32, #tpu.memory_space<vmem>>, vector<512x128xf32>,
    } else {
    }
    %c0 = arith.constant 0 : index
    %c0_1 = arith.constant 0 : index
    %3 = vector.load %arg7[%c0, %c0_1] : memref<512x128xf32, #tpu.memory_space<vmem>>, vector<512x128xf32>
    %c0_2 = arith.constant 0 : index
    %c0_3 = arith.constant 0 : index
    %4 = vector.load %arg1[%c0_2, %c0_3] : memref<512x16xbf16, #tpu.memory_space<vmem>>, vector<512x16xbf16>
    %c0_4 = arith.constant 0 : index
    %c0_5 = arith.constant 0 : index
    %5 = vector.load %arg2[%c0_4, %c0_5] : memref<16x128xbf16, #tpu.memory_space<vmem>>, vector<16x128xbf16>
    %cst = arith.constant dense<0.000000e+00> : vector<512x128xf32>
    %6 = tpu.matmul %4, %5, %cst {dimension_numbers = #tpu.dot_dimension_numbers<[1], [0], [0], [1], [0, 0, 1, 1], [], []>} : vector<512x16xbf16>, vector<16x128xbf16>, vector<512x128xf32> -> vector<512x128xf32>
    %7 = arith.addf %3, %6 : vector<512x128xf32>
    %c0_6 = arith.constant 0 : index
    %c0_7 = arith.constant 0 : index
    %8 = vector.load %arg7[%c0_6, %c0_7] : memref<512x128xf32, #tpu.memory_space<vmem>>, vector<512x128xf32>
    tpu.vector_store %arg7[%c0_6, %c0_7], %7 {strides = array<i32>} : memref<512x128xf32, #tpu.memory_space<vmem>>, vector<512x128xf32>,
    %c0_i32_8 = arith.constant 0 : i32
    %9 = arith.cmpi eq, %arg0, %c0_i32_8 : i32
    %10 = arith.extui %9 : i1 to i32
    %c0_i32_9 = arith.constant 0 : i32
    %11 = arith.cmpi ne, %10, %c0_i32_9 : i32
    scf.if %11 {
      %c0_10 = arith.constant 0 : index
      %c0_11 = arith.constant 0 : index
      %12 = vector.load %arg7[%c0_10, %c0_11] : memref<512x128xf32, #tpu.memory_space<vmem>>, vector<512x128xf32>
      %c0_12 = arith.constant 0 : index
      %c0_13 = arith.constant 0 : index
      %13 = vector.load %arg3[%c0_12, %c0_13] : memref<1x128xf32, #tpu.memory_space<vmem>>, vector<1x128xf32>
      %14 = vector.broadcast %13 : vector<1x128xf32> to vector<512x128xf32>
      %15 = arith.addf %12, %14 : vector<512x128xf32>
      %cst_14 = arith.constant dense<0.000000e+00> : vector<128xf32>
      %16 = vector.multi_reduction <add>, %15, %cst_14 [0] : vector<512x128xf32> to vector<128xf32>
      %17 = vector.shape_cast %16 : vector<128xf32> to vector<1x128xf32>
      %cst_15 = arith.constant 5.120000e+02 : f32
      %18 = vector.broadcast %cst_15 : f32 to vector<1x128xf32>
      %19 = arith.divf %17, %18 : vector<1x128xf32>
      %20 = vector.broadcast %19 : vector<1x128xf32> to vector<512x128xf32>
      %21 = arith.subf %15, %20 : vector<512x128xf32>
      %22 = arith.mulf %21, %21 : vector<512x128xf32>
      %cst_16 = arith.constant dense<0.000000e+00> : vector<128xf32>
      %23 = vector.multi_reduction <add>, %22, %cst_16 [0] : vector<512x128xf32> to vector<128xf32>
      %24 = vector.shape_cast %23 : vector<128xf32> to vector<1x128xf32>
      %cst_17 = arith.constant 5.120000e+02 : f32
      %25 = vector.broadcast %cst_17 : f32 to vector<1x128xf32>
      %26 = arith.divf %24, %25 : vector<1x128xf32>
      %cst_18 = arith.constant 9.99999974E-6 : f32
      %27 = vector.broadcast %cst_18 : f32 to vector<1x128xf32>
      %28 = arith.addf %26, %27 : vector<1x128xf32>
      %29 = math.rsqrt %28 : vector<1x128xf32>
      %30 = vector.broadcast %19 : vector<1x128xf32> to vector<512x128xf32>
      %31 = arith.subf %15, %30 : vector<512x128xf32>
      %32 = vector.broadcast %29 : vector<1x128xf32> to vector<512x128xf32>
      %33 = arith.mulf %31, %32 : vector<512x128xf32>
      %c0_19 = arith.constant 0 : index
      %c0_20 = arith.constant 0 : index
      %34 = vector.load %arg4[%c0_19, %c0_20] : memref<1x128xf32, #tpu.memory_space<vmem>>, vector<1x128xf32>
      %35 = vector.broadcast %34 : vector<1x128xf32> to vector<512x128xf32>
      %36 = arith.mulf %33, %35 : vector<512x128xf32>
      %c0_21 = arith.constant 0 : index
      %c0_22 = arith.constant 0 : index
      %37 = vector.load %arg5[%c0_21, %c0_22] : memref<1x128xf32, #tpu.memory_space<vmem>>, vector<1x128xf32>
      %38 = vector.broadcast %37 : vector<1x128xf32> to vector<512x128xf32>
      %39 = arith.addf %36, %38 : vector<512x128xf32>
      %cst_23 = arith.constant 0.000000e+00 : f32
      %40 = vector.broadcast %cst_23 : f32 to vector<512x128xf32>
      %41 = arith.cmpf oge, %39, %40 : vector<512x128xf32>
      %cst_24 = arith.constant 2.000000e-01 : f32
      %42 = vector.broadcast %cst_24 : f32 to vector<512x128xf32>
      %43 = arith.mulf %42, %39 : vector<512x128xf32>
      %44 = arith.select %41, %39, %43 : vector<512x128xi1>, vector<512x128xf32>
      %c0_25 = arith.constant 0 : index
      %c0_26 = arith.constant 0 : index
      %45 = vector.load %arg6[%c0_25, %c0_26] : memref<512x128xf32, #tpu.memory_space<vmem>>, vector<512x128xf32>
      tpu.vector_store %arg6[%c0_25, %c0_26], %44 {strides = array<i32>} : memref<512x128xf32, #tpu.memory_space<vmem>>, vector<512x128xf32>,
    } else {
    }
    return
  }
  func.func @transform_0(%arg0: i32) -> (i32, i32) {
    %c0_i32 = arith.constant 0 : i32
    %c0_i32_0 = arith.constant 0 : i32
    return %c0_i32, %arg0 : i32, i32
  }
  func.func @transform_1(%arg0: i32) -> (i32, i32) {
    %c0_i32 = arith.constant 0 : i32
    %c0_i32_0 = arith.constant 0 : i32
    return %arg0, %c0_i32 : i32, i32
  }
  func.func @transform_2(%arg0: i32) -> (i32, i32) {
    %c0_i32 = arith.constant 0 : i32
    %c0_i32_0 = arith.constant 0 : i32
    %c0_i32_1 = arith.constant 0 : i32
    return %c0_i32, %c0_i32_0 : i32, i32
  }
  func.func @transform_3(%arg0: i32) -> (i32, i32) {
    %c0_i32 = arith.constant 0 : i32
    %c0_i32_0 = arith.constant 0 : i32
    %c0_i32_1 = arith.constant 0 : i32
    return %c0_i32, %c0_i32_0 : i32, i32
  }
  func.func @transform_4(%arg0: i32) -> (i32, i32) {
    %c0_i32 = arith.constant 0 : i32
    %c0_i32_0 = arith.constant 0 : i32
    %c0_i32_1 = arith.constant 0 : i32
    return %c0_i32, %c0_i32_0 : i32, i32
  }
  func.func @transform_5(%arg0: i32) -> (i32, i32) {
    %c0_i32 = arith.constant 0 : i32
    %c0_i32_0 = arith.constant 0 : i32
    %c0_i32_1 = arith.constant 0 : i32
    return %c0_i32, %c0_i32_0 : i32, i32
  }
}

module attributes {stable_mosaic.version = 11 : i64} {
  func.func @_conv_bn_lrelu_kernel(%arg0: i32, %arg1: memref<128x1024xbf16, #tpu.memory_space<vmem>>, %arg2: memref<1024x128xbf16, #tpu.memory_space<vmem>>, %arg3: memref<1x128xf32, #tpu.memory_space<vmem>>, %arg4: memref<1x128xf32, #tpu.memory_space<vmem>>, %arg5: memref<1x128xf32, #tpu.memory_space<vmem>>, %arg6: memref<128x128xf32, #tpu.memory_space<vmem>>, %arg7: memref<128x128xf32, #tpu.memory_space<vmem>>) attributes {dimension_semantics = [#tpu.dimension_semantics<arbitrary>], iteration_bounds = array<i64: 1>, scalar_prefetch = 0 : i64, scratch_operands = 1 : i64, tpu.core_type = #tpu.core_type<tc>, window_params = [{transform_indices = @transform_0, window_bounds = array<i64: 128, 1024>}, {transform_indices = @transform_1, window_bounds = array<i64: 1024, 128>}, {pipeline_mode = #tpu.pipeline_mode<synchronous>, transform_indices = @transform_2, window_bounds = array<i64: 1, 128>}, {pipeline_mode = #tpu.pipeline_mode<synchronous>, transform_indices = @transform_3, window_bounds = array<i64: 1, 128>}, {pipeline_mode = #tpu.pipeline_mode<synchronous>, transform_indices = @transform_4, window_bounds = array<i64: 1, 128>}, {pipeline_mode = #tpu.pipeline_mode<synchronous>, transform_indices = @transform_5, window_bounds = array<i64: 128, 128>}]} {
    %c0_i32 = arith.constant 0 : i32
    %0 = arith.cmpi eq, %arg0, %c0_i32 : i32
    %1 = arith.extui %0 : i1 to i32
    %c0_i32_0 = arith.constant 0 : i32
    %2 = arith.cmpi ne, %1, %c0_i32_0 : i32
    scf.if %2 {
      %cst_10 = arith.constant 0.000000e+00 : f32
      %12 = vector.broadcast %cst_10 : f32 to vector<128x128xf32>
      %c0_11 = arith.constant 0 : index
      %c0_12 = arith.constant 0 : index
      %13 = vector.load %arg7[%c0_11, %c0_12] : memref<128x128xf32, #tpu.memory_space<vmem>>, vector<128x128xf32>
      tpu.vector_store %arg7[%c0_11, %c0_12], %12 {strides = array<i32>} : memref<128x128xf32, #tpu.memory_space<vmem>>, vector<128x128xf32>,
    } else {
    }
    %c0 = arith.constant 0 : index
    %c0_1 = arith.constant 0 : index
    %3 = vector.load %arg7[%c0, %c0_1] : memref<128x128xf32, #tpu.memory_space<vmem>>, vector<128x128xf32>
    %c0_2 = arith.constant 0 : index
    %c0_3 = arith.constant 0 : index
    %4 = vector.load %arg1[%c0_2, %c0_3] : memref<128x1024xbf16, #tpu.memory_space<vmem>>, vector<128x1024xbf16>
    %c0_4 = arith.constant 0 : index
    %c0_5 = arith.constant 0 : index
    %5 = vector.load %arg2[%c0_4, %c0_5] : memref<1024x128xbf16, #tpu.memory_space<vmem>>, vector<1024x128xbf16>
    %cst = arith.constant dense<0.000000e+00> : vector<128x128xf32>
    %6 = tpu.matmul %4, %5, %cst {dimension_numbers = #tpu.dot_dimension_numbers<[1], [0], [0], [1], [0, 0, 1, 1], [], []>} : vector<128x1024xbf16>, vector<1024x128xbf16>, vector<128x128xf32> -> vector<128x128xf32>
    %7 = arith.addf %3, %6 : vector<128x128xf32>
    %c0_6 = arith.constant 0 : index
    %c0_7 = arith.constant 0 : index
    %8 = vector.load %arg7[%c0_6, %c0_7] : memref<128x128xf32, #tpu.memory_space<vmem>>, vector<128x128xf32>
    tpu.vector_store %arg7[%c0_6, %c0_7], %7 {strides = array<i32>} : memref<128x128xf32, #tpu.memory_space<vmem>>, vector<128x128xf32>,
    %c0_i32_8 = arith.constant 0 : i32
    %9 = arith.cmpi eq, %arg0, %c0_i32_8 : i32
    %10 = arith.extui %9 : i1 to i32
    %c0_i32_9 = arith.constant 0 : i32
    %11 = arith.cmpi ne, %10, %c0_i32_9 : i32
    scf.if %11 {
      %c0_10 = arith.constant 0 : index
      %c0_11 = arith.constant 0 : index
      %12 = vector.load %arg7[%c0_10, %c0_11] : memref<128x128xf32, #tpu.memory_space<vmem>>, vector<128x128xf32>
      %c0_12 = arith.constant 0 : index
      %c0_13 = arith.constant 0 : index
      %13 = vector.load %arg3[%c0_12, %c0_13] : memref<1x128xf32, #tpu.memory_space<vmem>>, vector<1x128xf32>
      %14 = vector.broadcast %13 : vector<1x128xf32> to vector<128x128xf32>
      %15 = arith.addf %12, %14 : vector<128x128xf32>
      %cst_14 = arith.constant dense<0.000000e+00> : vector<128xf32>
      %16 = vector.multi_reduction <add>, %15, %cst_14 [0] : vector<128x128xf32> to vector<128xf32>
      %17 = vector.shape_cast %16 : vector<128xf32> to vector<1x128xf32>
      %cst_15 = arith.constant 1.280000e+02 : f32
      %18 = vector.broadcast %cst_15 : f32 to vector<1x128xf32>
      %19 = arith.divf %17, %18 : vector<1x128xf32>
      %20 = vector.broadcast %19 : vector<1x128xf32> to vector<128x128xf32>
      %21 = arith.subf %15, %20 : vector<128x128xf32>
      %22 = arith.mulf %21, %21 : vector<128x128xf32>
      %cst_16 = arith.constant dense<0.000000e+00> : vector<128xf32>
      %23 = vector.multi_reduction <add>, %22, %cst_16 [0] : vector<128x128xf32> to vector<128xf32>
      %24 = vector.shape_cast %23 : vector<128xf32> to vector<1x128xf32>
      %cst_17 = arith.constant 1.280000e+02 : f32
      %25 = vector.broadcast %cst_17 : f32 to vector<1x128xf32>
      %26 = arith.divf %24, %25 : vector<1x128xf32>
      %cst_18 = arith.constant 9.99999974E-6 : f32
      %27 = vector.broadcast %cst_18 : f32 to vector<1x128xf32>
      %28 = arith.addf %26, %27 : vector<1x128xf32>
      %29 = math.rsqrt %28 : vector<1x128xf32>
      %30 = vector.broadcast %19 : vector<1x128xf32> to vector<128x128xf32>
      %31 = arith.subf %15, %30 : vector<128x128xf32>
      %32 = vector.broadcast %29 : vector<1x128xf32> to vector<128x128xf32>
      %33 = arith.mulf %31, %32 : vector<128x128xf32>
      %c0_19 = arith.constant 0 : index
      %c0_20 = arith.constant 0 : index
      %34 = vector.load %arg4[%c0_19, %c0_20] : memref<1x128xf32, #tpu.memory_space<vmem>>, vector<1x128xf32>
      %35 = vector.broadcast %34 : vector<1x128xf32> to vector<128x128xf32>
      %36 = arith.mulf %33, %35 : vector<128x128xf32>
      %c0_21 = arith.constant 0 : index
      %c0_22 = arith.constant 0 : index
      %37 = vector.load %arg5[%c0_21, %c0_22] : memref<1x128xf32, #tpu.memory_space<vmem>>, vector<1x128xf32>
      %38 = vector.broadcast %37 : vector<1x128xf32> to vector<128x128xf32>
      %39 = arith.addf %36, %38 : vector<128x128xf32>
      %cst_23 = arith.constant 0.000000e+00 : f32
      %40 = vector.broadcast %cst_23 : f32 to vector<128x128xf32>
      %41 = arith.cmpf oge, %39, %40 : vector<128x128xf32>
      %cst_24 = arith.constant 2.000000e-01 : f32
      %42 = vector.broadcast %cst_24 : f32 to vector<128x128xf32>
      %43 = arith.mulf %42, %39 : vector<128x128xf32>
      %44 = arith.select %41, %39, %43 : vector<128x128xi1>, vector<128x128xf32>
      %c0_25 = arith.constant 0 : index
      %c0_26 = arith.constant 0 : index
      %45 = vector.load %arg6[%c0_25, %c0_26] : memref<128x128xf32, #tpu.memory_space<vmem>>, vector<128x128xf32>
      tpu.vector_store %arg6[%c0_25, %c0_26], %44 {strides = array<i32>} : memref<128x128xf32, #tpu.memory_space<vmem>>, vector<128x128xf32>,
    } else {
    }
    return
  }
  func.func @transform_0(%arg0: i32) -> (i32, i32) {
    %c0_i32 = arith.constant 0 : i32
    %c0_i32_0 = arith.constant 0 : i32
    return %c0_i32, %arg0 : i32, i32
  }
  func.func @transform_1(%arg0: i32) -> (i32, i32) {
    %c0_i32 = arith.constant 0 : i32
    %c0_i32_0 = arith.constant 0 : i32
    return %arg0, %c0_i32 : i32, i32
  }
  func.func @transform_2(%arg0: i32) -> (i32, i32) {
    %c0_i32 = arith.constant 0 : i32
    %c0_i32_0 = arith.constant 0 : i32
    %c0_i32_1 = arith.constant 0 : i32
    return %c0_i32, %c0_i32_0 : i32, i32
  }
  func.func @transform_3(%arg0: i32) -> (i32, i32) {
    %c0_i32 = arith.constant 0 : i32
    %c0_i32_0 = arith.constant 0 : i32
    %c0_i32_1 = arith.constant 0 : i32
    return %c0_i32, %c0_i32_0 : i32, i32
  }
  func.func @transform_4(%arg0: i32) -> (i32, i32) {
    %c0_i32 = arith.constant 0 : i32
    %c0_i32_0 = arith.constant 0 : i32
    %c0_i32_1 = arith.constant 0 : i32
    return %c0_i32, %c0_i32_0 : i32, i32
  }
  func.func @transform_5(%arg0: i32) -> (i32, i32) {
    %c0_i32 = arith.constant 0 : i32
    %c0_i32_0 = arith.constant 0 : i32
    %c0_i32_1 = arith.constant 0 : i32
    return %c0_i32, %c0_i32_0 : i32, i32
  }
}

module attributes {stable_mosaic.version = 11 : i64} {
  func.func @_conv_bn_lrelu_kernel(%arg0: i32, %arg1: memref<32x2048xbf16, #tpu.memory_space<vmem>>, %arg2: memref<2048x256xbf16, #tpu.memory_space<vmem>>, %arg3: memref<1x256xf32, #tpu.memory_space<vmem>>, %arg4: memref<1x256xf32, #tpu.memory_space<vmem>>, %arg5: memref<1x256xf32, #tpu.memory_space<vmem>>, %arg6: memref<32x256xf32, #tpu.memory_space<vmem>>, %arg7: memref<32x256xf32, #tpu.memory_space<vmem>>) attributes {dimension_semantics = [#tpu.dimension_semantics<arbitrary>], iteration_bounds = array<i64: 1>, scalar_prefetch = 0 : i64, scratch_operands = 1 : i64, tpu.core_type = #tpu.core_type<tc>, window_params = [{transform_indices = @transform_0, window_bounds = array<i64: 32, 2048>}, {transform_indices = @transform_1, window_bounds = array<i64: 2048, 256>}, {pipeline_mode = #tpu.pipeline_mode<synchronous>, transform_indices = @transform_2, window_bounds = array<i64: 1, 256>}, {pipeline_mode = #tpu.pipeline_mode<synchronous>, transform_indices = @transform_3, window_bounds = array<i64: 1, 256>}, {pipeline_mode = #tpu.pipeline_mode<synchronous>, transform_indices = @transform_4, window_bounds = array<i64: 1, 256>}, {pipeline_mode = #tpu.pipeline_mode<synchronous>, transform_indices = @transform_5, window_bounds = array<i64: 32, 256>}]} {
    %c0_i32 = arith.constant 0 : i32
    %0 = arith.cmpi eq, %arg0, %c0_i32 : i32
    %1 = arith.extui %0 : i1 to i32
    %c0_i32_0 = arith.constant 0 : i32
    %2 = arith.cmpi ne, %1, %c0_i32_0 : i32
    scf.if %2 {
      %cst_10 = arith.constant 0.000000e+00 : f32
      %12 = vector.broadcast %cst_10 : f32 to vector<32x256xf32>
      %c0_11 = arith.constant 0 : index
      %c0_12 = arith.constant 0 : index
      %13 = vector.load %arg7[%c0_11, %c0_12] : memref<32x256xf32, #tpu.memory_space<vmem>>, vector<32x256xf32>
      tpu.vector_store %arg7[%c0_11, %c0_12], %12 {strides = array<i32>} : memref<32x256xf32, #tpu.memory_space<vmem>>, vector<32x256xf32>,
    } else {
    }
    %c0 = arith.constant 0 : index
    %c0_1 = arith.constant 0 : index
    %3 = vector.load %arg7[%c0, %c0_1] : memref<32x256xf32, #tpu.memory_space<vmem>>, vector<32x256xf32>
    %c0_2 = arith.constant 0 : index
    %c0_3 = arith.constant 0 : index
    %4 = vector.load %arg1[%c0_2, %c0_3] : memref<32x2048xbf16, #tpu.memory_space<vmem>>, vector<32x2048xbf16>
    %c0_4 = arith.constant 0 : index
    %c0_5 = arith.constant 0 : index
    %5 = vector.load %arg2[%c0_4, %c0_5] : memref<2048x256xbf16, #tpu.memory_space<vmem>>, vector<2048x256xbf16>
    %cst = arith.constant dense<0.000000e+00> : vector<32x256xf32>
    %6 = tpu.matmul %4, %5, %cst {dimension_numbers = #tpu.dot_dimension_numbers<[1], [0], [0], [1], [0, 0, 1, 1], [], []>} : vector<32x2048xbf16>, vector<2048x256xbf16>, vector<32x256xf32> -> vector<32x256xf32>
    %7 = arith.addf %3, %6 : vector<32x256xf32>
    %c0_6 = arith.constant 0 : index
    %c0_7 = arith.constant 0 : index
    %8 = vector.load %arg7[%c0_6, %c0_7] : memref<32x256xf32, #tpu.memory_space<vmem>>, vector<32x256xf32>
    tpu.vector_store %arg7[%c0_6, %c0_7], %7 {strides = array<i32>} : memref<32x256xf32, #tpu.memory_space<vmem>>, vector<32x256xf32>,
    %c0_i32_8 = arith.constant 0 : i32
    %9 = arith.cmpi eq, %arg0, %c0_i32_8 : i32
    %10 = arith.extui %9 : i1 to i32
    %c0_i32_9 = arith.constant 0 : i32
    %11 = arith.cmpi ne, %10, %c0_i32_9 : i32
    scf.if %11 {
      %c0_10 = arith.constant 0 : index
      %c0_11 = arith.constant 0 : index
      %12 = vector.load %arg7[%c0_10, %c0_11] : memref<32x256xf32, #tpu.memory_space<vmem>>, vector<32x256xf32>
      %c0_12 = arith.constant 0 : index
      %c0_13 = arith.constant 0 : index
      %13 = vector.load %arg3[%c0_12, %c0_13] : memref<1x256xf32, #tpu.memory_space<vmem>>, vector<1x256xf32>
      %14 = vector.broadcast %13 : vector<1x256xf32> to vector<32x256xf32>
      %15 = arith.addf %12, %14 : vector<32x256xf32>
      %cst_14 = arith.constant dense<0.000000e+00> : vector<256xf32>
      %16 = vector.multi_reduction <add>, %15, %cst_14 [0] : vector<32x256xf32> to vector<256xf32>
      %17 = vector.shape_cast %16 : vector<256xf32> to vector<1x256xf32>
      %cst_15 = arith.constant 3.200000e+01 : f32
      %18 = vector.broadcast %cst_15 : f32 to vector<1x256xf32>
      %19 = arith.divf %17, %18 : vector<1x256xf32>
      %20 = vector.broadcast %19 : vector<1x256xf32> to vector<32x256xf32>
      %21 = arith.subf %15, %20 : vector<32x256xf32>
      %22 = arith.mulf %21, %21 : vector<32x256xf32>
      %cst_16 = arith.constant dense<0.000000e+00> : vector<256xf32>
      %23 = vector.multi_reduction <add>, %22, %cst_16 [0] : vector<32x256xf32> to vector<256xf32>
      %24 = vector.shape_cast %23 : vector<256xf32> to vector<1x256xf32>
      %cst_17 = arith.constant 3.200000e+01 : f32
      %25 = vector.broadcast %cst_17 : f32 to vector<1x256xf32>
      %26 = arith.divf %24, %25 : vector<1x256xf32>
      %cst_18 = arith.constant 9.99999974E-6 : f32
      %27 = vector.broadcast %cst_18 : f32 to vector<1x256xf32>
      %28 = arith.addf %26, %27 : vector<1x256xf32>
      %29 = math.rsqrt %28 : vector<1x256xf32>
      %30 = vector.broadcast %19 : vector<1x256xf32> to vector<32x256xf32>
      %31 = arith.subf %15, %30 : vector<32x256xf32>
      %32 = vector.broadcast %29 : vector<1x256xf32> to vector<32x256xf32>
      %33 = arith.mulf %31, %32 : vector<32x256xf32>
      %c0_19 = arith.constant 0 : index
      %c0_20 = arith.constant 0 : index
      %34 = vector.load %arg4[%c0_19, %c0_20] : memref<1x256xf32, #tpu.memory_space<vmem>>, vector<1x256xf32>
      %35 = vector.broadcast %34 : vector<1x256xf32> to vector<32x256xf32>
      %36 = arith.mulf %33, %35 : vector<32x256xf32>
      %c0_21 = arith.constant 0 : index
      %c0_22 = arith.constant 0 : index
      %37 = vector.load %arg5[%c0_21, %c0_22] : memref<1x256xf32, #tpu.memory_space<vmem>>, vector<1x256xf32>
      %38 = vector.broadcast %37 : vector<1x256xf32> to vector<32x256xf32>
      %39 = arith.addf %36, %38 : vector<32x256xf32>
      %cst_23 = arith.constant 0.000000e+00 : f32
      %40 = vector.broadcast %cst_23 : f32 to vector<32x256xf32>
      %41 = arith.cmpf oge, %39, %40 : vector<32x256xf32>
      %cst_24 = arith.constant 2.000000e-01 : f32
      %42 = vector.broadcast %cst_24 : f32 to vector<32x256xf32>
      %43 = arith.mulf %42, %39 : vector<32x256xf32>
      %44 = arith.select %41, %39, %43 : vector<32x256xi1>, vector<32x256xf32>
      %c0_25 = arith.constant 0 : index
      %c0_26 = arith.constant 0 : index
      %45 = vector.load %arg6[%c0_25, %c0_26] : memref<32x256xf32, #tpu.memory_space<vmem>>, vector<32x256xf32>
      tpu.vector_store %arg6[%c0_25, %c0_26], %44 {strides = array<i32>} : memref<32x256xf32, #tpu.memory_space<vmem>>, vector<32x256xf32>,
    } else {
    }
    return
  }
  func.func @transform_0(%arg0: i32) -> (i32, i32) {
    %c0_i32 = arith.constant 0 : i32
    %c0_i32_0 = arith.constant 0 : i32
    return %c0_i32, %arg0 : i32, i32
  }
  func.func @transform_1(%arg0: i32) -> (i32, i32) {
    %c0_i32 = arith.constant 0 : i32
    %c0_i32_0 = arith.constant 0 : i32
    return %arg0, %c0_i32 : i32, i32
  }
  func.func @transform_2(%arg0: i32) -> (i32, i32) {
    %c0_i32 = arith.constant 0 : i32
    %c0_i32_0 = arith.constant 0 : i32
    %c0_i32_1 = arith.constant 0 : i32
    return %c0_i32, %c0_i32_0 : i32, i32
  }
  func.func @transform_3(%arg0: i32) -> (i32, i32) {
    %c0_i32 = arith.constant 0 : i32
    %c0_i32_0 = arith.constant 0 : i32
    %c0_i32_1 = arith.constant 0 : i32
    return %c0_i32, %c0_i32_0 : i32, i32
  }
  func.func @transform_4(%arg0: i32) -> (i32, i32) {
    %c0_i32 = arith.constant 0 : i32
    %c0_i32_0 = arith.constant 0 : i32
    %c0_i32_1 = arith.constant 0 : i32
    return %c0_i32, %c0_i32_0 : i32, i32
  }
  func.func @transform_5(%arg0: i32) -> (i32, i32) {
    %c0_i32 = arith.constant 0 : i32
    %c0_i32_0 = arith.constant 0 : i32
    %c0_i32_1 = arith.constant 0 : i32
    return %c0_i32, %c0_i32_0 : i32, i32
  }
}

module attributes {stable_mosaic.version = 11 : i64} {
  func.func @_conv_bn_lrelu_kernel(%arg0: i32, %arg1: memref<16x2048xbf16, #tpu.memory_space<vmem>>, %arg2: memref<2048x512xbf16, #tpu.memory_space<vmem>>, %arg3: memref<1x512xf32, #tpu.memory_space<vmem>>, %arg4: memref<1x512xf32, #tpu.memory_space<vmem>>, %arg5: memref<1x512xf32, #tpu.memory_space<vmem>>, %arg6: memref<16x512xf32, #tpu.memory_space<vmem>>, %arg7: memref<16x512xf32, #tpu.memory_space<vmem>>) attributes {dimension_semantics = [#tpu.dimension_semantics<arbitrary>], iteration_bounds = array<i64: 2>, scalar_prefetch = 0 : i64, scratch_operands = 1 : i64, tpu.core_type = #tpu.core_type<tc>, window_params = [{transform_indices = @transform_0, window_bounds = array<i64: 16, 2048>}, {transform_indices = @transform_1, window_bounds = array<i64: 2048, 512>}, {pipeline_mode = #tpu.pipeline_mode<synchronous>, transform_indices = @transform_2, window_bounds = array<i64: 1, 512>}, {pipeline_mode = #tpu.pipeline_mode<synchronous>, transform_indices = @transform_3, window_bounds = array<i64: 1, 512>}, {pipeline_mode = #tpu.pipeline_mode<synchronous>, transform_indices = @transform_4, window_bounds = array<i64: 1, 512>}, {pipeline_mode = #tpu.pipeline_mode<synchronous>, transform_indices = @transform_5, window_bounds = array<i64: 16, 512>}]} {
    %c0_i32 = arith.constant 0 : i32
    %0 = arith.cmpi eq, %arg0, %c0_i32 : i32
    %1 = arith.extui %0 : i1 to i32
    %c0_i32_0 = arith.constant 0 : i32
    %2 = arith.cmpi ne, %1, %c0_i32_0 : i32
    scf.if %2 {
      %cst_9 = arith.constant 0.000000e+00 : f32
      %12 = vector.broadcast %cst_9 : f32 to vector<16x512xf32>
      %c0_10 = arith.constant 0 : index
      %c0_11 = arith.constant 0 : index
      %13 = vector.load %arg7[%c0_10, %c0_11] : memref<16x512xf32, #tpu.memory_space<vmem>>, vector<16x512xf32>
      tpu.vector_store %arg7[%c0_10, %c0_11], %12 {strides = array<i32>} : memref<16x512xf32, #tpu.memory_space<vmem>>, vector<16x512xf32>,
    } else {
    }
    %c0 = arith.constant 0 : index
    %c0_1 = arith.constant 0 : index
    %3 = vector.load %arg7[%c0, %c0_1] : memref<16x512xf32, #tpu.memory_space<vmem>>, vector<16x512xf32>
    %c0_2 = arith.constant 0 : index
    %c0_3 = arith.constant 0 : index
    %4 = vector.load %arg1[%c0_2, %c0_3] : memref<16x2048xbf16, #tpu.memory_space<vmem>>, vector<16x2048xbf16>
    %c0_4 = arith.constant 0 : index
    %c0_5 = arith.constant 0 : index
    %5 = vector.load %arg2[%c0_4, %c0_5] : memref<2048x512xbf16, #tpu.memory_space<vmem>>, vector<2048x512xbf16>
    %cst = arith.constant dense<0.000000e+00> : vector<16x512xf32>
    %6 = tpu.matmul %4, %5, %cst {dimension_numbers = #tpu.dot_dimension_numbers<[1], [0], [0], [1], [0, 0, 1, 1], [], []>} : vector<16x2048xbf16>, vector<2048x512xbf16>, vector<16x512xf32> -> vector<16x512xf32>
    %7 = arith.addf %3, %6 : vector<16x512xf32>
    %c0_6 = arith.constant 0 : index
    %c0_7 = arith.constant 0 : index
    %8 = vector.load %arg7[%c0_6, %c0_7] : memref<16x512xf32, #tpu.memory_space<vmem>>, vector<16x512xf32>
    tpu.vector_store %arg7[%c0_6, %c0_7], %7 {strides = array<i32>} : memref<16x512xf32, #tpu.memory_space<vmem>>, vector<16x512xf32>,
    %c1_i32 = arith.constant 1 : i32
    %9 = arith.cmpi eq, %arg0, %c1_i32 : i32
    %10 = arith.extui %9 : i1 to i32
    %c0_i32_8 = arith.constant 0 : i32
    %11 = arith.cmpi ne, %10, %c0_i32_8 : i32
    scf.if %11 {
      %c0_9 = arith.constant 0 : index
      %c0_10 = arith.constant 0 : index
      %12 = vector.load %arg7[%c0_9, %c0_10] : memref<16x512xf32, #tpu.memory_space<vmem>>, vector<16x512xf32>
      %c0_11 = arith.constant 0 : index
      %c0_12 = arith.constant 0 : index
      %13 = vector.load %arg3[%c0_11, %c0_12] : memref<1x512xf32, #tpu.memory_space<vmem>>, vector<1x512xf32>
      %14 = vector.broadcast %13 : vector<1x512xf32> to vector<16x512xf32>
      %15 = arith.addf %12, %14 : vector<16x512xf32>
      %16 = tpu.iota {dimensions = array<i32: 0>} : vector<16x512xi32>
      %c8_i32 = arith.constant 8 : i32
      %17 = vector.broadcast %c8_i32 : i32 to vector<16x512xi32>
      %18 = arith.cmpi slt, %16, %17 : vector<16x512xi32>
      %19 = arith.extui %18 : vector<16x512xi1> to vector<16x512xi32>
      %20 = arith.sitofp %19 : vector<16x512xi32> to vector<16x512xf32>
      %21 = arith.mulf %15, %20 : vector<16x512xf32>
      %cst_13 = arith.constant dense<0.000000e+00> : vector<512xf32>
      %22 = vector.multi_reduction <add>, %21, %cst_13 [0] : vector<16x512xf32> to vector<512xf32>
      %23 = vector.shape_cast %22 : vector<512xf32> to vector<1x512xf32>
      %cst_14 = arith.constant 1.250000e-01 : f32
      %24 = vector.broadcast %cst_14 : f32 to vector<1x512xf32>
      %25 = arith.mulf %23, %24 : vector<1x512xf32>
      %26 = vector.broadcast %25 : vector<1x512xf32> to vector<16x512xf32>
      %27 = arith.subf %15, %26 : vector<16x512xf32>
      %28 = arith.mulf %27, %20 : vector<16x512xf32>
      %29 = arith.mulf %28, %28 : vector<16x512xf32>
      %cst_15 = arith.constant dense<0.000000e+00> : vector<512xf32>
      %30 = vector.multi_reduction <add>, %29, %cst_15 [0] : vector<16x512xf32> to vector<512xf32>
      %31 = vector.shape_cast %30 : vector<512xf32> to vector<1x512xf32>
      %cst_16 = arith.constant 1.250000e-01 : f32
      %32 = vector.broadcast %cst_16 : f32 to vector<1x512xf32>
      %33 = arith.mulf %31, %32 : vector<1x512xf32>
      %cst_17 = arith.constant 9.99999974E-6 : f32
      %34 = vector.broadcast %cst_17 : f32 to vector<1x512xf32>
      %35 = arith.addf %33, %34 : vector<1x512xf32>
      %36 = math.rsqrt %35 : vector<1x512xf32>
      %37 = vector.broadcast %25 : vector<1x512xf32> to vector<16x512xf32>
      %38 = arith.subf %15, %37 : vector<16x512xf32>
      %39 = vector.broadcast %36 : vector<1x512xf32> to vector<16x512xf32>
      %40 = arith.mulf %38, %39 : vector<16x512xf32>
      %c0_18 = arith.constant 0 : index
      %c0_19 = arith.constant 0 : index
      %41 = vector.load %arg4[%c0_18, %c0_19] : memref<1x512xf32, #tpu.memory_space<vmem>>, vector<1x512xf32>
      %42 = vector.broadcast %41 : vector<1x512xf32> to vector<16x512xf32>
      %43 = arith.mulf %40, %42 : vector<16x512xf32>
      %c0_20 = arith.constant 0 : index
      %c0_21 = arith.constant 0 : index
      %44 = vector.load %arg5[%c0_20, %c0_21] : memref<1x512xf32, #tpu.memory_space<vmem>>, vector<1x512xf32>
      %45 = vector.broadcast %44 : vector<1x512xf32> to vector<16x512xf32>
      %46 = arith.addf %43, %45 : vector<16x512xf32>
      %cst_22 = arith.constant 0.000000e+00 : f32
      %47 = vector.broadcast %cst_22 : f32 to vector<16x512xf32>
      %48 = arith.cmpf oge, %46, %47 : vector<16x512xf32>
      %cst_23 = arith.constant 2.000000e-01 : f32
      %49 = vector.broadcast %cst_23 : f32 to vector<16x512xf32>
      %50 = arith.mulf %49, %46 : vector<16x512xf32>
      %51 = arith.select %48, %46, %50 : vector<16x512xi1>, vector<16x512xf32>
      %c0_24 = arith.constant 0 : index
      %c0_25 = arith.constant 0 : index
      %52 = vector.load %arg6[%c0_24, %c0_25] : memref<16x512xf32, #tpu.memory_space<vmem>>, vector<16x512xf32>
      tpu.vector_store %arg6[%c0_24, %c0_25], %51 {strides = array<i32>} : memref<16x512xf32, #tpu.memory_space<vmem>>, vector<16x512xf32>,
    } else {
    }
    return
  }
  func.func @transform_0(%arg0: i32) -> (i32, i32) {
    %c0_i32 = arith.constant 0 : i32
    %c0_i32_0 = arith.constant 0 : i32
    return %c0_i32, %arg0 : i32, i32
  }
  func.func @transform_1(%arg0: i32) -> (i32, i32) {
    %c0_i32 = arith.constant 0 : i32
    %c0_i32_0 = arith.constant 0 : i32
    return %arg0, %c0_i32 : i32, i32
  }
  func.func @transform_2(%arg0: i32) -> (i32, i32) {
    %c0_i32 = arith.constant 0 : i32
    %c0_i32_0 = arith.constant 0 : i32
    %c0_i32_1 = arith.constant 0 : i32
    return %c0_i32, %c0_i32_0 : i32, i32
  }
  func.func @transform_3(%arg0: i32) -> (i32, i32) {
    %c0_i32 = arith.constant 0 : i32
    %c0_i32_0 = arith.constant 0 : i32
    %c0_i32_1 = arith.constant 0 : i32
    return %c0_i32, %c0_i32_0 : i32, i32
  }
  func.func @transform_4(%arg0: i32) -> (i32, i32) {
    %c0_i32 = arith.constant 0 : i32
    %c0_i32_0 = arith.constant 0 : i32
    %c0_i32_1 = arith.constant 0 : i32
    return %c0_i32, %c0_i32_0 : i32, i32
  }
  func.func @transform_5(%arg0: i32) -> (i32, i32) {
    %c0_i32 = arith.constant 0 : i32
    %c0_i32_0 = arith.constant 0 : i32
    %c0_i32_1 = arith.constant 0 : i32
    return %c0_i32, %c0_i32_0 : i32, i32
  }
}

module attributes {stable_mosaic.version = 11 : i64} {
  func.func @_conv_bn_lrelu_kernel(%arg0: i32, %arg1: memref<16x2048xbf16, #tpu.memory_space<vmem>>, %arg2: memref<2048x512xbf16, #tpu.memory_space<vmem>>, %arg3: memref<1x512xf32, #tpu.memory_space<vmem>>, %arg4: memref<1x512xf32, #tpu.memory_space<vmem>>, %arg5: memref<1x512xf32, #tpu.memory_space<vmem>>, %arg6: memref<16x512xf32, #tpu.memory_space<vmem>>, %arg7: memref<16x512xf32, #tpu.memory_space<vmem>>) attributes {dimension_semantics = [#tpu.dimension_semantics<arbitrary>], iteration_bounds = array<i64: 4>, scalar_prefetch = 0 : i64, scratch_operands = 1 : i64, tpu.core_type = #tpu.core_type<tc>, window_params = [{transform_indices = @transform_0, window_bounds = array<i64: 16, 2048>}, {transform_indices = @transform_1, window_bounds = array<i64: 2048, 512>}, {pipeline_mode = #tpu.pipeline_mode<synchronous>, transform_indices = @transform_2, window_bounds = array<i64: 1, 512>}, {pipeline_mode = #tpu.pipeline_mode<synchronous>, transform_indices = @transform_3, window_bounds = array<i64: 1, 512>}, {pipeline_mode = #tpu.pipeline_mode<synchronous>, transform_indices = @transform_4, window_bounds = array<i64: 1, 512>}, {pipeline_mode = #tpu.pipeline_mode<synchronous>, transform_indices = @transform_5, window_bounds = array<i64: 16, 512>}]} {
    %c0_i32 = arith.constant 0 : i32
    %0 = arith.cmpi eq, %arg0, %c0_i32 : i32
    %1 = arith.extui %0 : i1 to i32
    %c0_i32_0 = arith.constant 0 : i32
    %2 = arith.cmpi ne, %1, %c0_i32_0 : i32
    scf.if %2 {
      %cst_9 = arith.constant 0.000000e+00 : f32
      %12 = vector.broadcast %cst_9 : f32 to vector<16x512xf32>
      %c0_10 = arith.constant 0 : index
      %c0_11 = arith.constant 0 : index
      %13 = vector.load %arg7[%c0_10, %c0_11] : memref<16x512xf32, #tpu.memory_space<vmem>>, vector<16x512xf32>
      tpu.vector_store %arg7[%c0_10, %c0_11], %12 {strides = array<i32>} : memref<16x512xf32, #tpu.memory_space<vmem>>, vector<16x512xf32>,
    } else {
    }
    %c0 = arith.constant 0 : index
    %c0_1 = arith.constant 0 : index
    %3 = vector.load %arg7[%c0, %c0_1] : memref<16x512xf32, #tpu.memory_space<vmem>>, vector<16x512xf32>
    %c0_2 = arith.constant 0 : index
    %c0_3 = arith.constant 0 : index
    %4 = vector.load %arg1[%c0_2, %c0_3] : memref<16x2048xbf16, #tpu.memory_space<vmem>>, vector<16x2048xbf16>
    %c0_4 = arith.constant 0 : index
    %c0_5 = arith.constant 0 : index
    %5 = vector.load %arg2[%c0_4, %c0_5] : memref<2048x512xbf16, #tpu.memory_space<vmem>>, vector<2048x512xbf16>
    %cst = arith.constant dense<0.000000e+00> : vector<16x512xf32>
    %6 = tpu.matmul %4, %5, %cst {dimension_numbers = #tpu.dot_dimension_numbers<[1], [0], [0], [1], [0, 0, 1, 1], [], []>} : vector<16x2048xbf16>, vector<2048x512xbf16>, vector<16x512xf32> -> vector<16x512xf32>
    %7 = arith.addf %3, %6 : vector<16x512xf32>
    %c0_6 = arith.constant 0 : index
    %c0_7 = arith.constant 0 : index
    %8 = vector.load %arg7[%c0_6, %c0_7] : memref<16x512xf32, #tpu.memory_space<vmem>>, vector<16x512xf32>
    tpu.vector_store %arg7[%c0_6, %c0_7], %7 {strides = array<i32>} : memref<16x512xf32, #tpu.memory_space<vmem>>, vector<16x512xf32>,
    %c3_i32 = arith.constant 3 : i32
    %9 = arith.cmpi eq, %arg0, %c3_i32 : i32
    %10 = arith.extui %9 : i1 to i32
    %c0_i32_8 = arith.constant 0 : i32
    %11 = arith.cmpi ne, %10, %c0_i32_8 : i32
    scf.if %11 {
      %c0_9 = arith.constant 0 : index
      %c0_10 = arith.constant 0 : index
      %12 = vector.load %arg7[%c0_9, %c0_10] : memref<16x512xf32, #tpu.memory_space<vmem>>, vector<16x512xf32>
      %c0_11 = arith.constant 0 : index
      %c0_12 = arith.constant 0 : index
      %13 = vector.load %arg3[%c0_11, %c0_12] : memref<1x512xf32, #tpu.memory_space<vmem>>, vector<1x512xf32>
      %14 = vector.broadcast %13 : vector<1x512xf32> to vector<16x512xf32>
      %15 = arith.addf %12, %14 : vector<16x512xf32>
      %16 = tpu.iota {dimensions = array<i32: 0>} : vector<16x512xi32>
      %c2_i32 = arith.constant 2 : i32
      %17 = vector.broadcast %c2_i32 : i32 to vector<16x512xi32>
      %18 = arith.cmpi slt, %16, %17 : vector<16x512xi32>
      %19 = arith.extui %18 : vector<16x512xi1> to vector<16x512xi32>
      %20 = arith.sitofp %19 : vector<16x512xi32> to vector<16x512xf32>
      %21 = arith.mulf %15, %20 : vector<16x512xf32>
      %cst_13 = arith.constant dense<0.000000e+00> : vector<512xf32>
      %22 = vector.multi_reduction <add>, %21, %cst_13 [0] : vector<16x512xf32> to vector<512xf32>
      %23 = vector.shape_cast %22 : vector<512xf32> to vector<1x512xf32>
      %cst_14 = arith.constant 5.000000e-01 : f32
      %24 = vector.broadcast %cst_14 : f32 to vector<1x512xf32>
      %25 = arith.mulf %23, %24 : vector<1x512xf32>
      %26 = vector.broadcast %25 : vector<1x512xf32> to vector<16x512xf32>
      %27 = arith.subf %15, %26 : vector<16x512xf32>
      %28 = arith.mulf %27, %20 : vector<16x512xf32>
      %29 = arith.mulf %28, %28 : vector<16x512xf32>
      %cst_15 = arith.constant dense<0.000000e+00> : vector<512xf32>
      %30 = vector.multi_reduction <add>, %29, %cst_15 [0] : vector<16x512xf32> to vector<512xf32>
      %31 = vector.shape_cast %30 : vector<512xf32> to vector<1x512xf32>
      %cst_16 = arith.constant 5.000000e-01 : f32
      %32 = vector.broadcast %cst_16 : f32 to vector<1x512xf32>
      %33 = arith.mulf %31, %32 : vector<1x512xf32>
      %cst_17 = arith.constant 9.99999974E-6 : f32
      %34 = vector.broadcast %cst_17 : f32 to vector<1x512xf32>
      %35 = arith.addf %33, %34 : vector<1x512xf32>
      %36 = math.rsqrt %35 : vector<1x512xf32>
      %37 = vector.broadcast %25 : vector<1x512xf32> to vector<16x512xf32>
      %38 = arith.subf %15, %37 : vector<16x512xf32>
      %39 = vector.broadcast %36 : vector<1x512xf32> to vector<16x512xf32>
      %40 = arith.mulf %38, %39 : vector<16x512xf32>
      %c0_18 = arith.constant 0 : index
      %c0_19 = arith.constant 0 : index
      %41 = vector.load %arg4[%c0_18, %c0_19] : memref<1x512xf32, #tpu.memory_space<vmem>>, vector<1x512xf32>
      %42 = vector.broadcast %41 : vector<1x512xf32> to vector<16x512xf32>
      %43 = arith.mulf %40, %42 : vector<16x512xf32>
      %c0_20 = arith.constant 0 : index
      %c0_21 = arith.constant 0 : index
      %44 = vector.load %arg5[%c0_20, %c0_21] : memref<1x512xf32, #tpu.memory_space<vmem>>, vector<1x512xf32>
      %45 = vector.broadcast %44 : vector<1x512xf32> to vector<16x512xf32>
      %46 = arith.addf %43, %45 : vector<16x512xf32>
      %cst_22 = arith.constant 0.000000e+00 : f32
      %47 = vector.broadcast %cst_22 : f32 to vector<16x512xf32>
      %48 = arith.cmpf oge, %46, %47 : vector<16x512xf32>
      %cst_23 = arith.constant 2.000000e-01 : f32
      %49 = vector.broadcast %cst_23 : f32 to vector<16x512xf32>
      %50 = arith.mulf %49, %46 : vector<16x512xf32>
      %51 = arith.select %48, %46, %50 : vector<16x512xi1>, vector<16x512xf32>
      %c0_24 = arith.constant 0 : index
      %c0_25 = arith.constant 0 : index
      %52 = vector.load %arg6[%c0_24, %c0_25] : memref<16x512xf32, #tpu.memory_space<vmem>>, vector<16x512xf32>
      tpu.vector_store %arg6[%c0_24, %c0_25], %51 {strides = array<i32>} : memref<16x512xf32, #tpu.memory_space<vmem>>, vector<16x512xf32>,
    } else {
    }
    return
  }
  func.func @transform_0(%arg0: i32) -> (i32, i32) {
    %c0_i32 = arith.constant 0 : i32
    %c0_i32_0 = arith.constant 0 : i32
    return %c0_i32, %arg0 : i32, i32
  }
  func.func @transform_1(%arg0: i32) -> (i32, i32) {
    %c0_i32 = arith.constant 0 : i32
    %c0_i32_0 = arith.constant 0 : i32
    return %arg0, %c0_i32 : i32, i32
  }
  func.func @transform_2(%arg0: i32) -> (i32, i32) {
    %c0_i32 = arith.constant 0 : i32
    %c0_i32_0 = arith.constant 0 : i32
    %c0_i32_1 = arith.constant 0 : i32
    return %c0_i32, %c0_i32_0 : i32, i32
  }
  func.func @transform_3(%arg0: i32) -> (i32, i32) {
    %c0_i32 = arith.constant 0 : i32
    %c0_i32_0 = arith.constant 0 : i32
    %c0_i32_1 = arith.constant 0 : i32
    return %c0_i32, %c0_i32_0 : i32, i32
  }
  func.func @transform_4(%arg0: i32) -> (i32, i32) {
    %c0_i32 = arith.constant 0 : i32
    %c0_i32_0 = arith.constant 0 : i32
    %c0_i32_1 = arith.constant 0 : i32
    return %c0_i32, %c0_i32_0 : i32, i32
  }
  func.func @transform_5(%arg0: i32) -> (i32, i32) {
    %c0_i32 = arith.constant 0 : i32
    %c0_i32_0 = arith.constant 0 : i32
    %c0_i32_1 = arith.constant 0 : i32
    return %c0_i32, %c0_i32_0 : i32, i32
  }
}

</mosaic_0001>

<bundles_post_ra>
// kernel: passive_sep_enc_forward.5
= control target key start
LH: loop header
LB: loop body
LE: loop exit
PB: predicated region body
PF: predicated region fallthrough
CT: control target
= control target key end

     0   :  { %10 = vsyncpa [#allocation4], 0  ;;  %s4263_s0 = inlined_call_operand.vmem [shape: bf16[512,16], index: 0, kind: input, shape index: {}]   ;;  %s4264_s1 = inlined_call_operand.hbm [shape: bf16[16,128], index: 1, kind: input, shape index: {}]   ;;  %s4265_s2 = inlined_call_operand.hbm [shape: f32[1,128], index: 2, kind: input, shape index: {}]   ;;  %s4266_s3 = inlined_call_operand.hbm [shape: f32[1,128], index: 3, kind: input, shape index: {}]   ;;  %s4267_s4 = inlined_call_operand.hbm [shape: f32[1,128], index: 4, kind: input, shape index: {}]   ;;  %s4268_s5 = inlined_call_operand.vmem [shape: f32[512,128], index: 5, kind: output, shape index: {}]  }
   0x1   :  { %11 = vsyncpa [#allocation6], 0 }
   0x2   :  { %12 = vsyncpa [#allocation9], 0  ;;  %s2130_s18 = smov [#allocation5]   ;;  %s2131_s20 = smov [#allocation3]  }
   0x3   :  { %s33_s19 = sshll.u32 %s2130_s18, 4  ;;  %s20_s21 = sshll.u32 %s2131_s20, 4  ;;  %s34_s19 = int_to_ptr.vmem [resolvable:$true] %s33_s19  ;;  %s2166_s21 = int_to_ptr.vmem [resolvable:$true] %s20_s21 }
   0x4   :  { %s2036_s24 = scalar_lea.hbm %s4265_s2, 16 }
   0x5   :  { %p2037_p0 = scmp.ne.s32.totalorder %s4265_s2, %s2036_s24  ;;  %p2040_p1 = scmp.lt.u32.totalorder %s2036_s24, %s4265_s2 }
   0x7   :  { %p2042_p2 = pnand %p2040_p1, %p2037_p0 }
   0x9   :  { %2045 = shalt.err (!%p2042_p2)
}
   0xa   :  { %s2046_s29 = scalar_lea.vmem %s34_s19, 16  ;;  %s2050_s30 = scalar_lea.vmem %s34_s19, 32 }
   0xb   :  { %p2047_p3 = scmp.ne.s32.totalorder %s34_s19, %s2046_s29  ;;  %p2051_p4 = scmp.lt.s32.totalorder %s34_s19, %s34_s19 }
   0xc   :  { %p2052_p5 = scmp.lt.s32.totalorder %s2050_s30, %s2046_s29 }
   0xe   :  { %p2053_p6 = por %p2052_p5, %p2051_p4 }
  0x10   :  { %p2054_p7 = pnand %p2053_p6, %p2047_p3 }
  0x12   :  { %2057 = shalt.err (!%p2054_p7)
}
  0x13   :  { %36 = dma.hbm_to_vmem [thread:$0]  %s4265_s2, 16, %s34_s19, [#allocation6]  }
  0x14   :  { %s2058_s10 = scalar_lea.hbm %s4264_s1, 128 }
  0x15   :  { %p2059_p8 = scmp.ne.s32.totalorder %s4264_s1, %s2058_s10  ;;  %p2062_p9 = scmp.lt.u32.totalorder %s2058_s10, %s4264_s1 }
  0x17   :  { %p2064_p10 = pnand %p2062_p9, %p2059_p8 }
  0x19   :  { %2067 = shalt.err (!%p2064_p10)
}
  0x1a   :  { %s2068_s15 = scalar_lea.vmem %s2166_s21, 128  ;;  %p2073_p12 = scmp.lt.s32.totalorder %s2166_s21, %s2166_s21 }
  0x1b   :  { %p2069_p11 = scmp.ne.s32.totalorder %s2166_s21, %s2068_s15  ;;  %p2074_p13 = scmp.lt.s32.totalorder %s2068_s15, %s2068_s15 }
  0x1d   :  { %p2075_p0 = por %p2074_p13, %p2073_p12 }
  0x1f   :  { %p2076_p1 = pnand %p2075_p0, %p2069_p11 }
  0x21   :  { %2079 = shalt.err (!%p2076_p1)
}
  0x22   :  { %s2132_s2 = smov 64   ;;  %s2133_s16 = smov 4  }
  0x23   :  { %26 = dma.hbm_to_vmem [thread:$0]  %s4264_s1, 128, %s2166_s21, [#allocation4], %s2132_s2, %s2132_s2, %s2133_s16  }
  0x24   :  { %s2134_s19 = smov [#allocation7]   ;;  %s2135_s22 = smov [#allocation8]  }
  0x25   :  { %s43_s20 = sshll.u32 %s2134_s19, 4  ;;  %s53_s23 = sshll.u32 %s2135_s22, 4  ;;  %s44_s20 = int_to_ptr.vmem [resolvable:$true] %s43_s20  ;;  %s54_s23 = int_to_ptr.vmem [resolvable:$true] %s53_s23 }
  0x26   :  { %s2080_s26 = scalar_lea.hbm %s4266_s3, 16 }
  0x27   :  { %p2081_p2 = scmp.ne.s32.totalorder %s4266_s3, %s2080_s26  ;;  %p2084_p3 = scmp.lt.u32.totalorder %s2080_s26, %s4266_s3 }
  0x29   :  { %p2086_p4 = pnand %p2084_p3, %p2081_p2 }
  0x2b   :  { %2089 = shalt.err (!%p2086_p4)
}
  0x2c   :  { %s2090_s1 = scalar_lea.vmem %s44_s20, 16  ;;  %s2094_s21 = scalar_lea.vmem %s44_s20, 32 }
  0x2d   :  { %p2091_p5 = scmp.ne.s32.totalorder %s44_s20, %s2090_s1  ;;  %p2095_p6 = scmp.lt.s32.totalorder %s44_s20, %s44_s20 }
  0x2e   :  { %p2096_p7 = scmp.lt.s32.totalorder %s2094_s21, %s2090_s1 }
  0x30   :  { %p2097_p8 = por %p2096_p7, %p2095_p6 }
  0x32   :  { %p2098_p9 = pnand %p2097_p8, %p2091_p5 }
  0x34   :  { %2101 = shalt.err (!%p2098_p9)
}
  0x35   :  { %46 = dma.hbm_to_vmem [thread:$0]  %s4266_s3, 16, %s44_s20, [#allocation6]  }
  0x36   :  { %s2102_s10 = scalar_lea.hbm %s4267_s4, 16 }
  0x37   :  { %p2103_p10 = scmp.ne.s32.totalorder %s4267_s4, %s2102_s10  ;;  %p2106_p11 = scmp.lt.u32.totalorder %s2102_s10, %s4267_s4 }
  0x39   :  { %p2108_p12 = pnand %p2106_p11, %p2103_p10 }
  0x3b   :  { %2111 = shalt.err (!%p2108_p12)
}
  0x3c   :  { %s2112_s15 = scalar_lea.vmem %s54_s23, 16  ;;  %s2116_s2 = scalar_lea.vmem %s54_s23, 32 }
  0x3d   :  { %p2113_p13 = scmp.ne.s32.totalorder %s54_s23, %s2112_s15  ;;  %p2117_p0 = scmp.lt.s32.totalorder %s54_s23, %s54_s23 }
  0x3e   :  { %p2118_p1 = scmp.lt.s32.totalorder %s2116_s2, %s2112_s15 }
  0x40   :  { %p2119_p2 = por %p2118_p1, %p2117_p0 }
  0x42   :  { %p2120_p3 = pnand %p2119_p2, %p2113_p13 }
  0x44   :  { %2123 = shalt.err (!%p2120_p3)
}
  0x45   :  { %56 = dma.hbm_to_vmem [thread:$0]  %s4267_s4, 16, %s54_s23, [#allocation9]  }
  0x46   :  { %2124 = dma.done.wait [#allocation4], 128  }
  0x47   :  { %2125 = vsyncadd [#allocation4], 4294967168 }
  0x48   :  { %2126 = dma.done.wait [#allocation6], 32  }
  0x49   :  { %2127 = vsyncadd [#allocation6], 4294967264 }
  0x4a   :  { %2128 = dma.done.wait [#allocation9], 16  }
  0x4b   :  { %2129 = vsyncadd [#allocation9], 4294967280  ;;  %v2001_v0 = vld [vmem:[#allocation3] sm:$0xff]   ;;  %vm434_vm0 = vcmask 130048   ;;  %v2003_v2 = vld [vmem:[%s4263_s0 + $0x8] sm:$0xff]  }
  0x4c   :  { %v2002_v1 = vld [vmem:[%s4263_s0] sm:$0xff]   ;;  %1927 = vmatprep.subr.bf16.mxu0 %v2001_v0  ;;  %1993 = vmatprep.subr.bf16.mxu1 %v2001_v0  ;;  %v2004_v3 = vld [vmem:[%s4263_s0 + $0x10] sm:$0xff]   ;;  %v2005_v4 = vld [vmem:[%s4263_s0 + $0x18] sm:$0xff]  }
  0x4d   :  { %1928 = vmatpush3.bf16.msra.mxu0 %v2001_v0  ;;  %1929 = vmatprep.mubr.msk.bf16.mxu0 %vm434_vm0, %v2002_v1  ;;  %v2006_v5 = vld [vmem:[%s4263_s0 + $0x20] sm:$0xff]   ;;  %v2007_v6 = vld [vmem:[%s4263_s0 + $0x28] sm:$0xff]   ;;  %v2008_v7 = vld [vmem:[%s4263_s0 + $0x30] sm:$0xff]  }
  0x4e   :  { %1994 = vmatpush3.bf16.msra.mxu1 %v2001_v0  ;;  %v2018_v8 = vld [vmem:[%s4263_s0 + $0x80] sm:$0xff]   ;;  %v2019_v9 = vld [vmem:[%s4263_s0 + $0x88] sm:$0xff]   ;;  %v2020_v10 = vld [vmem:[%s4263_s0 + $0x90] sm:$0xff]  }
  0x4f   :  { %1961 = vmatprep.mubr.msk.bf16.mxu1 %vm434_vm0, %v2018_v8  ;;  %v2021_v11 = vld [vmem:[%s4263_s0 + $0x98] sm:$0xff]   ;;  %v2022_v12 = vld [vmem:[%s4263_s0 + $0xa0] sm:$0xff]   ;;  %v2023_v15 = vld [vmem:[%s4263_s0 + $0xa8] sm:$0xff]  }
  0x50   :  { %1930 = vmatmul.mubr.msk.bf16.vlgmr.msra.gmra.mrb[0].mxu0 %vm434_vm0, %v2003_v2  ;;  %v2009_v13 = vld [vmem:[%s4263_s0 + $0x38] sm:$0xff]   ;;  %v2010_v14 = vld [vmem:[%s4263_s0 + $0x40] sm:$0xff]   ;;  %v2024_v16 = vld [vmem:[%s4263_s0 + $0xb0] sm:$0xff]  }
  0x51   :  { %1933 = vmatprep.mubr.msk.bf16.mxu0 %vm434_vm0, %v2004_v3  ;;  %1962 = vmatmul.mubr.msk.bf16.vlgmr.msra.gmra.mrb[0].mxu1 %vm434_vm0, %v2019_v9  ;;  %v2011_v17 = vld [vmem:[%s4263_s0 + $0x48] sm:$0xff]   ;;  %v2012_v18 = vld [vmem:[%s4263_s0 + $0x50] sm:$0xff]   ;;  %v2025_v19 = vld [vmem:[%s4263_s0 + $0xb8] sm:$0xff]  }
  0x52   :  { %1965 = vmatprep.mubr.msk.bf16.mxu1 %vm434_vm0, %v2020_v10  ;;  %v2026_v20 = vld [vmem:[%s4263_s0 + $0xc0] sm:$0xff]   ;;  %v2013_v21 = vld [vmem:[%s4263_s0 + $0x58] sm:$0xff]   ;;  %v2027_v23 = vld [vmem:[%s4263_s0 + $0xc8] sm:$0xff]  }
  0x53   :  { %v2014_v22 = vld [vmem:[%s4263_s0 + $0x60] sm:$0xff]   ;;  %v2028_v24 = vld [vmem:[%s4263_s0 + $0xd0] sm:$0xff]   ;;  %v2015_v25 = vld [vmem:[%s4263_s0 + $0x68] sm:$0xff]  }
  0x54   :  { %v2016_v26 = vld [vmem:[%s4263_s0 + $0x70] sm:$0xff]   ;;  %v2029_v27 = vld [vmem:[%s4263_s0 + $0xd8] sm:$0xff]   ;;  %v2030_v28 = vld [vmem:[%s4263_s0 + $0xe0] sm:$0xff]  }
  0x55   :  { %v2017_v29 = vld [vmem:[%s4263_s0 + $0x78] sm:$0xff]   ;;  %v2031_v30 = vld [vmem:[%s4263_s0 + $0xe8] sm:$0xff]   ;;  %v2032_v31 = vld [vmem:[%s4263_s0 + $0xf0] sm:$0xff]  }
  0x56   :  { %v2033_v32 = vld [vmem:[%s4263_s0 + $0xf8] sm:$0xff]   ;;  %v2349_v34 = vld [vmem:[#allocation5] ss:$0 sm:$0xff] }
  0x58   :  { %1934 = vmatmul.mubr.msk.bf16.gmra.mrb[4].mxu0 %vm434_vm0, %v2005_v4 }
  0x59   :  { %1937 = vmatprep.mubr.msk.bf16.mxu0 %vm434_vm0, %v2006_v5  ;;  %1966 = vmatmul.mubr.msk.bf16.gmra.mrb[4].mxu1 %vm434_vm0, %v2021_v11 }
  0x5a   :  { %1969 = vmatprep.mubr.msk.bf16.mxu1 %vm434_vm0, %v2022_v12 }
  0x60   :  { %1938 = vmatmul.mubr.msk.bf16.gmra.mrb[8].mxu0 %vm434_vm0, %v2007_v6 }
  0x61   :  { %1941 = vmatprep.mubr.msk.bf16.mxu0 %vm434_vm0, %v2008_v7  ;;  %1970 = vmatmul.mubr.msk.bf16.gmra.mrb[8].mxu1 %vm434_vm0, %v2023_v15 }
  0x62   :  { %1973 = vmatprep.mubr.msk.bf16.mxu1 %vm434_vm0, %v2024_v16 }
  0x68   :  { %1942 = vmatmul.mubr.msk.bf16.gmra.mrb[12].mxu0 %vm434_vm0, %v2009_v13 }
  0x69   :  { %1945 = vmatprep.mubr.msk.bf16.mxu0 %vm434_vm0, %v2010_v14  ;;  %1974 = vmatmul.mubr.msk.bf16.gmra.mrb[12].mxu1 %vm434_vm0, %v2025_v19 }
  0x6a   :  { %1977 = vmatprep.mubr.msk.bf16.mxu1 %vm434_vm0, %v2026_v20 }
  0x70   :  { %1946 = vmatmul.mubr.msk.bf16.gmra.mrb[16].mxu0 %vm434_vm0, %v2011_v17 }
  0x71   :  { %1949 = vmatprep.mubr.msk.bf16.mxu0 %vm434_vm0, %v2012_v18  ;;  %1978 = vmatmul.mubr.msk.bf16.gmra.mrb[16].mxu1 %vm434_vm0, %v2027_v23 }
  0x72   :  { %1981 = vmatprep.mubr.msk.bf16.mxu1 %vm434_vm0, %v2028_v24 }
  0x78   :  { %1950 = vmatmul.mubr.msk.bf16.gmra.mrb[20].mxu0 %vm434_vm0, %v2013_v21 }
  0x79   :  { %1953 = vmatprep.mubr.msk.bf16.mxu0 %vm434_vm0, %v2014_v22  ;;  %1982 = vmatmul.mubr.msk.bf16.gmra.mrb[20].mxu1 %vm434_vm0, %v2029_v27 }
  0x7a   :  { %1985 = vmatprep.mubr.msk.bf16.mxu1 %vm434_vm0, %v2030_v28 }
  0x80   :  { %1954 = vmatmul.mubr.msk.bf16.gmra.mrb[24].mxu0 %vm434_vm0, %v2015_v25 }
  0x81   :  { %1957 = vmatprep.mubr.msk.bf16.mxu0 %vm434_vm0, %v2016_v26  ;;  %1986 = vmatmul.mubr.msk.bf16.gmra.mrb[24].mxu1 %vm434_vm0, %v2031_v30 }
  0x82   :  { %1989 = vmatprep.mubr.msk.bf16.mxu1 %vm434_vm0, %v2032_v31 }
  0x88   :  { %1958 = vmatmul.mubr.msk.bf16.gmra.mrb[28].mxu0 %vm434_vm0, %v2017_v29 }
  0x89   :  { %1990 = vmatmul.mubr.msk.bf16.gmra.mrb[28].mxu1 %vm434_vm0, %v2033_v32 }
 0x123   :  { %v1931_v33 = vpop.f32.mrb[0].mxu0 }
 0x124   :  { %v565_v35 = vpop.f32.mrb[1].mxu0  ;;  %v2358_v40 = vadd.f32 %v1931_v33, %v2349_v34  ;;  %v2378_v54 = vpop.f32.mrb[0].mxu1 }
 0x125   :  { %v1932_v36 = vpop.f32.mrb[2].mxu0  ;;  %v2352_v38 = vadd.f32 %v2349_v34, %v565_v35  ;;  %v2380_v55 = vpop.f32.mrb[1].mxu1 }
 0x126   :  { %v568_v37 = vpop.f32.mrb[3].mxu0  ;;  %v2363_v42 = vadd.f32 %v1932_v36, %v2349_v34  ;;  %v2386_v59 = vpop.f32.mrb[2].mxu1 }
 0x127   :  { %v2355_v39 = vadd.f32 %v2349_v34, %v568_v37  ;;  %v2388_v61 = vpop.f32.mrb[3].mxu1 }
 0x129   :  { %v1086_v41 = vadd.f32 %v2355_v39, %v2352_v38 }
 0x12b   :  { %v1087_v43 = vadd.f32 %v1086_v41, %v2358_v40  ;;  %v1935_v44 = vpop.f32.mrb[4].mxu0 }
 0x12c   :  { %v581_v45 = vpop.f32.mrb[5].mxu0  ;;  %v2375_v52 = vadd.f32 %v1935_v44, %v2349_v34  ;;  %v2402_v6 = vpop.f32.mrb[4].mxu1 }
 0x12d   :  { %v2367_v46 = vadd.f32 %v2349_v34, %v581_v45  ;;  %v1088_v47 = vadd.f32 %v1087_v43, %v2363_v42  ;;  %v1936_v48 = vpop.f32.mrb[6].mxu0  ;;  %v2404_v7 = vpop.f32.mrb[5].mxu1 }
 0x12e   :  { %v584_v49 = vpop.f32.mrb[7].mxu0  ;;  %v2383_v56 = vadd.f32 %v1936_v48, %v2349_v34  ;;  %v2410_v11 = vpop.f32.mrb[6].mxu1 }
 0x12f   :  { %v1089_v50 = vadd.f32 %v1088_v47, %v2367_v46  ;;  %v2372_v51 = vadd.f32 %v2349_v34, %v584_v49  ;;  %v2412_v13 = vpop.f32.mrb[7].mxu1 }
 0x131   :  { %v1090_v53 = vadd.f32 %v1089_v50, %v2372_v51 }
 0x133   :  { %v1091_v57 = vadd.f32 %v1090_v53, %v2375_v52  ;;  %v1939_v58 = vpop.f32.mrb[8].mxu0 }
 0x134   :  { %v597_v60 = vpop.f32.mrb[9].mxu0  ;;  %v2399_v4 = vadd.f32 %v1939_v58, %v2349_v34  ;;  %v2426_v22 = vpop.f32.mrb[8].mxu1 }
 0x135   :  { %v2391_v62 = vadd.f32 %v2349_v34, %v597_v60  ;;  %v1092_v63 = vadd.f32 %v1091_v57, %v2383_v56  ;;  %v1940_v0 = vpop.f32.mrb[10].mxu0  ;;  %v2428_v23 = vpop.f32.mrb[9].mxu1 }
 0x136   :  { %v600_v1 = vpop.f32.mrb[11].mxu0  ;;  %v2407_v8 = vadd.f32 %v1940_v0, %v2349_v34  ;;  %v2434_v27 = vpop.f32.mrb[10].mxu1 }
 0x137   :  { %v1093_v2 = vadd.f32 %v1092_v63, %v2391_v62  ;;  %v2396_v3 = vadd.f32 %v2349_v34, %v600_v1  ;;  %v2436_v29 = vpop.f32.mrb[11].mxu1 }
 0x139   :  { %v1094_v5 = vadd.f32 %v1093_v2, %v2396_v3 }
 0x13b   :  { %v1095_v9 = vadd.f32 %v1094_v5, %v2399_v4  ;;  %v1943_v10 = vpop.f32.mrb[12].mxu0 }
 0x13c   :  { %v613_v12 = vpop.f32.mrb[13].mxu0  ;;  %v2423_v20 = vadd.f32 %v1943_v10, %v2349_v34  ;;  %v2450_v43 = vpop.f32.mrb[12].mxu1 }
 0x13d   :  { %v2415_v14 = vadd.f32 %v2349_v34, %v613_v12  ;;  %v1096_v15 = vadd.f32 %v1095_v9, %v2407_v8  ;;  %v1944_v16 = vpop.f32.mrb[14].mxu0  ;;  %v2452_v44 = vpop.f32.mrb[13].mxu1 }
 0x13e   :  { %v616_v17 = vpop.f32.mrb[15].mxu0  ;;  %v2431_v24 = vadd.f32 %v1944_v16, %v2349_v34  ;;  %v2458_v49 = vpop.f32.mrb[14].mxu1 }
 0x13f   :  { %v1097_v18 = vadd.f32 %v1096_v15, %v2415_v14  ;;  %v2420_v19 = vadd.f32 %v2349_v34, %v616_v17  ;;  %v2460_v53 = vpop.f32.mrb[15].mxu1 }
 0x141   :  { %v1098_v21 = vadd.f32 %v1097_v18, %v2420_v19 }
 0x143   :  { %v1099_v25 = vadd.f32 %v1098_v21, %v2423_v20  ;;  %v1947_v26 = vpop.f32.mrb[16].mxu0 }
 0x144   :  { %v629_v28 = vpop.f32.mrb[17].mxu0  ;;  %v2447_v37 = vadd.f32 %v1947_v26, %v2349_v34  ;;  %v2474_v9 = vpop.f32.mrb[16].mxu1 }
 0x145   :  { %v2439_v30 = vadd.f32 %v2349_v34, %v629_v28  ;;  %v1100_v31 = vadd.f32 %v1099_v25, %v2431_v24  ;;  %v1948_v32 = vpop.f32.mrb[18].mxu0  ;;  %v2476_v10 = vpop.f32.mrb[17].mxu1 }
 0x146   :  { %v632_v33 = vpop.f32.mrb[19].mxu0  ;;  %v2455_v45 = vadd.f32 %v1948_v32, %v2349_v34  ;;  %v2482_v17 = vpop.f32.mrb[18].mxu1 }
 0x147   :  { %v1101_v35 = vadd.f32 %v1100_v31, %v2439_v30  ;;  %v2444_v36 = vadd.f32 %v2349_v34, %v632_v33  ;;  %v2484_v21 = vpop.f32.mrb[19].mxu1 }
 0x149   :  { %v1102_v41 = vadd.f32 %v1101_v35, %v2444_v36 }
 0x14b   :  { %v1103_v47 = vadd.f32 %v1102_v41, %v2447_v37  ;;  %v1951_v48 = vpop.f32.mrb[20].mxu0 }
 0x14c   :  { %v645_v50 = vpop.f32.mrb[21].mxu0  ;;  %v2471_v2 = vadd.f32 %v1951_v48, %v2349_v34 }
 0x14d   :  { %v2463_v57 = vadd.f32 %v2349_v34, %v645_v50  ;;  %v1104_v58 = vadd.f32 %v1103_v47, %v2455_v45  ;;  %v1952_v60 = vpop.f32.mrb[22].mxu0  ;;  %v2498_v47 = vpop.f32.mrb[20].mxu1 }
 0x14e   :  { %v648_v63 = vpop.f32.mrb[23].mxu0  ;;  %v2479_v12 = vadd.f32 %v1952_v60, %v2349_v34  ;;  %v2500_v48 = vpop.f32.mrb[21].mxu1 }
 0x14f   :  { %v1105_v0 = vadd.f32 %v1104_v58, %v2463_v57  ;;  %v2468_v1 = vadd.f32 %v2349_v34, %v648_v63  ;;  %v2506_v63 = vpop.f32.mrb[22].mxu1 }
 0x151   :  { %v1106_v5 = vadd.f32 %v1105_v0, %v2468_v1 }
 0x153   :  { %v1107_v15 = vadd.f32 %v1106_v5, %v2471_v2  ;;  %v1955_v16 = vpop.f32.mrb[24].mxu0  ;;  %v776_v5 = vpop.f32.mrb[23].mxu1 }
 0x154   :  { %v661_v18 = vpop.f32.mrb[25].mxu0  ;;  %v2495_v35 = vadd.f32 %v1955_v16, %v2349_v34 }
 0x155   :  { %v2487_v25 = vadd.f32 %v2349_v34, %v661_v18  ;;  %v1108_v26 = vadd.f32 %v1107_v15, %v2479_v12  ;;  %v1956_v28 = vpop.f32.mrb[26].mxu0 }
 0x156   :  { %v664_v31 = vpop.f32.mrb[27].mxu0  ;;  %4334 = vst [vmem:[#allocation15_spill] sm:$0xff] %v2495_v35  ;;  %v2503_v50 = vadd.f32 %v1956_v28, %v2349_v34 }
 0x157   :  { %4332 = vst [vmem:[#allocation13_spill] sm:$0xff] %v2487_v25  ;;  %v1109_v32 = vadd.f32 %v1108_v26, %v2487_v25  ;;  %v2492_v33 = vadd.f32 %v2349_v34, %v664_v31 }
 0x159   :  { %4333 = vst [vmem:[#allocation14_spill] sm:$0xff] %v2492_v33  ;;  %v1110_v41 = vadd.f32 %v1109_v32, %v2492_v33 }
 0x15b   :  { %v1111_v58 = vadd.f32 %v1110_v41, %v2495_v35  ;;  %v1959_v60 = vpop.f32.mrb[28].mxu0  ;;  %v1987_v35 = vpop.f32.mrb[24].mxu1 }
 0x15c   :  { %v677_v0 = vpop.f32.mrb[29].mxu0  ;;  %v2517_v28 = vadd.f32 %v1959_v60, %v2349_v34  ;;  %v789_v33 = vpop.f32.mrb[25].mxu1 }
 0x15d   :  { %v2509_v15 = vadd.f32 %v2349_v34, %v677_v0  ;;  %v1112_v16 = vadd.f32 %v1111_v58, %v2503_v50  ;;  %v1960_v18 = vpop.f32.mrb[30].mxu0  ;;  %v2526_v58 = vadd.f32 %v2349_v34, %v2380_v55  ;;  %v2541_v55 = vadd.f32 %v2386_v59, %v2349_v34 }
 0x15e   :  { %v680_v26 = vpop.f32.mrb[31].mxu0  ;;  %4337 = vst [vmem:[#allocation18_spill] sm:$0xff] %v2517_v28  ;;  %v2521_v25 = vadd.f32 %v1960_v18, %v2349_v34  ;;  %v2536_v18 = vadd.f32 %v2378_v54, %v2349_v34  ;;  %v2556_v59 = vadd.f32 %v2402_v6, %v2349_v34  ;;  %v2572_v6 = vadd.f32 %v2349_v34, %v2436_v29 }
 0x15f   :  { %4335 = vst [vmem:[#allocation16_spill] sm:$0xff] %v2509_v15  ;;  %v1113_v31 = vadd.f32 %v1112_v16, %v2509_v15  ;;  %v2514_v32 = vadd.f32 %v2349_v34, %v680_v26  ;;  %4339 = vst [vmem:[#allocation20_spill] sm:$0xff] %v2526_v58  ;;  %v1988_v16 = vpop.f32.mrb[26].mxu1 }
 0x160   :  { %4338 = vst [vmem:[#allocation19_spill] sm:$0xff] %v2521_v25  ;;  %v792_v15 = vpop.f32.mrb[27].mxu1  ;;  %4340 = vst [vmem:[#allocation21_spill] sm:$0xff] %v2536_v18 }
 0x161   :  { %4336 = vst [vmem:[#allocation17_spill] sm:$0xff] %v2514_v32  ;;  %v1114_v41 = vadd.f32 %v1113_v31, %v2514_v32  ;;  %v2532_v31 = vadd.f32 %v2349_v34, %v2388_v61  ;;  %4343 = vst [vmem:[#allocation24_spill] sm:$0xff] %v2556_v59 }
 0x162   :  { %4346 = vst [vmem:[#allocation27_spill] sm:$0xff] %v2572_v6 }
 0x163   :  { %v1115_v0 = vadd.f32 %v1114_v41, %v2517_v28  ;;  %v1991_v28 = vpop.f32.mrb[28].mxu1 }
 0x164   :  { %v805_v32 = vpop.f32.mrb[29].mxu1 }
 0x165   :  { %v1116_v26 = vadd.f32 %v1115_v0, %v2521_v25  ;;  %v1992_v61 = vpop.f32.mrb[30].mxu1 }
 0x167   :  { %v1117_v60 = vadd.f32 %v1116_v26, %v2526_v58  ;;  %v2546_v26 = vadd.f32 %v2349_v34, %v2404_v7  ;;  %v808_v58 = vpop.f32.mrb[31].mxu1  ;;  %v2561_v7 = vadd.f32 %v2410_v11, %v2349_v34 }
 0x169   :  { %v1118_v41 = vadd.f32 %v1117_v60, %v2532_v31  ;;  %4341 = vst [vmem:[#allocation22_spill] sm:$0xff] %v2546_v26  ;;  %v2552_v60 = vadd.f32 %v2349_v34, %v2412_v13  ;;  %4344 = vst [vmem:[#allocation25_spill] sm:$0xff] %v2561_v7 }
 0x16b   :  { %v1119_v0 = vadd.f32 %v1118_v41, %v2536_v18  ;;  %4342 = vst [vmem:[#allocation23_spill] sm:$0xff] %v2552_v60 }
 0x16d   :  { %v1120_v25 = vadd.f32 %v1119_v0, %v2541_v55  ;;  %v2566_v0 = vadd.f32 %v2349_v34, %v2428_v23 }
 0x16f   :  { %v1121_v54 = vadd.f32 %v1120_v25, %v2546_v26  ;;  %4345 = vst [vmem:[#allocation26_spill] sm:$0xff] %v2566_v0 }
 0x171   :  { %v1122_v41 = vadd.f32 %v1121_v54, %v2552_v60  ;;  %v2576_v54 = vadd.f32 %v2426_v22, %v2349_v34  ;;  %v1067_v22 = vadd.f32 %v2349_v34, %v2460_v53 }
 0x173   :  { %v1123_v18 = vadd.f32 %v1122_v41, %v2556_v59  ;;  %4347 = vst [vmem:[#allocation28_spill] sm:$0xff] %v2576_v54  ;;  %v2581_v41 = vadd.f32 %v2434_v27, %v2349_v34  ;;  %v1069_v27 = vadd.f32 %v2458_v49, %v2349_v34  ;;  %v1074_v49 = vadd.f32 %v2349_v34, %v2500_v48 }
 0x174   :  { %v1080_v48 = vadd.f32 %v1987_v35, %v2349_v34  ;;  %v1083_v59 = vadd.f32 %v2349_v34, %v808_v58 }
 0x175   :  { %v1124_v25 = vadd.f32 %v1123_v18, %v2561_v7  ;;  %4348 = vst [vmem:[#allocation29_spill] sm:$0xff] %v2581_v41  ;;  %v2586_v18 = vadd.f32 %v2349_v34, %v2452_v44  ;;  %v1082_v7 = vadd.f32 %v2349_v34, %v805_v32 }
 0x177   :  { %v1125_v13 = vadd.f32 %v1124_v25, %v2566_v0  ;;  %4349 = vst [vmem:[#allocation30_spill] sm:$0xff] %v2586_v18 }
 0x179   :  { %v1126_v11 = vadd.f32 %v1125_v13, %v2572_v6  ;;  %v1068_v13 = vadd.f32 %v2450_v43, %v2349_v34  ;;  %v1073_v43 = vadd.f32 %v2482_v17, %v2349_v34 }
 0x17b   :  { %v1127_v23 = vadd.f32 %v1126_v11, %v2576_v54  ;;  %v1070_v11 = vadd.f32 %v2349_v34, %v2476_v10  ;;  %v1075_v10 = vadd.f32 %v2349_v34, %v776_v5 }
 0x17d   :  { %v1128_v25 = vadd.f32 %v1127_v23, %v2581_v41  ;;  %v1071_v23 = vadd.f32 %v2349_v34, %v2484_v21  ;;  %v1077_v21 = vadd.f32 %v2506_v63, %v2349_v34  ;;  %v1084_v63 = vadd.f32 %v1991_v28, %v2349_v34 }
 0x17f   :  { %v1129_v29 = vadd.f32 %v1128_v25, %v2586_v18  ;;  %v1072_v25 = vadd.f32 %v2474_v9, %v2349_v34 }
 0x181   :  { %v1130_v6 = vadd.f32 %v1129_v29, %v1067_v22 }
 0x183   :  { %v1131_v0 = vadd.f32 %v1130_v6, %v1068_v13 }
 0x185   :  { %v1132_v44 = vadd.f32 %v1131_v0, %v1069_v27  ;;  %v1076_v0 = vadd.f32 %v2498_v47, %v2349_v34 }
 0x187   :  { %v1133_v54 = vadd.f32 %v1132_v44, %v1070_v11 }
 0x189   :  { %v1134_v53 = vadd.f32 %v1133_v54, %v1071_v23  ;;  %v1078_v54 = vadd.f32 %v2349_v34, %v789_v33  ;;  %v1085_v33 = vadd.f32 %v1992_v61, %v2349_v34 }
 0x18b   :  { %v1135_v29 = vadd.f32 %v1134_v53, %v1072_v25  ;;  %v1079_v53 = vadd.f32 %v2349_v34, %v792_v15 }
 0x18d   :  { %v1136_v6 = vadd.f32 %v1135_v29, %v1073_v43 }
 0x18f   :  { %v1137_v18 = vadd.f32 %v1136_v6, %v1074_v49  ;;  %v1081_v6 = vadd.f32 %v1988_v16, %v2349_v34 }
 0x191   :  { %v1138_v44 = vadd.f32 %v1137_v18, %v1075_v10 }
 0x193   :  { %v1139_v9 = vadd.f32 %v1138_v44, %v1076_v0 }
 0x195   :  { %v1140_v41 = vadd.f32 %v1139_v9, %v1077_v21 }
 0x197   :  { %v1141_v17 = vadd.f32 %v1140_v41, %v1078_v54 }
 0x199   :  { %v1142_v29 = vadd.f32 %v1141_v17, %v1079_v53 }
 0x19b   :  { %v1143_v5 = vadd.f32 %v1142_v29, %v1080_v48 }
 0x19d   :  { %v1144_v47 = vadd.f32 %v1143_v5, %v1081_v6 }
 0x19f   :  { %v1145_v18 = vadd.f32 %v1144_v47, %v1082_v7 }
 0x1a1   :  { %v1146_v44 = vadd.f32 %v1145_v18, %v1083_v59 }
 0x1a3   :  { %v1147_v41 = vadd.f32 %v1146_v44, %v1084_v63 }
 0x1a5   :  { %v1148_v9 = vadd.f32 %v1147_v41, %v1085_v33 }
 0x1a7   :  { %v1149_v15 = vrot.slane %v1148_v9, 4 }
 0x1a9   :  { %v1150_v60 = vadd.f32 %v1149_v15, %v1148_v9 }
 0x1ab   :  { %v1151_v35 = vrot.slane %v1150_v60, 2 }
 0x1ad   :  { %v1152_v17 = vadd.f32 %v1151_v35, %v1150_v60 }
 0x1af   :  { %v1153_v26 = vrot.slane %v1152_v17, 1 }
 0x1b1   :  { %v1154_v16 = vadd.f32 %v1153_v26, %v1152_v17 }
 0x1b3   :  { %v2619_v29 = vmul.f32 0.001953125, %v1154_v16 }
 0x1b5   :  { %v2622_v32 = vsub.f32 %v1067_v22, %v2619_v29  ;;  %v2625_v58 = vsub.f32 %v1068_v13, %v2619_v29  ;;  %v2628_v28 = vsub.f32 %v1069_v27, %v2619_v29  ;;  %v2631_v34 = vsub.f32 %v1070_v11, %v2619_v29 }
 0x1b6   :  { %v2634_v61 = vsub.f32 %v1071_v23, %v2619_v29  ;;  %v2637_v60 = vsub.f32 %v1072_v25, %v2619_v29  ;;  %v2640_v26 = vsub.f32 %v1073_v43, %v2619_v29  ;;  %v2643_v22 = vsub.f32 %v1074_v49, %v2619_v29 }
 0x1b7   :  { %v2646_v13 = vsub.f32 %v1075_v10, %v2619_v29  ;;  %v2649_v27 = vsub.f32 %v1076_v0, %v2619_v29  ;;  %v2652_v11 = vsub.f32 %v1077_v21, %v2619_v29  ;;  %v2655_v23 = vsub.f32 %v1078_v54, %v2619_v29 }
 0x1b8   :  { %v2658_v25 = vsub.f32 %v1079_v53, %v2619_v29  ;;  %v2661_v43 = vsub.f32 %v1080_v48, %v2619_v29  ;;  %v2664_v49 = vsub.f32 %v1081_v6, %v2619_v29  ;;  %v2667_v10 = vsub.f32 %v1082_v7, %v2619_v29 }
 0x1b9   :  { %4350 = vst [vmem:[#allocation31_spill] sm:$0xff] %v2655_v23  ;;  %v2670_v0 = vsub.f32 %v1083_v59, %v2619_v29  ;;  %v2673_v21 = vsub.f32 %v1084_v63, %v2619_v29  ;;  %v2676_v54 = vsub.f32 %v1085_v33, %v2619_v29  ;;  %v2680_v53 = vsub.f32 %v2352_v38, %v2619_v29 }
 0x1ba   :  { %4351 = vst [vmem:[#allocation32_spill] sm:$0xff] %v2658_v25  ;;  %4352 = vst [vmem:[#allocation33_spill] sm:$0xff] %v2661_v43  ;;  %v2684_v48 = vsub.f32 %v2355_v39, %v2619_v29  ;;  %v2688_v7 = vsub.f32 %v2358_v40, %v2619_v29  ;;  %v2696_v5 = vsub.f32 %v2363_v42, %v2619_v29 }
 0x1bb   :  { %4353 = vst [vmem:[#allocation34_spill] sm:$0xff] %v2664_v49  ;;  %4354 = vst [vmem:[#allocation35_spill] sm:$0xff] %v2667_v10  ;;  %v1221_v59 = vmul.f32 %v2680_v53, %v2680_v53  ;;  %v2700_v38 = vsub.f32 %v2367_v46, %v2619_v29  ;;  %v2706_v40 = vsub.f32 %v2372_v51, %v2619_v29 }
 0x1bc   :  { %v1222_v6 = vmul.f32 %v2684_v48, %v2684_v48  ;;  %v1223_v39 = vmul.f32 %v2688_v7, %v2688_v7  ;;  %v1224_v18 = vmul.f32 %v2696_v5, %v2696_v5  ;;  %v2712_v42 = vsub.f32 %v2375_v52, %v2619_v29 }
 0x1bd   :  { %v1225_v46 = vmul.f32 %v2700_v38, %v2700_v38  ;;  %v2718_v33 = vsub.f32 %v2383_v56, %v2619_v29  ;;  %v1226_v51 = vmul.f32 %v2706_v40, %v2706_v40  ;;  %v2724_v9 = vsub.f32 %v2391_v62, %v2619_v29 }
 0x1be   :  { %v1285_v47 = vadd.f32 %v1222_v6, %v1221_v59  ;;  %v1227_v52 = vmul.f32 %v2712_v42, %v2712_v42  ;;  %v2730_v35 = vsub.f32 %v2396_v3, %v2619_v29  ;;  %v2736_v16 = vsub.f32 %v2399_v4, %v2619_v29 }
 0x1bf   :  { %v1228_v56 = vmul.f32 %v2718_v33, %v2718_v33  ;;  %v1229_v62 = vmul.f32 %v2724_v9, %v2724_v9  ;;  %v2742_v6 = vsub.f32 %v2407_v8, %v2619_v29 }
 0x1c0   :  { %v1286_v63 = vadd.f32 %v1285_v47, %v1223_v39  ;;  %v1230_v3 = vmul.f32 %v2730_v35, %v2730_v35  ;;  %v2748_v47 = vsub.f32 %v2415_v14, %v2619_v29  ;;  %v1231_v4 = vmul.f32 %v2736_v16, %v2736_v16 }
 0x1c1   :  { %v1232_v8 = vmul.f32 %v2742_v6, %v2742_v6 }
 0x1c2   :  { %v1287_v44 = vadd.f32 %v1286_v63, %v1224_v18  ;;  %v2754_v63 = vsub.f32 %v2420_v19, %v2619_v29  ;;  %v1233_v14 = vmul.f32 %v2748_v47, %v2748_v47 }
 0x1c4   :  { %v1288_v41 = vadd.f32 %v1287_v44, %v1225_v46  ;;  %v2760_v44 = vsub.f32 %v2423_v20, %v2619_v29  ;;  %v1234_v19 = vmul.f32 %v2754_v63, %v2754_v63 }
 0x1c6   :  { %v1289_v15 = vadd.f32 %v1288_v41, %v1226_v51  ;;  %v2766_v41 = vsub.f32 %v2431_v24, %v2619_v29  ;;  %v1235_v20 = vmul.f32 %v2760_v44, %v2760_v44 }
 0x1c8   :  { %v1290_v17 = vadd.f32 %v1289_v15, %v1227_v52  ;;  %v2772_v15 = vsub.f32 %v2439_v30, %v2619_v29  ;;  %v1236_v24 = vmul.f32 %v2766_v41, %v2766_v41 }
 0x1ca   :  { %v1291_v59 = vadd.f32 %v1290_v17, %v1228_v56  ;;  %v2778_v17 = vsub.f32 %v2444_v36, %v2619_v29  ;;  %v1237_v30 = vmul.f32 %v2772_v15, %v2772_v15 }
 0x1cc   :  { %v1292_v39 = vadd.f32 %v1291_v59, %v1229_v62  ;;  %v2784_v59 = vsub.f32 %v2447_v37, %v2619_v29  ;;  %v1238_v36 = vmul.f32 %v2778_v17, %v2778_v17 }
 0x1ce   :  { %v1293_v18 = vadd.f32 %v1292_v39, %v1230_v3  ;;  %v2790_v39 = vsub.f32 %v2455_v45, %v2619_v29  ;;  %v1239_v37 = vmul.f32 %v2784_v59, %v2784_v59 }
 0x1d0   :  { %v1294_v46 = vadd.f32 %v1293_v18, %v1231_v4  ;;  %v2796_v18 = vsub.f32 %v2463_v57, %v2619_v29  ;;  %v1240_v45 = vmul.f32 %v2790_v39, %v2790_v39 }
 0x1d2   :  { %v1295_v51 = vadd.f32 %v1294_v46, %v1232_v8  ;;  %v2802_v46 = vsub.f32 %v2468_v1, %v2619_v29  ;;  %v1241_v57 = vmul.f32 %v2796_v18, %v2796_v18 }
 0x1d4   :  { %v1296_v52 = vadd.f32 %v1295_v51, %v1233_v14  ;;  %v2808_v51 = vsub.f32 %v2471_v2, %v2619_v29  ;;  %v1242_v1 = vmul.f32 %v2802_v46, %v2802_v46 }
 0x1d6   :  { %v1297_v56 = vadd.f32 %v1296_v52, %v1234_v19  ;;  %v2814_v52 = vsub.f32 %v2479_v12, %v2619_v29  ;;  %v1243_v2 = vmul.f32 %v2808_v51, %v2808_v51 }
 0x1d8   :  { %v1298_v62 = vadd.f32 %v1297_v56, %v1235_v20  ;;  %v4355_v56 = vld [vmem:[#allocation13_spill] sm:$0xff]  ;;  %v1244_v12 = vmul.f32 %v2814_v52, %v2814_v52 }
 0x1da   :  { %v1299_v3 = vadd.f32 %v1298_v62, %v1236_v24  ;;  %v2820_v24 = vsub.f32 %v4355_v56, %v2619_v29 }
 0x1dc   :  { %v1300_v4 = vadd.f32 %v1299_v3, %v1237_v30  ;;  %v4356_v30 = vld [vmem:[#allocation14_spill] sm:$0xff] }
 0x1dd   :  { %v2826_v3 = vsub.f32 %v4356_v30, %v2619_v29 }
 0x1de   :  { %v1301_v8 = vadd.f32 %v1300_v4, %v1238_v36  ;;  %v4357_v4 = vld [vmem:[#allocation15_spill] sm:$0xff] }
 0x1e0   :  { %v1302_v14 = vadd.f32 %v1301_v8, %v1239_v37  ;;  %v2832_v37 = vsub.f32 %v4357_v4, %v2619_v29  ;;  %v1245_v8 = vmul.f32 %v2820_v24, %v2820_v24 }
 0x1e2   :  { %v1303_v19 = vadd.f32 %v1302_v14, %v1240_v45  ;;  %4358 = vst [vmem:[#allocation13_spill] sm:$0xff] %v2832_v37  ;;  %v2838_v14 = vsub.f32 %v2503_v50, %v2619_v29  ;;  %v1247_v56 = vmul.f32 %v2832_v37, %v2832_v37 }
 0x1e4   :  { %v1304_v20 = vadd.f32 %v1303_v19, %v1241_v57  ;;  %4359 = vst [vmem:[#allocation14_spill] sm:$0xff] %v2838_v14  ;;  %v1246_v57 = vmul.f32 %v2826_v3, %v2826_v3  ;;  %v1248_v50 = vmul.f32 %v2838_v14, %v2838_v14 }
 0x1e6   :  { %v1305_v62 = vadd.f32 %v1304_v20, %v1242_v1  ;;  %v4360_v1 = vld [vmem:[#allocation16_spill] sm:$0xff] }
 0x1e7   :  { %v2844_v20 = vsub.f32 %v4360_v1, %v2619_v29  ;;  %v4364_v1 = vld [vmem:[#allocation19_spill] sm:$0xff] }
 0x1e8   :  { %v1306_v36 = vadd.f32 %v1305_v62, %v1243_v2  ;;  %v4361_v62 = vld [vmem:[#allocation17_spill] sm:$0xff]  ;;  %v2862_v37 = vsub.f32 %v4364_v1, %v2619_v29 }
 0x1e9   :  { %v2850_v30 = vsub.f32 %v4361_v62, %v2619_v29  ;;  %v4366_v62 = vld [vmem:[#allocation20_spill] sm:$0xff]  ;;  %v4369_v1 = vld [vmem:[#allocation21_spill] sm:$0xff] }
 0x1ea   :  { %v1307_v45 = vadd.f32 %v1306_v36, %v1244_v12  ;;  %v4363_v36 = vld [vmem:[#allocation18_spill] sm:$0xff]  ;;  %4365 = vst [vmem:[#allocation16_spill] sm:$0xff] %v2862_v37  ;;  %v2868_v14 = vsub.f32 %v4366_v62, %v2619_v29  ;;  %v2886_v62 = vsub.f32 %v2541_v55, %v2619_v29 }
 0x1eb   :  { %4362 = vst [vmem:[#allocation15_spill] sm:$0xff] %v2850_v30  ;;  %v2856_v4 = vsub.f32 %v4363_v36, %v2619_v29  ;;  %v2874_v36 = vsub.f32 %v2532_v31, %v2619_v29 }
 0x1ec   :  { %v1308_v19 = vadd.f32 %v1307_v45, %v1245_v8  ;;  %v1249_v8 = vmul.f32 %v2844_v20, %v2844_v20  ;;  %4367 = vst [vmem:[#allocation17_spill] sm:$0xff] %v2868_v14  ;;  %4371 = vst [vmem:[#allocation20_spill] sm:$0xff] %v2886_v62  ;;  %v1256_v55 = vmul.f32 %v2886_v62, %v2886_v62 }
 0x1ed   :  { %4368 = vst [vmem:[#allocation18_spill] sm:$0xff] %v2874_v36  ;;  %v1254_v31 = vmul.f32 %v2874_v36, %v2874_v36 }
 0x1ee   :  { %v1309_v2 = vadd.f32 %v1308_v19, %v1246_v57  ;;  %v1250_v57 = vmul.f32 %v2850_v30, %v2850_v30  ;;  %v2880_v30 = vsub.f32 %v4369_v1, %v2619_v29  ;;  %v4374_v1 = vld [vmem:[#allocation23_spill] sm:$0xff] }
 0x1f0   :  { %v1310_v12 = vadd.f32 %v1309_v2, %v1247_v56  ;;  %v1251_v56 = vmul.f32 %v2856_v4, %v2856_v4  ;;  %4370 = vst [vmem:[#allocation19_spill] sm:$0xff] %v2880_v30 }
 0x1f2   :  { %v1311_v45 = vadd.f32 %v1310_v12, %v1248_v50  ;;  %v1252_v50 = vmul.f32 %v2862_v37, %v2862_v37 }
 0x1f4   :  { %v1312_v19 = vadd.f32 %v1311_v45, %v1249_v8  ;;  %v1253_v8 = vmul.f32 %v2868_v14, %v2868_v14  ;;  %v2898_v14 = vsub.f32 %v4374_v1, %v2619_v29  ;;  %v4380_v1 = vld [vmem:[#allocation26_spill] sm:$0xff] }
 0x1f5   :  { %v2916_v62 = vsub.f32 %v4380_v1, %v2619_v29  ;;  %v4384_v1 = vld [vmem:[#allocation29_spill] sm:$0xff] }
 0x1f6   :  { %v1313_v2 = vadd.f32 %v1312_v19, %v1250_v57  ;;  %v4372_v19 = vld [vmem:[#allocation22_spill] sm:$0xff] }
 0x1f7   :  { %v2892_v37 = vsub.f32 %v4372_v19, %v2619_v29  ;;  %4375 = vst [vmem:[#allocation22_spill] sm:$0xff] %v2898_v14  ;;  %v4378_v19 = vld [vmem:[#allocation25_spill] sm:$0xff] }
 0x1f8   :  { %v1314_v12 = vadd.f32 %v1313_v2, %v1251_v56  ;;  %v1255_v56 = vmul.f32 %v2880_v30, %v2880_v30  ;;  %v2910_v30 = vsub.f32 %v4378_v19, %v2619_v29  ;;  %v4383_v19 = vld [vmem:[#allocation28_spill] sm:$0xff] }
 0x1f9   :  { %4373 = vst [vmem:[#allocation21_spill] sm:$0xff] %v2892_v37 }
 0x1fa   :  { %v1315_v45 = vadd.f32 %v1314_v12, %v1252_v50  ;;  %v4376_v12 = vld [vmem:[#allocation24_spill] sm:$0xff] }
 0x1fb   :  { %v2904_v36 = vsub.f32 %v4376_v12, %v2619_v29  ;;  %4379 = vst [vmem:[#allocation24_spill] sm:$0xff] %v2910_v30  ;;  %v4381_v12 = vld [vmem:[#allocation27_spill] sm:$0xff] }
 0x1fc   :  { %v1316_v57 = vadd.f32 %v1315_v45, %v1253_v8  ;;  %v1257_v8 = vmul.f32 %v2892_v37, %v2892_v37  ;;  %v2922_v37 = vsub.f32 %v4381_v12, %v2619_v29  ;;  %v4385_v12 = vld [vmem:[#allocation30_spill] sm:$0xff] }
 0x1fd   :  { %4377 = vst [vmem:[#allocation23_spill] sm:$0xff] %v2904_v36 }
 0x1fe   :  { %v1317_v2 = vadd.f32 %v1316_v57, %v1254_v31  ;;  %v1258_v31 = vmul.f32 %v2898_v14, %v2898_v14  ;;  %4382 = vst [vmem:[#allocation25_spill] sm:$0xff] %v2922_v37  ;;  %v2928_v14 = vsub.f32 %v4383_v19, %v2619_v29 }
 0x200   :  { %v1318_v50 = vadd.f32 %v1317_v2, %v1255_v56  ;;  %v1259_v56 = vmul.f32 %v2904_v36, %v2904_v36  ;;  %v2934_v36 = vsub.f32 %v4384_v1, %v2619_v29 }
 0x202   :  { %v1319_v45 = vadd.f32 %v1318_v50, %v1256_v55  ;;  %v1260_v55 = vmul.f32 %v2910_v30, %v2910_v30  ;;  %v2940_v30 = vsub.f32 %v4385_v12, %v2619_v29  ;;  %v1264_v19 = vmul.f32 %v2934_v36, %v2934_v36 }
 0x203   :  { %v1267_v29 = vmul.f32 %v2625_v58, %v2625_v58  ;;  %v1268_v12 = vmul.f32 %v2628_v28, %v2628_v28 }
 0x204   :  { %v1320_v57 = vadd.f32 %v1319_v45, %v1257_v8  ;;  %v1261_v8 = vmul.f32 %v2916_v62, %v2916_v62 }
 0x206   :  { %v1321_v2 = vadd.f32 %v1320_v57, %v1258_v31  ;;  %v1262_v31 = vmul.f32 %v2922_v37, %v2922_v37  ;;  %v1266_v37 = vmul.f32 %v2622_v32, %v2622_v32 }
 0x208   :  { %v1322_v50 = vadd.f32 %v1321_v2, %v1259_v56  ;;  %v1263_v56 = vmul.f32 %v2928_v14, %v2928_v14 }
 0x20a   :  { %v1323_v45 = vadd.f32 %v1322_v50, %v1260_v55  ;;  %v1265_v50 = vmul.f32 %v2940_v30, %v2940_v30 }
 0x20c   :  { %v1324_v57 = vadd.f32 %v1323_v45, %v1261_v8 }
 0x20e   :  { %v1325_v2 = vadd.f32 %v1324_v57, %v1262_v31  ;;  %v1269_v57 = vmul.f32 %v2631_v34, %v2631_v34 }
 0x210   :  { %v1326_v55 = vadd.f32 %v1325_v2, %v1263_v56  ;;  %v1270_v2 = vmul.f32 %v2634_v61, %v2634_v61 }
 0x212   :  { %v1327_v1 = vadd.f32 %v1326_v55, %v1264_v19  ;;  %v1271_v55 = vmul.f32 %v2637_v60, %v2637_v60 }
 0x214   :  { %v1328_v8 = vadd.f32 %v1327_v1, %v1265_v50  ;;  %v1272_v1 = vmul.f32 %v2640_v26, %v2640_v26 }
 0x216   :  { %v1329_v45 = vadd.f32 %v1328_v8, %v1266_v37  ;;  %v1273_v8 = vmul.f32 %v2643_v22, %v2643_v22 }
 0x218   :  { %v1330_v31 = vadd.f32 %v1329_v45, %v1267_v29  ;;  %v1274_v45 = vmul.f32 %v2646_v13, %v2646_v13 }
 0x21a   :  { %v1331_v56 = vadd.f32 %v1330_v31, %v1268_v12  ;;  %v1275_v31 = vmul.f32 %v2649_v27, %v2649_v27 }
 0x21c   :  { %v1332_v19 = vadd.f32 %v1331_v56, %v1269_v57  ;;  %v1276_v56 = vmul.f32 %v2652_v11, %v2652_v11 }
 0x21e   :  { %v1333_v50 = vadd.f32 %v1332_v19, %v1270_v2  ;;  %v1277_v19 = vmul.f32 %v2655_v23, %v2655_v23 }
 0x220   :  { %v1334_v37 = vadd.f32 %v1333_v50, %v1271_v55  ;;  %v1278_v50 = vmul.f32 %v2658_v25, %v2658_v25 }
 0x222   :  { %v1335_v29 = vadd.f32 %v1334_v37, %v1272_v1  ;;  %v1279_v37 = vmul.f32 %v2661_v43, %v2661_v43 }
 0x224   :  { %v1336_v12 = vadd.f32 %v1335_v29, %v1273_v8  ;;  %v1280_v29 = vmul.f32 %v2664_v49, %v2664_v49 }
 0x226   :  { %v1337_v57 = vadd.f32 %v1336_v12, %v1274_v45  ;;  %v1281_v12 = vmul.f32 %v2667_v10, %v2667_v10 }
 0x228   :  { %v1338_v2 = vadd.f32 %v1337_v57, %v1275_v31  ;;  %v1282_v57 = vmul.f32 %v2670_v0, %v2670_v0 }
 0x22a   :  { %v1339_v55 = vadd.f32 %v1338_v2, %v1276_v56  ;;  %v1283_v2 = vmul.f32 %v2673_v21, %v2673_v21 }
 0x22c   :  { %v1340_v1 = vadd.f32 %v1339_v55, %v1277_v19  ;;  %v1284_v55 = vmul.f32 %v2676_v54, %v2676_v54 }
 0x22e   :  { %v1341_v8 = vadd.f32 %v1340_v1, %v1278_v50 }
 0x230   :  { %v1342_v45 = vadd.f32 %v1341_v8, %v1279_v37 }
 0x232   :  { %v1343_v31 = vadd.f32 %v1342_v45, %v1280_v29 }
 0x234   :  { %v1344_v56 = vadd.f32 %v1343_v31, %v1281_v12 }
 0x236   :  { %v1345_v19 = vadd.f32 %v1344_v56, %v1282_v57  ;;  %v4393_v56 = vld [vmem:[#allocation13_spill] sm:$0xff] }
 0x238   :  { %v1346_v50 = vadd.f32 %v1345_v19, %v1283_v2  ;;  %v4394_v2 = vld [vmem:[#allocation14_spill] sm:$0xff]  ;;  %v4395_v19 = vld [vmem:[#allocation15_spill] sm:$0xff] }
 0x23a   :  { %v1347_v1 = vadd.f32 %v1346_v50, %v1284_v55  ;;  %v4396_v55 = vld [vmem:[#allocation16_spill] sm:$0xff]  ;;  %v4397_v50 = vld [vmem:[#allocation17_spill] sm:$0xff] }
 0x23c   :  { %v1348_v43 = vrot.slane %v1347_v1, 4 }
 0x23e   :  { %v1349_v49 = vadd.f32 %v1348_v43, %v1347_v1  ;;  %v4398_v1 = vld [vmem:[#allocation18_spill] sm:$0xff] }
 0x240   :  { %v1350_v37 = vrot.slane %v1349_v49, 2 }
 0x242   :  { %v1351_v8 = vadd.f32 %v1350_v37, %v1349_v49 }
 0x244   :  { %v1352_v25 = vrot.slane %v1351_v8, 1 }
 0x246   :  { %v1353_v10 = vadd.f32 %v1352_v25, %v1351_v8  ;;  %v4399_v8 = vld [vmem:[#allocation19_spill] sm:$0xff] }
 0x248   :  { %v1354_v29 = vmul.f32 0.001953125, %v1353_v10 }
 0x24a   :  { %v1355_v45 = vadd.f32 1e-05, %v1354_v29 }
 0x24c   :  { %2034 = vrsqrt.f32 %v1355_v45  ;;  %v4400_v45 = vld [vmem:[#allocation20_spill] sm:$0xff] }
 0x256   :  { %v2986_v23 = vpop.eup %2034 }
 0x257   :  { %v2990_v12 = vmul.f32 %v2986_v23, %v2680_v53  ;;  %v2994_v31 = vmul.f32 %v2986_v23, %v2684_v48  ;;  %v2998_v43 = vmul.f32 %v2986_v23, %v2688_v7  ;;  %v3002_v25 = vmul.f32 %v2986_v23, %v2696_v5 }
 0x258   :  { %v3006_v49 = vmul.f32 %v2986_v23, %v2670_v0  ;;  %v3010_v10 = vmul.f32 %v2986_v23, %v2673_v21  ;;  %v3014_v53 = vmul.f32 %v2986_v23, %v2676_v54  ;;  %v1361_v48 = vmul.f32 %v2986_v23, %v2700_v38 }
 0x259   :  { %4386 = vst [vmem:[#allocation26_spill] sm:$0xff] %v2990_v12  ;;  %4387 = vst [vmem:[#allocation27_spill] sm:$0xff] %v2994_v31  ;;  %v1362_v7 = vmul.f32 %v2986_v23, %v2706_v40  ;;  %v1363_v5 = vmul.f32 %v2986_v23, %v2712_v42  ;;  %v1364_v0 = vmul.f32 %v2986_v23, %v2718_v33  ;;  %v4409_v31 = vld [vmem:[#allocation33_spill] sm:$0xff]  ;;  %v4410_v12 = vld [vmem:[#allocation34_spill] sm:$0xff] }
 0x25a   :  { %4388 = vst [vmem:[#allocation28_spill] sm:$0xff] %v2998_v43  ;;  %4389 = vst [vmem:[#allocation29_spill] sm:$0xff] %v3002_v25  ;;  %v1365_v21 = vmul.f32 %v2986_v23, %v2724_v9  ;;  %v1366_v57 = vmul.f32 %v2986_v23, %v2730_v35  ;;  %v1367_v54 = vmul.f32 %v2986_v23, %v2736_v16  ;;  %v3112_v25 = vld [vmem:[#allocation7] ss:$0 sm:$0xff] }
 0x25b   :  { %4390 = vst [vmem:[#allocation30_spill] sm:$0xff] %v3006_v49  ;;  %4391 = vst [vmem:[#allocation36_spill] sm:$0xff] %v3010_v10  ;;  %v1368_v38 = vmul.f32 %v2986_v23, %v2742_v6  ;;  %v1369_v40 = vmul.f32 %v2986_v23, %v2748_v47  ;;  %v1370_v42 = vmul.f32 %v2986_v23, %v2754_v63  ;;  %v4404_v10 = vld [vmem:[#allocation24_spill] sm:$0xff]  ;;  %v4405_v49 = vld [vmem:[#allocation25_spill] sm:$0xff] }
 0x25c   :  { %4392 = vst [vmem:[#allocation37_spill] sm:$0xff] %v3014_v53  ;;  %v1371_v33 = vmul.f32 %v2986_v23, %v2760_v44  ;;  %v1372_v9 = vmul.f32 %v2986_v23, %v2766_v41  ;;  %v1373_v35 = vmul.f32 %v2986_v23, %v2772_v15  ;;  %v1374_v16 = vmul.f32 %v2986_v23, %v2778_v17  ;;  %v4403_v53 = vld [vmem:[#allocation23_spill] sm:$0xff]  ;;  %v4408_v43 = vld [vmem:[#allocation32_spill] sm:$0xff] }
 0x25d   :  { %v1375_v6 = vmul.f32 %v2986_v23, %v2784_v59  ;;  %v1376_v47 = vmul.f32 %v2986_v23, %v2790_v39  ;;  %v1377_v63 = vmul.f32 %v2986_v23, %v2796_v18  ;;  %v1378_v44 = vmul.f32 %v2986_v23, %v2802_v46  ;;  %4406 = vst [vmem:[#allocation13_spill] sm:$0xff] %v3112_v25 }
 0x25e   :  { %v1379_v41 = vmul.f32 %v2986_v23, %v2808_v51  ;;  %v1380_v15 = vmul.f32 %v2986_v23, %v2814_v52  ;;  %v1381_v17 = vmul.f32 %v2986_v23, %v2820_v24  ;;  %v1382_v59 = vmul.f32 %v2986_v23, %v2826_v3 }
 0x25f   :  { %v1383_v39 = vmul.f32 %v2986_v23, %v4393_v56  ;;  %v1384_v18 = vmul.f32 %v2986_v23, %v4394_v2  ;;  %v1385_v46 = vmul.f32 %v2986_v23, %v2844_v20  ;;  %v1386_v51 = vmul.f32 %v2986_v23, %v4395_v19  ;;  %v4401_v56 = vld [vmem:[#allocation21_spill] sm:$0xff]  ;;  %v4402_v19 = vld [vmem:[#allocation22_spill] sm:$0xff] }
 0x260   :  { %v1387_v52 = vmul.f32 %v2986_v23, %v2856_v4  ;;  %v1388_v24 = vmul.f32 %v2986_v23, %v4396_v55  ;;  %v1389_v3 = vmul.f32 %v2986_v23, %v4397_v50  ;;  %v1390_v37 = vmul.f32 %v2986_v23, %v4398_v1 }
 0x261   :  { %v1391_v29 = vmul.f32 %v2986_v23, %v4399_v8  ;;  %v1392_v20 = vmul.f32 %v2986_v23, %v4400_v45  ;;  %v1393_v2 = vmul.f32 %v2986_v23, %v4401_v56  ;;  %v1394_v4 = vmul.f32 %v2986_v23, %v4402_v19 }
 0x262   :  { %v1395_v55 = vmul.f32 %v2986_v23, %v4403_v53  ;;  %v1396_v50 = vmul.f32 %v2986_v23, %v4404_v10  ;;  %v1397_v1 = vmul.f32 %v2986_v23, %v2916_v62  ;;  %v1398_v8 = vmul.f32 %v2986_v23, %v4405_v49 }
 0x263   :  { %v1399_v45 = vmul.f32 %v2986_v23, %v2928_v14  ;;  %v1400_v56 = vmul.f32 %v2986_v23, %v2934_v36  ;;  %v1401_v19 = vmul.f32 %v2986_v23, %v2940_v30  ;;  %v1402_v53 = vmul.f32 %v2986_v23, %v2622_v32 }
 0x264   :  { %v1403_v10 = vmul.f32 %v2986_v23, %v2625_v58  ;;  %v1404_v62 = vmul.f32 %v2986_v23, %v2628_v28  ;;  %v1405_v49 = vmul.f32 %v2986_v23, %v2631_v34  ;;  %v1406_v14 = vmul.f32 %v2986_v23, %v2634_v61  ;;  %v4407_v61 = vld [vmem:[#allocation31_spill] sm:$0xff] }
 0x265   :  { %v1407_v36 = vmul.f32 %v2986_v23, %v2637_v60  ;;  %v1408_v30 = vmul.f32 %v2986_v23, %v2640_v26  ;;  %v1409_v32 = vmul.f32 %v2986_v23, %v2643_v22  ;;  %v1410_v58 = vmul.f32 %v2986_v23, %v2646_v13  ;;  %v4411_v13 = vld [vmem:[#allocation35_spill] sm:$0xff] }
 0x266   :  { %v1411_v28 = vmul.f32 %v2986_v23, %v2649_v27  ;;  %v1412_v34 = vmul.f32 %v2986_v23, %v2652_v11  ;;  %v1413_v60 = vmul.f32 %v2986_v23, %v4407_v61  ;;  %v1414_v26 = vmul.f32 %v2986_v23, %v4408_v43  ;;  %v4412_v11 = vld [vmem:[#allocation26_spill] sm:$0xff]  ;;  %v4413_v61 = vld [vmem:[#allocation13_spill] sm:$0xff] }
 0x267   :  { %v1415_v25 = vmul.f32 %v2986_v23, %v4409_v31  ;;  %v1416_v22 = vmul.f32 %v2986_v23, %v4410_v12  ;;  %v1417_v27 = vmul.f32 %v2986_v23, %v4411_v13  ;;  %v3134_v43 = vmul.f32 %v4413_v61, %v4412_v11  ;;  %v4415_v31 = vld [vmem:[#allocation27_spill] sm:$0xff]  ;;  %v4417_v13 = vld [vmem:[#allocation28_spill] sm:$0xff]  ;;  %v4419_v11 = vld [vmem:[#allocation29_spill] sm:$0xff] }
 0x268   :  { %v3138_v12 = vmul.f32 %v4413_v61, %v4415_v31  ;;  %v3142_v23 = vmul.f32 %v4413_v61, %v4417_v13  ;;  %v3149_v31 = vmul.f32 %v4413_v61, %v1361_v48  ;;  %v3155_v13 = vmul.f32 %v4413_v61, %v1363_v5 }
 0x269   :  { %4414 = vst [vmem:[#allocation14_spill] sm:$0xff] %v3134_v43  ;;  %v3146_v43 = vmul.f32 %v4413_v61, %v4419_v11  ;;  %v3161_v11 = vmul.f32 %v4413_v61, %v1365_v21  ;;  %v3167_v48 = vmul.f32 %v4413_v61, %v1367_v54  ;;  %v3176_v5 = vmul.f32 %v4413_v61, %v1370_v42 }
 0x26a   :  { %4416 = vst [vmem:[#allocation15_spill] sm:$0xff] %v3138_v12  ;;  %4418 = vst [vmem:[#allocation16_spill] sm:$0xff] %v3142_v23  ;;  %v3152_v12 = vmul.f32 %v4413_v61, %v1362_v7  ;;  %v3158_v23 = vmul.f32 %v4413_v61, %v1364_v0  ;;  %v3173_v7 = vmul.f32 %v4413_v61, %v1369_v40 }
 0x26b   :  { %4420 = vst [vmem:[#allocation17_spill] sm:$0xff] %v3146_v43  ;;  %4421 = vst [vmem:[#allocation18_spill] sm:$0xff] %v3149_v31  ;;  %v3164_v43 = vmul.f32 %v4413_v61, %v1366_v57  ;;  %v3170_v31 = vmul.f32 %v4413_v61, %v1368_v38  ;;  %v3179_v0 = vmul.f32 %v4413_v61, %v1371_v33 }
 0x26c   :  { %v3182_v21 = vmul.f32 %v4413_v61, %v1372_v9  ;;  %v3185_v57 = vmul.f32 %v4413_v61, %v1373_v35  ;;  %v3188_v54 = vmul.f32 %v4413_v61, %v1374_v16  ;;  %v3191_v38 = vmul.f32 %v4413_v61, %v1375_v6 }
 0x26d   :  { %v3194_v40 = vmul.f32 %v4413_v61, %v1376_v47  ;;  %v3197_v42 = vmul.f32 %v4413_v61, %v1377_v63  ;;  %v3200_v33 = vmul.f32 %v4413_v61, %v1378_v44  ;;  %v3203_v9 = vmul.f32 %v4413_v61, %v1379_v41 }
 0x26e   :  { %v3206_v35 = vmul.f32 %v4413_v61, %v1380_v15  ;;  %v3209_v16 = vmul.f32 %v4413_v61, %v1381_v17  ;;  %v3212_v6 = vmul.f32 %v4413_v61, %v1382_v59  ;;  %v3215_v47 = vmul.f32 %v4413_v61, %v1383_v39 }
 0x26f   :  { %v3218_v63 = vmul.f32 %v4413_v61, %v1384_v18  ;;  %v3221_v44 = vmul.f32 %v4413_v61, %v1385_v46  ;;  %v3224_v41 = vmul.f32 %v4413_v61, %v1386_v51  ;;  %v3227_v15 = vmul.f32 %v4413_v61, %v1387_v52 }
 0x270   :  { %v3230_v17 = vmul.f32 %v4413_v61, %v1388_v24  ;;  %v3233_v59 = vmul.f32 %v4413_v61, %v1389_v3  ;;  %v3236_v39 = vmul.f32 %v4413_v61, %v1390_v37  ;;  %v3239_v18 = vmul.f32 %v4413_v61, %v1391_v29 }
 0x271   :  { %v3242_v46 = vmul.f32 %v4413_v61, %v1392_v20  ;;  %v3245_v51 = vmul.f32 %v4413_v61, %v1393_v2  ;;  %v3248_v52 = vmul.f32 %v4413_v61, %v1394_v4  ;;  %v3251_v24 = vmul.f32 %v4413_v61, %v1395_v55 }
 0x272   :  { %v3254_v3 = vmul.f32 %v4413_v61, %v1396_v50  ;;  %v3257_v37 = vmul.f32 %v4413_v61, %v1397_v1  ;;  %v3260_v29 = vmul.f32 %v4413_v61, %v1398_v8  ;;  %v3263_v20 = vmul.f32 %v4413_v61, %v1399_v45 }
 0x273   :  { %v3266_v2 = vmul.f32 %v4413_v61, %v1400_v56  ;;  %v3269_v4 = vmul.f32 %v4413_v61, %v1401_v19  ;;  %v3272_v55 = vmul.f32 %v4413_v61, %v1402_v53  ;;  %v3275_v50 = vmul.f32 %v4413_v61, %v1403_v10 }
 0x274   :  { %v3278_v1 = vmul.f32 %v4413_v61, %v1404_v62  ;;  %v3281_v8 = vmul.f32 %v4413_v61, %v1405_v49  ;;  %v3284_v45 = vmul.f32 %v4413_v61, %v1406_v14  ;;  %v3287_v56 = vmul.f32 %v4413_v61, %v1407_v36  ;;  %v3301_v49 = vld [vmem:[#allocation8] ss:$0 sm:$0xff] }
 0x275   :  { %v3290_v19 = vmul.f32 %v4413_v61, %v1408_v30  ;;  %v3293_v53 = vmul.f32 %v4413_v61, %v1409_v32  ;;  %v3296_v10 = vmul.f32 %v4413_v61, %v1410_v58  ;;  %v3299_v62 = vmul.f32 %v4413_v61, %v1411_v28 }
 0x276   :  { %v3304_v14 = vmul.f32 %v4413_v61, %v1412_v34  ;;  %v3307_v36 = vmul.f32 %v4413_v61, %v1413_v60  ;;  %v3310_v30 = vmul.f32 %v4413_v61, %v1414_v26  ;;  %v3313_v32 = vmul.f32 %v4413_v61, %v1415_v25  ;;  %v4429_v34 = vld [vmem:[#allocation36_spill] sm:$0xff]  ;;  %v4432_v25 = vld [vmem:[#allocation14_spill] sm:$0xff] }
 0x277   :  { %4422 = vst [vmem:[#allocation19_spill] sm:$0xff] %v3296_v10  ;;  %4423 = vst [vmem:[#allocation20_spill] sm:$0xff] %v3299_v62  ;;  %v3316_v58 = vmul.f32 %v4413_v61, %v1416_v22  ;;  %v3319_v28 = vmul.f32 %v4413_v61, %v1417_v27  ;;  %v4427_v62 = vld [vmem:[#allocation30_spill] sm:$0xff]  ;;  %v3327_v60 = vmul.f32 %v4413_v61, %v4429_v34  ;;  %v4433_v22 = vld [vmem:[#allocation15_spill] sm:$0xff] }
 0x278   :  { %4424 = vst [vmem:[#allocation21_spill] sm:$0xff] %v3307_v36  ;;  %4425 = vst [vmem:[#allocation22_spill] sm:$0xff] %v3313_v32  ;;  %v3323_v10 = vmul.f32 %v4413_v61, %v4427_v62  ;;  %v4431_v36 = vld [vmem:[#allocation37_spill] sm:$0xff]  ;;  %v3335_v32 = vadd.f32 %v3301_v49, %v4432_v25  ;;  %v3339_v27 = vadd.f32 %v3301_v49, %v4433_v22 }
 0x279   :  { %4426 = vst [vmem:[#allocation23_spill] sm:$0xff] %v3319_v28  ;;  %4430 = vst [vmem:[#allocation25_spill] sm:$0xff] %v3327_v60  ;;  %v3331_v26 = vmul.f32 %v4413_v61, %v4431_v36  ;;  %v4434_v28 = vld [vmem:[#allocation16_spill] sm:$0xff]  ;;  %v4436_v60 = vld [vmem:[#allocation18_spill] sm:$0xff]  ;;  %v3355_v36 = vadd.f32 %v3301_v49, %v3152_v12  ;;  %v3359_v25 = vadd.f32 %v3301_v49, %v3155_v13 }
 0x27a   :  { %4428 = vst [vmem:[#allocation24_spill] sm:$0xff] %v3323_v10  ;;  %v3343_v62 = vadd.f32 %v3301_v49, %v4434_v28  ;;  %v4435_v10 = vld [vmem:[#allocation17_spill] sm:$0xff]  ;;  %v3351_v61 = vadd.f32 %v3301_v49, %v4436_v60  ;;  %v3363_v28 = vadd.f32 %v3301_v49, %v3158_v23  ;;  %v3371_v60 = vadd.f32 %v3301_v49, %v3164_v43 }
 0x27b   :  { %v3347_v34 = vadd.f32 %v3301_v49, %v4435_v10  ;;  %v3367_v10 = vadd.f32 %v3301_v49, %v3161_v11  ;;  %v3375_v12 = vadd.f32 %v3301_v49, %v3167_v48  ;;  %v3379_v13 = vadd.f32 %v3301_v49, %v3170_v31 }
 0x27c   :  { %v3383_v23 = vadd.f32 %v3301_v49, %v3173_v7  ;;  %v3387_v11 = vadd.f32 %v3301_v49, %v3176_v5  ;;  %v3391_v43 = vadd.f32 %v3301_v49, %v3179_v0  ;;  %v3395_v48 = vadd.f32 %v3301_v49, %v3182_v21 }
 0x27d   :  { %v3399_v31 = vadd.f32 %v3301_v49, %v3185_v57  ;;  %v3403_v7 = vadd.f32 %v3301_v49, %v3188_v54  ;;  %v3407_v5 = vadd.f32 %v3301_v49, %v3191_v38  ;;  %v3411_v0 = vadd.f32 %v3301_v49, %v3194_v40 }
 0x27e   :  { %v3415_v21 = vadd.f32 %v3301_v49, %v3197_v42  ;;  %v3419_v57 = vadd.f32 %v3301_v49, %v3200_v33  ;;  %v3423_v54 = vadd.f32 %v3301_v49, %v3203_v9  ;;  %v3427_v38 = vadd.f32 %v3301_v49, %v3206_v35  ;;  %v4444_v22 = vld [vmem:[#allocation19_spill] sm:$0xff] }
 0x27f   :  { %v3431_v40 = vadd.f32 %v3301_v49, %v3209_v16  ;;  %v3435_v42 = vadd.f32 %v3301_v49, %v3212_v6  ;;  %v3439_v33 = vadd.f32 %v3301_v49, %v3215_v47  ;;  %v3443_v9 = vadd.f32 %v3301_v49, %v3218_v63 }
 0x280   :  { %v3447_v35 = vadd.f32 %v3301_v49, %v3221_v44  ;;  %v3451_v16 = vadd.f32 %v3301_v49, %v3224_v41  ;;  %v3455_v6 = vadd.f32 %v3301_v49, %v3227_v15  ;;  %v3459_v47 = vadd.f32 %v3301_v49, %v3230_v17 }
 0x281   :  { %v3463_v63 = vadd.f32 %v3301_v49, %v3233_v59  ;;  %v3467_v44 = vadd.f32 %v3301_v49, %v3236_v39  ;;  %v3471_v41 = vadd.f32 %v3301_v49, %v3239_v18  ;;  %v3475_v15 = vadd.f32 %v3301_v49, %v3242_v46 }
 0x282   :  { %v3479_v17 = vadd.f32 %v3301_v49, %v3245_v51  ;;  %v3483_v59 = vadd.f32 %v3301_v49, %v3248_v52  ;;  %v3487_v39 = vadd.f32 %v3301_v49, %v3251_v24  ;;  %v3491_v18 = vadd.f32 %v3301_v49, %v3254_v3 }
 0x283   :  { %v3495_v46 = vadd.f32 %v3301_v49, %v3257_v37  ;;  %v3499_v51 = vadd.f32 %v3301_v49, %v3260_v29  ;;  %v3503_v52 = vadd.f32 %v3301_v49, %v3263_v20  ;;  %v3507_v24 = vadd.f32 %v3301_v49, %v3266_v2 }
 0x284   :  { %v3511_v3 = vadd.f32 %v3301_v49, %v3269_v4  ;;  %v3515_v37 = vadd.f32 %v3301_v49, %v3272_v55  ;;  %v3519_v29 = vadd.f32 %v3301_v49, %v3275_v50  ;;  %v3523_v20 = vadd.f32 %v3301_v49, %v3278_v1 }
 0x285   :  { %v3527_v2 = vadd.f32 %v3301_v49, %v3281_v8  ;;  %v3531_v4 = vadd.f32 %v3301_v49, %v3284_v45  ;;  %v3535_v55 = vadd.f32 %v3301_v49, %v3287_v56  ;;  %v3539_v50 = vadd.f32 %v3301_v49, %v3290_v19 }
 0x286   :  { %4437 = vst [vmem:[#allocation31_spill] sm:$0xff] %v3511_v3  ;;  %4438 = vst [vmem:[#allocation32_spill] sm:$0xff] %v3515_v37  ;;  %v3543_v1 = vadd.f32 %v3301_v49, %v3293_v53  ;;  %v3547_v8 = vadd.f32 %v3301_v49, %v4444_v22  ;;  %v3555_v56 = vadd.f32 %v3301_v49, %v3304_v14  ;;  %vm1563_vm1 = vcmp.ge.f32.partialorder %v3335_v32, 0.0 }
 0x287   :  { %4439 = vst [vmem:[#allocation33_spill] sm:$0xff] %v3527_v2  ;;  %4440 = vst [vmem:[#allocation34_spill] sm:$0xff] %v3531_v4  ;;  %v4446_v2 = vld [vmem:[#allocation20_spill] sm:$0xff]  ;;  %v3563_v53 = vadd.f32 %v3301_v49, %v3310_v30  ;;  %vm1564_vm2 = vcmp.ge.f32.partialorder %v3339_v27, 0.0  ;;  %vm1565_vm3 = vcmp.ge.f32.partialorder %v3343_v62, 0.0  ;;  %vm1566_vm4 = vcmp.ge.f32.partialorder %v3347_v34, 0.0 }
 0x288   :  { %4441 = vst [vmem:[#allocation35_spill] sm:$0xff] %v3535_v55  ;;  %4442 = vst [vmem:[#allocation26_spill] sm:$0xff] %v3539_v50  ;;  %v3551_v45 = vadd.f32 %v3301_v49, %v4446_v2  ;;  %v4449_v55 = vld [vmem:[#allocation21_spill] sm:$0xff]  ;;  %v3571_v2 = vadd.f32 %v3301_v49, %v3316_v58  ;;  %vm1567_vm5 = vcmp.ge.f32.partialorder %v3351_v61, 0.0  ;;  %vm1568_vm6 = vcmp.ge.f32.partialorder %v3355_v36, 0.0 }
 0x289   :  { %4443 = vst [vmem:[#allocation13_spill] sm:$0xff] %v3543_v1  ;;  %4445 = vst [vmem:[#allocation27_spill] sm:$0xff] %v3547_v8  ;;  %v3559_v19 = vadd.f32 %v3301_v49, %v4449_v55  ;;  %v4452_v1 = vld [vmem:[#allocation22_spill] sm:$0xff]  ;;  %vm1569_vm7 = vcmp.ge.f32.partialorder %v3359_v25, 0.0  ;;  %vm1570_vm8 = vcmp.ge.f32.partialorder %v3363_v28, 0.0  ;;  %vm1571_vm9 = vcmp.ge.f32.partialorder %v3367_v10, 0.0 }
 0x28a   :  { %4447 = vst [vmem:[#allocation28_spill] sm:$0xff] %v3551_v45  ;;  %4448 = vst [vmem:[#allocation29_spill] sm:$0xff] %v3555_v56  ;;  %v3567_v22 = vadd.f32 %v3301_v49, %v4452_v1  ;;  %v4455_v45 = vld [vmem:[#allocation23_spill] sm:$0xff]  ;;  %v4457_v56 = vld [vmem:[#allocation24_spill] sm:$0xff]  ;;  %vm1572_vm10 = vcmp.ge.f32.partialorder %v3371_v60, 0.0  ;;  %vm1573_vm11 = vcmp.ge.f32.partialorder %v3375_v12, 0.0 }
 0x28b   :  { %4450 = vst [vmem:[#allocation30_spill] sm:$0xff] %v3559_v19  ;;  %4451 = vst [vmem:[#allocation36_spill] sm:$0xff] %v3563_v53  ;;  %v3575_v14 = vadd.f32 %v3301_v49, %v4455_v45  ;;  %v3579_v55 = vadd.f32 %v3301_v49, %v4457_v56  ;;  %v4459_v30 = vld [vmem:[#allocation25_spill] sm:$0xff]  ;;  %v1627_v1 = vmul.f32 0.2, %v3335_v32  ;;  %vm1574_vm12 = vcmp.ge.f32.partialorder %v3379_v13, 0.0 }
 0x28c   :  { %4453 = vst [vmem:[#allocation37_spill] sm:$0xff] %v3567_v22  ;;  %4454 = vst [vmem:[#allocation14_spill] sm:$0xff] %v3571_v2  ;;  %v3592_v58 = vadd.f32 %v3301_v49, %v4459_v30  ;;  %v1628_v45 = vmul.f32 0.2, %v3339_v27  ;;  %v1629_v56 = vmul.f32 0.2, %v3343_v62 }
 0x28d   :  { %4456 = vst [vmem:[#allocation15_spill] sm:$0xff] %v3575_v14  ;;  %4458 = vst [vmem:[#allocation16_spill] sm:$0xff] %v3579_v55  ;;  %v3600_v55 = vadd.f32 %v3301_v49, %v3331_v26  ;;  %v1630_v14 = vmul.f32 0.2, %v3347_v34  ;;  %v1631_v2 = vmul.f32 0.2, %v3351_v61  ;;  %v1691_v49 = vsel %vm1563_vm1, %v3335_v32, %v1627_v1 }
 0x28e   :  { %4460 = vst [vmem:[#allocation17_spill] sm:$0xff] %v3592_v58  ;;  %v1632_v30 = vmul.f32 0.2, %v3355_v36  ;;  %v1633_v58 = vmul.f32 0.2, %v3359_v25  ;;  %vm1575_vm13 = vcmp.ge.f32.partialorder %v3383_v23, 0.0  ;;  %v1692_v8 = vsel %vm1564_vm2, %v3339_v27, %v1628_v45  ;;  %1755 = vst [vmem:[%s4268_s5] sm:$0xff] %v1691_v49 }
 0x28f   :  { %4461 = vst [vmem:[#allocation18_spill] sm:$0xff] %v3600_v55  ;;  %v1634_v22 = vmul.f32 0.2, %v3363_v28  ;;  %v1635_v53 = vmul.f32 0.2, %v3367_v10  ;;  %vm1576_vm14 = vcmp.ge.f32.partialorder %v3387_v11, 0.0  ;;  %v1693_v4 = vsel %vm1565_vm3, %v3343_v62, %v1629_v56 }
 0x290   :  { %v1636_v26 = vmul.f32 0.2, %v3371_v60  ;;  %v3616_v55 = vmul.f32 0.2, %v3375_v12  ;;  %v3619_v19 = vmul.f32 0.2, %v3379_v13 }
 0x291   :  { %v3629_v32 = vmul.f32 0.2, %v3383_v23  ;;  %v3632_v1 = vmul.f32 0.2, %v3387_v11  ;;  %v3635_v50 = vmul.f32 0.2, %v3391_v43 }
 0x292   :  { %1756 = vst [vmem:[%s4268_s5 + $0x8] sm:$0xff] %v1692_v8  ;;  %vm1577_vm15 = vcmp.ge.f32.partialorder %v3391_v43, 0.0  ;;  %v3645_v27 = vmul.f32 0.2, %v3395_v48  ;;  %v3648_v45 = vmul.f32 0.2, %v3399_v31 }
 0x293   :  { %4462 = vst [vmem:[#allocation19_spill] sm:$0xff] %v3635_v50  ;;  %v3651_v49 = vmul.f32 0.2, %v3403_v7  ;;  %v1694_v50 = vsel %vm1566_vm4, %v3347_v34, %v1630_v14  ;;  %1757 = vst [vmem:[%s4268_s5 + $0x10] sm:$0xff] %v1693_v4  ;;  %vm1578_vm0 = vcmp.ge.f32.partialorder %v3395_v48, 0.0  ;;  %vm1579_vm1 = vcmp.ge.f32.partialorder %v3399_v31, 0.0 }
 0x294   :  { %v3661_v62 = vmul.f32 0.2, %v3407_v5  ;;  %v3664_v8 = vmul.f32 0.2, %v3411_v0  ;;  %v3667_v56 = vmul.f32 0.2, %v3415_v21 }
 0x295   :  { %4463 = vst [vmem:[#allocation20_spill] sm:$0xff] %v3651_v49  ;;  %v1695_v49 = vsel %vm1567_vm5, %v3351_v61, %v1631_v2  ;;  %1758 = vst [vmem:[%s4268_s5 + $0x18] sm:$0xff] %v1694_v50  ;;  %v3677_v34 = vmul.f32 0.2, %v3419_v57  ;;  %v3680_v4 = vmul.f32 0.2, %v3423_v54 }
 0x296   :  { %4464 = vst [vmem:[#allocation21_spill] sm:$0xff] %v3667_v56  ;;  %v3683_v14 = vmul.f32 0.2, %v3427_v38  ;;  %v1696_v56 = vsel %vm1568_vm6, %v3355_v36, %v1632_v30  ;;  %1759 = vst [vmem:[%s4268_s5 + $0x20] sm:$0xff] %v1695_v49  ;;  %vm1580_vm2 = vcmp.ge.f32.partialorder %v3403_v7, 0.0  ;;  %vm1581_vm3 = vcmp.ge.f32.partialorder %v3407_v5, 0.0 }
 0x297   :  { %v3693_v61 = vmul.f32 0.2, %v3431_v40  ;;  %v3696_v50 = vmul.f32 0.2, %v3435_v42  ;;  %v3699_v2 = vmul.f32 0.2, %v3439_v33 }
 0x298   :  { %4465 = vst [vmem:[#allocation22_spill] sm:$0xff] %v3683_v14  ;;  %v1697_v14 = vsel %vm1569_vm7, %v3359_v25, %v1633_v58  ;;  %1760 = vst [vmem:[%s4268_s5 + $0x28] sm:$0xff] %v1696_v56  ;;  %v3709_v36 = vmul.f32 0.2, %v3443_v9  ;;  %v3712_v30 = vmul.f32 0.2, %v3447_v35 }
 0x299   :  { %4466 = vst [vmem:[#allocation23_spill] sm:$0xff] %v3699_v2  ;;  %v3715_v49 = vmul.f32 0.2, %v3451_v16  ;;  %v1698_v2 = vsel %vm1570_vm8, %v3363_v28, %v1634_v22  ;;  %1761 = vst [vmem:[%s4268_s5 + $0x30] sm:$0xff] %v1697_v14  ;;  %vm1582_vm4 = vcmp.ge.f32.partialorder %v3411_v0, 0.0  ;;  %v1699_v28 = vsel %vm1571_vm9, %v3367_v10, %v1635_v53 }
 0x29a   :  { %v3727_v25 = vmul.f32 0.2, %v3455_v6  ;;  %v3730_v58 = vmul.f32 0.2, %v3459_v47  ;;  %v3733_v56 = vmul.f32 0.2, %v3463_v63  ;;  %v1700_v53 = vsel %vm1572_vm10, %v3371_v60, %v1636_v26 }
 0x29b   :  { %1762 = vst [vmem:[%s4268_s5 + $0x38] sm:$0xff] %v1698_v2  ;;  %vm1585_vm7 = vcmp.ge.f32.partialorder %v3423_v54, 0.0  ;;  %v3746_v22 = vmul.f32 0.2, %v3467_v44  ;;  %v3749_v14 = vmul.f32 0.2, %v3471_v41  ;;  %v1701_v26 = vsel %vm1573_vm11, %v3375_v12, %v3616_v55 }
 0x29c   :  { %v3752_v10 = vmul.f32 0.2, %v3475_v15  ;;  %1763 = vst [vmem:[%s4268_s5 + $0x40] sm:$0xff] %v1699_v28  ;;  %vm1589_vm9 = vcmp.ge.f32.partialorder %v3439_v33, 0.0  ;;  %v3765_v2 = vmul.f32 0.2, %v3479_v17  ;;  %v1702_v55 = vsel %vm1574_vm12, %v3379_v13, %v3619_v19 }
 0x29d   :  { %v3771_v60 = vmul.f32 0.2, %v3487_v39  ;;  %1764 = vst [vmem:[%s4268_s5 + $0x48] sm:$0xff] %v1700_v53  ;;  %vm1593_vm10 = vcmp.ge.f32.partialorder %v3455_v6, 0.0  ;;  %v3785_v28 = vmul.f32 0.2, %v3491_v18  ;;  %v1703_v19 = vsel %vm1575_vm13, %v3383_v23, %v3629_v32 }
 0x29e   :  { %4467 = vst [vmem:[#allocation24_spill] sm:$0xff] %v3752_v10  ;;  %v3768_v10 = vmul.f32 0.2, %v3483_v59  ;;  %v3791_v12 = vmul.f32 0.2, %v3499_v51  ;;  %1765 = vst [vmem:[%s4268_s5 + $0x50] sm:$0xff] %v1701_v26  ;;  %v1704_v32 = vsel %vm1576_vm14, %v3387_v11, %v3632_v1 }
 0x29f   :  { %4468 = vst [vmem:[#allocation25_spill] sm:$0xff] %v3771_v60  ;;  %v3788_v60 = vmul.f32 0.2, %v3495_v46  ;;  %vm1597_vm11 = vcmp.ge.f32.partialorder %v3471_v41, 0.0  ;;  %v3805_v53 = vmul.f32 0.2, %v3503_v52 }
 0x2a0   :  { %4469 = vst [vmem:[#allocation38_spill] sm:$0xff] %v3791_v12  ;;  %v3808_v12 = vmul.f32 0.2, %v3507_v24  ;;  %v3811_v13 = vmul.f32 0.2, %v3511_v3  ;;  %1766 = vst [vmem:[%s4268_s5 + $0x58] sm:$0xff] %v1702_v55 }
 0x2a1   :  { %vm1601_vm12 = vcmp.ge.f32.partialorder %v3487_v39, 0.0  ;;  %v3825_v26 = vmul.f32 0.2, %v3515_v37  ;;  %v3831_v23 = vmul.f32 0.2, %v3523_v20  ;;  %1767 = vst [vmem:[%s4268_s5 + $0x60] sm:$0xff] %v1703_v19 }
 0x2a2   :  { %4470 = vst [vmem:[#allocation39_spill] sm:$0xff] %v3808_v12  ;;  %4471 = vst [vmem:[#allocation40_spill] sm:$0xff] %v3811_v13  ;;  %v3828_v13 = vmul.f32 0.2, %v3519_v29  ;;  %vm1605_vm13 = vcmp.ge.f32.partialorder %v3503_v52, 0.0  ;;  %v4475_v55 = vld [vmem:[#allocation33_spill] sm:$0xff] }
 0x2a3   :  { %4472 = vst [vmem:[#allocation41_spill] sm:$0xff] %v3825_v26  ;;  %4474 = vst [vmem:[#allocation43_spill] sm:$0xff] %v3831_v23  ;;  %v4477_v23 = vld [vmem:[#allocation34_spill] sm:$0xff]  ;;  %v4479_v12 = vld [vmem:[#allocation35_spill] sm:$0xff]  ;;  %vm1609_vm14 = vcmp.ge.f32.partialorder %v3519_v29, 0.0  ;;  %vm4508_vm6 = vcmp.ge.f32.partialorder %v3419_v57, 0.0 }
 0x2a4   :  { %4473 = vst [vmem:[#allocation42_spill] sm:$0xff] %v3828_v13  ;;  %v3845_v13 = vmul.f32 0.2, %v4475_v55  ;;  %v3848_v26 = vmul.f32 0.2, %v4477_v23  ;;  %v4481_v1 = vld [vmem:[#allocation19_spill] sm:$0xff] }
 0x2a5   :  { %v3851_v11 = vmul.f32 0.2, %v4479_v12  ;;  %v1705_v19 = vsel %vm1577_vm15, %v3391_v43, %v4481_v1  ;;  %1768 = vst [vmem:[%s4268_s5 + $0x68] sm:$0xff] %v1704_v32  ;;  %v4486_v3 = vld [vmem:[#allocation27_spill] sm:$0xff]  ;;  %v1706_v32 = vsel %vm1578_vm0, %v3395_v48, %v3645_v27  ;;  %vm1613_vm15 = vcmp.ge.f32.partialorder %v4479_v12, 0.0  ;;  %v4488_v1 = vld [vmem:[#allocation28_spill] sm:$0xff] }
 0x2a6   :  { %4476 = vst [vmem:[#allocation33_spill] sm:$0xff] %v3845_v13  ;;  %4478 = vst [vmem:[#allocation44_spill] sm:$0xff] %v3848_v26  ;;  %v4482_v26 = vld [vmem:[#allocation26_spill] sm:$0xff]  ;;  %v3871_v43 = vmul.f32 0.2, %v4486_v3  ;;  %v1707_v27 = vsel %vm1579_vm1, %v3399_v31, %v3648_v45  ;;  %vm1617_vm0 = vcmp.ge.f32.partialorder %v4488_v1, 0.0 }
 0x2a7   :  { %4480 = vst [vmem:[#allocation35_spill] sm:$0xff] %v3851_v11  ;;  %v3865_v13 = vmul.f32 0.2, %v4482_v26  ;;  %v4484_v11 = vld [vmem:[#allocation13_spill] sm:$0xff]  ;;  %1769 = vst [vmem:[%s4268_s5 + $0x70] sm:$0xff] %v1705_v19  ;;  %v4492_v23 = vld [vmem:[#allocation30_spill] sm:$0xff] }
 0x2a8   :  { %v3868_v37 = vmul.f32 0.2, %v4484_v11  ;;  %4487 = vst [vmem:[#allocation13_spill] sm:$0xff] %v3871_v43  ;;  %v4490_v43 = vld [vmem:[#allocation29_spill] sm:$0xff]  ;;  %v3891_v48 = vmul.f32 0.2, %v4492_v23 }
 0x2a9   :  { %4483 = vst [vmem:[#allocation19_spill] sm:$0xff] %v3865_v13  ;;  %v3888_v13 = vmul.f32 0.2, %v4490_v43  ;;  %1770 = vst [vmem:[%s4268_s5 + $0x78] sm:$0xff] %v1706_v32  ;;  %v4494_v19 = vld [vmem:[#allocation36_spill] sm:$0xff]  ;;  %v4498_v3 = vld [vmem:[#allocation14_spill] sm:$0xff] }
 0x2aa   :  { %4485 = vst [vmem:[#allocation26_spill] sm:$0xff] %v3868_v37  ;;  %v3885_v37 = vmul.f32 0.2, %v4488_v1  ;;  %4493 = vst [vmem:[#allocation45_spill] sm:$0xff] %v3891_v48  ;;  %v4496_v48 = vld [vmem:[#allocation37_spill] sm:$0xff]  ;;  %v4500_v45 = vld [vmem:[#allocation20_spill] sm:$0xff] }
 0x2ab   :  { %4491 = vst [vmem:[#allocation29_spill] sm:$0xff] %v3888_v13  ;;  %v3905_v13 = vmul.f32 0.2, %v4494_v19  ;;  %v3911_v31 = vmul.f32 0.2, %v4498_v3  ;;  %v1708_v32 = vsel %vm1580_vm2, %v3403_v7, %v4500_v45  ;;  %1771 = vst [vmem:[%s4268_s5 + $0x80] sm:$0xff] %v1707_v27  ;;  %v1709_v27 = vsel %vm1581_vm3, %v3407_v5, %v3661_v62 }
 0x2ac   :  { %4489 = vst [vmem:[#allocation28_spill] sm:$0xff] %v3885_v37  ;;  %v3908_v37 = vmul.f32 0.2, %v4496_v48  ;;  %vm1621_vm1 = vcmp.ge.f32.partialorder %v4496_v48, 0.0  ;;  %vm1622_vm5 = vcmp.ge.f32.partialorder %v4498_v3, 0.0  ;;  %v4501_v19 = vld [vmem:[#allocation15_spill] sm:$0xff]  ;;  %v1712_v62 = vsel %vm4508_vm6, %v3419_v57, %v3677_v34 }
 0x2ad   :  { %4495 = vst [vmem:[#allocation46_spill] sm:$0xff] %v3905_v13  ;;  %4499 = vst [vmem:[#allocation14_spill] sm:$0xff] %v3911_v31  ;;  %v4502_v13 = vld [vmem:[#allocation16_spill] sm:$0xff]  ;;  %v4503_v23 = vld [vmem:[#allocation17_spill] sm:$0xff]  ;;  %vm4507_vm3 = vcmp.ge.f32.partialorder %v3415_v21, 0.0  ;;  %vm4512_vm6 = vcmp.ge.f32.partialorder %v3435_v42, 0.0 }
 0x2ae   :  { %4497 = vst [vmem:[#allocation37_spill] sm:$0xff] %v3908_v37  ;;  %v3925_v37 = vmul.f32 0.2, %v4501_v19  ;;  %v3928_v31 = vmul.f32 0.2, %v4502_v13  ;;  %1772 = vst [vmem:[%s4268_s5 + $0x88] sm:$0xff] %v1708_v32  ;;  %v1713_v32 = vsel %vm1585_vm7, %v3423_v54, %v3680_v4  ;;  %v1716_v57 = vsel %vm4512_vm6, %v3435_v42, %v3696_v50 }
 0x2af   :  { %v3931_v7 = vmul.f32 0.2, %v4503_v23  ;;  %vm1625_vm2 = vcmp.ge.f32.partialorder %v4503_v23, 0.0  ;;  %v4505_v45 = vld [vmem:[#allocation18_spill] sm:$0xff]  ;;  %v4506_v13 = vld [vmem:[#allocation21_spill] sm:$0xff]  ;;  %1773 = vst [vmem:[%s4268_s5 + $0x90] sm:$0xff] %v1709_v27 }
 0x2b0   :  { %vm1626_vm8 = vcmp.ge.f32.partialorder %v4505_v45, 0.0  ;;  %v3943_v19 = vmul.f32 0.2, %v4505_v45  ;;  %v1711_v5 = vsel %vm4507_vm3, %v3415_v21, %v4506_v13  ;;  %vm4511_vm3 = vcmp.ge.f32.partialorder %v3431_v40, 0.0  ;;  %1776 = vst [vmem:[%s4268_s5 + $0xa8] sm:$0xff] %v1712_v62  ;;  %v4513_v54 = vld [vmem:[#allocation23_spill] sm:$0xff] }
 0x2b1   :  { %4504 = vst [vmem:[#allocation20_spill] sm:$0xff] %v3931_v7  ;;  %v1710_v7 = vsel %vm1582_vm4, %v3411_v0, %v3664_v8  ;;  %v4509_v0 = vld [vmem:[#allocation22_spill] sm:$0xff]  ;;  %vm4510_vm4 = vcmp.ge.f32.partialorder %v3427_v38, 0.0  ;;  %v1715_v21 = vsel %vm4511_vm3, %v3431_v40, %v3693_v61  ;;  %1775 = vst [vmem:[%s4268_s5 + $0xa0] sm:$0xff] %v1711_v5  ;;  %vm4514_vm7 = vcmp.ge.f32.partialorder %v3443_v9, 0.0  ;;  %v4550_v27 = vld [vmem:[#allocation13_spill] sm:$0xff] }
 0x2b2   :  { %v1714_v8 = vsel %vm4510_vm4, %v3427_v38, %v4509_v0  ;;  %1774 = vst [vmem:[%s4268_s5 + $0x98] sm:$0xff] %v1710_v7  ;;  %v1717_v38 = vsel %vm1589_vm9, %v3439_v33, %v4513_v54  ;;  %v1718_v40 = vsel %vm4514_vm7, %v3443_v9, %v3709_v36  ;;  %vm4515_vm4 = vcmp.ge.f32.partialorder %v3447_v35, 0.0  ;;  %1777 = vst [vmem:[%s4268_s5 + $0xb0] sm:$0xff] %v1713_v32  ;;  %v4527_v61 = vld [vmem:[#allocation38_spill] sm:$0xff]  ;;  %v4532_v36 = vld [vmem:[#allocation31_spill] sm:$0xff] }
 0x2b3   :  { %v1719_v42 = vsel %vm4515_vm4, %v3447_v35, %v3712_v30  ;;  %vm4516_vm3 = vcmp.ge.f32.partialorder %v3451_v16, 0.0  ;;  %1778 = vst [vmem:[%s4268_s5 + $0xb8] sm:$0xff] %v1714_v8  ;;  %1779 = vst [vmem:[%s4268_s5 + $0xc0] sm:$0xff] %v1715_v21  ;;  %v1721_v33 = vsel %vm1593_vm10, %v3455_v6, %v3727_v25  ;;  %vm4517_vm9 = vcmp.ge.f32.partialorder %v3459_v47, 0.0  ;;  %v4535_v25 = vld [vmem:[#allocation32_spill] sm:$0xff]  ;;  %v4551_v5 = vld [vmem:[#allocation27_spill] sm:$0xff] }
 0x2b4   :  { %v1720_v34 = vsel %vm4516_vm3, %v3451_v16, %v3715_v49  ;;  %1780 = vst [vmem:[%s4268_s5 + $0xc8] sm:$0xff] %v1716_v57  ;;  %v1722_v9 = vsel %vm4517_vm9, %v3459_v47, %v3730_v58  ;;  %vm4518_vm6 = vcmp.ge.f32.partialorder %v3463_v63, 0.0  ;;  %vm4519_vm7 = vcmp.ge.f32.partialorder %v3467_v44, 0.0  ;;  %1781 = vst [vmem:[%s4268_s5 + $0xd0] sm:$0xff] %v1717_v38  ;;  %v4520_v47 = vld [vmem:[#allocation24_spill] sm:$0xff]  ;;  %v4534_v49 = vld [vmem:[#allocation41_spill] sm:$0xff] }
 0x2b5   :  { %v1723_v35 = vsel %vm4518_vm6, %v3463_v63, %v3733_v56  ;;  %v1724_v16 = vsel %vm4519_vm7, %v3467_v44, %v3746_v22  ;;  %1782 = vst [vmem:[%s4268_s5 + $0xd8] sm:$0xff] %v1718_v40  ;;  %1783 = vst [vmem:[%s4268_s5 + $0xe0] sm:$0xff] %v1719_v42  ;;  %v1725_v6 = vsel %vm1597_vm11, %v3471_v41, %v3749_v14  ;;  %vm4521_vm10 = vcmp.ge.f32.partialorder %v3475_v15, 0.0  ;;  %v4524_v41 = vld [vmem:[#allocation25_spill] sm:$0xff]  ;;  %v4538_v56 = vld [vmem:[#allocation43_spill] sm:$0xff] }
 0x2b6   :  { %1784 = vst [vmem:[%s4268_s5 + $0xe8] sm:$0xff] %v1720_v34  ;;  %v1726_v63 = vsel %vm4521_vm10, %v3475_v15, %v4520_v47  ;;  %vm4522_vm4 = vcmp.ge.f32.partialorder %v3479_v17, 0.0  ;;  %vm4523_vm3 = vcmp.ge.f32.partialorder %v3483_v59, 0.0  ;;  %1785 = vst [vmem:[%s4268_s5 + $0xf0] sm:$0xff] %v1721_v33  ;;  %v1729_v15 = vsel %vm1601_vm12, %v3487_v39, %v4524_v41  ;;  %v4540_v14 = vld [vmem:[#allocation33_spill] sm:$0xff]  ;;  %v4557_v8 = vld [vmem:[#allocation30_spill] sm:$0xff] }
 0x2b7   :  { %v1727_v44 = vsel %vm4522_vm4, %v3479_v17, %v3765_v2  ;;  %v1728_v4 = vsel %vm4523_vm3, %v3483_v59, %v3768_v10  ;;  %1786 = vst [vmem:[%s4268_s5 + $0xf8] sm:$0xff] %v1722_v9  ;;  %1787 = vst [vmem:[%s4268_s5 + $0x100] sm:$0xff] %v1723_v35  ;;  %vm4525_vm11 = vcmp.ge.f32.partialorder %v3491_v18, 0.0  ;;  %vm4526_vm9 = vcmp.ge.f32.partialorder %v3495_v46, 0.0  ;;  %v4542_v2 = vld [vmem:[#allocation44_spill] sm:$0xff]  ;;  %v4556_v0 = vld [vmem:[#allocation45_spill] sm:$0xff] }
 0x2b8   :  { %1788 = vst [vmem:[%s4268_s5 + $0x108] sm:$0xff] %v1724_v16  ;;  %v1730_v17 = vsel %vm4525_vm11, %v3491_v18, %v3785_v28  ;;  %v1731_v59 = vsel %vm4526_vm9, %v3495_v46, %v3788_v60  ;;  %vm4528_vm6 = vcmp.ge.f32.partialorder %v3499_v51, 0.0  ;;  %1789 = vst [vmem:[%s4268_s5 + $0x110] sm:$0xff] %v1725_v6  ;;  %v1733_v39 = vsel %vm1605_vm13, %v3503_v52, %v3805_v53  ;;  %v4529_v18 = vld [vmem:[#allocation39_spill] sm:$0xff]  ;;  %v4537_v52 = vld [vmem:[#allocation42_spill] sm:$0xff] }
 0x2b9   :  { %v1732_v50 = vsel %vm4528_vm6, %v3499_v51, %v4527_v61  ;;  %1790 = vst [vmem:[%s4268_s5 + $0x118] sm:$0xff] %v1726_v63  ;;  %1791 = vst [vmem:[%s4268_s5 + $0x120] sm:$0xff] %v1727_v44  ;;  %vm4530_vm12 = vcmp.ge.f32.partialorder %v3507_v24, 0.0  ;;  %v4531_v51 = vld [vmem:[#allocation40_spill] sm:$0xff]  ;;  %vm4533_vm7 = vcmp.ge.f32.partialorder %v4532_v36, 0.0  ;;  %vm4536_vm10 = vcmp.ge.f32.partialorder %v4535_v25, 0.0 }
 0x2ba   :  { %1792 = vst [vmem:[%s4268_s5 + $0x128] sm:$0xff] %v1728_v4  ;;  %v1734_v46 = vsel %vm4530_vm12, %v3507_v24, %v4529_v18  ;;  %v1735_v30 = vsel %vm4533_vm7, %v4532_v36, %v4531_v51  ;;  %v1736_v58 = vsel %vm4536_vm10, %v4535_v25, %v4534_v49  ;;  %1793 = vst [vmem:[%s4268_s5 + $0x130] sm:$0xff] %v1729_v15  ;;  %vm4539_vm13 = vcmp.ge.f32.partialorder %v3523_v20, 0.0  ;;  %v4543_v60 = vld [vmem:[#allocation34_spill] sm:$0xff]  ;;  %v4546_v53 = vld [vmem:[#allocation19_spill] sm:$0xff] }
 0x2bb   :  { %1794 = vst [vmem:[%s4268_s5 + $0x138] sm:$0xff] %v1730_v17  ;;  %1795 = vst [vmem:[%s4268_s5 + $0x140] sm:$0xff] %v1731_v59  ;;  %v1737_v24 = vsel %vm1609_vm14, %v3519_v29, %v4537_v52  ;;  %v1738_v22 = vsel %vm4539_vm13, %v3523_v20, %v4538_v56  ;;  %vm4541_vm4 = vcmp.ge.f32.partialorder %v4475_v55, 0.0  ;;  %vm4544_vm3 = vcmp.ge.f32.partialorder %v4543_v60, 0.0  ;;  %v4545_v29 = vld [vmem:[#allocation35_spill] sm:$0xff]  ;;  %v4559_v57 = vld [vmem:[#allocation46_spill] sm:$0xff] }
 0x2bc   :  { %1796 = vst [vmem:[%s4268_s5 + $0x148] sm:$0xff] %v1732_v50  ;;  %v1739_v10 = vsel %vm4541_vm4, %v4475_v55, %v4540_v14  ;;  %v1740_v28 = vsel %vm4544_vm3, %v4543_v60, %v4542_v2  ;;  %1797 = vst [vmem:[%s4268_s5 + $0x150] sm:$0xff] %v1733_v39  ;;  %v1741_v20 = vsel %vm1613_vm15, %v4479_v12, %v4545_v29  ;;  %vm4547_vm14 = vcmp.ge.f32.partialorder %v4482_v26, 0.0  ;;  %v4548_v55 = vld [vmem:[#allocation26_spill] sm:$0xff]  ;;  %v4553_v12 = vld [vmem:[#allocation28_spill] sm:$0xff] }
 0x2bd   :  { %1798 = vst [vmem:[%s4268_s5 + $0x158] sm:$0xff] %v1734_v46  ;;  %1799 = vst [vmem:[%s4268_s5 + $0x160] sm:$0xff] %v1735_v30  ;;  %v1742_v13 = vsel %vm4547_vm14, %v4482_v26, %v4546_v53  ;;  %vm4549_vm11 = vcmp.ge.f32.partialorder %v4484_v11, 0.0  ;;  %vm4552_vm9 = vcmp.ge.f32.partialorder %v4551_v5, 0.0  ;;  %v1745_v26 = vsel %vm1617_vm0, %v4488_v1, %v4553_v12  ;;  %v4560_v54 = vld [vmem:[#allocation36_spill] sm:$0xff]  ;;  %v4563_v40 = vld [vmem:[#allocation14_spill] sm:$0xff] }
 0x2be   :  { %1800 = vst [vmem:[%s4268_s5 + $0x168] sm:$0xff] %v1736_v58  ;;  %v1743_v7 = vsel %vm4549_vm11, %v4484_v11, %v4548_v55  ;;  %v1744_v62 = vsel %vm4552_vm9, %v4551_v5, %v4550_v27  ;;  %1801 = vst [vmem:[%s4268_s5 + $0x170] sm:$0xff] %v1737_v24  ;;  %v4554_v11 = vld [vmem:[#allocation29_spill] sm:$0xff]  ;;  %vm4555_vm15 = vcmp.ge.f32.partialorder %v4490_v43, 0.0  ;;  %vm4558_vm6 = vcmp.ge.f32.partialorder %v4557_v8, 0.0  ;;  %v4564_v34 = vld [vmem:[#allocation15_spill] sm:$0xff] }
 0x2bf   :  { %1802 = vst [vmem:[%s4268_s5 + $0x178] sm:$0xff] %v1738_v22  ;;  %1803 = vst [vmem:[%s4268_s5 + $0x180] sm:$0xff] %v1739_v10  ;;  %v1746_v32 = vsel %vm4555_vm15, %v4490_v43, %v4554_v11  ;;  %v1747_v21 = vsel %vm4558_vm6, %v4557_v8, %v4556_v0  ;;  %vm4561_vm12 = vcmp.ge.f32.partialorder %v4560_v54, 0.0  ;;  %v4562_v43 = vld [vmem:[#allocation37_spill] sm:$0xff]  ;;  %v1750_v42 = vsel %vm1622_vm5, %v4498_v3, %v4563_v40  ;;  %v4566_v9 = vld [vmem:[#allocation16_spill] sm:$0xff] }
 0x2c0   :  { %1804 = vst [vmem:[%s4268_s5 + $0x188] sm:$0xff] %v1740_v28  ;;  %v1748_v38 = vsel %vm4561_vm12, %v4560_v54, %v4559_v57  ;;  %1805 = vst [vmem:[%s4268_s5 + $0x190] sm:$0xff] %v1741_v20  ;;  %v1749_v1 = vsel %vm1621_vm1, %v4496_v48, %v4562_v43  ;;  %vm4565_vm0 = vcmp.ge.f32.partialorder %v4564_v34, 0.0  ;;  %vm4567_vm7 = vcmp.ge.f32.partialorder %v4566_v9, 0.0  ;;  %v4568_v3 = vld [vmem:[#allocation20_spill] sm:$0xff] }
 0x2c1   :  { %1806 = vst [vmem:[%s4268_s5 + $0x198] sm:$0xff] %v1742_v13  ;;  %1807 = vst [vmem:[%s4268_s5 + $0x1a0] sm:$0xff] %v1743_v7  ;;  %v1751_v33 = vsel %vm4565_vm0, %v4564_v34, %v3925_v37  ;;  %v1752_v35 = vsel %vm4567_vm7, %v4566_v9, %v3928_v31  ;;  %v1753_v37 = vsel %vm1625_vm2, %v4503_v23, %v4568_v3 }
 0x2c2   :  { %1808 = vst [vmem:[%s4268_s5 + $0x1a8] sm:$0xff] %v1744_v62  ;;  %1809 = vst [vmem:[%s4268_s5 + $0x1b0] sm:$0xff] %v1745_v26  ;;  %v1754_v48 = vsel %vm1626_vm8, %v4505_v45, %v3943_v19 }
 0x2c3   :  { %1810 = vst [vmem:[%s4268_s5 + $0x1b8] sm:$0xff] %v1746_v32  ;;  %1811 = vst [vmem:[%s4268_s5 + $0x1c0] sm:$0xff] %v1747_v21 }
 0x2c4   :  { %1812 = vst [vmem:[%s4268_s5 + $0x1c8] sm:$0xff] %v1748_v38  ;;  %1813 = vst [vmem:[%s4268_s5 + $0x1d0] sm:$0xff] %v1749_v1 }
 0x2c5   :  { %1814 = vst [vmem:[%s4268_s5 + $0x1d8] sm:$0xff] %v1750_v42  ;;  %1815 = vst [vmem:[%s4268_s5 + $0x1e0] sm:$0xff] %v1751_v33 }
 0x2c6   :  { %1816 = vst [vmem:[%s4268_s5 + $0x1e8] sm:$0xff] %v1752_v35  ;;  %1817 = vst [vmem:[%s4268_s5 + $0x1f0] sm:$0xff] %v1753_v37 }
 0x2c7   :  { %1818 = vst [vmem:[%s4268_s5 + $0x1f8] sm:$0xff] %v1754_v48 }
 0x2c8   :  { %1823 = vsyncpa [#allocation4], 1 }
 0x2c9   :  { %1824 = vsyncpa [#allocation6], 1 }
 0x2ca   :  { %1825 = vsyncpa [#allocation9], 1 }

// kernel: passive_sep_enc_forward.6
= control target key start
LH: loop header
LB: loop body
LE: loop exit
PB: predicated region body
PF: predicated region fallthrough
CT: control target
= control target key end

     0   :  { %10 = vsyncpa [#allocation4], 0  ;;  %s2682_s0 = inlined_call_operand.vmem [shape: bf16[128,1024], index: 0, kind: input, shape index: {}]   ;;  %s2683_s1 = inlined_call_operand.hbm [shape: bf16[1024,128], index: 1, kind: input, shape index: {}]   ;;  %s2684_s2 = inlined_call_operand.hbm [shape: f32[1,128], index: 2, kind: input, shape index: {}]   ;;  %s2685_s3 = inlined_call_operand.hbm [shape: f32[1,128], index: 3, kind: input, shape index: {}]   ;;  %s2686_s4 = inlined_call_operand.hbm [shape: f32[1,128], index: 4, kind: input, shape index: {}]   ;;  %s2687_s5 = inlined_call_operand.vmem [shape: f32[128,128], index: 5, kind: output, shape index: {}]  }
   0x1   :  { %11 = vsyncpa [#allocation6], 0 }
   0x2   :  { %12 = vsyncpa [#allocation9], 0  ;;  %s2229_s18 = smov [#allocation5]   ;;  %s2230_s20 = smov [#allocation3]  }
   0x3   :  { %s33_s19 = sshll.u32 %s2229_s18, 4  ;;  %s20_s21 = sshll.u32 %s2230_s20, 4  ;;  %s34_s19 = int_to_ptr.vmem [resolvable:$true] %s33_s19  ;;  %s2265_s21 = int_to_ptr.vmem [resolvable:$true] %s20_s21 }
   0x4   :  { %s2135_s24 = scalar_lea.hbm %s2684_s2, 16 }
   0x5   :  { %p2136_p0 = scmp.ne.s32.totalorder %s2684_s2, %s2135_s24  ;;  %p2139_p1 = scmp.lt.u32.totalorder %s2135_s24, %s2684_s2 }
   0x7   :  { %p2141_p2 = pnand %p2139_p1, %p2136_p0 }
   0x9   :  { %2144 = shalt.err (!%p2141_p2)
}
   0xa   :  { %s2145_s29 = scalar_lea.vmem %s34_s19, 16  ;;  %s2149_s30 = scalar_lea.vmem %s34_s19, 32 }
   0xb   :  { %p2146_p3 = scmp.ne.s32.totalorder %s34_s19, %s2145_s29  ;;  %p2150_p4 = scmp.lt.s32.totalorder %s34_s19, %s34_s19 }
   0xc   :  { %p2151_p5 = scmp.lt.s32.totalorder %s2149_s30, %s2145_s29 }
   0xe   :  { %p2152_p6 = por %p2151_p5, %p2150_p4 }
  0x10   :  { %p2153_p7 = pnand %p2152_p6, %p2146_p3 }
  0x12   :  { %2156 = shalt.err (!%p2153_p7)
}
  0x13   :  { %36 = dma.hbm_to_vmem [thread:$0]  %s2684_s2, 16, %s34_s19, [#allocation6]  }
  0x14   :  { %s2157_s10 = scalar_lea.hbm %s2683_s1, 8192 }
  0x15   :  { %p2158_p8 = scmp.ne.s32.totalorder %s2683_s1, %s2157_s10  ;;  %p2161_p9 = scmp.lt.u32.totalorder %s2157_s10, %s2683_s1 }
  0x17   :  { %p2163_p10 = pnand %p2161_p9, %p2158_p8 }
  0x19   :  { %2166 = shalt.err (!%p2163_p10)
}
  0x1a   :  { %s2167_s15 = scalar_lea.vmem %s2265_s21, 8192  ;;  %p2172_p12 = scmp.lt.s32.totalorder %s2265_s21, %s2265_s21 }
  0x1b   :  { %p2168_p11 = scmp.ne.s32.totalorder %s2265_s21, %s2167_s15  ;;  %p2173_p13 = scmp.lt.s32.totalorder %s2167_s15, %s2167_s15 }
  0x1d   :  { %p2174_p0 = por %p2173_p13, %p2172_p12 }
  0x1f   :  { %p2175_p1 = pnand %p2174_p0, %p2168_p11 }
  0x21   :  { %2178 = shalt.err (!%p2175_p1)
}
  0x22   :  { %s2231_s2 = smov 64   ;;  %s2232_s16 = smov 4  }
  0x23   :  { %26 = dma.hbm_to_vmem [thread:$0]  %s2683_s1, 8192, %s2265_s21, [#allocation4], %s2231_s2, %s2231_s2, %s2232_s16  }
  0x24   :  { %s2233_s19 = smov [#allocation7]   ;;  %s2234_s22 = smov [#allocation8]  }
  0x25   :  { %s43_s20 = sshll.u32 %s2233_s19, 4  ;;  %s53_s23 = sshll.u32 %s2234_s22, 4  ;;  %s44_s20 = int_to_ptr.vmem [resolvable:$true] %s43_s20  ;;  %s54_s23 = int_to_ptr.vmem [resolvable:$true] %s53_s23 }
  0x26   :  { %s2179_s26 = scalar_lea.hbm %s2685_s3, 16 }
  0x27   :  { %p2180_p2 = scmp.ne.s32.totalorder %s2685_s3, %s2179_s26  ;;  %p2183_p3 = scmp.lt.u32.totalorder %s2179_s26, %s2685_s3 }
  0x29   :  { %p2185_p4 = pnand %p2183_p3, %p2180_p2 }
  0x2b   :  { %2188 = shalt.err (!%p2185_p4)
}
  0x2c   :  { %s2189_s1 = scalar_lea.vmem %s44_s20, 16  ;;  %s2193_s21 = scalar_lea.vmem %s44_s20, 32 }
  0x2d   :  { %p2190_p5 = scmp.ne.s32.totalorder %s44_s20, %s2189_s1  ;;  %p2194_p6 = scmp.lt.s32.totalorder %s44_s20, %s44_s20 }
  0x2e   :  { %p2195_p7 = scmp.lt.s32.totalorder %s2193_s21, %s2189_s1 }
  0x30   :  { %p2196_p8 = por %p2195_p7, %p2194_p6 }
  0x32   :  { %p2197_p9 = pnand %p2196_p8, %p2190_p5 }
  0x34   :  { %2200 = shalt.err (!%p2197_p9)
}
  0x35   :  { %46 = dma.hbm_to_vmem [thread:$0]  %s2685_s3, 16, %s44_s20, [#allocation6]  }
  0x36   :  { %s2201_s10 = scalar_lea.hbm %s2686_s4, 16 }
  0x37   :  { %p2202_p10 = scmp.ne.s32.totalorder %s2686_s4, %s2201_s10  ;;  %p2205_p11 = scmp.lt.u32.totalorder %s2201_s10, %s2686_s4 }
  0x39   :  { %p2207_p12 = pnand %p2205_p11, %p2202_p10 }
  0x3b   :  { %2210 = shalt.err (!%p2207_p12)
}
  0x3c   :  { %s2211_s15 = scalar_lea.vmem %s54_s23, 16  ;;  %s2215_s2 = scalar_lea.vmem %s54_s23, 32 }
  0x3d   :  { %p2212_p13 = scmp.ne.s32.totalorder %s54_s23, %s2211_s15  ;;  %p2216_p0 = scmp.lt.s32.totalorder %s54_s23, %s54_s23 }
  0x3e   :  { %p2217_p1 = scmp.lt.s32.totalorder %s2215_s2, %s2211_s15 }
  0x40   :  { %p2218_p2 = por %p2217_p1, %p2216_p0 }
  0x42   :  { %p2219_p3 = pnand %p2218_p2, %p2212_p13 }
  0x44   :  { %2222 = shalt.err (!%p2219_p3)
}
  0x45   :  { %56 = dma.hbm_to_vmem [thread:$0]  %s2686_s4, 16, %s54_s23, [#allocation9]  }
  0x46   :  { %2223 = dma.done.wait [#allocation4], 8192  }
  0x47   :  { %2224 = vsyncadd [#allocation4], 4294959104 }
  0x48   :  { %2225 = dma.done.wait [#allocation6], 32  }
  0x49   :  { %2226 = vsyncadd [#allocation6], 4294967264 }
  0x4a   :  { %2227 = dma.done.wait [#allocation9], 16  }
  0x4b   :  { %2228 = vsyncadd [#allocation9], 4294967280  ;;  %v2069_v0 = vld [vmem:[#allocation3 + $0x40] sm:$0xff]   ;;  %v2073_v4 = vld [vmem:[#allocation3 + $0x48] sm:$0xff]  }
  0x4c   :  { %v2070_v1 = vld [vmem:[#allocation3 + $0xc0] sm:$0xff]   ;;  %1807 = vmatprep.subr.bf16.mxu0 %v2069_v0  ;;  %v2074_v5 = vld [vmem:[#allocation3 + $0xc8] sm:$0xff]   ;;  %v2077_v8 = vld [vmem:[#allocation3 + $0x50] sm:$0xff]  }
  0x4d   :  { %v2071_v2 = vld [vmem:[#allocation3] sm:$0xff]   ;;  %1871 = vmatprep.subr.bf16.mxu1 %v2070_v1  ;;  %v2075_v6 = vld [vmem:[#allocation3 + $0x8] sm:$0xff]   ;;  %v2078_v9 = vld [vmem:[#allocation3 + $0xd0] sm:$0xff]  }
  0x4e   :  { %v2072_v3 = vld [vmem:[#allocation3 + $0x80] sm:$0xff]   ;;  %1808 = vmatpush3.bf16.msra.mxu0 %v2071_v2  ;;  %v2076_v7 = vld [vmem:[#allocation3 + $0x88] sm:$0xff]   ;;  %v2079_v10 = vld [vmem:[#allocation3 + $0x10] sm:$0xff]  }
  0x4f   :  { %1872 = vmatpush3.bf16.msra.mxu1 %v2072_v3  ;;  %1809 = vmatprep.subr.bf16.mxu0 %v2073_v4  ;;  %v2080_v11 = vld [vmem:[#allocation3 + $0x90] sm:$0xff]   ;;  %v2081_v12 = vld [vmem:[#allocation3 + $0x58] sm:$0xff]   ;;  %v2085_v16 = vld [vmem:[#allocation3 + $0x60] sm:$0xff]  }
  0x50   :  { %1873 = vmatprep.subr.bf16.mxu1 %v2074_v5  ;;  %v2082_v13 = vld [vmem:[#allocation3 + $0xd8] sm:$0xff]   ;;  %v2086_v17 = vld [vmem:[#allocation3 + $0xe0] sm:$0xff]   ;;  %v2089_v20 = vld [vmem:[#allocation3 + $0x68] sm:$0xff]  }
  0x51   :  { %v2083_v14 = vld [vmem:[#allocation3 + $0x18] sm:$0xff]   ;;  %v2087_v18 = vld [vmem:[#allocation3 + $0x20] sm:$0xff]   ;;  %v2090_v21 = vld [vmem:[#allocation3 + $0xe8] sm:$0xff]  }
  0x52   :  { %1810 = vmatpush3.bf16.msra.mxu0 %v2075_v6  ;;  %v2084_v15 = vld [vmem:[#allocation3 + $0x98] sm:$0xff]   ;;  %v2088_v19 = vld [vmem:[#allocation3 + $0xa0] sm:$0xff]   ;;  %v2091_v22 = vld [vmem:[#allocation3 + $0x28] sm:$0xff]  }
  0x53   :  { %1874 = vmatpush3.bf16.msra.mxu1 %v2076_v7  ;;  %1811 = vmatprep.subr.bf16.mxu0 %v2077_v8  ;;  %v2092_v23 = vld [vmem:[#allocation3 + $0xa8] sm:$0xff]   ;;  %v2093_v24 = vld [vmem:[#allocation3 + $0x70] sm:$0xff]   ;;  %v2097_v28 = vld [vmem:[#allocation3 + $0x78] sm:$0xff]  }
  0x54   :  { %1875 = vmatprep.subr.bf16.mxu1 %v2078_v9  ;;  %v2094_v25 = vld [vmem:[#allocation3 + $0xf0] sm:$0xff]   ;;  %v2098_v29 = vld [vmem:[#allocation3 + $0xf8] sm:$0xff]   ;;  %v106_v32 = vld [vmem:[%s2682_s0] sm:$0xff] }
  0x55   :  { %v2095_v26 = vld [vmem:[#allocation3 + $0x30] sm:$0xff]   ;;  %v2099_v30 = vld [vmem:[#allocation3 + $0x38] sm:$0xff]   ;;  %v110_v33 = vld [vmem:[%s2682_s0 + $0x20] sm:$0xff] }
  0x56   :  { %1812 = vmatpush3.bf16.msra.mxu0 %v2079_v10  ;;  %v2096_v27 = vld [vmem:[#allocation3 + $0xb0] sm:$0xff]   ;;  %v2100_v31 = vld [vmem:[#allocation3 + $0xb8] sm:$0xff]   ;;  %v107_v34 = vld [vmem:[%s2682_s0 + $0x8] sm:$0xff]  ;;  %v1676_v35 = vcombine.low %v106_v32, %v110_v33  ;;  %v1677_v36 = vcombine.high %v106_v32, %v110_v33 }
  0x57   :  { %1876 = vmatpush3.bf16.msra.mxu1 %v2080_v11  ;;  %1813 = vmatprep.subr.bf16.mxu0 %v2081_v12  ;;  %v111_v37 = vld [vmem:[%s2682_s0 + $0x28] sm:$0xff]  ;;  %v2101_v40 = vld [vmem:[#allocation3 + $0x140] sm:$0xff]   ;;  %v2109_v62 = vld [vmem:[#allocation3 + $0x150] sm:$0xff]  }
  0x58   :  { %1877 = vmatprep.subr.bf16.mxu1 %v2082_v13  ;;  %v1678_v38 = vcombine.low %v107_v34, %v111_v37  ;;  %v1679_v39 = vcombine.high %v107_v34, %v111_v37  ;;  %1034 = vmatprep.mubr.bf16.mxu0 %v1677_v36  ;;  %v2102_v41 = vld [vmem:[#allocation3 + $0x100] sm:$0xff]   ;;  %v115_v47 = vld [vmem:[%s2682_s0 + $0x48] sm:$0xff]  ;;  %v2110_v63 = vld [vmem:[#allocation3 + $0x110] sm:$0xff]  }
  0x59   :  { %v2103_v42 = vld [vmem:[#allocation3 + $0x1c0] sm:$0xff]   ;;  %v119_v48 = vld [vmem:[%s2682_s0 + $0x68] sm:$0xff]  ;;  %v2111_v0 = vld [vmem:[#allocation3 + $0x1d0] sm:$0xff]  }
  0x5a   :  { %1814 = vmatpush3.bf16.msra.mxu0 %v2083_v14  ;;  %1131 = vmatprep.mubr.bf16.mxu1 %v1679_v39  ;;  %v2104_v43 = vld [vmem:[#allocation3 + $0x180] sm:$0xff]   ;;  %v1687_v49 = vcombine.high %v115_v47, %v119_v48  ;;  %v2105_v50 = vld [vmem:[#allocation3 + $0x148] sm:$0xff]   ;;  %v1686_v53 = vcombine.low %v115_v47, %v119_v48  ;;  %v2112_v1 = vld [vmem:[#allocation3 + $0x190] sm:$0xff]  }
  0x5b   :  { %1878 = vmatpush3.bf16.msra.mxu1 %v2084_v15  ;;  %1815 = vmatprep.subr.bf16.mxu0 %v2085_v16  ;;  %v114_v44 = vld [vmem:[%s2682_s0 + $0x40] sm:$0xff]  ;;  %v2106_v52 = vld [vmem:[#allocation3 + $0x108] sm:$0xff]   ;;  %v2113_v10 = vld [vmem:[#allocation3 + $0x158] sm:$0xff]  }
  0x5c   :  { %1879 = vmatprep.subr.bf16.mxu1 %v2086_v17  ;;  %v118_v45 = vld [vmem:[%s2682_s0 + $0x60] sm:$0xff]  ;;  %v2107_v54 = vld [vmem:[#allocation3 + $0x1c8] sm:$0xff]   ;;  %v2114_v11 = vld [vmem:[#allocation3 + $0x118] sm:$0xff]  }
  0x5d   :  { %v1685_v46 = vcombine.high %v114_v44, %v118_v45  ;;  %v1684_v51 = vcombine.low %v114_v44, %v118_v45  ;;  %v2108_v55 = vld [vmem:[#allocation3 + $0x188] sm:$0xff]   ;;  %v122_v56 = vld [vmem:[%s2682_s0 + $0x80] sm:$0xff]  ;;  %v2115_v12 = vld [vmem:[#allocation3 + $0x1d8] sm:$0xff]  }
  0x5e   :  { %1816 = vmatpush3.bf16.msra.mxu0 %v2087_v18  ;;  %v126_v57 = vld [vmem:[%s2682_s0 + $0xa0] sm:$0xff]  ;;  %v123_v58 = vld [vmem:[%s2682_s0 + $0x88] sm:$0xff]  ;;  %v2116_v13 = vld [vmem:[#allocation3 + $0x198] sm:$0xff]  }
  0x5f   :  { %1880 = vmatpush3.bf16.msra.mxu1 %v2088_v19  ;;  %1817 = vmatprep.subr.bf16.mxu0 %v2089_v20  ;;  %v127_v59 = vld [vmem:[%s2682_s0 + $0xa8] sm:$0xff]  ;;  %v1693_v60 = vcombine.high %v122_v56, %v126_v57  ;;  %v1692_v2 = vcombine.low %v122_v56, %v126_v57  ;;  %v130_v3 = vld [vmem:[%s2682_s0 + $0xc0] sm:$0xff]  ;;  %v2126_v39 = vld [vmem:[#allocation3 + $0x130] sm:$0xff]  }
  0x60   :  { %1881 = vmatprep.subr.bf16.mxu1 %v2090_v21  ;;  %v1695_v61 = vcombine.high %v123_v58, %v127_v59  ;;  %v134_v4 = vld [vmem:[%s2682_s0 + $0xe0] sm:$0xff]  ;;  %v131_v5 = vld [vmem:[%s2682_s0 + $0xc8] sm:$0xff]  ;;  %v1694_v6 = vcombine.low %v123_v58, %v127_v59  ;;  %v2130_v48 = vld [vmem:[#allocation3 + $0x138] sm:$0xff]  }
  0x61   :  { %v1701_v7 = vcombine.high %v130_v3, %v134_v4  ;;  %v135_v8 = vld [vmem:[%s2682_s0 + $0xe8] sm:$0xff]  ;;  %v138_v14 = vld [vmem:[%s2682_s0 + $0x100] sm:$0xff]  ;;  %v1700_v19 = vcombine.low %v130_v3, %v134_v4 }
  0x62   :  { %1818 = vmatpush3.bf16.msra.mxu0 %v2091_v22  ;;  %v1703_v9 = vcombine.high %v131_v5, %v135_v8  ;;  %v142_v15 = vld [vmem:[%s2682_s0 + $0x120] sm:$0xff]  ;;  %v139_v16 = vld [vmem:[%s2682_s0 + $0x108] sm:$0xff]  ;;  %v1702_v21 = vcombine.low %v131_v5, %v135_v8  ;;  %v117_v8 = vld [vmem:[%s2682_s0 + $0x58] sm:$0xff] }
  0x63   :  { %1882 = vmatpush3.bf16.msra.mxu1 %v2092_v23  ;;  %1819 = vmatprep.subr.bf16.mxu0 %v2093_v24  ;;  %v143_v17 = vld [vmem:[%s2682_s0 + $0x128] sm:$0xff]  ;;  %v2117_v18 = vld [vmem:[#allocation3 + $0x160] sm:$0xff]   ;;  %v1709_v22 = vcombine.high %v138_v14, %v142_v15  ;;  %v1708_v34 = vcombine.low %v138_v14, %v142_v15  ;;  %v124_v14 = vld [vmem:[%s2682_s0 + $0x90] sm:$0xff] }
  0x64   :  { %1883 = vmatprep.subr.bf16.mxu1 %v2094_v25  ;;  %v2118_v20 = vld [vmem:[#allocation3 + $0x120] sm:$0xff]   ;;  %v1711_v24 = vcombine.high %v139_v16, %v143_v17  ;;  %v2123_v32 = vld [vmem:[#allocation3 + $0x1e8] sm:$0xff]   ;;  %v128_v15 = vld [vmem:[%s2682_s0 + $0xb0] sm:$0xff] }
  0x65   :  { %v2119_v23 = vld [vmem:[#allocation3 + $0x1e0] sm:$0xff]   ;;  %v2124_v33 = vld [vmem:[#allocation3 + $0x1a8] sm:$0xff]  }
  0x66   :  { %1820 = vmatpush3.bf16.msra.mxu0 %v2095_v26  ;;  %v2120_v25 = vld [vmem:[#allocation3 + $0x1a0] sm:$0xff]   ;;  %v155_v44 = vld [vmem:[%s2682_s0 + $0x188] sm:$0xff] }
  0x67   :  { %1884 = vmatpush3.bf16.msra.mxu1 %v2096_v27  ;;  %1821 = vmatprep.subr.bf16.mxu0 %v2097_v28  ;;  %v146_v26 = vld [vmem:[%s2682_s0 + $0x140] sm:$0xff]  ;;  %v2121_v28 = vld [vmem:[#allocation3 + $0x168] sm:$0xff]  }
  0x68   :  { %1885 = vmatprep.subr.bf16.mxu1 %v2098_v29  ;;  %v150_v27 = vld [vmem:[%s2682_s0 + $0x160] sm:$0xff]  ;;  %v147_v29 = vld [vmem:[%s2682_s0 + $0x148] sm:$0xff] }
  0x69   :  { %v1717_v36 = vcombine.high %v146_v26, %v150_v27  ;;  %v159_v45 = vld [vmem:[%s2682_s0 + $0x1a8] sm:$0xff]  ;;  %v1716_v47 = vcombine.low %v146_v26, %v150_v27  ;;  %v1696_v26 = vcombine.low %v124_v14, %v128_v15 }
  0x6a   :  { %1822 = vmatpush3.bf16.msra.mxu0 %v2099_v30  ;;  %v151_v30 = vld [vmem:[%s2682_s0 + $0x168] sm:$0xff]  ;;  %v1726_v59 = vcombine.low %v155_v44, %v159_v45 }
  0x6b   :  { %1886 = vmatpush3.bf16.msra.mxu1 %v2100_v31  ;;  %1935 = vmatprep.subr.bf16.mxu0 %v2101_v40  ;;  %v2122_v31 = vld [vmem:[#allocation3 + $0x128] sm:$0xff]   ;;  %v1719_v37 = vcombine.high %v147_v29, %v151_v30  ;;  %v2127_v40 = vld [vmem:[#allocation3 + $0x1f0] sm:$0xff]  }
  0x6c   :  { %1999 = vmatprep.subr.bf16.mxu1 %v2103_v42  ;;  %v158_v42 = vld [vmem:[%s2682_s0 + $0x1a0] sm:$0xff]  ;;  %v163_v56 = vld [vmem:[%s2682_s0 + $0x1c8] sm:$0xff] }
  0x6d   :  { %1035 = vmatmul.mubr.bf16.vlgmr.msra.gmra.mrb[0].mxu0 %v1676_v35  ;;  %v1710_v35 = vcombine.low %v139_v16, %v143_v17  ;;  %v167_v57 = vld [vmem:[%s2682_s0 + $0x1e8] sm:$0xff]  ;;  %v125_v16 = vld [vmem:[%s2682_s0 + $0x98] sm:$0xff] }
  0x6e   :  { %1132 = vmatmul.mubr.bf16.vlgmr.msra.gmra.mrb[0].mxu1 %v1678_v38  ;;  %1936 = vmatpush3.bf16.msra.mxu0 %v2102_v41  ;;  %v2125_v38 = vld [vmem:[#allocation3 + $0x170] sm:$0xff]   ;;  %v154_v41 = vld [vmem:[%s2682_s0 + $0x180] sm:$0xff]  ;;  %v1734_v3 = vcombine.low %v163_v56, %v167_v57  ;;  %v129_v17 = vld [vmem:[%s2682_s0 + $0xb8] sm:$0xff] }
  0x6f   :  { %2000 = vmatpush3.bf16.msra.mxu1 %v2104_v43  ;;  %1042 = vmatprep.mubr.bf16.mxu0 %v1685_v46  ;;  %v2128_v43 = vld [vmem:[#allocation3 + $0x1b0] sm:$0xff]   ;;  %v2129_v46 = vld [vmem:[#allocation3 + $0x178] sm:$0xff]   ;;  %v1724_v58 = vcombine.low %v154_v41, %v158_v42  ;;  %v1698_v27 = vcombine.low %v125_v16, %v129_v17 }
  0x70   :  { %1139 = vmatprep.mubr.bf16.mxu1 %v1687_v49  ;;  %1937 = vmatprep.subr.bf16.mxu0 %v2105_v50  ;;  %v1718_v49 = vcombine.low %v147_v29, %v151_v30  ;;  %v1725_v50 = vcombine.high %v154_v41, %v158_v42  ;;  %v140_v30 = vld [vmem:[%s2682_s0 + $0x110] sm:$0xff]  ;;  %v153_v41 = vld [vmem:[%s2682_s0 + $0x178] sm:$0xff] }
  0x71   :  { %2001 = vmatprep.subr.bf16.mxu1 %v2107_v54  ;;  %v162_v54 = vld [vmem:[%s2682_s0 + $0x1c0] sm:$0xff] }
  0x72   :  { %1938 = vmatpush3.bf16.msra.mxu0 %v2106_v52  ;;  %v1727_v52 = vcombine.high %v155_v44, %v159_v45 }
  0x73   :  { %2002 = vmatpush3.bf16.msra.mxu1 %v2108_v55  ;;  %1939 = vmatprep.subr.bf16.mxu0 %v2109_v62  ;;  %v166_v55 = vld [vmem:[%s2682_s0 + $0x1e0] sm:$0xff]  ;;  %v108_v62 = vld [vmem:[%s2682_s0 + $0x10] sm:$0xff] }
  0x74   :  { %2003 = vmatprep.subr.bf16.mxu1 %v2111_v0  ;;  %v109_v0 = vld [vmem:[%s2682_s0 + $0x18] sm:$0xff] }
  0x75   :  { %1043 = vmatmul.mubr.bf16.gmra.mrb[4].mxu0 %v1684_v51  ;;  %v2131_v51 = vld [vmem:[#allocation3 + $0x1f8] sm:$0xff]  }
  0x76   :  { %1140 = vmatmul.mubr.bf16.gmra.mrb[4].mxu1 %v1686_v53  ;;  %1050 = vmatprep.mubr.bf16.mxu0 %v1693_v60  ;;  %v2132_v53 = vld [vmem:[#allocation3 + $0x1b8] sm:$0xff]   ;;  %v1733_v60 = vcombine.high %v162_v54, %v166_v55 }
  0x77   :  { %1147 = vmatprep.mubr.bf16.mxu1 %v1695_v61  ;;  %1940 = vmatpush3.bf16.msra.mxu0 %v2110_v63  ;;  %v1735_v61 = vcombine.high %v163_v56, %v167_v57  ;;  %v112_v63 = vld [vmem:[%s2682_s0 + $0x30] sm:$0xff]  ;;  %v165_v56 = vld [vmem:[%s2682_s0 + $0x1d8] sm:$0xff] }
  0x78   :  { %2004 = vmatpush3.bf16.msra.mxu1 %v2112_v1  ;;  %1941 = vmatprep.subr.bf16.mxu0 %v2113_v10  ;;  %v113_v1 = vld [vmem:[%s2682_s0 + $0x38] sm:$0xff]  ;;  %v1681_v4 = vcombine.high %v108_v62, %v112_v63  ;;  %v1680_v10 = vcombine.low %v108_v62, %v112_v63 }
  0x79   :  { %2005 = vmatprep.subr.bf16.mxu1 %v2115_v12  ;;  %v1683_v5 = vcombine.high %v109_v0, %v113_v1  ;;  %v169_v57 = vld [vmem:[%s2682_s0 + $0x1f8] sm:$0xff] }
  0x7a   :  { %v1738_v63 = vcombine.low %v165_v56, %v169_v57 }
  0x7b   :  { %1942 = vmatpush3.bf16.msra.mxu0 %v2114_v11  ;;  %v1682_v11 = vcombine.low %v109_v0, %v113_v1 }
  0x7c   :  { %2006 = vmatpush3.bf16.msra.mxu1 %v2116_v13  ;;  %1943 = vmatprep.subr.bf16.mxu0 %v2117_v18 }
  0x7d   :  { %1051 = vmatmul.mubr.bf16.gmra.mrb[8].mxu0 %v1692_v2  ;;  %2007 = vmatprep.subr.bf16.mxu1 %v2119_v23  ;;  %v1732_v2 = vcombine.low %v162_v54, %v166_v55  ;;  %v136_v23 = vld [vmem:[%s2682_s0 + $0xf0] sm:$0xff] }
  0x7e   :  { %1148 = vmatmul.mubr.bf16.gmra.mrb[8].mxu1 %v1694_v6  ;;  %1058 = vmatprep.mubr.bf16.mxu0 %v1701_v7  ;;  %v116_v6 = vld [vmem:[%s2682_s0 + $0x50] sm:$0xff] }
  0x7f   :  { %1155 = vmatprep.mubr.bf16.mxu1 %v1703_v9  ;;  %1944 = vmatpush3.bf16.msra.mxu0 %v2118_v20  ;;  %v120_v7 = vld [vmem:[%s2682_s0 + $0x70] sm:$0xff]  ;;  %v121_v9 = vld [vmem:[%s2682_s0 + $0x78] sm:$0xff]  ;;  %v1697_v20 = vcombine.high %v124_v14, %v128_v15 }
  0x80   :  { %2008 = vmatpush3.bf16.msra.mxu1 %v2120_v25  ;;  %1945 = vmatprep.subr.bf16.mxu0 %v2121_v28  ;;  %v1689_v12 = vcombine.high %v116_v6, %v120_v7  ;;  %v1691_v13 = vcombine.high %v117_v8, %v121_v9  ;;  %v1688_v18 = vcombine.low %v116_v6, %v120_v7  ;;  %v137_v25 = vld [vmem:[%s2682_s0 + $0xf8] sm:$0xff]  ;;  %v164_v54 = vld [vmem:[%s2682_s0 + $0x1d0] sm:$0xff] }
  0x81   :  { %2009 = vmatprep.subr.bf16.mxu1 %v2123_v32  ;;  %v141_v32 = vld [vmem:[%s2682_s0 + $0x118] sm:$0xff]  ;;  %v168_v55 = vld [vmem:[%s2682_s0 + $0x1f0] sm:$0xff] }
  0x82   :  { %v1736_v62 = vcombine.low %v164_v54, %v168_v55 }
  0x83   :  { %1946 = vmatpush3.bf16.msra.mxu0 %v2122_v31  ;;  %v144_v31 = vld [vmem:[%s2682_s0 + $0x130] sm:$0xff] }
  0x84   :  { %2010 = vmatpush3.bf16.msra.mxu1 %v2124_v33  ;;  %1947 = vmatprep.subr.bf16.mxu0 %v2125_v38  ;;  %v145_v33 = vld [vmem:[%s2682_s0 + $0x138] sm:$0xff]  ;;  %v148_v38 = vld [vmem:[%s2682_s0 + $0x150] sm:$0xff]  ;;  %v1712_v42 = vcombine.low %v140_v30, %v144_v31 }
  0x85   :  { %1059 = vmatmul.mubr.bf16.gmra.mrb[12].mxu0 %v1700_v19  ;;  %2011 = vmatprep.subr.bf16.mxu1 %v2127_v40  ;;  %v1690_v19 = vcombine.low %v117_v8, %v121_v9  ;;  %v149_v40 = vld [vmem:[%s2682_s0 + $0x158] sm:$0xff] }
  0x86   :  { %1156 = vmatmul.mubr.bf16.gmra.mrb[12].mxu1 %v1702_v21  ;;  %1066 = vmatprep.mubr.bf16.mxu0 %v1709_v22  ;;  %v1699_v21 = vcombine.high %v125_v16, %v129_v17  ;;  %v132_v22 = vld [vmem:[%s2682_s0 + $0xd0] sm:$0xff]  ;;  %v1723_v45 = vcombine.high %v149_v40, %v153_v41 }
  0x87   :  { %1163 = vmatprep.mubr.bf16.mxu1 %v1711_v24  ;;  %1948 = vmatpush3.bf16.msra.mxu0 %v2126_v39  ;;  %v133_v24 = vld [vmem:[%s2682_s0 + $0xd8] sm:$0xff]  ;;  %v1705_v28 = vcombine.high %v132_v22, %v136_v23  ;;  %v152_v39 = vld [vmem:[%s2682_s0 + $0x170] sm:$0xff] }
  0x88   :  { %2012 = vmatpush3.bf16.msra.mxu1 %v2128_v43  ;;  %1949 = vmatprep.subr.bf16.mxu0 %v2129_v46  ;;  %v1707_v29 = vcombine.high %v133_v24, %v137_v25  ;;  %v1714_v43 = vcombine.low %v141_v32, %v145_v33  ;;  %v1721_v44 = vcombine.high %v148_v38, %v152_v39  ;;  %v156_v46 = vld [vmem:[%s2682_s0 + $0x190] sm:$0xff] }
  0x89   :  { %2013 = vmatprep.subr.bf16.mxu1 %v2131_v51  ;;  %v1722_v51 = vcombine.low %v149_v40, %v153_v41 }
  0x8b   :  { %1950 = vmatpush3.bf16.msra.mxu0 %v2130_v48  ;;  %v157_v48 = vld [vmem:[%s2682_s0 + $0x198] sm:$0xff] }
  0x8c   :  { %2014 = vmatpush3.bf16.msra.mxu1 %v2132_v53 }
  0x8d   :  { %1067 = vmatmul.mubr.bf16.gmra.mrb[16].mxu0 %v1708_v34  ;;  %v1704_v34 = vcombine.low %v132_v22, %v136_v23 }
  0x8e   :  { %1164 = vmatmul.mubr.bf16.gmra.mrb[16].mxu1 %v1710_v35  ;;  %1074 = vmatprep.mubr.bf16.mxu0 %v1717_v36  ;;  %v1706_v35 = vcombine.low %v133_v24, %v137_v25  ;;  %v1713_v36 = vcombine.high %v140_v30, %v144_v31 }
  0x8f   :  { %1171 = vmatprep.mubr.bf16.mxu1 %v1719_v37  ;;  %v1715_v37 = vcombine.high %v141_v32, %v145_v33 }
  0x95   :  { %1075 = vmatmul.mubr.bf16.gmra.mrb[20].mxu0 %v1716_v47  ;;  %v160_v47 = vld [vmem:[%s2682_s0 + $0x1b0] sm:$0xff] }
  0x96   :  { %1172 = vmatmul.mubr.bf16.gmra.mrb[20].mxu1 %v1718_v49  ;;  %1082 = vmatprep.mubr.bf16.mxu0 %v1725_v50  ;;  %v161_v49 = vld [vmem:[%s2682_s0 + $0x1b8] sm:$0xff]  ;;  %v1720_v50 = vcombine.low %v148_v38, %v152_v39 }
  0x97   :  { %1179 = vmatprep.mubr.bf16.mxu1 %v1727_v52  ;;  %v1729_v52 = vcombine.high %v156_v46, %v160_v47  ;;  %v1731_v53 = vcombine.high %v157_v48, %v161_v49 }
  0x9d   :  { %1083 = vmatmul.mubr.bf16.gmra.mrb[24].mxu0 %v1724_v58  ;;  %v1728_v58 = vcombine.low %v156_v46, %v160_v47 }
  0x9e   :  { %1180 = vmatmul.mubr.bf16.gmra.mrb[24].mxu1 %v1726_v59  ;;  %1090 = vmatprep.mubr.bf16.mxu0 %v1733_v60  ;;  %v1730_v59 = vcombine.low %v157_v48, %v161_v49  ;;  %v1737_v60 = vcombine.high %v164_v54, %v168_v55 }
  0x9f   :  { %1187 = vmatprep.mubr.bf16.mxu1 %v1735_v61  ;;  %v1739_v61 = vcombine.high %v165_v56, %v169_v57 }
  0xa5   :  { %1091 = vmatmul.mubr.bf16.gmra.mrb[28].mxu0 %v1732_v2 }
  0xa6   :  { %1188 = vmatmul.mubr.bf16.gmra.mrb[28].mxu1 %v1734_v3  ;;  %1228 = vmatprep.mubr.bf16.mxu0 %v1681_v4 }
  0xa7   :  { %1325 = vmatprep.mubr.bf16.mxu1 %v1683_v5 }
  0xad   :  { %1229 = vmatmul.mubr.bf16.vlgmr.msra.gmra.mrb[32].mxu0 %v1680_v10 }
  0xae   :  { %1326 = vmatmul.mubr.bf16.vlgmr.msra.gmra.mrb[32].mxu1 %v1682_v11  ;;  %1236 = vmatprep.mubr.bf16.mxu0 %v1689_v12 }
  0xaf   :  { %1333 = vmatprep.mubr.bf16.mxu1 %v1691_v13 }
  0xb5   :  { %1237 = vmatmul.mubr.bf16.gmra.mrb[36].mxu0 %v1688_v18 }
  0xb6   :  { %1334 = vmatmul.mubr.bf16.gmra.mrb[36].mxu1 %v1690_v19  ;;  %1244 = vmatprep.mubr.bf16.mxu0 %v1697_v20 }
  0xb7   :  { %1341 = vmatprep.mubr.bf16.mxu1 %v1699_v21 }
  0xbd   :  { %1245 = vmatmul.mubr.bf16.gmra.mrb[40].mxu0 %v1696_v26 }
  0xbe   :  { %1342 = vmatmul.mubr.bf16.gmra.mrb[40].mxu1 %v1698_v27  ;;  %1252 = vmatprep.mubr.bf16.mxu0 %v1705_v28 }
  0xbf   :  { %1349 = vmatprep.mubr.bf16.mxu1 %v1707_v29 }
  0xc5   :  { %1253 = vmatmul.mubr.bf16.gmra.mrb[44].mxu0 %v1704_v34 }
  0xc6   :  { %1350 = vmatmul.mubr.bf16.gmra.mrb[44].mxu1 %v1706_v35  ;;  %1260 = vmatprep.mubr.bf16.mxu0 %v1713_v36 }
  0xc7   :  { %1357 = vmatprep.mubr.bf16.mxu1 %v1715_v37 }
  0xcd   :  { %1261 = vmatmul.mubr.bf16.gmra.mrb[48].mxu0 %v1712_v42 }
  0xce   :  { %1358 = vmatmul.mubr.bf16.gmra.mrb[48].mxu1 %v1714_v43  ;;  %1268 = vmatprep.mubr.bf16.mxu0 %v1721_v44 }
  0xcf   :  { %1365 = vmatprep.mubr.bf16.mxu1 %v1723_v45 }
  0xd5   :  { %1269 = vmatmul.mubr.bf16.gmra.mrb[52].mxu0 %v1720_v50 }
  0xd6   :  { %1366 = vmatmul.mubr.bf16.gmra.mrb[52].mxu1 %v1722_v51  ;;  %1276 = vmatprep.mubr.bf16.mxu0 %v1729_v52 }
  0xd7   :  { %1373 = vmatprep.mubr.bf16.mxu1 %v1731_v53 }
  0xdd   :  { %1277 = vmatmul.mubr.bf16.gmra.mrb[56].mxu0 %v1728_v58 }
  0xde   :  { %1374 = vmatmul.mubr.bf16.gmra.mrb[56].mxu1 %v1730_v59  ;;  %1284 = vmatprep.mubr.bf16.mxu0 %v1737_v60 }
  0xdf   :  { %1381 = vmatprep.mubr.bf16.mxu1 %v1739_v61 }
  0xe5   :  { %1285 = vmatmul.mubr.bf16.gmra.mrb[60].mxu0 %v1736_v62 }
  0xe6   :  { %1382 = vmatmul.mubr.bf16.gmra.mrb[60].mxu1 %v1738_v63 }
 0x140   :  { %v1823_v0 = vpop.f32.mrb[0].mxu0 }
 0x141   :  { %v1887_v1 = vpop.f32.mrb[0].mxu1  ;;  %v1824_v2 = vpop.f32.mrb[1].mxu0 }
 0x142   :  { %v1825_v3 = vadd.f32 %v1824_v2, %v1823_v0  ;;  %v1888_v4 = vpop.f32.mrb[1].mxu1  ;;  %v1826_v5 = vpop.f32.mrb[2].mxu0 }
 0x143   :  { %v1889_v6 = vadd.f32 %v1888_v4, %v1887_v1  ;;  %v1890_v7 = vpop.f32.mrb[2].mxu1  ;;  %v1827_v8 = vpop.f32.mrb[3].mxu0 }
 0x144   :  { %v1828_v9 = vadd.f32 %v1827_v8, %v1826_v5  ;;  %v1891_v10 = vpop.f32.mrb[3].mxu1 }
 0x145   :  { %v2512_v11 = vadd.f32 %v1889_v6, %v1825_v3  ;;  %v1892_v12 = vadd.f32 %v1891_v10, %v1890_v7 }
 0x147   :  { %v2514_v13 = vadd.f32 %v1892_v12, %v1828_v9 }
 0x148   :  { %v1829_v14 = vpop.f32.mrb[4].mxu0 }
 0x149   :  { %v1893_v15 = vpop.f32.mrb[4].mxu1  ;;  %v1830_v16 = vpop.f32.mrb[5].mxu0 }
 0x14a   :  { %v1831_v17 = vadd.f32 %v1830_v16, %v1829_v14  ;;  %v1894_v18 = vpop.f32.mrb[5].mxu1  ;;  %v1832_v19 = vpop.f32.mrb[6].mxu0 }
 0x14b   :  { %v1895_v20 = vadd.f32 %v1894_v18, %v1893_v15  ;;  %v1896_v21 = vpop.f32.mrb[6].mxu1  ;;  %v1833_v22 = vpop.f32.mrb[7].mxu0 }
 0x14c   :  { %v1834_v23 = vadd.f32 %v1833_v22, %v1832_v19  ;;  %v1897_v24 = vpop.f32.mrb[7].mxu1 }
 0x14d   :  { %v2516_v25 = vadd.f32 %v1895_v20, %v1831_v17  ;;  %v1898_v26 = vadd.f32 %v1897_v24, %v1896_v21 }
 0x14f   :  { %v2518_v27 = vadd.f32 %v1898_v26, %v1834_v23 }
 0x150   :  { %v1835_v28 = vpop.f32.mrb[8].mxu0 }
 0x151   :  { %v1899_v29 = vpop.f32.mrb[8].mxu1  ;;  %v1836_v30 = vpop.f32.mrb[9].mxu0 }
 0x152   :  { %v1837_v31 = vadd.f32 %v1836_v30, %v1835_v28  ;;  %v1900_v32 = vpop.f32.mrb[9].mxu1  ;;  %v1838_v33 = vpop.f32.mrb[10].mxu0 }
 0x153   :  { %v1901_v34 = vadd.f32 %v1900_v32, %v1899_v29  ;;  %v1902_v35 = vpop.f32.mrb[10].mxu1  ;;  %v1839_v36 = vpop.f32.mrb[11].mxu0 }
 0x154   :  { %v1840_v37 = vadd.f32 %v1839_v36, %v1838_v33  ;;  %v1903_v38 = vpop.f32.mrb[11].mxu1 }
 0x155   :  { %v2520_v39 = vadd.f32 %v1901_v34, %v1837_v31  ;;  %v1904_v40 = vadd.f32 %v1903_v38, %v1902_v35 }
 0x157   :  { %v2522_v41 = vadd.f32 %v1904_v40, %v1840_v37 }
 0x158   :  { %v1841_v42 = vpop.f32.mrb[12].mxu0 }
 0x159   :  { %v1905_v43 = vpop.f32.mrb[12].mxu1  ;;  %v1842_v44 = vpop.f32.mrb[13].mxu0 }
 0x15a   :  { %v1843_v45 = vadd.f32 %v1842_v44, %v1841_v42  ;;  %v1906_v46 = vpop.f32.mrb[13].mxu1  ;;  %v1844_v47 = vpop.f32.mrb[14].mxu0 }
 0x15b   :  { %v1907_v48 = vadd.f32 %v1906_v46, %v1905_v43  ;;  %v1908_v49 = vpop.f32.mrb[14].mxu1  ;;  %v1845_v50 = vpop.f32.mrb[15].mxu0 }
 0x15c   :  { %v1846_v51 = vadd.f32 %v1845_v50, %v1844_v47  ;;  %v1909_v52 = vpop.f32.mrb[15].mxu1 }
 0x15d   :  { %v2524_v53 = vadd.f32 %v1907_v48, %v1843_v45  ;;  %v1910_v54 = vadd.f32 %v1909_v52, %v1908_v49 }
 0x15f   :  { %v2526_v55 = vadd.f32 %v1910_v54, %v1846_v51 }
 0x160   :  { %v1847_v56 = vpop.f32.mrb[16].mxu0 }
 0x161   :  { %v1911_v57 = vpop.f32.mrb[16].mxu1  ;;  %v1848_v58 = vpop.f32.mrb[17].mxu0 }
 0x162   :  { %v1849_v59 = vadd.f32 %v1848_v58, %v1847_v56  ;;  %v1912_v60 = vpop.f32.mrb[17].mxu1  ;;  %v1850_v61 = vpop.f32.mrb[18].mxu0 }
 0x163   :  { %v1913_v62 = vadd.f32 %v1912_v60, %v1911_v57  ;;  %v1914_v63 = vpop.f32.mrb[18].mxu1  ;;  %v1851_v0 = vpop.f32.mrb[19].mxu0 }
 0x164   :  { %v1852_v1 = vadd.f32 %v1851_v0, %v1850_v61  ;;  %v1915_v2 = vpop.f32.mrb[19].mxu1 }
 0x165   :  { %v2528_v3 = vadd.f32 %v1913_v62, %v1849_v59  ;;  %v1916_v4 = vadd.f32 %v1915_v2, %v1914_v63 }
 0x167   :  { %v2530_v5 = vadd.f32 %v1916_v4, %v1852_v1 }
 0x168   :  { %v1853_v6 = vpop.f32.mrb[20].mxu0 }
 0x169   :  { %v1917_v7 = vpop.f32.mrb[20].mxu1  ;;  %v1854_v8 = vpop.f32.mrb[21].mxu0 }
 0x16a   :  { %v1855_v9 = vadd.f32 %v1854_v8, %v1853_v6  ;;  %v1918_v10 = vpop.f32.mrb[21].mxu1  ;;  %v1856_v12 = vpop.f32.mrb[22].mxu0 }
 0x16b   :  { %v1919_v14 = vadd.f32 %v1918_v10, %v1917_v7  ;;  %v1920_v15 = vpop.f32.mrb[22].mxu1  ;;  %v1857_v16 = vpop.f32.mrb[23].mxu0 }
 0x16c   :  { %v1858_v17 = vadd.f32 %v1857_v16, %v1856_v12  ;;  %v1921_v18 = vpop.f32.mrb[23].mxu1 }
 0x16d   :  { %v2532_v19 = vadd.f32 %v1919_v14, %v1855_v9  ;;  %v1922_v20 = vadd.f32 %v1921_v18, %v1920_v15  ;;  %v2546_v9 = vld [vmem:[#allocation5] ss:$0 sm:$0xff] }
 0x16f   :  { %v2534_v21 = vadd.f32 %v1922_v20, %v1858_v17 }
 0x170   :  { %v1859_v22 = vpop.f32.mrb[24].mxu0 }
 0x171   :  { %v1923_v23 = vpop.f32.mrb[24].mxu1  ;;  %v1860_v24 = vpop.f32.mrb[25].mxu0 }
 0x172   :  { %v1861_v26 = vadd.f32 %v1860_v24, %v1859_v22  ;;  %v1924_v28 = vpop.f32.mrb[25].mxu1  ;;  %v1862_v29 = vpop.f32.mrb[26].mxu0 }
 0x173   :  { %v1925_v30 = vadd.f32 %v1924_v28, %v1923_v23  ;;  %v1926_v31 = vpop.f32.mrb[26].mxu1  ;;  %v1863_v32 = vpop.f32.mrb[27].mxu0 }
 0x174   :  { %v1864_v33 = vadd.f32 %v1863_v32, %v1862_v29  ;;  %v1927_v34 = vpop.f32.mrb[27].mxu1 }
 0x175   :  { %v2536_v35 = vadd.f32 %v1925_v30, %v1861_v26  ;;  %v1928_v36 = vadd.f32 %v1927_v34, %v1926_v31 }
 0x177   :  { %v2538_v37 = vadd.f32 %v1928_v36, %v1864_v33 }
 0x178   :  { %v1865_v38 = vpop.f32.mrb[28].mxu0 }
 0x179   :  { %v1929_v40 = vpop.f32.mrb[28].mxu1  ;;  %v1866_v42 = vpop.f32.mrb[29].mxu0 }
 0x17a   :  { %v1867_v43 = vadd.f32 %v1866_v42, %v1865_v38  ;;  %v1930_v44 = vpop.f32.mrb[29].mxu1  ;;  %v1868_v45 = vpop.f32.mrb[30].mxu0 }
 0x17b   :  { %v1931_v46 = vadd.f32 %v1930_v44, %v1929_v40  ;;  %v1932_v47 = vpop.f32.mrb[30].mxu1  ;;  %v1869_v48 = vpop.f32.mrb[31].mxu0 }
 0x17c   :  { %v1870_v49 = vadd.f32 %v1869_v48, %v1868_v45  ;;  %v1933_v50 = vpop.f32.mrb[31].mxu1 }
 0x17d   :  { %v2540_v51 = vadd.f32 %v1931_v46, %v1867_v43  ;;  %v1934_v52 = vadd.f32 %v1933_v50, %v1932_v47 }
 0x17f   :  { %v2542_v54 = vadd.f32 %v1934_v52, %v1870_v49 }
 0x180   :  { %v1951_v56 = vpop.f32.mrb[32].mxu0 }
 0x181   :  { %v2015_v57 = vpop.f32.mrb[32].mxu1  ;;  %v1952_v58 = vpop.f32.mrb[33].mxu0 }
 0x182   :  { %v1953_v59 = vadd.f32 %v1952_v58, %v1951_v56  ;;  %v2016_v60 = vpop.f32.mrb[33].mxu1  ;;  %v1954_v61 = vpop.f32.mrb[34].mxu0 }
 0x183   :  { %v2017_v62 = vadd.f32 %v2016_v60, %v2015_v57  ;;  %v2018_v63 = vpop.f32.mrb[34].mxu1  ;;  %v1955_v0 = vpop.f32.mrb[35].mxu0 }
 0x184   :  { %v1231_v1 = vadd.f32 %v1953_v59, %v2512_v11  ;;  %v1956_v2 = vadd.f32 %v1955_v0, %v1954_v61  ;;  %v2019_v4 = vpop.f32.mrb[35].mxu1 }
 0x185   :  { %v2020_v6 = vadd.f32 %v2019_v4, %v2018_v63 }
 0x186   :  { %v1328_v7 = vadd.f32 %v2017_v62, %v1231_v1  ;;  %v1234_v8 = vadd.f32 %v1956_v2, %v2514_v13 }
 0x188   :  { %v1331_v10 = vadd.f32 %v2020_v6, %v1234_v8  ;;  %v1957_v12 = vpop.f32.mrb[36].mxu0  ;;  %v2549_v16 = vadd.f32 %v2546_v9, %v1328_v7 }
 0x189   :  { %v2021_v14 = vpop.f32.mrb[36].mxu1  ;;  %v1958_v15 = vpop.f32.mrb[37].mxu0 }
 0x18a   :  { %v2552_v17 = vadd.f32 %v2546_v9, %v1331_v10  ;;  %v1959_v18 = vadd.f32 %v1958_v15, %v1957_v12  ;;  %v2022_v11 = vpop.f32.mrb[37].mxu1  ;;  %v1960_v20 = vpop.f32.mrb[38].mxu0 }
 0x18b   :  { %v2023_v22 = vadd.f32 %v2022_v11, %v2021_v14  ;;  %v2024_v23 = vpop.f32.mrb[38].mxu1  ;;  %v1961_v24 = vpop.f32.mrb[39].mxu0 }
 0x18c   :  { %v1464_v13 = vadd.f32 %v2552_v17, %v2549_v16  ;;  %v1239_v26 = vadd.f32 %v1959_v18, %v2516_v25  ;;  %v1962_v28 = vadd.f32 %v1961_v24, %v1960_v20  ;;  %v2025_v29 = vpop.f32.mrb[39].mxu1 }
 0x18d   :  { %v2026_v30 = vadd.f32 %v2025_v29, %v2024_v23 }
 0x18e   :  { %v1336_v31 = vadd.f32 %v2023_v22, %v1239_v26  ;;  %v1242_v32 = vadd.f32 %v1962_v28, %v2518_v27 }
 0x190   :  { %v2559_v33 = vadd.f32 %v2546_v9, %v1336_v31  ;;  %v1339_v34 = vadd.f32 %v2026_v30, %v1242_v32  ;;  %v1963_v36 = vpop.f32.mrb[40].mxu0 }
 0x191   :  { %v2027_v38 = vpop.f32.mrb[40].mxu1  ;;  %v1964_v40 = vpop.f32.mrb[41].mxu0 }
 0x192   :  { %v1465_v42 = vadd.f32 %v1464_v13, %v2559_v33  ;;  %v2563_v43 = vadd.f32 %v2546_v9, %v1339_v34  ;;  %v1965_v44 = vadd.f32 %v1964_v40, %v1963_v36  ;;  %v2028_v25 = vpop.f32.mrb[41].mxu1  ;;  %v1966_v45 = vpop.f32.mrb[42].mxu0 }
 0x193   :  { %v2029_v46 = vadd.f32 %v2028_v25, %v2027_v38  ;;  %v2030_v47 = vpop.f32.mrb[42].mxu1  ;;  %v1967_v48 = vpop.f32.mrb[43].mxu0 }
 0x194   :  { %v1466_v27 = vadd.f32 %v1465_v42, %v2563_v43  ;;  %v1247_v49 = vadd.f32 %v1965_v44, %v2520_v39  ;;  %v1968_v50 = vadd.f32 %v1967_v48, %v1966_v45  ;;  %v2031_v52 = vpop.f32.mrb[43].mxu1 }
 0x195   :  { %v2032_v56 = vadd.f32 %v2031_v52, %v2030_v47 }
 0x196   :  { %v1344_v57 = vadd.f32 %v2029_v46, %v1247_v49  ;;  %v1250_v58 = vadd.f32 %v1968_v50, %v2522_v41 }
 0x198   :  { %v2569_v59 = vadd.f32 %v2546_v9, %v1344_v57  ;;  %v1347_v60 = vadd.f32 %v2032_v56, %v1250_v58  ;;  %v1969_v61 = vpop.f32.mrb[44].mxu0 }
 0x199   :  { %v2033_v62 = vpop.f32.mrb[44].mxu1  ;;  %v1970_v63 = vpop.f32.mrb[45].mxu0 }
 0x19a   :  { %v1467_v0 = vadd.f32 %v1466_v27, %v2569_v59  ;;  %v2573_v1 = vadd.f32 %v2546_v9, %v1347_v60  ;;  %v1971_v2 = vadd.f32 %v1970_v63, %v1969_v61  ;;  %v2034_v39 = vpop.f32.mrb[45].mxu1  ;;  %v1972_v4 = vpop.f32.mrb[46].mxu0 }
 0x19b   :  { %v2035_v6 = vadd.f32 %v2034_v39, %v2033_v62  ;;  %v2036_v7 = vpop.f32.mrb[46].mxu1  ;;  %v1973_v8 = vpop.f32.mrb[47].mxu0 }
 0x19c   :  { %v1468_v41 = vadd.f32 %v1467_v0, %v2573_v1  ;;  %v1255_v10 = vadd.f32 %v1971_v2, %v2524_v53  ;;  %v1974_v12 = vadd.f32 %v1973_v8, %v1972_v4  ;;  %v2037_v14 = vpop.f32.mrb[47].mxu1 }
 0x19d   :  { %v2038_v15 = vadd.f32 %v2037_v14, %v2036_v7 }
 0x19e   :  { %v1352_v18 = vadd.f32 %v2035_v6, %v1255_v10  ;;  %v1258_v11 = vadd.f32 %v1974_v12, %v2526_v55 }
 0x1a0   :  { %v2579_v20 = vadd.f32 %v2546_v9, %v1352_v18  ;;  %v1355_v22 = vadd.f32 %v2038_v15, %v1258_v11  ;;  %v1975_v23 = vpop.f32.mrb[48].mxu0 }
 0x1a1   :  { %v2039_v24 = vpop.f32.mrb[48].mxu1  ;;  %v1976_v13 = vpop.f32.mrb[49].mxu0 }
 0x1a2   :  { %v1469_v26 = vadd.f32 %v1468_v41, %v2579_v20  ;;  %v2583_v28 = vadd.f32 %v2546_v9, %v1355_v22  ;;  %v1977_v29 = vadd.f32 %v1976_v13, %v1975_v23  ;;  %v2040_v53 = vpop.f32.mrb[49].mxu1  ;;  %v1978_v30 = vpop.f32.mrb[50].mxu0 }
 0x1a3   :  { %v2041_v31 = vadd.f32 %v2040_v53, %v2039_v24  ;;  %v2042_v32 = vpop.f32.mrb[50].mxu1  ;;  %v1979_v34 = vpop.f32.mrb[51].mxu0 }
 0x1a4   :  { %v1470_v55 = vadd.f32 %v1469_v26, %v2583_v28  ;;  %v1263_v36 = vadd.f32 %v1977_v29, %v2528_v3  ;;  %v1980_v38 = vadd.f32 %v1979_v34, %v1978_v30  ;;  %v2043_v40 = vpop.f32.mrb[51].mxu1 }
 0x1a5   :  { %v2044_v42 = vadd.f32 %v2043_v40, %v2042_v32 }
 0x1a6   :  { %v1360_v44 = vadd.f32 %v2041_v31, %v1263_v36  ;;  %v1266_v25 = vadd.f32 %v1980_v38, %v2530_v5 }
 0x1a8   :  { %v2589_v45 = vadd.f32 %v2546_v9, %v1360_v44  ;;  %v1363_v46 = vadd.f32 %v2044_v42, %v1266_v25  ;;  %v1981_v47 = vpop.f32.mrb[52].mxu0 }
 0x1a9   :  { %v2045_v48 = vpop.f32.mrb[52].mxu1  ;;  %v1982_v27 = vpop.f32.mrb[53].mxu0 }
 0x1aa   :  { %v1471_v49 = vadd.f32 %v1470_v55, %v2589_v45  ;;  %v2593_v50 = vadd.f32 %v2546_v9, %v1363_v46  ;;  %v1983_v52 = vadd.f32 %v1982_v27, %v1981_v47  ;;  %v2046_v3 = vpop.f32.mrb[53].mxu1  ;;  %v1984_v56 = vpop.f32.mrb[54].mxu0 }
 0x1ab   :  { %v2047_v57 = vadd.f32 %v2046_v3, %v2045_v48  ;;  %v2048_v58 = vpop.f32.mrb[54].mxu1  ;;  %v1985_v60 = vpop.f32.mrb[55].mxu0 }
 0x1ac   :  { %v1472_v5 = vadd.f32 %v1471_v49, %v2593_v50  ;;  %v1271_v61 = vadd.f32 %v1983_v52, %v2532_v19  ;;  %v1986_v62 = vadd.f32 %v1985_v60, %v1984_v56  ;;  %v2049_v63 = vpop.f32.mrb[55].mxu1 }
 0x1ad   :  { %v2050_v0 = vadd.f32 %v2049_v63, %v2048_v58 }
 0x1ae   :  { %v1368_v2 = vadd.f32 %v2047_v57, %v1271_v61  ;;  %v1274_v39 = vadd.f32 %v1986_v62, %v2534_v21 }
 0x1b0   :  { %v1458_v4 = vadd.f32 %v2546_v9, %v1368_v2  ;;  %v1371_v6 = vadd.f32 %v2050_v0, %v1274_v39  ;;  %v1987_v7 = vpop.f32.mrb[56].mxu0 }
 0x1b1   :  { %v2051_v8 = vpop.f32.mrb[56].mxu1  ;;  %v1988_v41 = vpop.f32.mrb[57].mxu0 }
 0x1b2   :  { %v1473_v10 = vadd.f32 %v1472_v5, %v1458_v4  ;;  %v1459_v12 = vadd.f32 %v2546_v9, %v1371_v6  ;;  %v1989_v14 = vadd.f32 %v1988_v41, %v1987_v7  ;;  %v2052_v15 = vpop.f32.mrb[57].mxu1  ;;  %v1990_v18 = vpop.f32.mrb[58].mxu0 }
 0x1b3   :  { %v2053_v11 = vadd.f32 %v2052_v15, %v2051_v8  ;;  %v2054_v19 = vpop.f32.mrb[58].mxu1  ;;  %v1991_v22 = vpop.f32.mrb[59].mxu0 }
 0x1b4   :  { %v1474_v23 = vadd.f32 %v1473_v10, %v1459_v12  ;;  %v1279_v24 = vadd.f32 %v1989_v14, %v2536_v35  ;;  %v1992_v13 = vadd.f32 %v1991_v22, %v1990_v18  ;;  %v2055_v21 = vpop.f32.mrb[59].mxu1 }
 0x1b5   :  { %v2056_v26 = vadd.f32 %v2055_v21, %v2054_v19 }
 0x1b6   :  { %v1376_v29 = vadd.f32 %v2053_v11, %v1279_v24  ;;  %v1282_v53 = vadd.f32 %v1992_v13, %v2538_v37 }
 0x1b8   :  { %v1460_v30 = vadd.f32 %v2546_v9, %v1376_v29  ;;  %v1379_v31 = vadd.f32 %v2056_v26, %v1282_v53  ;;  %v1993_v32 = vpop.f32.mrb[60].mxu0 }
 0x1b9   :  { %v2057_v34 = vpop.f32.mrb[60].mxu1  ;;  %v1994_v55 = vpop.f32.mrb[61].mxu0 }
 0x1ba   :  { %v1475_v36 = vadd.f32 %v1474_v23, %v1460_v30  ;;  %v1461_v38 = vadd.f32 %v2546_v9, %v1379_v31  ;;  %v1995_v40 = vadd.f32 %v1994_v55, %v1993_v32  ;;  %v2058_v42 = vpop.f32.mrb[61].mxu1  ;;  %v1996_v44 = vpop.f32.mrb[62].mxu0 }
 0x1bb   :  { %v2059_v25 = vadd.f32 %v2058_v42, %v2057_v34  ;;  %v2060_v35 = vpop.f32.mrb[62].mxu1  ;;  %v1997_v46 = vpop.f32.mrb[63].mxu0 }
 0x1bc   :  { %v1476_v47 = vadd.f32 %v1475_v36, %v1461_v38  ;;  %v1287_v48 = vadd.f32 %v1995_v40, %v2540_v51  ;;  %v1998_v27 = vadd.f32 %v1997_v46, %v1996_v44  ;;  %v2061_v37 = vpop.f32.mrb[63].mxu1 }
 0x1bd   :  { %v2062_v49 = vadd.f32 %v2061_v37, %v2060_v35 }
 0x1be   :  { %v1384_v52 = vadd.f32 %v2059_v25, %v1287_v48  ;;  %v1290_v3 = vadd.f32 %v1998_v27, %v2542_v54 }
 0x1c0   :  { %v1462_v56 = vadd.f32 %v2546_v9, %v1384_v52  ;;  %v1387_v57 = vadd.f32 %v2062_v49, %v1290_v3 }
 0x1c2   :  { %v1477_v58 = vadd.f32 %v1476_v47, %v1462_v56  ;;  %v1463_v60 = vadd.f32 %v2546_v9, %v1387_v57 }
 0x1c4   :  { %v1478_v5 = vadd.f32 %v1477_v58, %v1463_v60 }
 0x1c6   :  { %v1479_v61 = vrot.slane %v1478_v5, 4 }
 0x1c8   :  { %v1480_v62 = vadd.f32 %v1479_v61, %v1478_v5 }
 0x1ca   :  { %v1481_v63 = vrot.slane %v1480_v62, 2 }
 0x1cc   :  { %v1482_v0 = vadd.f32 %v1481_v63, %v1480_v62 }
 0x1ce   :  { %v1483_v2 = vrot.slane %v1482_v0, 1 }
 0x1d0   :  { %v1484_v39 = vadd.f32 %v1483_v2, %v1482_v0 }
 0x1d2   :  { %v1486_v51 = vmul.f32 0.0078125, %v1484_v39 }
 0x1d4   :  { %v1487_v6 = vsub.f32 %v2549_v16, %v1486_v51  ;;  %v1488_v7 = vsub.f32 %v2552_v17, %v1486_v51  ;;  %v1489_v54 = vsub.f32 %v2559_v33, %v1486_v51  ;;  %v1490_v8 = vsub.f32 %v2563_v43, %v1486_v51 }
 0x1d5   :  { %v1491_v41 = vsub.f32 %v2569_v59, %v1486_v51  ;;  %v1492_v9 = vsub.f32 %v2573_v1, %v1486_v51  ;;  %v1493_v10 = vsub.f32 %v2579_v20, %v1486_v51  ;;  %v1494_v14 = vsub.f32 %v2583_v28, %v1486_v51 }
 0x1d6   :  { %v1495_v15 = vsub.f32 %v2589_v45, %v1486_v51  ;;  %v1496_v18 = vsub.f32 %v2593_v50, %v1486_v51  ;;  %v1497_v11 = vsub.f32 %v1458_v4, %v1486_v51  ;;  %v1498_v16 = vsub.f32 %v1459_v12, %v1486_v51 }
 0x1d7   :  { %v1499_v19 = vsub.f32 %v1460_v30, %v1486_v51  ;;  %v1500_v17 = vsub.f32 %v1461_v38, %v1486_v51  ;;  %v1501_v22 = vsub.f32 %v1462_v56, %v1486_v51  ;;  %v1502_v33 = vsub.f32 %v1463_v60, %v1486_v51 }
 0x1d8   :  { %v1503_v23 = vmul.f32 %v1487_v6, %v1487_v6  ;;  %v1504_v43 = vmul.f32 %v1488_v7, %v1488_v7  ;;  %v1505_v24 = vmul.f32 %v1489_v54, %v1489_v54  ;;  %v1506_v13 = vmul.f32 %v1490_v8, %v1490_v8 }
 0x1d9   :  { %v1507_v21 = vmul.f32 %v1491_v41, %v1491_v41  ;;  %v1508_v26 = vmul.f32 %v1492_v9, %v1492_v9  ;;  %v1509_v29 = vmul.f32 %v1493_v10, %v1493_v10  ;;  %v1510_v53 = vmul.f32 %v1494_v14, %v1494_v14 }
 0x1da   :  { %v1519_v59 = vadd.f32 %v1504_v43, %v1503_v23  ;;  %v1511_v4 = vmul.f32 %v1495_v15, %v1495_v15  ;;  %v1512_v30 = vmul.f32 %v1496_v18, %v1496_v18  ;;  %v1513_v32 = vmul.f32 %v1497_v11, %v1497_v11  ;;  %v1805_v23 = vld [vmem:[#allocation7] ss:$0 sm:$0xff] }
 0x1db   :  { %v1514_v55 = vmul.f32 %v1498_v16, %v1498_v16  ;;  %v1515_v38 = vmul.f32 %v1499_v19, %v1499_v19  ;;  %v1516_v42 = vmul.f32 %v1500_v17, %v1500_v17  ;;  %v1517_v25 = vmul.f32 %v1501_v22, %v1501_v22 }
 0x1dc   :  { %v1520_v1 = vadd.f32 %v1519_v59, %v1505_v24  ;;  %v1518_v46 = vmul.f32 %v1502_v33, %v1502_v33 }
 0x1de   :  { %v1521_v20 = vadd.f32 %v1520_v1, %v1506_v13 }
 0x1e0   :  { %v1522_v28 = vadd.f32 %v1521_v20, %v1507_v21 }
 0x1e2   :  { %v1523_v45 = vadd.f32 %v1522_v28, %v1508_v26 }
 0x1e4   :  { %v1524_v50 = vadd.f32 %v1523_v45, %v1509_v29 }
 0x1e6   :  { %v1525_v12 = vadd.f32 %v1524_v50, %v1510_v53 }
 0x1e8   :  { %v1526_v31 = vadd.f32 %v1525_v12, %v1511_v4 }
 0x1ea   :  { %v1527_v34 = vadd.f32 %v1526_v31, %v1512_v30 }
 0x1ec   :  { %v1528_v36 = vadd.f32 %v1527_v34, %v1513_v32 }
 0x1ee   :  { %v1529_v40 = vadd.f32 %v1528_v36, %v1514_v55 }
 0x1f0   :  { %v1530_v44 = vadd.f32 %v1529_v40, %v1515_v38 }
 0x1f2   :  { %v1531_v35 = vadd.f32 %v1530_v44, %v1516_v42 }
 0x1f4   :  { %v1532_v47 = vadd.f32 %v1531_v35, %v1517_v25 }
 0x1f6   :  { %v1533_v48 = vadd.f32 %v1532_v47, %v1518_v46 }
 0x1f8   :  { %v1534_v27 = vrot.slane %v1533_v48, 4 }
 0x1fa   :  { %v1535_v37 = vadd.f32 %v1534_v27, %v1533_v48 }
 0x1fc   :  { %v1536_v49 = vrot.slane %v1535_v37, 2 }
 0x1fe   :  { %v1537_v52 = vadd.f32 %v1536_v49, %v1535_v37 }
 0x200   :  { %v1538_v3 = vrot.slane %v1537_v52, 1 }
 0x202   :  { %v1539_v56 = vadd.f32 %v1538_v3, %v1537_v52 }
 0x204   :  { %v1540_v57 = vmul.f32 0.0078125, %v1539_v56 }
 0x206   :  { %v1541_v58 = vadd.f32 1e-05, %v1540_v57 }
 0x208   :  { %2133 = vrsqrt.f32 %v1541_v58 }
 0x212   :  { %v2134_v60 = vpop.eup %2133 }
 0x213   :  { %v1543_v5 = vmul.f32 %v2134_v60, %v1487_v6  ;;  %v1544_v61 = vmul.f32 %v2134_v60, %v1488_v7  ;;  %v1545_v62 = vmul.f32 %v2134_v60, %v1489_v54  ;;  %v1546_v63 = vmul.f32 %v2134_v60, %v1490_v8 }
 0x214   :  { %v1547_v0 = vmul.f32 %v2134_v60, %v1491_v41  ;;  %v1548_v2 = vmul.f32 %v2134_v60, %v1492_v9  ;;  %v1549_v39 = vmul.f32 %v2134_v60, %v1493_v10  ;;  %v1550_v51 = vmul.f32 %v2134_v60, %v1494_v14  ;;  %v1806_v9 = vld [vmem:[#allocation8] ss:$0 sm:$0xff] }
 0x215   :  { %v1551_v43 = vmul.f32 %v2134_v60, %v1495_v15  ;;  %v1552_v24 = vmul.f32 %v2134_v60, %v1496_v18  ;;  %v1553_v59 = vmul.f32 %v2134_v60, %v1497_v11  ;;  %v1554_v13 = vmul.f32 %v2134_v60, %v1498_v16 }
 0x216   :  { %v1555_v1 = vmul.f32 %v2134_v60, %v1499_v19  ;;  %v1556_v21 = vmul.f32 %v2134_v60, %v1500_v17  ;;  %v1557_v20 = vmul.f32 %v2134_v60, %v1501_v22  ;;  %v1558_v26 = vmul.f32 %v2134_v60, %v1502_v33 }
 0x217   :  { %v1566_v28 = vmul.f32 %v1805_v23, %v1543_v5  ;;  %v1567_v29 = vmul.f32 %v1805_v23, %v1544_v61  ;;  %v1568_v45 = vmul.f32 %v1805_v23, %v1545_v62  ;;  %v1569_v6 = vmul.f32 %v1805_v23, %v1546_v63 }
 0x218   :  { %v1570_v7 = vmul.f32 %v1805_v23, %v1547_v0  ;;  %v1571_v54 = vmul.f32 %v1805_v23, %v1548_v2  ;;  %v1572_v8 = vmul.f32 %v1805_v23, %v1549_v39  ;;  %v1573_v41 = vmul.f32 %v1805_v23, %v1550_v51 }
 0x219   :  { %v1574_v10 = vmul.f32 %v1805_v23, %v1551_v43  ;;  %v1575_v14 = vmul.f32 %v1805_v23, %v1552_v24  ;;  %v1576_v53 = vmul.f32 %v1805_v23, %v1553_v59  ;;  %v1577_v15 = vmul.f32 %v1805_v23, %v1554_v13 }
 0x21a   :  { %v1578_v18 = vmul.f32 %v1805_v23, %v1555_v1  ;;  %v1579_v11 = vmul.f32 %v1805_v23, %v1556_v21  ;;  %v1580_v16 = vmul.f32 %v1805_v23, %v1557_v20  ;;  %v1581_v19 = vmul.f32 %v1805_v23, %v1558_v26 }
 0x21b   :  { %v1589_v17 = vadd.f32 %v1806_v9, %v1566_v28  ;;  %v1590_v22 = vadd.f32 %v1806_v9, %v1567_v29  ;;  %v1591_v33 = vadd.f32 %v1806_v9, %v1568_v45  ;;  %v1592_v50 = vadd.f32 %v1806_v9, %v1569_v6 }
 0x21c   :  { %v1593_v4 = vadd.f32 %v1806_v9, %v1570_v7  ;;  %v1594_v12 = vadd.f32 %v1806_v9, %v1571_v54  ;;  %v1595_v30 = vadd.f32 %v1806_v9, %v1572_v8  ;;  %v1596_v31 = vadd.f32 %v1806_v9, %v1573_v41 }
 0x21d   :  { %v1597_v32 = vadd.f32 %v1806_v9, %v1574_v10  ;;  %v1598_v34 = vadd.f32 %v1806_v9, %v1575_v14  ;;  %v1599_v55 = vadd.f32 %v1806_v9, %v1576_v53  ;;  %v1600_v36 = vadd.f32 %v1806_v9, %v1577_v15 }
 0x21e   :  { %v1601_v38 = vadd.f32 %v1806_v9, %v1578_v18  ;;  %v1602_v40 = vadd.f32 %v1806_v9, %v1579_v11  ;;  %v1603_v42 = vadd.f32 %v1806_v9, %v1580_v16  ;;  %v1604_v44 = vadd.f32 %v1806_v9, %v1581_v19 }
 0x21f   :  { %vm1605_vm0 = vcmp.ge.f32.partialorder %v1589_v17, 0.0  ;;  %vm1606_vm1 = vcmp.ge.f32.partialorder %v1590_v22, 0.0  ;;  %vm1607_vm2 = vcmp.ge.f32.partialorder %v1591_v33, 0.0  ;;  %vm1608_vm3 = vcmp.ge.f32.partialorder %v1592_v50, 0.0 }
 0x220   :  { %vm1609_vm4 = vcmp.ge.f32.partialorder %v1593_v4, 0.0  ;;  %vm1610_vm5 = vcmp.ge.f32.partialorder %v1594_v12, 0.0  ;;  %vm1611_vm6 = vcmp.ge.f32.partialorder %v1595_v30, 0.0  ;;  %vm1612_vm7 = vcmp.ge.f32.partialorder %v1596_v31, 0.0 }
 0x221   :  { %vm1613_vm8 = vcmp.ge.f32.partialorder %v1597_v32, 0.0  ;;  %vm1614_vm9 = vcmp.ge.f32.partialorder %v1598_v34, 0.0  ;;  %vm1615_vm10 = vcmp.ge.f32.partialorder %v1599_v55, 0.0  ;;  %vm1616_vm11 = vcmp.ge.f32.partialorder %v1600_v36, 0.0 }
 0x222   :  { %vm1617_vm12 = vcmp.ge.f32.partialorder %v1601_v38, 0.0  ;;  %vm1618_vm13 = vcmp.ge.f32.partialorder %v1602_v40, 0.0  ;;  %vm1619_vm14 = vcmp.ge.f32.partialorder %v1603_v42, 0.0  ;;  %vm1620_vm15 = vcmp.ge.f32.partialorder %v1604_v44, 0.0 }
 0x223   :  { %v1621_v25 = vmul.f32 0.2, %v1589_v17  ;;  %v1622_v35 = vmul.f32 0.2, %v1590_v22  ;;  %v1623_v46 = vmul.f32 0.2, %v1591_v33 }
 0x224   :  { %v1624_v47 = vmul.f32 0.2, %v1592_v50  ;;  %v1625_v48 = vmul.f32 0.2, %v1593_v4  ;;  %v1626_v27 = vmul.f32 0.2, %v1594_v12 }
 0x225   :  { %v1627_v37 = vmul.f32 0.2, %v1595_v30  ;;  %v1628_v49 = vmul.f32 0.2, %v1596_v31  ;;  %v1629_v52 = vmul.f32 0.2, %v1597_v32  ;;  %v1637_v3 = vsel %vm1605_vm0, %v1589_v17, %v1621_v25 }
 0x226   :  { %v1630_v56 = vmul.f32 0.2, %v1598_v34  ;;  %v1631_v57 = vmul.f32 0.2, %v1599_v55  ;;  %v1632_v58 = vmul.f32 0.2, %v1600_v36  ;;  %v1638_v60 = vsel %vm1606_vm1, %v1590_v22, %v1622_v35  ;;  %1653 = vst [vmem:[%s2687_s5] sm:$0xff] %v1637_v3 }
 0x227   :  { %v1633_v5 = vmul.f32 0.2, %v1601_v38  ;;  %v1634_v61 = vmul.f32 0.2, %v1602_v40  ;;  %v1635_v62 = vmul.f32 0.2, %v1603_v42  ;;  %v1639_v63 = vsel %vm1607_vm2, %v1591_v33, %v1623_v46 }
 0x228   :  { %1654 = vst [vmem:[%s2687_s5 + $0x8] sm:$0xff] %v1638_v60  ;;  %v1636_v0 = vmul.f32 0.2, %v1604_v44  ;;  %v1640_v2 = vsel %vm1608_vm3, %v1592_v50, %v1624_v47  ;;  %v1641_v39 = vsel %vm1609_vm4, %v1593_v4, %v1625_v48  ;;  %v1642_v51 = vsel %vm1610_vm5, %v1594_v12, %v1626_v27  ;;  %1655 = vst [vmem:[%s2687_s5 + $0x10] sm:$0xff] %v1639_v63 }
 0x229   :  { %v1643_v23 = vsel %vm1611_vm6, %v1595_v30, %v1627_v37  ;;  %v1644_v43 = vsel %vm1612_vm7, %v1596_v31, %v1628_v49  ;;  %v1645_v24 = vsel %vm1613_vm8, %v1597_v32, %v1629_v52  ;;  %v1646_v59 = vsel %vm1614_vm9, %v1598_v34, %v1630_v56  ;;  %1656 = vst [vmem:[%s2687_s5 + $0x18] sm:$0xff] %v1640_v2 }
 0x22a   :  { %1657 = vst [vmem:[%s2687_s5 + $0x20] sm:$0xff] %v1641_v39  ;;  %1658 = vst [vmem:[%s2687_s5 + $0x28] sm:$0xff] %v1642_v51  ;;  %v1647_v13 = vsel %vm1615_vm10, %v1599_v55, %v1631_v57  ;;  %v1648_v1 = vsel %vm1616_vm11, %v1600_v36, %v1632_v58  ;;  %v1649_v21 = vsel %vm1617_vm12, %v1601_v38, %v1633_v5 }
 0x22b   :  { %v1650_v20 = vsel %vm1618_vm13, %v1602_v40, %v1634_v61  ;;  %1659 = vst [vmem:[%s2687_s5 + $0x30] sm:$0xff] %v1643_v23  ;;  %1660 = vst [vmem:[%s2687_s5 + $0x38] sm:$0xff] %v1644_v43  ;;  %v1651_v26 = vsel %vm1619_vm14, %v1603_v42, %v1635_v62  ;;  %v1652_v28 = vsel %vm1620_vm15, %v1604_v44, %v1636_v0 }
 0x22c   :  { %1661 = vst [vmem:[%s2687_s5 + $0x40] sm:$0xff] %v1645_v24  ;;  %1662 = vst [vmem:[%s2687_s5 + $0x48] sm:$0xff] %v1646_v59 }
 0x22d   :  { %1663 = vst [vmem:[%s2687_s5 + $0x50] sm:$0xff] %v1647_v13  ;;  %1664 = vst [vmem:[%s2687_s5 + $0x58] sm:$0xff] %v1648_v1 }
 0x22e   :  { %1665 = vst [vmem:[%s2687_s5 + $0x60] sm:$0xff] %v1649_v21  ;;  %1666 = vst [vmem:[%s2687_s5 + $0x68] sm:$0xff] %v1650_v20 }
 0x22f   :  { %1667 = vst [vmem:[%s2687_s5 + $0x70] sm:$0xff] %v1651_v26  ;;  %1668 = vst [vmem:[%s2687_s5 + $0x78] sm:$0xff] %v1652_v28 }
 0x230   :  { %1673 = vsyncpa [#allocation4], 1 }
 0x231   :  { %1674 = vsyncpa [#allocation6], 1 }
 0x232   :  { %1675 = vsyncpa [#allocation9], 1 }

// kernel: passive_sep_enc_forward.7
= control target key start
LH: loop header
LB: loop body
LE: loop exit
PB: predicated region body
PF: predicated region fallthrough
CT: control target
= control target key end

     0   :  { %10 = vsyncpa [#allocation4], 0  ;;  %s3540_s0 = inlined_call_operand.vmem [shape: bf16[32,2048], index: 0, kind: input, shape index: {}]   ;;  %s3541_s1 = inlined_call_operand.hbm [shape: bf16[2048,256], index: 1, kind: input, shape index: {}]   ;;  %s3542_s2 = inlined_call_operand.hbm [shape: f32[1,256], index: 2, kind: input, shape index: {}]   ;;  %s3543_s3 = inlined_call_operand.hbm [shape: f32[1,256], index: 3, kind: input, shape index: {}]   ;;  %s3544_s4 = inlined_call_operand.hbm [shape: f32[1,256], index: 4, kind: input, shape index: {}]   ;;  %s3545_s5 = inlined_call_operand.vmem [shape: f32[32,256], index: 5, kind: output, shape index: {}]  }
   0x1   :  { %11 = vsyncpa [#allocation6], 0 }
   0x2   :  { %12 = vsyncpa [#allocation9], 0  ;;  %s3268_s18 = smov [#allocation5]   ;;  %s3269_s20 = smov [#allocation3]  }
   0x3   :  { %s33_s19 = sshll.u32 %s3268_s18, 4  ;;  %s20_s21 = sshll.u32 %s3269_s20, 4  ;;  %s34_s19 = int_to_ptr.vmem [resolvable:$true] %s33_s19  ;;  %s3304_s21 = int_to_ptr.vmem [resolvable:$true] %s20_s21 }
   0x4   :  { %s3174_s24 = scalar_lea.hbm %s3542_s2, 32 }
   0x5   :  { %p3175_p0 = scmp.ne.s32.totalorder %s3542_s2, %s3174_s24  ;;  %p3178_p1 = scmp.lt.u32.totalorder %s3174_s24, %s3542_s2 }
   0x7   :  { %p3180_p2 = pnand %p3178_p1, %p3175_p0 }
   0x9   :  { %3183 = shalt.err (!%p3180_p2)
}
   0xa   :  { %s3184_s29 = scalar_lea.vmem %s34_s19, 32  ;;  %p3189_p4 = scmp.lt.s32.totalorder %s34_s19, %s34_s19 }
   0xb   :  { %p3185_p3 = scmp.ne.s32.totalorder %s34_s19, %s3184_s29  ;;  %p3190_p5 = scmp.lt.s32.totalorder %s3184_s29, %s3184_s29 }
   0xd   :  { %p3191_p6 = por %p3190_p5, %p3189_p4 }
   0xf   :  { %p3192_p7 = pnand %p3191_p6, %p3185_p3 }
  0x11   :  { %3195 = shalt.err (!%p3192_p7)
}
  0x12   :  { %36 = dma.hbm_to_vmem [thread:$0]  %s3542_s2, 32, %s34_s19, [#allocation6]  }
  0x13   :  { %s3196_s9 = scalar_lea.hbm %s3541_s1, 32768 }
  0x14   :  { %p3197_p8 = scmp.ne.s32.totalorder %s3541_s1, %s3196_s9  ;;  %p3200_p9 = scmp.lt.u32.totalorder %s3196_s9, %s3541_s1 }
  0x16   :  { %p3202_p10 = pnand %p3200_p9, %p3197_p8 }
  0x18   :  { %3205 = shalt.err (!%p3202_p10)
}
  0x19   :  { %s3206_s14 = scalar_lea.vmem %s3304_s21, 32768  ;;  %p3211_p12 = scmp.lt.s32.totalorder %s3304_s21, %s3304_s21 }
  0x1a   :  { %p3207_p11 = scmp.ne.s32.totalorder %s3304_s21, %s3206_s14  ;;  %p3212_p13 = scmp.lt.s32.totalorder %s3206_s14, %s3206_s14 }
  0x1c   :  { %p3213_p0 = por %p3212_p13, %p3211_p12 }
  0x1e   :  { %p3214_p1 = pnand %p3213_p0, %p3207_p11 }
  0x20   :  { %3217 = shalt.err (!%p3214_p1)
}
  0x21   :  { %s3270_s2 = smov 128   ;;  %s3271_s15 = smov 8  }
  0x22   :  { %26 = dma.hbm_to_vmem [thread:$0]  %s3541_s1, 32768, %s3304_s21, [#allocation4], %s3270_s2, %s3270_s2, %s3271_s15  }
  0x23   :  { %s3272_s18 = smov [#allocation7]   ;;  %s3273_s20 = smov [#allocation8]  }
  0x24   :  { %s43_s19 = sshll.u32 %s3272_s18, 4  ;;  %s53_s22 = sshll.u32 %s3273_s20, 4  ;;  %s44_s19 = int_to_ptr.vmem [resolvable:$true] %s43_s19  ;;  %s54_s22 = int_to_ptr.vmem [resolvable:$true] %s53_s22 }
  0x25   :  { %s3218_s25 = scalar_lea.hbm %s3543_s3, 32 }
  0x26   :  { %p3219_p2 = scmp.ne.s32.totalorder %s3543_s3, %s3218_s25  ;;  %p3222_p3 = scmp.lt.u32.totalorder %s3218_s25, %s3543_s3 }
  0x28   :  { %p3224_p4 = pnand %p3222_p3, %p3219_p2 }
  0x2a   :  { %3227 = shalt.err (!%p3224_p4)
}
  0x2b   :  { %s3228_s1 = scalar_lea.vmem %s44_s19, 32  ;;  %p3233_p6 = scmp.lt.s32.totalorder %s44_s19, %s44_s19 }
  0x2c   :  { %p3229_p5 = scmp.ne.s32.totalorder %s44_s19, %s3228_s1  ;;  %p3234_p7 = scmp.lt.s32.totalorder %s3228_s1, %s3228_s1 }
  0x2e   :  { %p3235_p8 = por %p3234_p7, %p3233_p6 }
  0x30   :  { %p3236_p9 = pnand %p3235_p8, %p3229_p5 }
  0x32   :  { %3239 = shalt.err (!%p3236_p9)
}
  0x33   :  { %46 = dma.hbm_to_vmem [thread:$0]  %s3543_s3, 32, %s44_s19, [#allocation6]  }
  0x34   :  { %s3240_s8 = scalar_lea.hbm %s3544_s4, 32 }
  0x35   :  { %p3241_p10 = scmp.ne.s32.totalorder %s3544_s4, %s3240_s8  ;;  %p3244_p11 = scmp.lt.u32.totalorder %s3240_s8, %s3544_s4 }
  0x37   :  { %p3246_p12 = pnand %p3244_p11, %p3241_p10 }
  0x39   :  { %3249 = shalt.err (!%p3246_p12)
}
  0x3a   :  { %s3250_s13 = scalar_lea.vmem %s54_s22, 32  ;;  %p3255_p0 = scmp.lt.s32.totalorder %s54_s22, %s54_s22 }
  0x3b   :  { %p3251_p13 = scmp.ne.s32.totalorder %s54_s22, %s3250_s13  ;;  %p3256_p1 = scmp.lt.s32.totalorder %s3250_s13, %s3250_s13 }
  0x3d   :  { %p3257_p2 = por %p3256_p1, %p3255_p0 }
  0x3f   :  { %p3258_p3 = pnand %p3257_p2, %p3251_p13 }
  0x41   :  { %3261 = shalt.err (!%p3258_p3)
}
  0x42   :  { %56 = dma.hbm_to_vmem [thread:$0]  %s3544_s4, 32, %s54_s22, [#allocation9]  }
  0x43   :  { %3262 = dma.done.wait [#allocation4], 32768  }
  0x44   :  { %3263 = vsyncadd [#allocation4], 4294934528 }
  0x45   :  { %3264 = dma.done.wait [#allocation6], 64  }
  0x46   :  { %3265 = vsyncadd [#allocation6], 4294967232 }
  0x47   :  { %3266 = dma.done.wait [#allocation9], 32  }
  0x48   :  { %3267 = vsyncadd [#allocation9], 4294967264  ;;  %v2786_v0 = vld [vmem:[#allocation3 + $0x4] ss:$8 sps:$4 sm:$0xff]   ;;  %v2790_v2 = vld [vmem:[#allocation3] ss:$8 sps:$4 sm:$0xff]  }
  0x49   :  { %v2788_v1 = vld [vmem:[#allocation3 + $0x404] ss:$8 sps:$4 sm:$0xff]   ;;  %1817 = vmatprep.subr.bf16.mxu1 %v2786_v0  ;;  %v2791_v3 = vld [vmem:[#allocation3 + $0x400] ss:$8 sps:$4 sm:$0xff]   ;;  %v2792_v4 = vld [vmem:[#allocation3 + $0x14] ss:$8 sps:$4 sm:$0xff]  }
  0x4a   :  { %2029 = vmatprep.subr.bf16.mxu0 %v2788_v1  ;;  %1818 = vmatpush1.bf16.msra.mxu1 %v2790_v2  ;;  %v2794_v5 = vld [vmem:[#allocation3 + $0x414] ss:$8 sps:$4 sm:$0xff]   ;;  %v2796_v6 = vld [vmem:[#allocation3 + $0x10] ss:$8 sps:$4 sm:$0xff]   ;;  %v2798_v8 = vld [vmem:[#allocation3 + $0x24] ss:$8 sps:$4 sm:$0xff]  }
  0x4b   :  { %2030 = vmatpush1.bf16.msra.mxu0 %v2791_v3  ;;  %1819 = vmatprep.subr.bf16.mxu1 %v2792_v4  ;;  %v2797_v7 = vld [vmem:[#allocation3 + $0x410] ss:$8 sps:$4 sm:$0xff]   ;;  %v2800_v9 = vld [vmem:[#allocation3 + $0x424] ss:$8 sps:$4 sm:$0xff]   ;;  %v2802_v10 = vld [vmem:[#allocation3 + $0x20] ss:$8 sps:$4 sm:$0xff]  }
  0x4c   :  { %2031 = vmatprep.subr.bf16.mxu0 %v2794_v5  ;;  %v2803_v11 = vld [vmem:[#allocation3 + $0x420] ss:$8 sps:$4 sm:$0xff]   ;;  %v2804_v12 = vld [vmem:[#allocation3 + $0x34] ss:$8 sps:$4 sm:$0xff]   ;;  %v2808_v14 = vld [vmem:[#allocation3 + $0x30] ss:$8 sps:$4 sm:$0xff]  }
  0x4d   :  { %v2806_v13 = vld [vmem:[#allocation3 + $0x434] ss:$8 sps:$4 sm:$0xff]   ;;  %v2809_v15 = vld [vmem:[#allocation3 + $0x430] ss:$8 sps:$4 sm:$0xff]   ;;  %v2810_v16 = vld [vmem:[#allocation3 + $0x44] ss:$8 sps:$4 sm:$0xff]  }
  0x4e   :  { %1820 = vmatpush1.bf16.msra.mxu1 %v2796_v6  ;;  %v2812_v17 = vld [vmem:[#allocation3 + $0x444] ss:$8 sps:$4 sm:$0xff]   ;;  %v2814_v18 = vld [vmem:[#allocation3 + $0x40] ss:$8 sps:$4 sm:$0xff]   ;;  %v2816_v20 = vld [vmem:[#allocation3 + $0x54] ss:$8 sps:$4 sm:$0xff]  }
  0x4f   :  { %2032 = vmatpush1.bf16.msra.mxu0 %v2797_v7  ;;  %1821 = vmatprep.subr.bf16.mxu1 %v2798_v8  ;;  %v2815_v19 = vld [vmem:[#allocation3 + $0x440] ss:$8 sps:$4 sm:$0xff]   ;;  %v2818_v21 = vld [vmem:[#allocation3 + $0x454] ss:$8 sps:$4 sm:$0xff]   ;;  %v2820_v22 = vld [vmem:[#allocation3 + $0x50] ss:$8 sps:$4 sm:$0xff]  }
  0x50   :  { %2033 = vmatprep.subr.bf16.mxu0 %v2800_v9  ;;  %v2821_v23 = vld [vmem:[#allocation3 + $0x450] ss:$8 sps:$4 sm:$0xff]   ;;  %v2822_v24 = vld [vmem:[#allocation3 + $0x64] ss:$8 sps:$4 sm:$0xff]   ;;  %v2826_v26 = vld [vmem:[#allocation3 + $0x60] ss:$8 sps:$4 sm:$0xff]  }
  0x51   :  { %v2824_v25 = vld [vmem:[#allocation3 + $0x464] ss:$8 sps:$4 sm:$0xff]   ;;  %v2827_v27 = vld [vmem:[#allocation3 + $0x460] ss:$8 sps:$4 sm:$0xff]   ;;  %v2828_v28 = vld [vmem:[#allocation3 + $0x74] ss:$8 sps:$4 sm:$0xff]  }
  0x52   :  { %1822 = vmatpush1.bf16.msra.mxu1 %v2802_v10  ;;  %v2830_v29 = vld [vmem:[#allocation3 + $0x474] ss:$8 sps:$4 sm:$0xff]   ;;  %v2832_v30 = vld [vmem:[#allocation3 + $0x70] ss:$8 sps:$4 sm:$0xff]   ;;  %v2834_v32 = vld [vmem:[#allocation3 + $0x84] ss:$8 sps:$4 sm:$0xff]  }
  0x53   :  { %2034 = vmatpush1.bf16.msra.mxu0 %v2803_v11  ;;  %1823 = vmatprep.subr.bf16.mxu1 %v2804_v12  ;;  %v2833_v31 = vld [vmem:[#allocation3 + $0x470] ss:$8 sps:$4 sm:$0xff]   ;;  %v2836_v33 = vld [vmem:[#allocation3 + $0x484] ss:$8 sps:$4 sm:$0xff]   ;;  %v2838_v34 = vld [vmem:[#allocation3 + $0x80] ss:$8 sps:$4 sm:$0xff]  }
  0x54   :  { %2035 = vmatprep.subr.bf16.mxu0 %v2806_v13  ;;  %v2839_v35 = vld [vmem:[#allocation3 + $0x480] ss:$8 sps:$4 sm:$0xff]   ;;  %v2840_v36 = vld [vmem:[#allocation3 + $0x94] ss:$8 sps:$4 sm:$0xff]   ;;  %v2844_v38 = vld [vmem:[#allocation3 + $0x90] ss:$8 sps:$4 sm:$0xff]  }
  0x55   :  { %v2842_v37 = vld [vmem:[#allocation3 + $0x494] ss:$8 sps:$4 sm:$0xff]   ;;  %v2845_v39 = vld [vmem:[#allocation3 + $0x490] ss:$8 sps:$4 sm:$0xff]   ;;  %v2846_v40 = vld [vmem:[#allocation3 + $0xa4] ss:$8 sps:$4 sm:$0xff]  }
  0x56   :  { %1824 = vmatpush1.bf16.msra.mxu1 %v2808_v14  ;;  %v2848_v41 = vld [vmem:[#allocation3 + $0x4a4] ss:$8 sps:$4 sm:$0xff]   ;;  %v2850_v42 = vld [vmem:[#allocation3 + $0xa0] ss:$8 sps:$4 sm:$0xff]   ;;  %v2852_v44 = vld [vmem:[#allocation3 + $0xb4] ss:$8 sps:$4 sm:$0xff]  }
  0x57   :  { %2036 = vmatpush1.bf16.msra.mxu0 %v2809_v15  ;;  %1825 = vmatprep.subr.bf16.mxu1 %v2810_v16  ;;  %v2851_v43 = vld [vmem:[#allocation3 + $0x4a0] ss:$8 sps:$4 sm:$0xff]   ;;  %v2854_v45 = vld [vmem:[#allocation3 + $0x4b4] ss:$8 sps:$4 sm:$0xff]   ;;  %v2856_v46 = vld [vmem:[#allocation3 + $0xb0] ss:$8 sps:$4 sm:$0xff]  }
  0x58   :  { %2037 = vmatprep.subr.bf16.mxu0 %v2812_v17  ;;  %v2857_v47 = vld [vmem:[#allocation3 + $0x4b0] ss:$8 sps:$4 sm:$0xff]   ;;  %v89_v48 = vld [vmem:[%s3540_s0] sm:$0xff]  ;;  %v2864_v58 = vld [vmem:[#allocation3 + $0xd4] ss:$8 sps:$4 sm:$0xff]  }
  0x59   :  { %v97_v49 = vld [vmem:[%s3540_s0 + $0x40] sm:$0xff]  ;;  %v2866_v59 = vld [vmem:[#allocation3 + $0x4d4] ss:$8 sps:$4 sm:$0xff]   ;;  %v2868_v60 = vld [vmem:[#allocation3 + $0xd0] ss:$8 sps:$4 sm:$0xff]  }
  0x5a   :  { %1826 = vmatpush1.bf16.msra.mxu1 %v2814_v18  ;;  %v2858_v50 = vld [vmem:[#allocation3 + $0xc4] ss:$8 sps:$4 sm:$0xff]   ;;  %v2437_v52 = vcombine.high %v89_v48, %v97_v49  ;;  %v2862_v56 = vld [vmem:[#allocation3 + $0xc0] ss:$8 sps:$4 sm:$0xff]   ;;  %v2869_v61 = vld [vmem:[#allocation3 + $0x4d0] ss:$8 sps:$4 sm:$0xff]   ;;  %v2436_v8 = vcombine.low %v89_v48, %v97_v49 }
  0x5b   :  { %2038 = vmatpush1.bf16.msra.mxu0 %v2815_v19  ;;  %1827 = vmatprep.subr.bf16.mxu1 %v2816_v20  ;;  %v2860_v51 = vld [vmem:[#allocation3 + $0x4c4] ss:$8 sps:$4 sm:$0xff]   ;;  %v2863_v57 = vld [vmem:[#allocation3 + $0x4c0] ss:$8 sps:$4 sm:$0xff]   ;;  %v2876_v2 = vld [vmem:[#allocation3 + $0xf4] ss:$8 sps:$4 sm:$0xff]  }
  0x5c   :  { %2039 = vmatprep.subr.bf16.mxu0 %v2818_v21  ;;  %v93_v53 = vld [vmem:[%s3540_s0 + $0x20] sm:$0xff]  ;;  %1849 = vmatprep.mubr.bf16.mxu1 %v2437_v52  ;;  %v2878_v3 = vld [vmem:[#allocation3 + $0x4f4] ss:$8 sps:$4 sm:$0xff]   ;;  %v2880_v4 = vld [vmem:[#allocation3 + $0xf0] ss:$8 sps:$4 sm:$0xff]  }
  0x5d   :  { %v101_v54 = vld [vmem:[%s3540_s0 + $0x60] sm:$0xff]  ;;  %v2881_v5 = vld [vmem:[#allocation3 + $0x4f0] ss:$8 sps:$4 sm:$0xff]   ;;  %v2890_v12 = vld [vmem:[#allocation3 + $0x114] ss:$8 sps:$4 sm:$0xff]  }
  0x5e   :  { %1828 = vmatpush1.bf16.msra.mxu1 %v2820_v22  ;;  %v2445_v55 = vcombine.high %v93_v53, %v101_v54  ;;  %v2870_v62 = vld [vmem:[#allocation3 + $0xe4] ss:$8 sps:$4 sm:$0xff]   ;;  %v2874_v0 = vld [vmem:[#allocation3 + $0xe0] ss:$8 sps:$4 sm:$0xff]   ;;  %v2444_v10 = vcombine.low %v93_v53, %v101_v54  ;;  %v2893_v13 = vld [vmem:[#allocation3 + $0x514] ss:$8 sps:$4 sm:$0xff]  }
  0x5f   :  { %2040 = vmatpush1.bf16.msra.mxu0 %v2821_v23  ;;  %1829 = vmatprep.subr.bf16.mxu1 %v2822_v24  ;;  %v2872_v63 = vld [vmem:[#allocation3 + $0x4e4] ss:$8 sps:$4 sm:$0xff]   ;;  %v2875_v1 = vld [vmem:[#allocation3 + $0x4e0] ss:$8 sps:$4 sm:$0xff]   ;;  %v2888_v14 = vld [vmem:[#allocation3 + $0x110] ss:$8 sps:$4 sm:$0xff]  }
  0x60   :  { %2041 = vmatprep.subr.bf16.mxu0 %v2824_v25  ;;  %2061 = vmatprep.mubr.bf16.mxu0 %v2445_v55  ;;  %v2884_v6 = vld [vmem:[#allocation3 + $0x104] ss:$8 sps:$4 sm:$0xff]   ;;  %v2882_v9 = vld [vmem:[#allocation3 + $0x100] ss:$8 sps:$4 sm:$0xff]   ;;  %v2891_v15 = vld [vmem:[#allocation3 + $0x510] ss:$8 sps:$4 sm:$0xff]  }
  0x61   :  { %v2887_v7 = vld [vmem:[#allocation3 + $0x504] ss:$8 sps:$4 sm:$0xff]   ;;  %v2885_v11 = vld [vmem:[#allocation3 + $0x500] ss:$8 sps:$4 sm:$0xff]   ;;  %v2902_v20 = vld [vmem:[#allocation3 + $0x134] ss:$8 sps:$4 sm:$0xff]  }
  0x62   :  { %1830 = vmatpush1.bf16.msra.mxu1 %v2826_v26  ;;  %v2896_v16 = vld [vmem:[#allocation3 + $0x124] ss:$8 sps:$4 sm:$0xff]   ;;  %v2894_v18 = vld [vmem:[#allocation3 + $0x120] ss:$8 sps:$4 sm:$0xff]   ;;  %v2905_v21 = vld [vmem:[#allocation3 + $0x534] ss:$8 sps:$4 sm:$0xff]  }
  0x63   :  { %2042 = vmatpush1.bf16.msra.mxu0 %v2827_v27  ;;  %1831 = vmatprep.subr.bf16.mxu1 %v2828_v28  ;;  %v2899_v17 = vld [vmem:[#allocation3 + $0x524] ss:$8 sps:$4 sm:$0xff]   ;;  %v2897_v19 = vld [vmem:[#allocation3 + $0x520] ss:$8 sps:$4 sm:$0xff]   ;;  %v2900_v22 = vld [vmem:[#allocation3 + $0x130] ss:$8 sps:$4 sm:$0xff]  }
  0x64   :  { %2043 = vmatprep.subr.bf16.mxu0 %v2830_v29  ;;  %v2903_v23 = vld [vmem:[#allocation3 + $0x530] ss:$8 sps:$4 sm:$0xff]   ;;  %v2908_v24 = vld [vmem:[#allocation3 + $0x144] ss:$8 sps:$4 sm:$0xff]   ;;  %v2906_v26 = vld [vmem:[#allocation3 + $0x140] ss:$8 sps:$4 sm:$0xff]  }
  0x65   :  { %v2911_v25 = vld [vmem:[#allocation3 + $0x544] ss:$8 sps:$4 sm:$0xff]   ;;  %v2909_v27 = vld [vmem:[#allocation3 + $0x540] ss:$8 sps:$4 sm:$0xff]   ;;  %v2914_v28 = vld [vmem:[#allocation3 + $0x154] ss:$8 sps:$4 sm:$0xff]  }
  0x66   :  { %1832 = vmatpush1.bf16.msra.mxu1 %v2832_v30  ;;  %v2917_v29 = vld [vmem:[#allocation3 + $0x554] ss:$8 sps:$4 sm:$0xff]   ;;  %v105_v30 = vld [vmem:[%s3540_s0 + $0x80] sm:$0xff]  ;;  %v3398_v49 = vld [vmem:[%s3540_s0 + $0x28] sm:$0xff] }
  0x67   :  { %2044 = vmatpush1.bf16.msra.mxu0 %v2833_v31  ;;  %1833 = vmatprep.subr.bf16.mxu1 %v2834_v32  ;;  %v113_v31 = vld [vmem:[%s3540_s0 + $0xc0] sm:$0xff]  ;;  %v2912_v32 = vld [vmem:[#allocation3 + $0x150] ss:$8 sps:$4 sm:$0xff]  }
  0x68   :  { %2045 = vmatprep.subr.bf16.mxu0 %v2836_v33  ;;  %v2453_v33 = vcombine.high %v105_v30, %v113_v31  ;;  %v2927_v52 = vld [vmem:[#allocation3 + $0x570] ss:$8 sps:$4 sm:$0xff]   ;;  %v2932_v54 = vld [vmem:[#allocation3 + $0x184] ss:$8 sps:$4 sm:$0xff]  }
  0x69   :  { %v2935_v55 = vld [vmem:[#allocation3 + $0x584] ss:$8 sps:$4 sm:$0xff]  }
  0x6a   :  { %1834 = vmatpush1.bf16.msra.mxu1 %v2838_v34  ;;  %v2915_v34 = vld [vmem:[#allocation3 + $0x550] ss:$8 sps:$4 sm:$0xff]  }
  0x6b   :  { %2046 = vmatpush1.bf16.msra.mxu0 %v2839_v35  ;;  %1835 = vmatprep.subr.bf16.mxu1 %v2840_v36  ;;  %v109_v35 = vld [vmem:[%s3540_s0 + $0xa0] sm:$0xff] }
  0x6c   :  { %2047 = vmatprep.subr.bf16.mxu0 %v2842_v37  ;;  %v117_v36 = vld [vmem:[%s3540_s0 + $0xe0] sm:$0xff]  ;;  %v2452_v37 = vcombine.low %v105_v30, %v113_v31  ;;  %v2986_v30 = vld [vmem:[#allocation3 + $0x214] ss:$8 sps:$4 sm:$0xff]  }
  0x6d   :  { %v2989_v31 = vld [vmem:[#allocation3 + $0x614] ss:$8 sps:$4 sm:$0xff]  }
  0x6e   :  { %1836 = vmatpush1.bf16.msra.mxu1 %v2844_v38  ;;  %v2920_v38 = vld [vmem:[#allocation3 + $0x164] ss:$8 sps:$4 sm:$0xff]  }
  0x6f   :  { %2048 = vmatpush1.bf16.msra.mxu0 %v2845_v39  ;;  %1837 = vmatprep.subr.bf16.mxu1 %v2846_v40  ;;  %v2461_v39 = vcombine.high %v109_v35, %v117_v36  ;;  %v2460_v40 = vcombine.low %v109_v35, %v117_v36  ;;  %v2984_v36 = vld [vmem:[#allocation3 + $0x210] ss:$8 sps:$4 sm:$0xff]  }
  0x70   :  { %2049 = vmatprep.subr.bf16.mxu0 %v2848_v41  ;;  %v2923_v41 = vld [vmem:[#allocation3 + $0x564] ss:$8 sps:$4 sm:$0xff]  }
  0x72   :  { %1838 = vmatpush1.bf16.msra.mxu1 %v2850_v42  ;;  %v2918_v42 = vld [vmem:[#allocation3 + $0x160] ss:$8 sps:$4 sm:$0xff]  }
  0x73   :  { %2050 = vmatpush1.bf16.msra.mxu0 %v2851_v43  ;;  %1839 = vmatprep.subr.bf16.mxu1 %v2852_v44  ;;  %v2921_v43 = vld [vmem:[#allocation3 + $0x560] ss:$8 sps:$4 sm:$0xff]  }
  0x74   :  { %2051 = vmatprep.subr.bf16.mxu0 %v2854_v45  ;;  %v3386_v44 = vld [vmem:[%s3540_s0 + $0x8] sm:$0xff] }
  0x75   :  { %v3391_v45 = vld [vmem:[%s3540_s0 + $0x48] sm:$0xff] }
  0x76   :  { %1840 = vmatpush1.bf16.msra.mxu1 %v2856_v46  ;;  %v2926_v46 = vld [vmem:[#allocation3 + $0x174] ss:$8 sps:$4 sm:$0xff]   ;;  %v2439_v48 = vcombine.high %v3386_v44, %v3391_v45 }
  0x77   :  { %2052 = vmatpush1.bf16.msra.mxu0 %v2857_v47  ;;  %1841 = vmatprep.subr.bf16.mxu1 %v2858_v50  ;;  %v2929_v47 = vld [vmem:[#allocation3 + $0x574] ss:$8 sps:$4 sm:$0xff]   ;;  %v3403_v50 = vld [vmem:[%s3540_s0 + $0x68] sm:$0xff] }
  0x78   :  { %2053 = vmatprep.subr.bf16.mxu0 %v2860_v51  ;;  %v2924_v51 = vld [vmem:[#allocation3 + $0x170] ss:$8 sps:$4 sm:$0xff]   ;;  %v2447_v53 = vcombine.high %v3398_v49, %v3403_v50 }
  0x7a   :  { %1842 = vmatpush1.bf16.msra.mxu1 %v2862_v56  ;;  %v2930_v56 = vld [vmem:[#allocation3 + $0x180] ss:$8 sps:$4 sm:$0xff]  }
  0x7b   :  { %2054 = vmatpush1.bf16.msra.mxu0 %v2863_v57  ;;  %1843 = vmatprep.subr.bf16.mxu1 %v2864_v58  ;;  %v2933_v57 = vld [vmem:[#allocation3 + $0x580] ss:$8 sps:$4 sm:$0xff]   ;;  %v2938_v58 = vld [vmem:[#allocation3 + $0x194] ss:$8 sps:$4 sm:$0xff]  }
  0x7c   :  { %2055 = vmatprep.subr.bf16.mxu0 %v2866_v59  ;;  %v2941_v59 = vld [vmem:[#allocation3 + $0x594] ss:$8 sps:$4 sm:$0xff]  }
  0x7e   :  { %1844 = vmatpush1.bf16.msra.mxu1 %v2868_v60  ;;  %v2936_v60 = vld [vmem:[#allocation3 + $0x190] ss:$8 sps:$4 sm:$0xff]  }
  0x7f   :  { %2056 = vmatpush1.bf16.msra.mxu0 %v2869_v61  ;;  %1845 = vmatprep.subr.bf16.mxu1 %v2870_v62  ;;  %v2939_v61 = vld [vmem:[#allocation3 + $0x590] ss:$8 sps:$4 sm:$0xff]   ;;  %v2944_v62 = vld [vmem:[#allocation3 + $0x1a4] ss:$8 sps:$4 sm:$0xff]  }
  0x80   :  { %2057 = vmatprep.subr.bf16.mxu0 %v2872_v63  ;;  %v2947_v63 = vld [vmem:[#allocation3 + $0x5a4] ss:$8 sps:$4 sm:$0xff]  }
  0x82   :  { %1846 = vmatpush1.bf16.msra.mxu1 %v2874_v0  ;;  %v2942_v0 = vld [vmem:[#allocation3 + $0x1a0] ss:$8 sps:$4 sm:$0xff]  }
  0x83   :  { %2058 = vmatpush1.bf16.msra.mxu0 %v2875_v1  ;;  %1847 = vmatprep.subr.bf16.mxu1 %v2876_v2  ;;  %v2945_v1 = vld [vmem:[#allocation3 + $0x5a0] ss:$8 sps:$4 sm:$0xff]   ;;  %v2950_v2 = vld [vmem:[#allocation3 + $0x1b4] ss:$8 sps:$4 sm:$0xff]  }
  0x84   :  { %2059 = vmatprep.subr.bf16.mxu0 %v2878_v3  ;;  %v2953_v3 = vld [vmem:[#allocation3 + $0x5b4] ss:$8 sps:$4 sm:$0xff]  }
  0x86   :  { %1848 = vmatpush1.bf16.msra.mxu1 %v2880_v4  ;;  %v2948_v4 = vld [vmem:[#allocation3 + $0x1b0] ss:$8 sps:$4 sm:$0xff]  }
  0x87   :  { %2060 = vmatpush1.bf16.msra.mxu0 %v2881_v5  ;;  %1870 = vmatprep.subr.bf16.mxu1 %v2884_v6  ;;  %v2951_v5 = vld [vmem:[#allocation3 + $0x5b0] ss:$8 sps:$4 sm:$0xff]   ;;  %v2956_v6 = vld [vmem:[#allocation3 + $0x1c4] ss:$8 sps:$4 sm:$0xff]  }
  0x88   :  { %2082 = vmatprep.subr.bf16.mxu0 %v2887_v7  ;;  %v2959_v7 = vld [vmem:[#allocation3 + $0x5c4] ss:$8 sps:$4 sm:$0xff]  }
  0x89   :  { %1850 = vmatmul.mubr.bf16.vlgmr.msra.gmra.mrb[0].mxu1 %v2436_v8  ;;  %v2954_v8 = vld [vmem:[#allocation3 + $0x1c0] ss:$8 sps:$4 sm:$0xff]  }
  0x8a   :  { %2062 = vmatmul.mubr.bf16.vlgmr.msra.gmra.mrb[0].mxu0 %v2444_v10  ;;  %1871 = vmatpush1.bf16.msra.mxu1 %v2882_v9  ;;  %v2957_v9 = vld [vmem:[#allocation3 + $0x5c0] ss:$8 sps:$4 sm:$0xff]   ;;  %v2962_v10 = vld [vmem:[#allocation3 + $0x1d4] ss:$8 sps:$4 sm:$0xff]  }
  0x8b   :  { %2083 = vmatpush1.bf16.msra.mxu0 %v2885_v11  ;;  %1872 = vmatprep.subr.bf16.mxu1 %v2890_v12  ;;  %v2965_v11 = vld [vmem:[#allocation3 + $0x5d4] ss:$8 sps:$4 sm:$0xff]   ;;  %v2960_v12 = vld [vmem:[#allocation3 + $0x1d0] ss:$8 sps:$4 sm:$0xff]  }
  0x8c   :  { %2084 = vmatprep.subr.bf16.mxu0 %v2893_v13  ;;  %1859 = vmatprep.mubr.bf16.mxu1 %v2453_v33  ;;  %v2963_v13 = vld [vmem:[#allocation3 + $0x5d0] ss:$8 sps:$4 sm:$0xff]   ;;  %v118_v33 = vld [vmem:[%s3540_s0 + $0xe8] sm:$0xff] }
  0x8d   :  { %2071 = vmatprep.mubr.bf16.mxu0 %v2461_v39  ;;  %v2995_v39 = vld [vmem:[#allocation3 + $0x624] ss:$8 sps:$4 sm:$0xff]  }
  0x8e   :  { %1873 = vmatpush1.bf16.msra.mxu1 %v2888_v14  ;;  %v2968_v14 = vld [vmem:[#allocation3 + $0x1e4] ss:$8 sps:$4 sm:$0xff]  }
  0x8f   :  { %2085 = vmatpush1.bf16.msra.mxu0 %v2891_v15  ;;  %1874 = vmatprep.subr.bf16.mxu1 %v2896_v16  ;;  %v2971_v15 = vld [vmem:[#allocation3 + $0x5e4] ss:$8 sps:$4 sm:$0xff]   ;;  %v2966_v16 = vld [vmem:[#allocation3 + $0x1e0] ss:$8 sps:$4 sm:$0xff]  }
  0x90   :  { %2086 = vmatprep.subr.bf16.mxu0 %v2899_v17  ;;  %v2969_v17 = vld [vmem:[#allocation3 + $0x5e0] ss:$8 sps:$4 sm:$0xff]  }
  0x91   :  { %1860 = vmatmul.mubr.bf16.gmra.mrb[4].mxu1 %v2452_v37  ;;  %v2987_v37 = vld [vmem:[#allocation3 + $0x610] ss:$8 sps:$4 sm:$0xff]  }
  0x92   :  { %1875 = vmatpush1.bf16.msra.mxu1 %v2894_v18  ;;  %2072 = vmatmul.mubr.bf16.gmra.mrb[4].mxu0 %v2460_v40  ;;  %v2974_v18 = vld [vmem:[#allocation3 + $0x1f4] ss:$8 sps:$4 sm:$0xff]   ;;  %v2990_v40 = vld [vmem:[#allocation3 + $0x220] ss:$8 sps:$4 sm:$0xff]  }
  0x93   :  { %2087 = vmatpush1.bf16.msra.mxu0 %v2897_v19  ;;  %1876 = vmatprep.subr.bf16.mxu1 %v2902_v20  ;;  %v2977_v19 = vld [vmem:[#allocation3 + $0x5f4] ss:$8 sps:$4 sm:$0xff]   ;;  %v2972_v20 = vld [vmem:[#allocation3 + $0x1f0] ss:$8 sps:$4 sm:$0xff]  }
  0x94   :  { %2088 = vmatprep.subr.bf16.mxu0 %v2905_v21  ;;  %1902 = vmatprep.mubr.bf16.mxu1 %v2439_v48  ;;  %v2975_v21 = vld [vmem:[#allocation3 + $0x5f0] ss:$8 sps:$4 sm:$0xff]   ;;  %v2998_v48 = vld [vmem:[#allocation3 + $0x234] ss:$8 sps:$4 sm:$0xff]  }
  0x95   :  { %2114 = vmatprep.mubr.bf16.mxu0 %v2447_v53  ;;  %v2999_v53 = vld [vmem:[#allocation3 + $0x630] ss:$8 sps:$4 sm:$0xff]  }
  0x96   :  { %1877 = vmatpush1.bf16.msra.mxu1 %v2900_v22  ;;  %v2980_v22 = vld [vmem:[#allocation3 + $0x204] ss:$8 sps:$4 sm:$0xff]  }
  0x97   :  { %2089 = vmatpush1.bf16.msra.mxu0 %v2903_v23  ;;  %1878 = vmatprep.subr.bf16.mxu1 %v2908_v24  ;;  %v2983_v23 = vld [vmem:[#allocation3 + $0x604] ss:$8 sps:$4 sm:$0xff]   ;;  %v2978_v24 = vld [vmem:[#allocation3 + $0x200] ss:$8 sps:$4 sm:$0xff]  }
  0x98   :  { %2090 = vmatprep.subr.bf16.mxu0 %v2911_v25  ;;  %v2981_v25 = vld [vmem:[#allocation3 + $0x600] ss:$8 sps:$4 sm:$0xff]  }
  0x9a   :  { %1879 = vmatpush1.bf16.msra.mxu1 %v2906_v26  ;;  %v106_v26 = vld [vmem:[%s3540_s0 + $0x88] sm:$0xff] }
  0x9b   :  { %2091 = vmatpush1.bf16.msra.mxu0 %v2909_v27  ;;  %1880 = vmatprep.subr.bf16.mxu1 %v2914_v28  ;;  %v2438_v27 = vcombine.low %v3386_v44, %v3391_v45  ;;  %v2446_v28 = vcombine.low %v3398_v49, %v3403_v50  ;;  %v3431_v45 = vld [vmem:[%s3540_s0 + $0x50] sm:$0xff] }
  0x9c   :  { %2092 = vmatprep.subr.bf16.mxu0 %v2917_v29  ;;  %v114_v29 = vld [vmem:[%s3540_s0 + $0xc8] sm:$0xff]  ;;  %v3001_v49 = vld [vmem:[#allocation3 + $0x634] ss:$8 sps:$4 sm:$0xff]  }
  0x9e   :  { %1881 = vmatpush1.bf16.msra.mxu1 %v2912_v32  ;;  %v110_v32 = vld [vmem:[%s3540_s0 + $0xa8] sm:$0xff] }
  0x9f   :  { %2093 = vmatpush1.bf16.msra.mxu0 %v2915_v34  ;;  %1882 = vmatprep.subr.bf16.mxu1 %v2920_v38  ;;  %v2455_v34 = vcombine.high %v106_v26, %v114_v29  ;;  %v2463_v35 = vcombine.high %v110_v32, %v118_v33  ;;  %v2992_v38 = vld [vmem:[#allocation3 + $0x224] ss:$8 sps:$4 sm:$0xff]   ;;  %v2462_v44 = vcombine.low %v110_v32, %v118_v33  ;;  %v3062_v32 = vld [vmem:[#allocation3 + $0x2e0] ss:$8 sps:$4 sm:$0xff]  }
  0xa0   :  { %2094 = vmatprep.subr.bf16.mxu0 %v2923_v41  ;;  %v2993_v41 = vld [vmem:[#allocation3 + $0x620] ss:$8 sps:$4 sm:$0xff]  }
  0xa1   :  { %v3065_v33 = vld [vmem:[#allocation3 + $0x6e0] ss:$8 sps:$4 sm:$0xff]  }
  0xa2   :  { %1883 = vmatpush1.bf16.msra.mxu1 %v2918_v42  ;;  %v3426_v42 = vld [vmem:[%s3540_s0 + $0x10] sm:$0xff] }
  0xa3   :  { %2095 = vmatpush1.bf16.msra.mxu0 %v2921_v43  ;;  %1884 = vmatprep.subr.bf16.mxu1 %v2926_v46  ;;  %v2454_v43 = vcombine.low %v106_v26, %v114_v29  ;;  %v3436_v46 = vld [vmem:[%s3540_s0 + $0x30] sm:$0xff]  ;;  %v2441_v50 = vcombine.high %v3426_v42, %v3431_v45 }
  0xa4   :  { %2096 = vmatprep.subr.bf16.mxu0 %v2929_v47  ;;  %v3441_v47 = vld [vmem:[%s3540_s0 + $0x70] sm:$0xff] }
  0xa5   :  { %v3058_v26 = vld [vmem:[#allocation3 + $0x2d4] ss:$8 sps:$4 sm:$0xff]   ;;  %v3059_v29 = vld [vmem:[#allocation3 + $0x6d0] ss:$8 sps:$4 sm:$0xff]  }
  0xa6   :  { %1885 = vmatpush1.bf16.msra.mxu1 %v2924_v51  ;;  %v2449_v51 = vcombine.high %v3436_v46, %v3441_v47 }
  0xa7   :  { %2097 = vmatpush1.bf16.msra.mxu0 %v2927_v52  ;;  %1886 = vmatprep.subr.bf16.mxu1 %v2932_v54  ;;  %v2996_v52 = vld [vmem:[#allocation3 + $0x230] ss:$8 sps:$4 sm:$0xff]   ;;  %v3004_v54 = vld [vmem:[#allocation3 + $0x244] ss:$8 sps:$4 sm:$0xff]  }
  0xa8   :  { %2098 = vmatprep.subr.bf16.mxu0 %v2935_v55  ;;  %v3007_v55 = vld [vmem:[#allocation3 + $0x644] ss:$8 sps:$4 sm:$0xff]  }
  0xaa   :  { %1887 = vmatpush1.bf16.msra.mxu1 %v2930_v56  ;;  %v3002_v56 = vld [vmem:[#allocation3 + $0x240] ss:$8 sps:$4 sm:$0xff]  }
  0xab   :  { %2099 = vmatpush1.bf16.msra.mxu0 %v2933_v57  ;;  %1888 = vmatprep.subr.bf16.mxu1 %v2938_v58  ;;  %v3005_v57 = vld [vmem:[#allocation3 + $0x640] ss:$8 sps:$4 sm:$0xff]   ;;  %v3010_v58 = vld [vmem:[#allocation3 + $0x254] ss:$8 sps:$4 sm:$0xff]  }
  0xac   :  { %2100 = vmatprep.subr.bf16.mxu0 %v2941_v59  ;;  %v3013_v59 = vld [vmem:[#allocation3 + $0x654] ss:$8 sps:$4 sm:$0xff]  }
  0xae   :  { %1889 = vmatpush1.bf16.msra.mxu1 %v2936_v60  ;;  %v3008_v60 = vld [vmem:[#allocation3 + $0x250] ss:$8 sps:$4 sm:$0xff]  }
  0xaf   :  { %2101 = vmatpush1.bf16.msra.mxu0 %v2939_v61  ;;  %1890 = vmatprep.subr.bf16.mxu1 %v2944_v62  ;;  %v3011_v61 = vld [vmem:[#allocation3 + $0x650] ss:$8 sps:$4 sm:$0xff]   ;;  %v3016_v62 = vld [vmem:[#allocation3 + $0x264] ss:$8 sps:$4 sm:$0xff]  }
  0xb0   :  { %2102 = vmatprep.subr.bf16.mxu0 %v2947_v63  ;;  %v3019_v63 = vld [vmem:[#allocation3 + $0x664] ss:$8 sps:$4 sm:$0xff]  }
  0xb2   :  { %1891 = vmatpush1.bf16.msra.mxu1 %v2942_v0  ;;  %v3014_v0 = vld [vmem:[#allocation3 + $0x260] ss:$8 sps:$4 sm:$0xff]  }
  0xb3   :  { %2103 = vmatpush1.bf16.msra.mxu0 %v2945_v1  ;;  %1892 = vmatprep.subr.bf16.mxu1 %v2950_v2  ;;  %v3017_v1 = vld [vmem:[#allocation3 + $0x660] ss:$8 sps:$4 sm:$0xff]   ;;  %v3022_v2 = vld [vmem:[#allocation3 + $0x274] ss:$8 sps:$4 sm:$0xff]  }
  0xb4   :  { %2104 = vmatprep.subr.bf16.mxu0 %v2953_v3  ;;  %v3025_v3 = vld [vmem:[#allocation3 + $0x674] ss:$8 sps:$4 sm:$0xff]  }
  0xb6   :  { %1893 = vmatpush1.bf16.msra.mxu1 %v2948_v4  ;;  %v3020_v4 = vld [vmem:[#allocation3 + $0x270] ss:$8 sps:$4 sm:$0xff]  }
  0xb7   :  { %2105 = vmatpush1.bf16.msra.mxu0 %v2951_v5  ;;  %1894 = vmatprep.subr.bf16.mxu1 %v2956_v6  ;;  %v3023_v5 = vld [vmem:[#allocation3 + $0x670] ss:$8 sps:$4 sm:$0xff]   ;;  %v3028_v6 = vld [vmem:[#allocation3 + $0x284] ss:$8 sps:$4 sm:$0xff]  }
  0xb8   :  { %2106 = vmatprep.subr.bf16.mxu0 %v2959_v7  ;;  %v3031_v7 = vld [vmem:[#allocation3 + $0x684] ss:$8 sps:$4 sm:$0xff]  }
  0xba   :  { %1895 = vmatpush1.bf16.msra.mxu1 %v2954_v8  ;;  %v3026_v8 = vld [vmem:[#allocation3 + $0x280] ss:$8 sps:$4 sm:$0xff]  }
  0xbb   :  { %2107 = vmatpush1.bf16.msra.mxu0 %v2957_v9  ;;  %1896 = vmatprep.subr.bf16.mxu1 %v2962_v10  ;;  %v3029_v9 = vld [vmem:[#allocation3 + $0x680] ss:$8 sps:$4 sm:$0xff]   ;;  %v3034_v10 = vld [vmem:[#allocation3 + $0x294] ss:$8 sps:$4 sm:$0xff]  }
  0xbc   :  { %2108 = vmatprep.subr.bf16.mxu0 %v2965_v11  ;;  %v3037_v11 = vld [vmem:[#allocation3 + $0x694] ss:$8 sps:$4 sm:$0xff]  }
  0xbe   :  { %1897 = vmatpush1.bf16.msra.mxu1 %v2960_v12  ;;  %v3032_v12 = vld [vmem:[#allocation3 + $0x290] ss:$8 sps:$4 sm:$0xff]  }
  0xbf   :  { %2109 = vmatpush1.bf16.msra.mxu0 %v2963_v13  ;;  %1898 = vmatprep.subr.bf16.mxu1 %v2968_v14  ;;  %v3035_v13 = vld [vmem:[#allocation3 + $0x690] ss:$8 sps:$4 sm:$0xff]   ;;  %v3040_v14 = vld [vmem:[#allocation3 + $0x2a4] ss:$8 sps:$4 sm:$0xff]  }
  0xc0   :  { %2110 = vmatprep.subr.bf16.mxu0 %v2971_v15  ;;  %v3043_v15 = vld [vmem:[#allocation3 + $0x6a4] ss:$8 sps:$4 sm:$0xff]  }
  0xc2   :  { %1899 = vmatpush1.bf16.msra.mxu1 %v2966_v16  ;;  %v3038_v16 = vld [vmem:[#allocation3 + $0x2a0] ss:$8 sps:$4 sm:$0xff]  }
  0xc3   :  { %2111 = vmatpush1.bf16.msra.mxu0 %v2969_v17  ;;  %1900 = vmatprep.subr.bf16.mxu1 %v2974_v18  ;;  %v3041_v17 = vld [vmem:[#allocation3 + $0x6a0] ss:$8 sps:$4 sm:$0xff]   ;;  %v3046_v18 = vld [vmem:[#allocation3 + $0x2b4] ss:$8 sps:$4 sm:$0xff]  }
  0xc4   :  { %2112 = vmatprep.subr.bf16.mxu0 %v2977_v19  ;;  %v3049_v19 = vld [vmem:[#allocation3 + $0x6b4] ss:$8 sps:$4 sm:$0xff]  }
  0xc6   :  { %1901 = vmatpush1.bf16.msra.mxu1 %v2972_v20  ;;  %v3044_v20 = vld [vmem:[#allocation3 + $0x2b0] ss:$8 sps:$4 sm:$0xff]  }
  0xc7   :  { %2113 = vmatpush1.bf16.msra.mxu0 %v2975_v21  ;;  %1923 = vmatprep.subr.bf16.mxu1 %v2980_v22  ;;  %v3047_v21 = vld [vmem:[#allocation3 + $0x6b0] ss:$8 sps:$4 sm:$0xff]   ;;  %v3052_v22 = vld [vmem:[#allocation3 + $0x2c4] ss:$8 sps:$4 sm:$0xff]  }
  0xc8   :  { %2135 = vmatprep.subr.bf16.mxu0 %v2983_v23  ;;  %v3055_v23 = vld [vmem:[#allocation3 + $0x6c4] ss:$8 sps:$4 sm:$0xff]  }
  0xc9   :  { %1903 = vmatmul.mubr.bf16.vlgmr.msra.gmra.mrb[0].mxu1 %v2438_v27  ;;  %v3061_v27 = vld [vmem:[#allocation3 + $0x6d4] ss:$8 sps:$4 sm:$0xff]  }
  0xca   :  { %2115 = vmatmul.mubr.bf16.vlgmr.msra.gmra.mrb[0].mxu0 %v2446_v28  ;;  %1924 = vmatpush1.bf16.msra.mxu1 %v2978_v24  ;;  %v3050_v24 = vld [vmem:[#allocation3 + $0x2c0] ss:$8 sps:$4 sm:$0xff]   ;;  %v3056_v28 = vld [vmem:[#allocation3 + $0x2d0] ss:$8 sps:$4 sm:$0xff]  }
  0xcb   :  { %2136 = vmatpush1.bf16.msra.mxu0 %v2981_v25  ;;  %1925 = vmatprep.subr.bf16.mxu1 %v2986_v30  ;;  %v3053_v25 = vld [vmem:[#allocation3 + $0x6c0] ss:$8 sps:$4 sm:$0xff]   ;;  %v3064_v30 = vld [vmem:[#allocation3 + $0x2e4] ss:$8 sps:$4 sm:$0xff]  }
  0xcc   :  { %2137 = vmatprep.subr.bf16.mxu0 %v2989_v31  ;;  %1912 = vmatprep.mubr.bf16.mxu1 %v2455_v34  ;;  %v3067_v31 = vld [vmem:[#allocation3 + $0x6e4] ss:$8 sps:$4 sm:$0xff]   ;;  %v3070_v34 = vld [vmem:[#allocation3 + $0x2f4] ss:$8 sps:$4 sm:$0xff]  }
  0xcd   :  { %2124 = vmatprep.mubr.bf16.mxu0 %v2463_v35  ;;  %v3073_v35 = vld [vmem:[#allocation3 + $0x6f4] ss:$8 sps:$4 sm:$0xff]  }
  0xce   :  { %1926 = vmatpush1.bf16.msra.mxu1 %v2984_v36  ;;  %v3068_v36 = vld [vmem:[#allocation3 + $0x2f0] ss:$8 sps:$4 sm:$0xff]  }
  0xcf   :  { %2138 = vmatpush1.bf16.msra.mxu0 %v2987_v37  ;;  %1927 = vmatprep.subr.bf16.mxu1 %v2992_v38  ;;  %v3071_v37 = vld [vmem:[#allocation3 + $0x6f0] ss:$8 sps:$4 sm:$0xff]   ;;  %v3076_v38 = vld [vmem:[#allocation3 + $0x304] ss:$8 sps:$4 sm:$0xff]  }
  0xd0   :  { %2139 = vmatprep.subr.bf16.mxu0 %v2995_v39  ;;  %v3079_v39 = vld [vmem:[#allocation3 + $0x704] ss:$8 sps:$4 sm:$0xff]  }
  0xd1   :  { %1913 = vmatmul.mubr.bf16.gmra.mrb[4].mxu1 %v2454_v43  ;;  %v2448_v43 = vcombine.low %v3436_v46, %v3441_v47 }
  0xd2   :  { %2125 = vmatmul.mubr.bf16.gmra.mrb[4].mxu0 %v2462_v44  ;;  %1928 = vmatpush1.bf16.msra.mxu1 %v2990_v40  ;;  %v107_v40 = vld [vmem:[%s3540_s0 + $0x90] sm:$0xff] }
  0xd3   :  { %2140 = vmatpush1.bf16.msra.mxu0 %v2993_v41  ;;  %1929 = vmatprep.subr.bf16.mxu1 %v2998_v48  ;;  %v2440_v41 = vcombine.low %v3426_v42, %v3431_v45  ;;  %v115_v44 = vld [vmem:[%s3540_s0 + $0xd0] sm:$0xff] }
  0xd4   :  { %2141 = vmatprep.subr.bf16.mxu0 %v3001_v49  ;;  %1955 = vmatprep.mubr.bf16.mxu1 %v2441_v50  ;;  %v111_v48 = vld [vmem:[%s3540_s0 + $0xb0] sm:$0xff]  ;;  %v3074_v50 = vld [vmem:[#allocation3 + $0x300] ss:$8 sps:$4 sm:$0xff]   ;;  %v2457_v46 = vcombine.high %v107_v40, %v115_v44 }
  0xd5   :  { %2167 = vmatprep.mubr.bf16.mxu0 %v2449_v51  ;;  %v119_v49 = vld [vmem:[%s3540_s0 + $0xf0] sm:$0xff]  ;;  %v3077_v51 = vld [vmem:[#allocation3 + $0x700] ss:$8 sps:$4 sm:$0xff]  }
  0xd6   :  { %1930 = vmatpush1.bf16.msra.mxu1 %v2996_v52  ;;  %v3082_v42 = vld [vmem:[#allocation3 + $0x314] ss:$8 sps:$4 sm:$0xff]   ;;  %v2465_v47 = vcombine.high %v111_v48, %v119_v49  ;;  %v3080_v52 = vld [vmem:[#allocation3 + $0x310] ss:$8 sps:$4 sm:$0xff]  }
  0xd7   :  { %2142 = vmatpush1.bf16.msra.mxu0 %v2999_v53  ;;  %1931 = vmatprep.subr.bf16.mxu1 %v3004_v54  ;;  %v3085_v45 = vld [vmem:[#allocation3 + $0x714] ss:$8 sps:$4 sm:$0xff]   ;;  %v3083_v53 = vld [vmem:[#allocation3 + $0x710] ss:$8 sps:$4 sm:$0xff]   ;;  %v3088_v54 = vld [vmem:[#allocation3 + $0x324] ss:$8 sps:$4 sm:$0xff]  }
  0xd8   :  { %2143 = vmatprep.subr.bf16.mxu0 %v3007_v55  ;;  %v3091_v55 = vld [vmem:[#allocation3 + $0x724] ss:$8 sps:$4 sm:$0xff]  }
  0xda   :  { %1932 = vmatpush1.bf16.msra.mxu1 %v3002_v56  ;;  %v3466_v56 = vld [vmem:[%s3540_s0 + $0x18] sm:$0xff] }
  0xdb   :  { %2144 = vmatpush1.bf16.msra.mxu0 %v3005_v57  ;;  %1933 = vmatprep.subr.bf16.mxu1 %v3010_v58  ;;  %v2456_v57 = vcombine.low %v107_v40, %v115_v44  ;;  %v2464_v58 = vcombine.low %v111_v48, %v119_v49  ;;  %v3146_v40 = vld [vmem:[#allocation3 + $0x3c0] ss:$8 sps:$4 sm:$0xff]   ;;  %v3157_v44 = vld [vmem:[#allocation3 + $0x7d4] ss:$8 sps:$4 sm:$0xff]   ;;  %v3152_v48 = vld [vmem:[#allocation3 + $0x3d0] ss:$8 sps:$4 sm:$0xff]  }
  0xdc   :  { %2145 = vmatprep.subr.bf16.mxu0 %v3013_v59  ;;  %v3471_v59 = vld [vmem:[%s3540_s0 + $0x58] sm:$0xff] }
  0xdd   :  { %v3155_v49 = vld [vmem:[#allocation3 + $0x7d0] ss:$8 sps:$4 sm:$0xff]  }
  0xde   :  { %1934 = vmatpush1.bf16.msra.mxu1 %v3008_v60  ;;  %v3476_v60 = vld [vmem:[%s3540_s0 + $0x38] sm:$0xff] }
  0xdf   :  { %2146 = vmatpush1.bf16.msra.mxu0 %v3011_v61  ;;  %1935 = vmatprep.subr.bf16.mxu1 %v3016_v62  ;;  %v3481_v61 = vld [vmem:[%s3540_s0 + $0x78] sm:$0xff]  ;;  %v3086_v62 = vld [vmem:[#allocation3 + $0x320] ss:$8 sps:$4 sm:$0xff]  }
  0xe0   :  { %2147 = vmatprep.subr.bf16.mxu0 %v3019_v63  ;;  %v3089_v63 = vld [vmem:[#allocation3 + $0x720] ss:$8 sps:$4 sm:$0xff]  }
  0xe2   :  { %1936 = vmatpush1.bf16.msra.mxu1 %v3014_v0  ;;  %v3094_v0 = vld [vmem:[#allocation3 + $0x334] ss:$8 sps:$4 sm:$0xff]  }
  0xe3   :  { %2148 = vmatpush1.bf16.msra.mxu0 %v3017_v1  ;;  %1937 = vmatprep.subr.bf16.mxu1 %v3022_v2  ;;  %v3097_v1 = vld [vmem:[#allocation3 + $0x734] ss:$8 sps:$4 sm:$0xff]   ;;  %v2443_v2 = vcombine.high %v3466_v56, %v3471_v59 }
  0xe4   :  { %2149 = vmatprep.subr.bf16.mxu0 %v3025_v3  ;;  %v2451_v3 = vcombine.high %v3476_v60, %v3481_v61 }
  0xe6   :  { %1938 = vmatpush1.bf16.msra.mxu1 %v3020_v4  ;;  %v3092_v4 = vld [vmem:[#allocation3 + $0x330] ss:$8 sps:$4 sm:$0xff]  }
  0xe7   :  { %2150 = vmatpush1.bf16.msra.mxu0 %v3023_v5  ;;  %1939 = vmatprep.subr.bf16.mxu1 %v3028_v6  ;;  %v3095_v5 = vld [vmem:[#allocation3 + $0x730] ss:$8 sps:$4 sm:$0xff]   ;;  %v3100_v6 = vld [vmem:[#allocation3 + $0x344] ss:$8 sps:$4 sm:$0xff]  }
  0xe8   :  { %2151 = vmatprep.subr.bf16.mxu0 %v3031_v7  ;;  %v3103_v7 = vld [vmem:[#allocation3 + $0x744] ss:$8 sps:$4 sm:$0xff]  }
  0xea   :  { %1940 = vmatpush1.bf16.msra.mxu1 %v3026_v8  ;;  %v3098_v8 = vld [vmem:[#allocation3 + $0x340] ss:$8 sps:$4 sm:$0xff]  }
  0xeb   :  { %2152 = vmatpush1.bf16.msra.mxu0 %v3029_v9  ;;  %1941 = vmatprep.subr.bf16.mxu1 %v3034_v10  ;;  %v3101_v9 = vld [vmem:[#allocation3 + $0x740] ss:$8 sps:$4 sm:$0xff]   ;;  %v3106_v10 = vld [vmem:[#allocation3 + $0x354] ss:$8 sps:$4 sm:$0xff]  }
  0xec   :  { %2153 = vmatprep.subr.bf16.mxu0 %v3037_v11  ;;  %v3109_v11 = vld [vmem:[#allocation3 + $0x754] ss:$8 sps:$4 sm:$0xff]  }
  0xee   :  { %1942 = vmatpush1.bf16.msra.mxu1 %v3032_v12  ;;  %v3104_v12 = vld [vmem:[#allocation3 + $0x350] ss:$8 sps:$4 sm:$0xff]  }
  0xef   :  { %2154 = vmatpush1.bf16.msra.mxu0 %v3035_v13  ;;  %1943 = vmatprep.subr.bf16.mxu1 %v3040_v14  ;;  %v3107_v13 = vld [vmem:[#allocation3 + $0x750] ss:$8 sps:$4 sm:$0xff]   ;;  %v3112_v14 = vld [vmem:[#allocation3 + $0x364] ss:$8 sps:$4 sm:$0xff]  }
  0xf0   :  { %2155 = vmatprep.subr.bf16.mxu0 %v3043_v15  ;;  %v3115_v15 = vld [vmem:[#allocation3 + $0x764] ss:$8 sps:$4 sm:$0xff]  }
  0xf2   :  { %1944 = vmatpush1.bf16.msra.mxu1 %v3038_v16  ;;  %v3110_v16 = vld [vmem:[#allocation3 + $0x360] ss:$8 sps:$4 sm:$0xff]  }
  0xf3   :  { %2156 = vmatpush1.bf16.msra.mxu0 %v3041_v17  ;;  %1945 = vmatprep.subr.bf16.mxu1 %v3046_v18  ;;  %v3113_v17 = vld [vmem:[#allocation3 + $0x760] ss:$8 sps:$4 sm:$0xff]   ;;  %v3118_v18 = vld [vmem:[#allocation3 + $0x374] ss:$8 sps:$4 sm:$0xff]  }
  0xf4   :  { %2157 = vmatprep.subr.bf16.mxu0 %v3049_v19  ;;  %v3121_v19 = vld [vmem:[#allocation3 + $0x774] ss:$8 sps:$4 sm:$0xff]  }
  0xf6   :  { %1946 = vmatpush1.bf16.msra.mxu1 %v3044_v20  ;;  %v3116_v20 = vld [vmem:[#allocation3 + $0x370] ss:$8 sps:$4 sm:$0xff]  }
  0xf7   :  { %2158 = vmatpush1.bf16.msra.mxu0 %v3047_v21  ;;  %1947 = vmatprep.subr.bf16.mxu1 %v3052_v22  ;;  %v3119_v21 = vld [vmem:[#allocation3 + $0x770] ss:$8 sps:$4 sm:$0xff]   ;;  %v3124_v22 = vld [vmem:[#allocation3 + $0x384] ss:$8 sps:$4 sm:$0xff]  }
  0xf8   :  { %2159 = vmatprep.subr.bf16.mxu0 %v3055_v23  ;;  %v3127_v23 = vld [vmem:[#allocation3 + $0x784] ss:$8 sps:$4 sm:$0xff]  }
  0xfa   :  { %1948 = vmatpush1.bf16.msra.mxu1 %v3050_v24  ;;  %v3122_v24 = vld [vmem:[#allocation3 + $0x380] ss:$8 sps:$4 sm:$0xff]  }
  0xfb   :  { %2160 = vmatpush1.bf16.msra.mxu0 %v3053_v25  ;;  %1949 = vmatprep.subr.bf16.mxu1 %v3058_v26  ;;  %v3125_v25 = vld [vmem:[#allocation3 + $0x780] ss:$8 sps:$4 sm:$0xff]   ;;  %v3130_v26 = vld [vmem:[#allocation3 + $0x394] ss:$8 sps:$4 sm:$0xff]  }
  0xfc   :  { %2161 = vmatprep.subr.bf16.mxu0 %v3061_v27  ;;  %v3133_v27 = vld [vmem:[#allocation3 + $0x794] ss:$8 sps:$4 sm:$0xff]  }
  0xfe   :  { %1950 = vmatpush1.bf16.msra.mxu1 %v3056_v28  ;;  %v3128_v28 = vld [vmem:[#allocation3 + $0x390] ss:$8 sps:$4 sm:$0xff]  }
  0xff   :  { %2162 = vmatpush1.bf16.msra.mxu0 %v3059_v29  ;;  %1951 = vmatprep.subr.bf16.mxu1 %v3064_v30  ;;  %v3131_v29 = vld [vmem:[#allocation3 + $0x790] ss:$8 sps:$4 sm:$0xff]   ;;  %v3136_v30 = vld [vmem:[#allocation3 + $0x3a4] ss:$8 sps:$4 sm:$0xff]  }
 0x100   :  { %2163 = vmatprep.subr.bf16.mxu0 %v3067_v31  ;;  %v3139_v31 = vld [vmem:[#allocation3 + $0x7a4] ss:$8 sps:$4 sm:$0xff]  }
 0x102   :  { %1952 = vmatpush1.bf16.msra.mxu1 %v3062_v32  ;;  %v3134_v32 = vld [vmem:[#allocation3 + $0x3a0] ss:$8 sps:$4 sm:$0xff]  }
 0x103   :  { %2164 = vmatpush1.bf16.msra.mxu0 %v3065_v33  ;;  %1953 = vmatprep.subr.bf16.mxu1 %v3070_v34  ;;  %v3137_v33 = vld [vmem:[#allocation3 + $0x7a0] ss:$8 sps:$4 sm:$0xff]   ;;  %v3142_v34 = vld [vmem:[#allocation3 + $0x3b4] ss:$8 sps:$4 sm:$0xff]  }
 0x104   :  { %2165 = vmatprep.subr.bf16.mxu0 %v3073_v35  ;;  %v3145_v35 = vld [vmem:[#allocation3 + $0x7b4] ss:$8 sps:$4 sm:$0xff]  }
 0x106   :  { %1954 = vmatpush1.bf16.msra.mxu1 %v3068_v36  ;;  %v3140_v36 = vld [vmem:[#allocation3 + $0x3b0] ss:$8 sps:$4 sm:$0xff]  }
 0x107   :  { %2166 = vmatpush1.bf16.msra.mxu0 %v3071_v37  ;;  %1976 = vmatprep.subr.bf16.mxu1 %v3076_v38  ;;  %v3143_v37 = vld [vmem:[#allocation3 + $0x7b0] ss:$8 sps:$4 sm:$0xff]   ;;  %v3148_v38 = vld [vmem:[#allocation3 + $0x3c4] ss:$8 sps:$4 sm:$0xff]  }
 0x108   :  { %2188 = vmatprep.subr.bf16.mxu0 %v3079_v39  ;;  %v3151_v39 = vld [vmem:[#allocation3 + $0x7c4] ss:$8 sps:$4 sm:$0xff]  }
 0x109   :  { %1956 = vmatmul.mubr.bf16.vlgmr.msra.gmra.mrb[0].mxu1 %v2440_v41  ;;  %v3149_v41 = vld [vmem:[#allocation3 + $0x7c0] ss:$8 sps:$4 sm:$0xff]  }
 0x10a   :  { %2168 = vmatmul.mubr.bf16.vlgmr.msra.gmra.mrb[0].mxu0 %v2448_v43  ;;  %1977 = vmatpush1.bf16.msra.mxu1 %v3074_v50  ;;  %v3154_v43 = vld [vmem:[#allocation3 + $0x3d4] ss:$8 sps:$4 sm:$0xff]   ;;  %v3160_v50 = vld [vmem:[#allocation3 + $0x3e4] ss:$8 sps:$4 sm:$0xff]  }
 0x10b   :  { %2189 = vmatpush1.bf16.msra.mxu0 %v3077_v51  ;;  %1978 = vmatprep.subr.bf16.mxu1 %v3082_v42  ;;  %v3163_v51 = vld [vmem:[#allocation3 + $0x7e4] ss:$8 sps:$4 sm:$0xff]   ;;  %v3158_v42 = vld [vmem:[#allocation3 + $0x3e0] ss:$8 sps:$4 sm:$0xff]  }
 0x10c   :  { %2190 = vmatprep.subr.bf16.mxu0 %v3085_v45  ;;  %1965 = vmatprep.mubr.bf16.mxu1 %v2457_v46  ;;  %v3161_v45 = vld [vmem:[#allocation3 + $0x7e0] ss:$8 sps:$4 sm:$0xff]   ;;  %v3166_v46 = vld [vmem:[#allocation3 + $0x3f4] ss:$8 sps:$4 sm:$0xff]  }
 0x10d   :  { %2177 = vmatprep.mubr.bf16.mxu0 %v2465_v47  ;;  %v3169_v47 = vld [vmem:[#allocation3 + $0x7f4] ss:$8 sps:$4 sm:$0xff]  }
 0x10e   :  { %1979 = vmatpush1.bf16.msra.mxu1 %v3080_v52  ;;  %v3164_v52 = vld [vmem:[#allocation3 + $0x3f0] ss:$8 sps:$4 sm:$0xff]  }
 0x10f   :  { %2191 = vmatpush1.bf16.msra.mxu0 %v3083_v53  ;;  %1980 = vmatprep.subr.bf16.mxu1 %v3088_v54  ;;  %v3167_v53 = vld [vmem:[#allocation3 + $0x7f0] ss:$8 sps:$4 sm:$0xff]  }
 0x110   :  { %2192 = vmatprep.subr.bf16.mxu0 %v3091_v55  ;;  %v108_v54 = vld [vmem:[%s3540_s0 + $0x98] sm:$0xff] }
 0x111   :  { %1966 = vmatmul.mubr.bf16.gmra.mrb[4].mxu1 %v2456_v57  ;;  %v116_v55 = vld [vmem:[%s3540_s0 + $0xd8] sm:$0xff] }
 0x112   :  { %2178 = vmatmul.mubr.bf16.gmra.mrb[4].mxu0 %v2464_v58  ;;  %1981 = vmatpush1.bf16.msra.mxu1 %v3086_v62  ;;  %v112_v57 = vld [vmem:[%s3540_s0 + $0xb8] sm:$0xff]  ;;  %v2442_v62 = vcombine.low %v3466_v56, %v3471_v59  ;;  %v2268_v56 = vld [vmem:[#allocation5] sm:$0x3] }
 0x113   :  { %2193 = vmatpush1.bf16.msra.mxu0 %v3089_v63  ;;  %1982 = vmatprep.subr.bf16.mxu1 %v3094_v0  ;;  %v120_v58 = vld [vmem:[%s3540_s0 + $0xf8] sm:$0xff]  ;;  %v2450_v63 = vcombine.low %v3476_v60, %v3481_v61  ;;  %v2459_v0 = vcombine.high %v108_v54, %v116_v55 }
 0x114   :  { %2194 = vmatprep.subr.bf16.mxu0 %v3097_v1  ;;  %2008 = vmatprep.mubr.bf16.mxu1 %v2443_v2  ;;  %v2467_v1 = vcombine.high %v112_v57, %v120_v58  ;;  %v2458_v2 = vcombine.low %v108_v54, %v116_v55 }
 0x115   :  { %2220 = vmatprep.mubr.bf16.mxu0 %v2451_v3  ;;  %v2466_v3 = vcombine.low %v112_v57, %v120_v58 }
 0x116   :  { %1983 = vmatpush1.bf16.msra.mxu1 %v3092_v4  ;;  %v2270_v4 = vlaneseq }
 0x117   :  { %2195 = vmatpush1.bf16.msra.mxu0 %v3095_v5  ;;  %1984 = vmatprep.subr.bf16.mxu1 %v3100_v6 }
 0x118   :  { %2196 = vmatprep.subr.bf16.mxu0 %v3103_v7  ;;  %v2271_v5 = vshrl.u32 %v2270_v4, 7 }
 0x11a   :  { %1985 = vmatpush1.bf16.msra.mxu1 %v3098_v8  ;;  %v3503_v6 = vsub.s32 0, %v2271_v5  ;;  %v3505_v59 = vsub.s32 1, %v2271_v5 }
 0x11b   :  { %2197 = vmatpush1.bf16.msra.mxu0 %v3101_v9  ;;  %1986 = vmatprep.subr.bf16.mxu1 %v3106_v10 }
 0x11c   :  { %2198 = vmatprep.subr.bf16.mxu0 %v3109_v11  ;;  %v2273_v8 = vrot.slane %v2268_v56, %v3503_v6 }
 0x11e   :  { %1987 = vmatpush1.bf16.msra.mxu1 %v3104_v12  ;;  %v2277_v12 = vrot.slane %v2268_v56, %v3505_v59 }
 0x11f   :  { %2199 = vmatpush1.bf16.msra.mxu0 %v3107_v13  ;;  %1988 = vmatprep.subr.bf16.mxu1 %v3112_v14 }
 0x120   :  { %2200 = vmatprep.subr.bf16.mxu0 %v3115_v15 }
 0x122   :  { %1989 = vmatpush1.bf16.msra.mxu1 %v3110_v16 }
 0x123   :  { %2201 = vmatpush1.bf16.msra.mxu0 %v3113_v17  ;;  %1990 = vmatprep.subr.bf16.mxu1 %v3118_v18 }
 0x124   :  { %2202 = vmatprep.subr.bf16.mxu0 %v3121_v19 }
 0x126   :  { %1991 = vmatpush1.bf16.msra.mxu1 %v3116_v20 }
 0x127   :  { %2203 = vmatpush1.bf16.msra.mxu0 %v3119_v21  ;;  %1992 = vmatprep.subr.bf16.mxu1 %v3124_v22 }
 0x128   :  { %2204 = vmatprep.subr.bf16.mxu0 %v3127_v23 }
 0x12a   :  { %1993 = vmatpush1.bf16.msra.mxu1 %v3122_v24 }
 0x12b   :  { %2205 = vmatpush1.bf16.msra.mxu0 %v3125_v25  ;;  %1994 = vmatprep.subr.bf16.mxu1 %v3130_v26 }
 0x12c   :  { %2206 = vmatprep.subr.bf16.mxu0 %v3133_v27 }
 0x12e   :  { %1995 = vmatpush1.bf16.msra.mxu1 %v3128_v28 }
 0x12f   :  { %2207 = vmatpush1.bf16.msra.mxu0 %v3131_v29  ;;  %1996 = vmatprep.subr.bf16.mxu1 %v3136_v30 }
 0x130   :  { %2208 = vmatprep.subr.bf16.mxu0 %v3139_v31 }
 0x132   :  { %1997 = vmatpush1.bf16.msra.mxu1 %v3134_v32 }
 0x133   :  { %2209 = vmatpush1.bf16.msra.mxu0 %v3137_v33  ;;  %1998 = vmatprep.subr.bf16.mxu1 %v3142_v34 }
 0x134   :  { %2210 = vmatprep.subr.bf16.mxu0 %v3145_v35 }
 0x136   :  { %1999 = vmatpush1.bf16.msra.mxu1 %v3140_v36 }
 0x137   :  { %2211 = vmatpush1.bf16.msra.mxu0 %v3143_v37  ;;  %2000 = vmatprep.subr.bf16.mxu1 %v3148_v38 }
 0x138   :  { %2212 = vmatprep.subr.bf16.mxu0 %v3151_v39 }
 0x13a   :  { %2001 = vmatpush1.bf16.msra.mxu1 %v3146_v40 }
 0x13b   :  { %2213 = vmatpush1.bf16.msra.mxu0 %v3149_v41  ;;  %2002 = vmatprep.subr.bf16.mxu1 %v3154_v43 }
 0x13c   :  { %2214 = vmatprep.subr.bf16.mxu0 %v3157_v44 }
 0x13e   :  { %2003 = vmatpush1.bf16.msra.mxu1 %v3152_v48 }
 0x13f   :  { %2215 = vmatpush1.bf16.msra.mxu0 %v3155_v49  ;;  %2004 = vmatprep.subr.bf16.mxu1 %v3160_v50 }
 0x140   :  { %2216 = vmatprep.subr.bf16.mxu0 %v3163_v51 }
 0x142   :  { %2005 = vmatpush1.bf16.msra.mxu1 %v3158_v42 }
 0x143   :  { %2217 = vmatpush1.bf16.msra.mxu0 %v3161_v45  ;;  %2006 = vmatprep.subr.bf16.mxu1 %v3166_v46 }
 0x144   :  { %2218 = vmatprep.subr.bf16.mxu0 %v3169_v47 }
 0x146   :  { %2007 = vmatpush1.bf16.msra.mxu1 %v3164_v52 }
 0x147   :  { %2219 = vmatpush1.bf16.msra.mxu0 %v3167_v53 }
 0x149   :  { %2009 = vmatmul.mubr.bf16.vlgmr.msra.gmra.mrb[0].mxu1 %v2442_v62 }
 0x14a   :  { %2221 = vmatmul.mubr.bf16.vlgmr.msra.gmra.mrb[0].mxu0 %v2450_v63  ;;  %2018 = vmatprep.mubr.bf16.mxu1 %v2459_v0 }
 0x14b   :  { %2230 = vmatprep.mubr.bf16.mxu0 %v2467_v1 }
 0x151   :  { %2019 = vmatmul.mubr.bf16.gmra.mrb[4].mxu1 %v2458_v2 }
 0x152   :  { %2231 = vmatmul.mubr.bf16.gmra.mrb[4].mxu0 %v2466_v3 }
 0x21c   :  { %v2010_v60 = vpop.f32.mrb[0].mxu1 }
 0x21d   :  { %v2222_v61 = vpop.f32.mrb[0].mxu0  ;;  %v2012_v9 = vpop.f32.mrb[1].mxu1 }
 0x21e   :  { %v2724_v7 = vadd.f32 %v2222_v61, %v2010_v60  ;;  %v2224_v10 = vpop.f32.mrb[1].mxu0  ;;  %v2014_v13 = vpop.f32.mrb[2].mxu1 }
 0x21f   :  { %v2725_v11 = vadd.f32 %v2224_v10, %v2012_v9  ;;  %v2226_v14 = vpop.f32.mrb[2].mxu0  ;;  %v2016_v16 = vpop.f32.mrb[3].mxu1 }
 0x220   :  { %v2726_v15 = vadd.f32 %v2226_v14, %v2014_v13  ;;  %v2228_v17 = vpop.f32.mrb[3].mxu0  ;;  %v2280_v19 = vadd.f32 %v2724_v7, %v2273_v8 }
 0x221   :  { %v2727_v18 = vadd.f32 %v2228_v17, %v2016_v16  ;;  %v2281_v21 = vadd.f32 %v2725_v11, %v2277_v12 }
 0x222   :  { %v2282_v20 = vadd.f32 %v2726_v15, %v2273_v8 }
 0x223   :  { %v2283_v22 = vadd.f32 %v2727_v18, %v2277_v12 }
 0x224   :  { %v2288_v23 = vadd.f32 %v2282_v20, %v2280_v19  ;;  %v2020_v25 = vpop.f32.mrb[4].mxu1 }
 0x225   :  { %v2297_v24 = vadd.f32 %v2283_v22, %v2281_v21  ;;  %v2232_v26 = vpop.f32.mrb[4].mxu0  ;;  %v2022_v28 = vpop.f32.mrb[5].mxu1 }
 0x226   :  { %v2728_v27 = vadd.f32 %v2232_v26, %v2020_v25  ;;  %v2234_v29 = vpop.f32.mrb[5].mxu0  ;;  %v2024_v31 = vpop.f32.mrb[6].mxu1 }
 0x227   :  { %v2729_v30 = vadd.f32 %v2234_v29, %v2022_v28  ;;  %v2236_v32 = vpop.f32.mrb[6].mxu0  ;;  %v2026_v35 = vpop.f32.mrb[7].mxu1 }
 0x228   :  { %v2284_v33 = vadd.f32 %v2728_v27, %v2273_v8  ;;  %v2730_v34 = vadd.f32 %v2236_v32, %v2024_v31  ;;  %v2238_v36 = vpop.f32.mrb[7].mxu0 }
 0x229   :  { %v2285_v37 = vadd.f32 %v2729_v30, %v2277_v12  ;;  %v2731_v38 = vadd.f32 %v2238_v36, %v2026_v35  ;;  %v2357_v35 = vld [vmem:[#allocation7] sm:$0x3]  ;;  %v2377_v36 = vld [vmem:[#allocation8] sm:$0x3] }
 0x22a   :  { %v2289_v39 = vadd.f32 %v2288_v23, %v2284_v33  ;;  %v2286_v40 = vadd.f32 %v2730_v34, %v2273_v8 }
 0x22b   :  { %v2298_v41 = vadd.f32 %v2297_v24, %v2285_v37  ;;  %v2287_v43 = vadd.f32 %v2731_v38, %v2277_v12 }
 0x22c   :  { %v2290_v44 = vadd.f32 %v2289_v39, %v2286_v40  ;;  %v2382_v39 = vrot.slane %v2377_v36, %v3503_v6 }
 0x22d   :  { %v2299_v48 = vadd.f32 %v2298_v41, %v2287_v43  ;;  %v2386_v41 = vrot.slane %v2377_v36, %v3505_v59 }
 0x22e   :  { %v2291_v49 = vrot.slane %v2290_v44, 4 }
 0x22f   :  { %v2300_v50 = vrot.slane %v2299_v48, 4 }
 0x230   :  { %v2292_v51 = vadd.f32 %v2291_v49, %v2290_v44 }
 0x231   :  { %v2301_v42 = vadd.f32 %v2300_v50, %v2299_v48 }
 0x232   :  { %v2293_v45 = vrot.slane %v2292_v51, 2 }
 0x233   :  { %v2302_v46 = vrot.slane %v2301_v42, 2 }
 0x234   :  { %v2294_v47 = vadd.f32 %v2293_v45, %v2292_v51 }
 0x235   :  { %v2303_v52 = vadd.f32 %v2302_v46, %v2301_v42 }
 0x236   :  { %v2295_v53 = vrot.slane %v2294_v47, 1 }
 0x237   :  { %v2304_v54 = vrot.slane %v2303_v52, 1 }
 0x238   :  { %v2296_v55 = vadd.f32 %v2295_v53, %v2294_v47 }
 0x239   :  { %v2305_v57 = vadd.f32 %v2304_v54, %v2303_v52 }
 0x23a   :  { %v2307_v58 = vmul.f32 0.03125, %v2296_v55 }
 0x23b   :  { %v2308_v62 = vmul.f32 0.03125, %v2305_v57 }
 0x23c   :  { %v2309_v63 = vsub.f32 %v2280_v19, %v2307_v58  ;;  %v2311_v0 = vsub.f32 %v2282_v20, %v2307_v58  ;;  %v2313_v1 = vsub.f32 %v2284_v33, %v2307_v58  ;;  %v2315_v2 = vsub.f32 %v2286_v40, %v2307_v58 }
 0x23d   :  { %v2310_v3 = vsub.f32 %v2281_v21, %v2308_v62  ;;  %v2312_v4 = vsub.f32 %v2283_v22, %v2308_v62  ;;  %v2314_v5 = vsub.f32 %v2285_v37, %v2308_v62  ;;  %v2316_v56 = vsub.f32 %v2287_v43, %v2308_v62 }
 0x23e   :  { %v2317_v60 = vmul.f32 %v2309_v63, %v2309_v63  ;;  %v2319_v61 = vmul.f32 %v2311_v0, %v2311_v0  ;;  %v2321_v9 = vmul.f32 %v2313_v1, %v2313_v1  ;;  %v2323_v13 = vmul.f32 %v2315_v2, %v2315_v2 }
 0x23f   :  { %v2318_v7 = vmul.f32 %v2310_v3, %v2310_v3  ;;  %v2320_v8 = vmul.f32 %v2312_v4, %v2312_v4  ;;  %v2322_v11 = vmul.f32 %v2314_v5, %v2314_v5  ;;  %v2324_v15 = vmul.f32 %v2316_v56, %v2316_v56 }
 0x240   :  { %v2325_v10 = vadd.f32 %v2319_v61, %v2317_v60  ;;  %v2362_v37 = vrot.slane %v2357_v35, %v3503_v6  ;;  %v2366_v40 = vrot.slane %v2357_v35, %v3505_v59 }
 0x241   :  { %v2334_v12 = vadd.f32 %v2320_v8, %v2318_v7 }
 0x242   :  { %v2326_v14 = vadd.f32 %v2325_v10, %v2321_v9 }
 0x243   :  { %v2335_v16 = vadd.f32 %v2334_v12, %v2322_v11 }
 0x244   :  { %v2327_v17 = vadd.f32 %v2326_v14, %v2323_v13 }
 0x245   :  { %v2336_v18 = vadd.f32 %v2335_v16, %v2324_v15 }
 0x246   :  { %v2328_v19 = vrot.slane %v2327_v17, 4 }
 0x247   :  { %v2337_v20 = vrot.slane %v2336_v18, 4 }
 0x248   :  { %v2329_v21 = vadd.f32 %v2328_v19, %v2327_v17 }
 0x249   :  { %v2338_v22 = vadd.f32 %v2337_v20, %v2336_v18 }
 0x24a   :  { %v2330_v23 = vrot.slane %v2329_v21, 2 }
 0x24b   :  { %v2339_v24 = vrot.slane %v2338_v22, 2 }
 0x24c   :  { %v2331_v25 = vadd.f32 %v2330_v23, %v2329_v21 }
 0x24d   :  { %v2340_v26 = vadd.f32 %v2339_v24, %v2338_v22 }
 0x24e   :  { %v2332_v27 = vrot.slane %v2331_v25, 1 }
 0x24f   :  { %v2341_v28 = vrot.slane %v2340_v26, 1 }
 0x250   :  { %v2333_v29 = vadd.f32 %v2332_v27, %v2331_v25 }
 0x251   :  { %v2342_v30 = vadd.f32 %v2341_v28, %v2340_v26 }
 0x252   :  { %v2343_v31 = vmul.f32 0.03125, %v2333_v29 }
 0x253   :  { %v2344_v32 = vmul.f32 0.03125, %v2342_v30 }
 0x254   :  { %v2345_v33 = vadd.f32 1e-05, %v2343_v31 }
 0x255   :  { %v2346_v34 = vadd.f32 1e-05, %v2344_v32 }
 0x256   :  { %3170 = vrsqrt.f32 %v2345_v33 }
 0x257   :  { %3172 = vrsqrt.f32 %v2346_v34 }
 0x260   :  { %v3171_v38 = vpop.eup %3170 }
 0x261   :  { %v3173_v43 = vpop.eup %3172  ;;  %v2349_v44 = vmul.f32 %v3171_v38, %v2309_v63  ;;  %v2351_v48 = vmul.f32 %v3171_v38, %v2311_v0  ;;  %v2353_v49 = vmul.f32 %v3171_v38, %v2313_v1  ;;  %v2355_v50 = vmul.f32 %v3171_v38, %v2315_v2 }
 0x262   :  { %v2350_v51 = vmul.f32 %v3173_v43, %v2310_v3  ;;  %v2352_v42 = vmul.f32 %v3173_v43, %v2312_v4  ;;  %v2354_v45 = vmul.f32 %v3173_v43, %v2314_v5  ;;  %v2356_v46 = vmul.f32 %v3173_v43, %v2316_v56 }
 0x263   :  { %v2369_v47 = vmul.f32 %v2362_v37, %v2349_v44  ;;  %v2371_v52 = vmul.f32 %v2362_v37, %v2351_v48  ;;  %v2373_v53 = vmul.f32 %v2362_v37, %v2353_v49  ;;  %v2375_v54 = vmul.f32 %v2362_v37, %v2355_v50 }
 0x264   :  { %v2370_v55 = vmul.f32 %v2366_v40, %v2350_v51  ;;  %v2372_v57 = vmul.f32 %v2366_v40, %v2352_v42  ;;  %v2374_v6 = vmul.f32 %v2366_v40, %v2354_v45  ;;  %v2376_v58 = vmul.f32 %v2366_v40, %v2356_v46 }
 0x265   :  { %v2389_v62 = vadd.f32 %v2382_v39, %v2369_v47  ;;  %v2391_v60 = vadd.f32 %v2382_v39, %v2371_v52  ;;  %v2393_v59 = vadd.f32 %v2382_v39, %v2373_v53  ;;  %v2395_v61 = vadd.f32 %v2382_v39, %v2375_v54 }
 0x266   :  { %v2390_v63 = vadd.f32 %v2386_v41, %v2370_v55  ;;  %v2392_v0 = vadd.f32 %v2386_v41, %v2372_v57  ;;  %v2394_v1 = vadd.f32 %v2386_v41, %v2374_v6  ;;  %v2396_v2 = vadd.f32 %v2386_v41, %v2376_v58 }
 0x267   :  { %vm2397_vm0 = vcmp.ge.f32.partialorder %v2389_v62, 0.0  ;;  %vm2399_vm1 = vcmp.ge.f32.partialorder %v2391_v60, 0.0  ;;  %vm2401_vm2 = vcmp.ge.f32.partialorder %v2393_v59, 0.0  ;;  %vm2403_vm3 = vcmp.ge.f32.partialorder %v2395_v61, 0.0 }
 0x268   :  { %v2405_v3 = vmul.f32 0.2, %v2389_v62  ;;  %v2407_v4 = vmul.f32 0.2, %v2391_v60  ;;  %v2409_v5 = vmul.f32 0.2, %v2393_v59 }
 0x269   :  { %v2411_v56 = vmul.f32 0.2, %v2395_v61  ;;  %vm2398_vm4 = vcmp.ge.f32.partialorder %v2390_v63, 0.0  ;;  %vm2400_vm5 = vcmp.ge.f32.partialorder %v2392_v0, 0.0  ;;  %vm2402_vm6 = vcmp.ge.f32.partialorder %v2394_v1, 0.0 }
 0x26a   :  { %v2413_v7 = vsel %vm2397_vm0, %v2389_v62, %v2405_v3  ;;  %v2415_v8 = vsel %vm2399_vm1, %v2391_v60, %v2407_v4  ;;  %v2417_v9 = vsel %vm2401_vm2, %v2393_v59, %v2409_v5  ;;  %vm2404_vm7 = vcmp.ge.f32.partialorder %v2396_v2, 0.0 }
 0x26b   :  { %v2419_v10 = vsel %vm2403_vm3, %v2395_v61, %v2411_v56  ;;  %2421 = vst [vmem:[%s3545_s5] sm:$0xff] %v2413_v7  ;;  %2423 = vst [vmem:[%s3545_s5 + $0x10] sm:$0xff] %v2415_v8  ;;  %v2406_v11 = vmul.f32 0.2, %v2390_v63  ;;  %v2408_v12 = vmul.f32 0.2, %v2392_v0 }
 0x26c   :  { %2425 = vst [vmem:[%s3545_s5 + $0x20] sm:$0xff] %v2417_v9  ;;  %v2410_v13 = vmul.f32 0.2, %v2394_v1  ;;  %2427 = vst [vmem:[%s3545_s5 + $0x30] sm:$0xff] %v2419_v10  ;;  %v2412_v14 = vmul.f32 0.2, %v2396_v2 }
 0x26d   :  { %v2414_v15 = vsel %vm2398_vm4, %v2390_v63, %v2406_v11  ;;  %v2416_v16 = vsel %vm2400_vm5, %v2392_v0, %v2408_v12 }
 0x26e   :  { %v2418_v17 = vsel %vm2402_vm6, %v2394_v1, %v2410_v13  ;;  %v2420_v18 = vsel %vm2404_vm7, %v2396_v2, %v2412_v14  ;;  %2422 = vst [vmem:[%s3545_s5 + $0x8] sm:$0xff] %v2414_v15  ;;  %2424 = vst [vmem:[%s3545_s5 + $0x18] sm:$0xff] %v2416_v16 }
 0x26f   :  { %2426 = vst [vmem:[%s3545_s5 + $0x28] sm:$0xff] %v2418_v17  ;;  %2428 = vst [vmem:[%s3545_s5 + $0x38] sm:$0xff] %v2420_v18 }
 0x270   :  { %2433 = vsyncpa [#allocation4], 1 }
 0x271   :  { %2434 = vsyncpa [#allocation6], 1 }
 0x272   :  { %2435 = vsyncpa [#allocation9], 1 }

// kernel: passive_sep_enc_forward.8
= control target key start
LH: loop header
LB: loop body
LE: loop exit
PB: predicated region body
PF: predicated region fallthrough
CT: control target
= control target key end

     0   :  { %s5936_s18 = smov 0   ;;  %s5938_s19 = smov 0   ;;  %s6686_s0 = inlined_call_operand.vmem [shape: bf16[16,4096], index: 0, kind: input, shape index: {}]   ;;  %s6687_s1 = inlined_call_operand.vmem [shape: bf16[4096,512], index: 1, kind: input, shape index: {}]   ;;  %s6688_s2 = inlined_call_operand.vmem [shape: f32[1,512], index: 2, kind: input, shape index: {}]   ;;  %s6689_s3 = inlined_call_operand.vmem [shape: f32[1,512], index: 3, kind: input, shape index: {}]   ;;  %s6690_s4 = inlined_call_operand.vmem [shape: f32[1,512], index: 4, kind: input, shape index: {}]   ;;  %s6691_s5 = inlined_call_operand.vmem [shape: f32[16,512], index: 5, kind: output, shape index: {}]  }
   0x1   :  { %s5940_s20 = smov 0  }
   0x2 LB: > { %s5952_s21 = sadd.s32 4294967295, %s5903_s20   ;;  %s5955_s22 = sadd.s32 1, %s5903_s20   ;;  %s5903_s20 = sphi %s5940_s20, %s6694_s20   ;;  %s5899_s19 = sphi %s5938_s19, %s6693_s19   ;;  %s5895_s18 = sphi %s5936_s18, %s6692_s18  }
   0x3   : > { %s19_s23 = ssub.s32 %s5903_s20, %s5955_s22  ;;  %s22_s24 = sadd.s32 1, %s5899_s19 }
   0x4   : > { %p20_p0 = scmp.eq.s32.totalorder %s19_s23, 0  ;;  %p29_p1 = scmp.ne.s32.totalorder %s5899_s19, %s5895_s18 }
   0x5   : > { %p30_p2 = scmp.eq.s32.totalorder %s5903_s20, 0  ;;  %p4481_p4 = scmp.ge.s32.totalorder %s5903_s20, 2 }
   0x6   : > { %s5964_s25 = scalar_select %p20_p0, %s5899_s19, %s22_s24  }
   0x7   : > { %p31_p3 = por %p30_p2, %p29_p1  ;;  %174 = sbr.rel (%p4481_p4) target bundleno = 26 (0x1a), region = 28 }
   0xe   : > { %177 = sbr.rel (!%p31_p3) target bundleno = 26 (0x1a), region = 32  ;;  %s179_s26 = sand.u32 (%p31_p3), 1, %s5899_s19  }
   0xf   : > { %s5022_s27 = sshll.u32 (%p31_p3), %s5903_s20, 6  ;;  %s4482_s28 = sshll.u32 (%p31_p3), %s179_s26, 7 }
  0x10   : > { %s5972_s6 = scalar_lea.vmem (%p31_p3), %s6686_s0, %s5022_s27  ;;  %s181_s7 = scalar_lea.vmem (%p31_p3), [#allocation3], %s4482_s28 }
  0x11   : > { %v197_v0 = vld [vmem:[%s5972_s6] sm:$0xff] (%p31_p3)  ;;  %v199_v1 = vld [vmem:[%s5972_s6 + $0x8] sm:$0xff] (%p31_p3)  ;;  %v201_v2 = vld [vmem:[%s5972_s6 + $0x10] sm:$0xff] (%p31_p3) }
  0x12   : > { %198 = vst [vmem:[%s181_s7] sm:$0xff] (%p31_p3), %v197_v0  ;;  %200 = vst [vmem:[%s181_s7 + $0x8] sm:$0xff] (%p31_p3), %v199_v1  ;;  %v203_v3 = vld [vmem:[%s5972_s6 + $0x18] sm:$0xff] (%p31_p3)  ;;  %v205_v4 = vld [vmem:[%s5972_s6 + $0x20] sm:$0xff] (%p31_p3) }
  0x13   : > { %202 = vst [vmem:[%s181_s7 + $0x10] sm:$0xff] (%p31_p3), %v201_v2  ;;  %v207_v5 = vld [vmem:[%s5972_s6 + $0x28] sm:$0xff] (%p31_p3)  ;;  %204 = vst [vmem:[%s181_s7 + $0x18] sm:$0xff] (%p31_p3), %v203_v3  ;;  %v209_v6 = vld [vmem:[%s5972_s6 + $0x30] sm:$0xff] (%p31_p3) }
  0x14   : > { %206 = vst [vmem:[%s181_s7 + $0x20] sm:$0xff] (%p31_p3), %v205_v4  ;;  %208 = vst [vmem:[%s181_s7 + $0x28] sm:$0xff] (%p31_p3), %v207_v5  ;;  %v211_v7 = vld [vmem:[%s5972_s6 + $0x38] sm:$0xff] (%p31_p3)  ;;  %v213_v8 = vld [vmem:[%s5972_s6 + $0x80] sm:$0xff] (%p31_p3) }
  0x15   : > { %210 = vst [vmem:[%s181_s7 + $0x30] sm:$0xff] %v209_v6  ;;  %212 = vst [vmem:[%s181_s7 + $0x38] sm:$0xff] %v211_v7  ;;  %v215_v9 = vld [vmem:[%s5972_s6 + $0x88] sm:$0xff]  ;;  %v217_v10 = vld [vmem:[%s5972_s6 + $0x90] sm:$0xff] }
  0x16   : > { %214 = vst [vmem:[%s181_s7 + $0x40] sm:$0xff] %v213_v8  ;;  %v219_v11 = vld [vmem:[%s5972_s6 + $0x98] sm:$0xff]  ;;  %216 = vst [vmem:[%s181_s7 + $0x48] sm:$0xff] %v215_v9  ;;  %v221_v12 = vld [vmem:[%s5972_s6 + $0xa0] sm:$0xff] }
  0x17   : > { %218 = vst [vmem:[%s181_s7 + $0x50] sm:$0xff] %v217_v10  ;;  %220 = vst [vmem:[%s181_s7 + $0x58] sm:$0xff] %v219_v11  ;;  %v223_v13 = vld [vmem:[%s5972_s6 + $0xa8] sm:$0xff]  ;;  %v225_v14 = vld [vmem:[%s5972_s6 + $0xb0] sm:$0xff] }
  0x18   : > { %222 = vst [vmem:[%s181_s7 + $0x60] sm:$0xff] %v221_v12  ;;  %224 = vst [vmem:[%s181_s7 + $0x68] sm:$0xff] %v223_v13  ;;  %v227_v15 = vld [vmem:[%s5972_s6 + $0xb8] sm:$0xff] }
  0x19   : > { %226 = vst [vmem:[%s181_s7 + $0x70] sm:$0xff] %v225_v14  ;;  %228 = vst [vmem:[%s181_s7 + $0x78] sm:$0xff] %v227_v15 }
  0x1a PF: > { %p4485_p5 = scmp.ge.s32.totalorder %s5903_s20, 1  ;;  %p243_p6 = scmp.lt.s32.totalorder %s5903_s20, 3 }
  0x1c   : > { %p244_p7 = pnand %p4485_p5, %p243_p6 }
  0x1d   : > { %s250_s8 = sand.u32 (!%p244_p7), 1, %s5895_s18   ;;  %s4487_s9 = sshll.u32 (!%p244_p7), %s5952_s21, 8 }
  0x1e   : > { %247 = sbr.rel (%p244_p7) target bundleno = 853 (0x355), region = 59  ;;  %s4486_s10 = sshll.u32 (!%p244_p7), %s250_s8, 7 }
  0x1f   : > { %p280_p8 = scmp.lt.s32.totalorder (!%p244_p7), %s4487_s9, 511  ;;  %s5999_s15 = scalar_lea.vmem (!%p244_p7), [#allocation3], %s4486_s10 }
  0x20   : > { %p4490_p9 = scmp.ne.s32.totalorder (!%p244_p7), %s5952_s21, 0 }
  0x25   : > { %s6696_s9 = smov (!%p280_p8, %s4487_s9), 511  ;;  %289 = sbr.rel (%p4490_p9) target bundleno = 44 (0x2c), region = 67 }
  0x26   : > { %s5023_s11 = sshll.u32 %s6696_s9, 4  ;;  %v5905_v16 = vmov (!%p4490_p9), 0.0  }
  0x27   : > { %s5997_s14 = scalar_lea.vmem %s6687_s1, %s5023_s11  ;;  %290 = vst [vmem:[#allocation2] sm:$0xff] (!%p4490_p9), %v5905_v16  ;;  %291 = vst [vmem:[#allocation2 + $0x8] sm:$0xff] (!%p4490_p9), %v5905_v16 }
  0x28   : > { %292 = vst [vmem:[#allocation2 + $0x10] sm:$0xff] (!%p4490_p9), %v5905_v16  ;;  %293 = vst [vmem:[#allocation2 + $0x18] sm:$0xff] (!%p4490_p9), %v5905_v16 }
  0x29   : > { %294 = vst [vmem:[#allocation2 + $0x20] sm:$0xff] (!%p4490_p9), %v5905_v16  ;;  %295 = vst [vmem:[#allocation2 + $0x28] sm:$0xff] (!%p4490_p9), %v5905_v16 }
  0x2a   : > { %296 = vst [vmem:[#allocation2 + $0x30] sm:$0xff] (!%p4490_p9), %v5905_v16  ;;  %297 = vst [vmem:[#allocation2 + $0x38] sm:$0xff] (!%p4490_p9), %v5905_v16 }
  0x2c PF: > { %v5105_v17 = vld [vmem:[%s5997_s14 + $0x4] ss:$16 sps:$4 sm:$0xff]   ;;  %v5107_v18 = vld [vmem:[%s5997_s14 + $0xc] ss:$16 sps:$4 sm:$0xff]   ;;  %v5109_v19 = vld [vmem:[%s5997_s14] ss:$16 sps:$4 sm:$0xff]  }
  0x2d   : > { %3474 = vmatprep.subr.bf16.mxu0 %v5105_v17  ;;  %v5110_v20 = vld [vmem:[%s5997_s14 + $0x8] ss:$16 sps:$4 sm:$0xff]   ;;  %3818 = vmatprep.subr.bf16.mxu1 %v5107_v18  ;;  %v5111_v21 = vld [vmem:[%s5997_s14 + $0x24] ss:$16 sps:$4 sm:$0xff]   ;;  %v5113_v22 = vld [vmem:[%s5997_s14 + $0x2c] ss:$16 sps:$4 sm:$0xff]  }
  0x2e   : > { %3475 = vmatpush1.bf16.msra.mxu0 %v5109_v19  ;;  %3819 = vmatpush1.bf16.msra.mxu1 %v5110_v20  ;;  %v5115_v23 = vld [vmem:[%s5997_s14 + $0x20] ss:$16 sps:$4 sm:$0xff]   ;;  %v5116_v24 = vld [vmem:[%s5997_s14 + $0x28] ss:$16 sps:$4 sm:$0xff]   ;;  %v5117_v25 = vld [vmem:[%s5997_s14 + $0x44] ss:$16 sps:$4 sm:$0xff]  }
  0x2f   : > { %3476 = vmatprep.subr.bf16.mxu0 %v5111_v21  ;;  %3820 = vmatprep.subr.bf16.mxu1 %v5113_v22  ;;  %v5119_v26 = vld [vmem:[%s5997_s14 + $0x4c] ss:$16 sps:$4 sm:$0xff]   ;;  %v5121_v27 = vld [vmem:[%s5997_s14 + $0x40] ss:$16 sps:$4 sm:$0xff]   ;;  %v5122_v28 = vld [vmem:[%s5997_s14 + $0x48] ss:$16 sps:$4 sm:$0xff]  }
  0x30   : > { %v5123_v29 = vld [vmem:[%s5997_s14 + $0x64] ss:$16 sps:$4 sm:$0xff]   ;;  %v5125_v30 = vld [vmem:[%s5997_s14 + $0x6c] ss:$16 sps:$4 sm:$0xff]   ;;  %v5127_v31 = vld [vmem:[%s5997_s14 + $0x60] ss:$16 sps:$4 sm:$0xff]  }
  0x31   : > { %v5128_v32 = vld [vmem:[%s5997_s14 + $0x68] ss:$16 sps:$4 sm:$0xff]   ;;  %v5129_v33 = vld [vmem:[%s5997_s14 + $0x84] ss:$16 sps:$4 sm:$0xff]   ;;  %v5131_v34 = vld [vmem:[%s5997_s14 + $0x8c] ss:$16 sps:$4 sm:$0xff]  }
  0x32   : > { %3477 = vmatpush1.bf16.msra.mxu0 %v5115_v23  ;;  %3821 = vmatpush1.bf16.msra.mxu1 %v5116_v24  ;;  %v5133_v35 = vld [vmem:[%s5997_s14 + $0x80] ss:$16 sps:$4 sm:$0xff]   ;;  %v5134_v36 = vld [vmem:[%s5997_s14 + $0x88] ss:$16 sps:$4 sm:$0xff]   ;;  %v5135_v37 = vld [vmem:[%s5997_s14 + $0xa4] ss:$16 sps:$4 sm:$0xff]  }
  0x33   : > { %3478 = vmatprep.subr.bf16.mxu0 %v5117_v25  ;;  %3822 = vmatprep.subr.bf16.mxu1 %v5119_v26  ;;  %v5137_v38 = vld [vmem:[%s5997_s14 + $0xac] ss:$16 sps:$4 sm:$0xff]   ;;  %v5139_v39 = vld [vmem:[%s5997_s14 + $0xa0] ss:$16 sps:$4 sm:$0xff]   ;;  %v5140_v40 = vld [vmem:[%s5997_s14 + $0xa8] ss:$16 sps:$4 sm:$0xff]  }
  0x34   : > { %v5141_v41 = vld [vmem:[%s5997_s14 + $0xc4] ss:$16 sps:$4 sm:$0xff]   ;;  %v5143_v42 = vld [vmem:[%s5997_s14 + $0xcc] ss:$16 sps:$4 sm:$0xff]   ;;  %v5145_v43 = vld [vmem:[%s5997_s14 + $0xc0] ss:$16 sps:$4 sm:$0xff]  }
  0x35   : > { %v5146_v44 = vld [vmem:[%s5997_s14 + $0xc8] ss:$16 sps:$4 sm:$0xff]   ;;  %v5147_v45 = vld [vmem:[%s5997_s14 + $0xe4] ss:$16 sps:$4 sm:$0xff]   ;;  %v5149_v46 = vld [vmem:[%s5997_s14 + $0xec] ss:$16 sps:$4 sm:$0xff]  }
  0x36   : > { %3479 = vmatpush1.bf16.msra.mxu0 %v5121_v27  ;;  %3823 = vmatpush1.bf16.msra.mxu1 %v5122_v28  ;;  %v5151_v47 = vld [vmem:[%s5997_s14 + $0xe0] ss:$16 sps:$4 sm:$0xff]   ;;  %v5152_v48 = vld [vmem:[%s5997_s14 + $0xe8] ss:$16 sps:$4 sm:$0xff]   ;;  %v5153_v49 = vld [vmem:[%s5997_s14 + $0x104] ss:$16 sps:$4 sm:$0xff]  }
  0x37   : > { %3480 = vmatprep.subr.bf16.mxu0 %v5123_v29  ;;  %3824 = vmatprep.subr.bf16.mxu1 %v5125_v30  ;;  %v5155_v50 = vld [vmem:[%s5997_s14 + $0x10c] ss:$16 sps:$4 sm:$0xff]   ;;  %v5157_v51 = vld [vmem:[%s5997_s14 + $0x100] ss:$16 sps:$4 sm:$0xff]   ;;  %v5158_v52 = vld [vmem:[%s5997_s14 + $0x108] ss:$16 sps:$4 sm:$0xff]  }
  0x38   : > { %v5159_v53 = vld [vmem:[%s5997_s14 + $0x124] ss:$16 sps:$4 sm:$0xff]   ;;  %v5161_v54 = vld [vmem:[%s5997_s14 + $0x12c] ss:$16 sps:$4 sm:$0xff]   ;;  %v5163_v55 = vld [vmem:[%s5997_s14 + $0x120] ss:$16 sps:$4 sm:$0xff]  }
  0x39   : > { %v5164_v56 = vld [vmem:[%s5997_s14 + $0x128] ss:$16 sps:$4 sm:$0xff]   ;;  %v5165_v57 = vld [vmem:[%s5997_s14 + $0x144] ss:$16 sps:$4 sm:$0xff]   ;;  %v5167_v58 = vld [vmem:[%s5997_s14 + $0x14c] ss:$16 sps:$4 sm:$0xff]  }
  0x3a   : > { %3481 = vmatpush1.bf16.msra.mxu0 %v5127_v31  ;;  %3825 = vmatpush1.bf16.msra.mxu1 %v5128_v32  ;;  %v5169_v59 = vld [vmem:[%s5997_s14 + $0x140] ss:$16 sps:$4 sm:$0xff]   ;;  %v5170_v60 = vld [vmem:[%s5997_s14 + $0x148] ss:$16 sps:$4 sm:$0xff]   ;;  %v5171_v61 = vld [vmem:[%s5997_s14 + $0x164] ss:$16 sps:$4 sm:$0xff]  }
  0x3b   : > { %3482 = vmatprep.subr.bf16.mxu0 %v5129_v33  ;;  %3826 = vmatprep.subr.bf16.mxu1 %v5131_v34  ;;  %v5173_v62 = vld [vmem:[%s5997_s14 + $0x16c] ss:$16 sps:$4 sm:$0xff]   ;;  %v306_v63 = vld [vmem:[%s5999_s15] sm:$0xff]  ;;  %v5176_v2 = vld [vmem:[%s5997_s14 + $0x168] ss:$16 sps:$4 sm:$0xff]   ;;  %p5019_p10 = scmp.ne.s32.totalorder %s5952_s21, 1 }
  0x3c   : > { %v314_v0 = vld [vmem:[%s5999_s15 + $0x40] sm:$0xff]  ;;  %v5179_v5 = vld [vmem:[%s5997_s14 + $0x18c] ss:$16 sps:$4 sm:$0xff]   ;;  %v5182_v7 = vld [vmem:[%s5997_s14 + $0x188] ss:$16 sps:$4 sm:$0xff]  }
  0x3d   : > { %v5175_v1 = vld [vmem:[%s5997_s14 + $0x160] ss:$16 sps:$4 sm:$0xff]   ;;  %v4492_v3 = vcombine.high %v306_v63, %v314_v0  ;;  %v5177_v4 = vld [vmem:[%s5997_s14 + $0x184] ss:$16 sps:$4 sm:$0xff]   ;;  %v5185_v9 = vld [vmem:[%s5997_s14 + $0x1ac] ss:$16 sps:$4 sm:$0xff]   ;;  %v4491_v22 = vcombine.low %v306_v63, %v314_v0 }
  0x3e   : > { %3483 = vmatpush1.bf16.msra.mxu0 %v5133_v35  ;;  %3827 = vmatpush1.bf16.msra.mxu1 %v5134_v36  ;;  %v5181_v6 = vld [vmem:[%s5997_s14 + $0x180] ss:$16 sps:$4 sm:$0xff]   ;;  %v5183_v8 = vld [vmem:[%s5997_s14 + $0x1a4] ss:$16 sps:$4 sm:$0xff]   ;;  %v5188_v11 = vld [vmem:[%s5997_s14 + $0x1a8] ss:$16 sps:$4 sm:$0xff]  }
  0x3f   : > { %3484 = vmatprep.subr.bf16.mxu0 %v5135_v37  ;;  %3828 = vmatprep.subr.bf16.mxu1 %v5137_v38  ;;  %v5187_v10 = vld [vmem:[%s5997_s14 + $0x1a0] ss:$16 sps:$4 sm:$0xff]   ;;  %v5189_v12 = vld [vmem:[%s5997_s14 + $0x1c4] ss:$16 sps:$4 sm:$0xff]   ;;  %v5191_v13 = vld [vmem:[%s5997_s14 + $0x1cc] ss:$16 sps:$4 sm:$0xff]  }
  0x40   : > { %3506 = vmatprep.mubr.bf16.mxu0 %v4492_v3  ;;  %3850 = vmatprep.mubr.bf16.mxu1 %v4492_v3  ;;  %v5193_v14 = vld [vmem:[%s5997_s14 + $0x1c0] ss:$16 sps:$4 sm:$0xff]   ;;  %v5194_v15 = vld [vmem:[%s5997_s14 + $0x1c8] ss:$16 sps:$4 sm:$0xff]   ;;  %v5195_v16 = vld [vmem:[%s5997_s14 + $0x1e4] ss:$16 sps:$4 sm:$0xff]  }
  0x41   : > { %v5197_v17 = vld [vmem:[%s5997_s14 + $0x1ec] ss:$16 sps:$4 sm:$0xff]   ;;  %v5199_v18 = vld [vmem:[%s5997_s14 + $0x1e0] ss:$16 sps:$4 sm:$0xff]   ;;  %v5200_v19 = vld [vmem:[%s5997_s14 + $0x1e8] ss:$16 sps:$4 sm:$0xff]  }
  0x42   : > { %3485 = vmatpush1.bf16.msra.mxu0 %v5139_v39  ;;  %3829 = vmatpush1.bf16.msra.mxu1 %v5140_v40  ;;  %v5203_v20 = vld [vmem:[%s5997_s14 + $0x204] ss:$16 sps:$4 sm:$0xff]   ;;  %v5206_v21 = vld [vmem:[%s5997_s14 + $0x20c] ss:$16 sps:$4 sm:$0xff]   ;;  %v5201_v23 = vld [vmem:[%s5997_s14 + $0x200] ss:$16 sps:$4 sm:$0xff]  }
  0x43   : > { %3486 = vmatprep.subr.bf16.mxu0 %v5141_v41  ;;  %3830 = vmatprep.subr.bf16.mxu1 %v5143_v42  ;;  %v5204_v24 = vld [vmem:[%s5997_s14 + $0x208] ss:$16 sps:$4 sm:$0xff]   ;;  %v5209_v25 = vld [vmem:[%s5997_s14 + $0x224] ss:$16 sps:$4 sm:$0xff]   ;;  %v5212_v26 = vld [vmem:[%s5997_s14 + $0x22c] ss:$16 sps:$4 sm:$0xff]  }
  0x44   : > { %v5207_v27 = vld [vmem:[%s5997_s14 + $0x220] ss:$16 sps:$4 sm:$0xff]   ;;  %v5210_v28 = vld [vmem:[%s5997_s14 + $0x228] ss:$16 sps:$4 sm:$0xff]   ;;  %v5215_v29 = vld [vmem:[%s5997_s14 + $0x244] ss:$16 sps:$4 sm:$0xff]  }
  0x45   : > { %v5218_v30 = vld [vmem:[%s5997_s14 + $0x24c] ss:$16 sps:$4 sm:$0xff]   ;;  %v5213_v31 = vld [vmem:[%s5997_s14 + $0x240] ss:$16 sps:$4 sm:$0xff]   ;;  %v5216_v32 = vld [vmem:[%s5997_s14 + $0x248] ss:$16 sps:$4 sm:$0xff]  }
  0x46   : > { %3487 = vmatpush1.bf16.msra.mxu0 %v5145_v43  ;;  %3831 = vmatpush1.bf16.msra.mxu1 %v5146_v44  ;;  %v5221_v33 = vld [vmem:[%s5997_s14 + $0x264] ss:$16 sps:$4 sm:$0xff]   ;;  %v5224_v34 = vld [vmem:[%s5997_s14 + $0x26c] ss:$16 sps:$4 sm:$0xff]   ;;  %v5219_v35 = vld [vmem:[%s5997_s14 + $0x260] ss:$16 sps:$4 sm:$0xff]  }
  0x47   : > { %3488 = vmatprep.subr.bf16.mxu0 %v5147_v45  ;;  %3832 = vmatprep.subr.bf16.mxu1 %v5149_v46  ;;  %v5222_v36 = vld [vmem:[%s5997_s14 + $0x268] ss:$16 sps:$4 sm:$0xff]   ;;  %v5227_v37 = vld [vmem:[%s5997_s14 + $0x284] ss:$16 sps:$4 sm:$0xff]   ;;  %v5230_v38 = vld [vmem:[%s5997_s14 + $0x28c] ss:$16 sps:$4 sm:$0xff]  }
  0x48   : > { %v5225_v39 = vld [vmem:[%s5997_s14 + $0x280] ss:$16 sps:$4 sm:$0xff]   ;;  %v5228_v40 = vld [vmem:[%s5997_s14 + $0x288] ss:$16 sps:$4 sm:$0xff]   ;;  %v5233_v41 = vld [vmem:[%s5997_s14 + $0x2a4] ss:$16 sps:$4 sm:$0xff]  }
  0x49   : > { %v5236_v42 = vld [vmem:[%s5997_s14 + $0x2ac] ss:$16 sps:$4 sm:$0xff]   ;;  %v5231_v43 = vld [vmem:[%s5997_s14 + $0x2a0] ss:$16 sps:$4 sm:$0xff]   ;;  %v5234_v44 = vld [vmem:[%s5997_s14 + $0x2a8] ss:$16 sps:$4 sm:$0xff]  }
  0x4a   : > { %3489 = vmatpush1.bf16.msra.mxu0 %v5151_v47  ;;  %3833 = vmatpush1.bf16.msra.mxu1 %v5152_v48  ;;  %v5239_v45 = vld [vmem:[%s5997_s14 + $0x2c4] ss:$16 sps:$4 sm:$0xff]   ;;  %v5242_v46 = vld [vmem:[%s5997_s14 + $0x2cc] ss:$16 sps:$4 sm:$0xff]   ;;  %v5258_v63 = vld [vmem:[%s5997_s14 + $0x328] ss:$16 sps:$4 sm:$0xff]  }
  0x4b   : > { %3490 = vmatprep.subr.bf16.mxu0 %v5153_v49  ;;  %3834 = vmatprep.subr.bf16.mxu1 %v5155_v50  ;;  %v6095_v47 = vld [vmem:[%s5999_s15 + $0x8] sm:$0xff]  ;;  %v5237_v49 = vld [vmem:[%s5997_s14 + $0x2c0] ss:$16 sps:$4 sm:$0xff]   ;;  %v5263_v0 = vld [vmem:[%s5997_s14 + $0x344] ss:$16 sps:$4 sm:$0xff]  }
  0x4c   : > { %v6098_v48 = vld [vmem:[%s5999_s15 + $0x48] sm:$0xff] }
  0x4d   : > { %v5240_v50 = vld [vmem:[%s5997_s14 + $0x2c8] ss:$16 sps:$4 sm:$0xff]  }
  0x4e   : > { %3491 = vmatpush1.bf16.msra.mxu0 %v5157_v51  ;;  %3835 = vmatpush1.bf16.msra.mxu1 %v5158_v52  ;;  %v4494_v51 = vcombine.high %v6095_v47, %v6098_v48  ;;  %v5245_v52 = vld [vmem:[%s5997_s14 + $0x2e4] ss:$16 sps:$4 sm:$0xff]   ;;  %v5264_v3 = vld [vmem:[%s5997_s14 + $0x348] ss:$16 sps:$4 sm:$0xff]  }
  0x4f   : > { %3492 = vmatprep.subr.bf16.mxu0 %v5159_v53  ;;  %3836 = vmatprep.subr.bf16.mxu1 %v5161_v54  ;;  %v5248_v53 = vld [vmem:[%s5997_s14 + $0x2ec] ss:$16 sps:$4 sm:$0xff]   ;;  %v5243_v54 = vld [vmem:[%s5997_s14 + $0x2e0] ss:$16 sps:$4 sm:$0xff]  }
  0x52   : > { %3493 = vmatpush1.bf16.msra.mxu0 %v5163_v55  ;;  %3837 = vmatpush1.bf16.msra.mxu1 %v5164_v56  ;;  %v5246_v55 = vld [vmem:[%s5997_s14 + $0x2e8] ss:$16 sps:$4 sm:$0xff]   ;;  %v5251_v56 = vld [vmem:[%s5997_s14 + $0x304] ss:$16 sps:$4 sm:$0xff]  }
  0x53   : > { %3494 = vmatprep.subr.bf16.mxu0 %v5165_v57  ;;  %3838 = vmatprep.subr.bf16.mxu1 %v5167_v58  ;;  %v5254_v57 = vld [vmem:[%s5997_s14 + $0x30c] ss:$16 sps:$4 sm:$0xff]   ;;  %v5249_v58 = vld [vmem:[%s5997_s14 + $0x300] ss:$16 sps:$4 sm:$0xff]  }
  0x56   : > { %3495 = vmatpush1.bf16.msra.mxu0 %v5169_v59  ;;  %3839 = vmatpush1.bf16.msra.mxu1 %v5170_v60  ;;  %v5252_v59 = vld [vmem:[%s5997_s14 + $0x308] ss:$16 sps:$4 sm:$0xff]   ;;  %v5257_v60 = vld [vmem:[%s5997_s14 + $0x324] ss:$16 sps:$4 sm:$0xff]  }
  0x57   : > { %3496 = vmatprep.subr.bf16.mxu0 %v5171_v61  ;;  %3840 = vmatprep.subr.bf16.mxu1 %v5173_v62  ;;  %v5260_v61 = vld [vmem:[%s5997_s14 + $0x32c] ss:$16 sps:$4 sm:$0xff]   ;;  %v5255_v62 = vld [vmem:[%s5997_s14 + $0x320] ss:$16 sps:$4 sm:$0xff]  }
  0x5a   : > { %3497 = vmatpush1.bf16.msra.mxu0 %v5175_v1  ;;  %3841 = vmatpush1.bf16.msra.mxu1 %v5176_v2  ;;  %v5266_v1 = vld [vmem:[%s5997_s14 + $0x34c] ss:$16 sps:$4 sm:$0xff]   ;;  %v5261_v2 = vld [vmem:[%s5997_s14 + $0x340] ss:$16 sps:$4 sm:$0xff]  }
  0x5b   : > { %3498 = vmatprep.subr.bf16.mxu0 %v5177_v4  ;;  %3842 = vmatprep.subr.bf16.mxu1 %v5179_v5  ;;  %v5269_v4 = vld [vmem:[%s5997_s14 + $0x364] ss:$16 sps:$4 sm:$0xff]   ;;  %v5272_v5 = vld [vmem:[%s5997_s14 + $0x36c] ss:$16 sps:$4 sm:$0xff]  }
  0x5e   : > { %3499 = vmatpush1.bf16.msra.mxu0 %v5181_v6  ;;  %3843 = vmatpush1.bf16.msra.mxu1 %v5182_v7  ;;  %v5267_v6 = vld [vmem:[%s5997_s14 + $0x360] ss:$16 sps:$4 sm:$0xff]   ;;  %v5270_v7 = vld [vmem:[%s5997_s14 + $0x368] ss:$16 sps:$4 sm:$0xff]  }
  0x5f   : > { %3500 = vmatprep.subr.bf16.mxu0 %v5183_v8  ;;  %3844 = vmatprep.subr.bf16.mxu1 %v5185_v9  ;;  %v5275_v8 = vld [vmem:[%s5997_s14 + $0x384] ss:$16 sps:$4 sm:$0xff]   ;;  %v5278_v9 = vld [vmem:[%s5997_s14 + $0x38c] ss:$16 sps:$4 sm:$0xff]  }
  0x62   : > { %3501 = vmatpush1.bf16.msra.mxu0 %v5187_v10  ;;  %3845 = vmatpush1.bf16.msra.mxu1 %v5188_v11  ;;  %v5273_v10 = vld [vmem:[%s5997_s14 + $0x380] ss:$16 sps:$4 sm:$0xff]   ;;  %v5276_v11 = vld [vmem:[%s5997_s14 + $0x388] ss:$16 sps:$4 sm:$0xff]  }
  0x63   : > { %3502 = vmatprep.subr.bf16.mxu0 %v5189_v12  ;;  %3846 = vmatprep.subr.bf16.mxu1 %v5191_v13  ;;  %v5281_v12 = vld [vmem:[%s5997_s14 + $0x3a4] ss:$16 sps:$4 sm:$0xff]   ;;  %v5284_v13 = vld [vmem:[%s5997_s14 + $0x3ac] ss:$16 sps:$4 sm:$0xff]  }
  0x66   : > { %3503 = vmatpush1.bf16.msra.mxu0 %v5193_v14  ;;  %3847 = vmatpush1.bf16.msra.mxu1 %v5194_v15  ;;  %v5279_v14 = vld [vmem:[%s5997_s14 + $0x3a0] ss:$16 sps:$4 sm:$0xff]   ;;  %v5282_v15 = vld [vmem:[%s5997_s14 + $0x3a8] ss:$16 sps:$4 sm:$0xff]  }
  0x67   : > { %3504 = vmatprep.subr.bf16.mxu0 %v5195_v16  ;;  %3848 = vmatprep.subr.bf16.mxu1 %v5197_v17  ;;  %v5287_v16 = vld [vmem:[%s5997_s14 + $0x3c4] ss:$16 sps:$4 sm:$0xff]   ;;  %v5290_v17 = vld [vmem:[%s5997_s14 + $0x3cc] ss:$16 sps:$4 sm:$0xff]  }
  0x6a   : > { %3505 = vmatpush1.bf16.msra.mxu0 %v5199_v18  ;;  %3849 = vmatpush1.bf16.msra.mxu1 %v5200_v19  ;;  %v5285_v18 = vld [vmem:[%s5997_s14 + $0x3c0] ss:$16 sps:$4 sm:$0xff]   ;;  %v5288_v19 = vld [vmem:[%s5997_s14 + $0x3c8] ss:$16 sps:$4 sm:$0xff]  }
  0x6b   : > { %3517 = vmatprep.subr.bf16.mxu0 %v5203_v20  ;;  %3861 = vmatprep.subr.bf16.mxu1 %v5206_v21  ;;  %v5293_v20 = vld [vmem:[%s5997_s14 + $0x3e4] ss:$16 sps:$4 sm:$0xff]   ;;  %v5296_v21 = vld [vmem:[%s5997_s14 + $0x3ec] ss:$16 sps:$4 sm:$0xff]  }
  0x6d   : > { %3507 = vmatmul.mubr.bf16.vlgmr.msra.gmra.mrb[0].mxu0 %v4491_v22  ;;  %3851 = vmatmul.mubr.bf16.vlgmr.msra.gmra.mrb[0].mxu1 %v4491_v22  ;;  %v5291_v22 = vld [vmem:[%s5997_s14 + $0x3e0] ss:$16 sps:$4 sm:$0xff]  }
  0x6e   : > { %3518 = vmatpush1.bf16.msra.mxu0 %v5201_v23  ;;  %3862 = vmatpush1.bf16.msra.mxu1 %v5204_v24  ;;  %v5294_v23 = vld [vmem:[%s5997_s14 + $0x3e8] ss:$16 sps:$4 sm:$0xff]   ;;  %v5299_v24 = vld [vmem:[%s5997_s14 + $0x404] ss:$16 sps:$4 sm:$0xff]  }
  0x6f   : > { %3519 = vmatprep.subr.bf16.mxu0 %v5209_v25  ;;  %3863 = vmatprep.subr.bf16.mxu1 %v5212_v26  ;;  %v5302_v25 = vld [vmem:[%s5997_s14 + $0x40c] ss:$16 sps:$4 sm:$0xff]   ;;  %v4493_v26 = vcombine.low %v6095_v47, %v6098_v48  ;;  %v5324_v47 = vld [vmem:[%s5997_s14 + $0x488] ss:$16 sps:$4 sm:$0xff]   ;;  %v5329_v48 = vld [vmem:[%s5997_s14 + $0x4a4] ss:$16 sps:$4 sm:$0xff]  }
  0x70   : > { %3549 = vmatprep.mubr.bf16.mxu0 %v4494_v51  ;;  %3893 = vmatprep.mubr.bf16.mxu1 %v4494_v51  ;;  %v5330_v51 = vld [vmem:[%s5997_s14 + $0x4a8] ss:$16 sps:$4 sm:$0xff]  }
  0x72   : > { %3520 = vmatpush1.bf16.msra.mxu0 %v5207_v27  ;;  %3864 = vmatpush1.bf16.msra.mxu1 %v5210_v28  ;;  %v5297_v27 = vld [vmem:[%s5997_s14 + $0x400] ss:$16 sps:$4 sm:$0xff]   ;;  %v5300_v28 = vld [vmem:[%s5997_s14 + $0x408] ss:$16 sps:$4 sm:$0xff]  }
  0x73   : > { %3521 = vmatprep.subr.bf16.mxu0 %v5215_v29  ;;  %3865 = vmatprep.subr.bf16.mxu1 %v5218_v30  ;;  %v5305_v29 = vld [vmem:[%s5997_s14 + $0x424] ss:$16 sps:$4 sm:$0xff]   ;;  %v5308_v30 = vld [vmem:[%s5997_s14 + $0x42c] ss:$16 sps:$4 sm:$0xff]  }
  0x76   : > { %3522 = vmatpush1.bf16.msra.mxu0 %v5213_v31  ;;  %3866 = vmatpush1.bf16.msra.mxu1 %v5216_v32  ;;  %v6149_v31 = vld [vmem:[%s5999_s15 + $0x10] sm:$0xff] }
  0x77   : > { %3523 = vmatprep.subr.bf16.mxu0 %v5221_v33  ;;  %3867 = vmatprep.subr.bf16.mxu1 %v5224_v34  ;;  %v6152_v32 = vld [vmem:[%s5999_s15 + $0x50] sm:$0xff] }
  0x78   : > { %v4496_v33 = vcombine.high %v6149_v31, %v6152_v32  ;;  %v5303_v34 = vld [vmem:[%s5997_s14 + $0x420] ss:$16 sps:$4 sm:$0xff]  }
  0x7a   : > { %3524 = vmatpush1.bf16.msra.mxu0 %v5219_v35  ;;  %3868 = vmatpush1.bf16.msra.mxu1 %v5222_v36  ;;  %v5306_v35 = vld [vmem:[%s5997_s14 + $0x428] ss:$16 sps:$4 sm:$0xff]   ;;  %v5311_v36 = vld [vmem:[%s5997_s14 + $0x444] ss:$16 sps:$4 sm:$0xff]  }
  0x7b   : > { %3525 = vmatprep.subr.bf16.mxu0 %v5227_v37  ;;  %3869 = vmatprep.subr.bf16.mxu1 %v5230_v38  ;;  %v5314_v37 = vld [vmem:[%s5997_s14 + $0x44c] ss:$16 sps:$4 sm:$0xff]   ;;  %v5309_v38 = vld [vmem:[%s5997_s14 + $0x440] ss:$16 sps:$4 sm:$0xff]  }
  0x7e   : > { %3526 = vmatpush1.bf16.msra.mxu0 %v5225_v39  ;;  %3870 = vmatpush1.bf16.msra.mxu1 %v5228_v40  ;;  %v5312_v39 = vld [vmem:[%s5997_s14 + $0x448] ss:$16 sps:$4 sm:$0xff]   ;;  %v5317_v40 = vld [vmem:[%s5997_s14 + $0x464] ss:$16 sps:$4 sm:$0xff]  }
  0x7f   : > { %3527 = vmatprep.subr.bf16.mxu0 %v5233_v41  ;;  %3871 = vmatprep.subr.bf16.mxu1 %v5236_v42  ;;  %v5320_v41 = vld [vmem:[%s5997_s14 + $0x46c] ss:$16 sps:$4 sm:$0xff]   ;;  %v5315_v42 = vld [vmem:[%s5997_s14 + $0x460] ss:$16 sps:$4 sm:$0xff]  }
  0x82   : > { %3528 = vmatpush1.bf16.msra.mxu0 %v5231_v43  ;;  %3872 = vmatpush1.bf16.msra.mxu1 %v5234_v44  ;;  %v5318_v43 = vld [vmem:[%s5997_s14 + $0x468] ss:$16 sps:$4 sm:$0xff]   ;;  %v5323_v44 = vld [vmem:[%s5997_s14 + $0x484] ss:$16 sps:$4 sm:$0xff]  }
  0x83   : > { %3529 = vmatprep.subr.bf16.mxu0 %v5239_v45  ;;  %3873 = vmatprep.subr.bf16.mxu1 %v5242_v46  ;;  %v5326_v45 = vld [vmem:[%s5997_s14 + $0x48c] ss:$16 sps:$4 sm:$0xff]   ;;  %v5321_v46 = vld [vmem:[%s5997_s14 + $0x480] ss:$16 sps:$4 sm:$0xff]  }
  0x86   : > { %3530 = vmatpush1.bf16.msra.mxu0 %v5237_v49  ;;  %3874 = vmatpush1.bf16.msra.mxu1 %v5240_v50  ;;  %v5332_v49 = vld [vmem:[%s5997_s14 + $0x4ac] ss:$16 sps:$4 sm:$0xff]   ;;  %v5327_v50 = vld [vmem:[%s5997_s14 + $0x4a0] ss:$16 sps:$4 sm:$0xff]  }
  0x87   : > { %3531 = vmatprep.subr.bf16.mxu0 %v5245_v52  ;;  %3875 = vmatprep.subr.bf16.mxu1 %v5248_v53  ;;  %v5335_v52 = vld [vmem:[%s5997_s14 + $0x4c4] ss:$16 sps:$4 sm:$0xff]   ;;  %v5338_v53 = vld [vmem:[%s5997_s14 + $0x4cc] ss:$16 sps:$4 sm:$0xff]  }
  0x8a   : > { %3532 = vmatpush1.bf16.msra.mxu0 %v5243_v54  ;;  %3876 = vmatpush1.bf16.msra.mxu1 %v5246_v55  ;;  %v5333_v54 = vld [vmem:[%s5997_s14 + $0x4c0] ss:$16 sps:$4 sm:$0xff]   ;;  %v5336_v55 = vld [vmem:[%s5997_s14 + $0x4c8] ss:$16 sps:$4 sm:$0xff]  }
  0x8b   : > { %3533 = vmatprep.subr.bf16.mxu0 %v5251_v56  ;;  %3877 = vmatprep.subr.bf16.mxu1 %v5254_v57  ;;  %v5341_v56 = vld [vmem:[%s5997_s14 + $0x4e4] ss:$16 sps:$4 sm:$0xff]   ;;  %v5344_v57 = vld [vmem:[%s5997_s14 + $0x4ec] ss:$16 sps:$4 sm:$0xff]  }
  0x8e   : > { %3534 = vmatpush1.bf16.msra.mxu0 %v5249_v58  ;;  %3878 = vmatpush1.bf16.msra.mxu1 %v5252_v59  ;;  %v5339_v58 = vld [vmem:[%s5997_s14 + $0x4e0] ss:$16 sps:$4 sm:$0xff]   ;;  %v5342_v59 = vld [vmem:[%s5997_s14 + $0x4e8] ss:$16 sps:$4 sm:$0xff]  }
  0x8f   : > { %3535 = vmatprep.subr.bf16.mxu0 %v5257_v60  ;;  %3879 = vmatprep.subr.bf16.mxu1 %v5260_v61  ;;  %v5347_v60 = vld [vmem:[%s5997_s14 + $0x504] ss:$16 sps:$4 sm:$0xff]   ;;  %v5350_v61 = vld [vmem:[%s5997_s14 + $0x50c] ss:$16 sps:$4 sm:$0xff]  }
  0x92   : > { %3536 = vmatpush1.bf16.msra.mxu0 %v5255_v62  ;;  %3880 = vmatpush1.bf16.msra.mxu1 %v5258_v63  ;;  %v5345_v62 = vld [vmem:[%s5997_s14 + $0x500] ss:$16 sps:$4 sm:$0xff]   ;;  %v5348_v63 = vld [vmem:[%s5997_s14 + $0x508] ss:$16 sps:$4 sm:$0xff]  }
  0x93   : > { %3537 = vmatprep.subr.bf16.mxu0 %v5263_v0  ;;  %3881 = vmatprep.subr.bf16.mxu1 %v5266_v1  ;;  %v5353_v0 = vld [vmem:[%s5997_s14 + $0x524] ss:$16 sps:$4 sm:$0xff]   ;;  %v5356_v1 = vld [vmem:[%s5997_s14 + $0x52c] ss:$16 sps:$4 sm:$0xff]  }
  0x96   : > { %3538 = vmatpush1.bf16.msra.mxu0 %v5261_v2  ;;  %3882 = vmatpush1.bf16.msra.mxu1 %v5264_v3  ;;  %v5351_v2 = vld [vmem:[%s5997_s14 + $0x520] ss:$16 sps:$4 sm:$0xff]   ;;  %v5354_v3 = vld [vmem:[%s5997_s14 + $0x528] ss:$16 sps:$4 sm:$0xff]  }
  0x97   : > { %3539 = vmatprep.subr.bf16.mxu0 %v5269_v4  ;;  %3883 = vmatprep.subr.bf16.mxu1 %v5272_v5  ;;  %v5359_v4 = vld [vmem:[%s5997_s14 + $0x544] ss:$16 sps:$4 sm:$0xff]   ;;  %v5362_v5 = vld [vmem:[%s5997_s14 + $0x54c] ss:$16 sps:$4 sm:$0xff]  }
  0x9a   : > { %3540 = vmatpush1.bf16.msra.mxu0 %v5267_v6  ;;  %3884 = vmatpush1.bf16.msra.mxu1 %v5270_v7  ;;  %v5357_v6 = vld [vmem:[%s5997_s14 + $0x540] ss:$16 sps:$4 sm:$0xff]   ;;  %v5360_v7 = vld [vmem:[%s5997_s14 + $0x548] ss:$16 sps:$4 sm:$0xff]  }
  0x9b   : > { %3541 = vmatprep.subr.bf16.mxu0 %v5275_v8  ;;  %3885 = vmatprep.subr.bf16.mxu1 %v5278_v9  ;;  %v5365_v8 = vld [vmem:[%s5997_s14 + $0x564] ss:$16 sps:$4 sm:$0xff]   ;;  %v5368_v9 = vld [vmem:[%s5997_s14 + $0x56c] ss:$16 sps:$4 sm:$0xff]  }
  0x9e   : > { %3542 = vmatpush1.bf16.msra.mxu0 %v5273_v10  ;;  %3886 = vmatpush1.bf16.msra.mxu1 %v5276_v11  ;;  %v5363_v10 = vld [vmem:[%s5997_s14 + $0x560] ss:$16 sps:$4 sm:$0xff]   ;;  %v5366_v11 = vld [vmem:[%s5997_s14 + $0x568] ss:$16 sps:$4 sm:$0xff]  }
  0x9f   : > { %3543 = vmatprep.subr.bf16.mxu0 %v5281_v12  ;;  %3887 = vmatprep.subr.bf16.mxu1 %v5284_v13  ;;  %v5371_v12 = vld [vmem:[%s5997_s14 + $0x584] ss:$16 sps:$4 sm:$0xff]   ;;  %v5374_v13 = vld [vmem:[%s5997_s14 + $0x58c] ss:$16 sps:$4 sm:$0xff]  }
  0xa2   : > { %3544 = vmatpush1.bf16.msra.mxu0 %v5279_v14  ;;  %3888 = vmatpush1.bf16.msra.mxu1 %v5282_v15  ;;  %v5369_v14 = vld [vmem:[%s5997_s14 + $0x580] ss:$16 sps:$4 sm:$0xff]   ;;  %v5372_v15 = vld [vmem:[%s5997_s14 + $0x588] ss:$16 sps:$4 sm:$0xff]  }
  0xa3   : > { %3545 = vmatprep.subr.bf16.mxu0 %v5287_v16  ;;  %3889 = vmatprep.subr.bf16.mxu1 %v5290_v17  ;;  %v5377_v16 = vld [vmem:[%s5997_s14 + $0x5a4] ss:$16 sps:$4 sm:$0xff]   ;;  %v5380_v17 = vld [vmem:[%s5997_s14 + $0x5ac] ss:$16 sps:$4 sm:$0xff]  }
  0xa6   : > { %3546 = vmatpush1.bf16.msra.mxu0 %v5285_v18  ;;  %3890 = vmatpush1.bf16.msra.mxu1 %v5288_v19  ;;  %v5375_v18 = vld [vmem:[%s5997_s14 + $0x5a0] ss:$16 sps:$4 sm:$0xff]   ;;  %v5378_v19 = vld [vmem:[%s5997_s14 + $0x5a8] ss:$16 sps:$4 sm:$0xff]  }
  0xa7   : > { %3547 = vmatprep.subr.bf16.mxu0 %v5293_v20  ;;  %3891 = vmatprep.subr.bf16.mxu1 %v5296_v21  ;;  %v5383_v20 = vld [vmem:[%s5997_s14 + $0x5c4] ss:$16 sps:$4 sm:$0xff]   ;;  %v5386_v21 = vld [vmem:[%s5997_s14 + $0x5cc] ss:$16 sps:$4 sm:$0xff]  }
  0xaa   : > { %3548 = vmatpush1.bf16.msra.mxu0 %v5291_v22  ;;  %3892 = vmatpush1.bf16.msra.mxu1 %v5294_v23  ;;  %v5381_v22 = vld [vmem:[%s5997_s14 + $0x5c0] ss:$16 sps:$4 sm:$0xff]   ;;  %v5384_v23 = vld [vmem:[%s5997_s14 + $0x5c8] ss:$16 sps:$4 sm:$0xff]  }
  0xab   : > { %3560 = vmatprep.subr.bf16.mxu0 %v5299_v24  ;;  %3904 = vmatprep.subr.bf16.mxu1 %v5302_v25  ;;  %v5389_v24 = vld [vmem:[%s5997_s14 + $0x5e4] ss:$16 sps:$4 sm:$0xff]   ;;  %v5392_v25 = vld [vmem:[%s5997_s14 + $0x5ec] ss:$16 sps:$4 sm:$0xff]  }
  0xad   : > { %3550 = vmatmul.mubr.bf16.vlgmr.msra.gmra.mrb[0].mxu0 %v4493_v26  ;;  %3894 = vmatmul.mubr.bf16.vlgmr.msra.gmra.mrb[0].mxu1 %v4493_v26  ;;  %v5387_v26 = vld [vmem:[%s5997_s14 + $0x5e0] ss:$16 sps:$4 sm:$0xff]  }
  0xae   : > { %3561 = vmatpush1.bf16.msra.mxu0 %v5297_v27  ;;  %3905 = vmatpush1.bf16.msra.mxu1 %v5300_v28  ;;  %v5390_v27 = vld [vmem:[%s5997_s14 + $0x5e8] ss:$16 sps:$4 sm:$0xff]   ;;  %v5395_v28 = vld [vmem:[%s5997_s14 + $0x604] ss:$16 sps:$4 sm:$0xff]  }
  0xaf   : > { %3562 = vmatprep.subr.bf16.mxu0 %v5305_v29  ;;  %3906 = vmatprep.subr.bf16.mxu1 %v5308_v30  ;;  %v5398_v29 = vld [vmem:[%s5997_s14 + $0x60c] ss:$16 sps:$4 sm:$0xff]   ;;  %v5393_v30 = vld [vmem:[%s5997_s14 + $0x600] ss:$16 sps:$4 sm:$0xff]  }
  0xb0   : > { %3592 = vmatprep.mubr.bf16.mxu0 %v4496_v33  ;;  %3936 = vmatprep.mubr.bf16.mxu1 %v4496_v33  ;;  %v5396_v33 = vld [vmem:[%s5997_s14 + $0x608] ss:$16 sps:$4 sm:$0xff]  }
  0xb2   : > { %3563 = vmatpush1.bf16.msra.mxu0 %v5303_v34  ;;  %3907 = vmatpush1.bf16.msra.mxu1 %v5306_v35  ;;  %v4495_v34 = vcombine.low %v6149_v31, %v6152_v32  ;;  %v6221_v35 = vld [vmem:[%s5999_s15 + $0x18] sm:$0xff]  ;;  %v5399_v31 = vld [vmem:[%s5997_s14 + $0x620] ss:$16 sps:$4 sm:$0xff]  }
  0xb3   : > { %3564 = vmatprep.subr.bf16.mxu0 %v5311_v36  ;;  %3908 = vmatprep.subr.bf16.mxu1 %v5314_v37  ;;  %v6224_v36 = vld [vmem:[%s5999_s15 + $0x58] sm:$0xff]  ;;  %v5401_v37 = vld [vmem:[%s5997_s14 + $0x624] ss:$16 sps:$4 sm:$0xff]  }
  0xb4   : > { %v5402_v32 = vld [vmem:[%s5997_s14 + $0x628] ss:$16 sps:$4 sm:$0xff]  }
  0xb6   : > { %3565 = vmatpush1.bf16.msra.mxu0 %v5309_v38  ;;  %3909 = vmatpush1.bf16.msra.mxu1 %v5312_v39  ;;  %v5404_v38 = vld [vmem:[%s5997_s14 + $0x62c] ss:$16 sps:$4 sm:$0xff]   ;;  %v4498_v39 = vcombine.high %v6221_v35, %v6224_v36 }
  0xb7   : > { %3566 = vmatprep.subr.bf16.mxu0 %v5317_v40  ;;  %3910 = vmatprep.subr.bf16.mxu1 %v5320_v41  ;;  %v5407_v40 = vld [vmem:[%s5997_s14 + $0x644] ss:$16 sps:$4 sm:$0xff]   ;;  %v5410_v41 = vld [vmem:[%s5997_s14 + $0x64c] ss:$16 sps:$4 sm:$0xff]  }
  0xba   : > { %3567 = vmatpush1.bf16.msra.mxu0 %v5315_v42  ;;  %3911 = vmatpush1.bf16.msra.mxu1 %v5318_v43  ;;  %v5405_v42 = vld [vmem:[%s5997_s14 + $0x640] ss:$16 sps:$4 sm:$0xff]   ;;  %v5408_v43 = vld [vmem:[%s5997_s14 + $0x648] ss:$16 sps:$4 sm:$0xff]  }
  0xbb   : > { %3568 = vmatprep.subr.bf16.mxu0 %v5323_v44  ;;  %3912 = vmatprep.subr.bf16.mxu1 %v5326_v45  ;;  %v5413_v44 = vld [vmem:[%s5997_s14 + $0x664] ss:$16 sps:$4 sm:$0xff]   ;;  %v5416_v45 = vld [vmem:[%s5997_s14 + $0x66c] ss:$16 sps:$4 sm:$0xff]  }
  0xbe   : > { %3569 = vmatpush1.bf16.msra.mxu0 %v5321_v46  ;;  %3913 = vmatpush1.bf16.msra.mxu1 %v5324_v47  ;;  %v5411_v46 = vld [vmem:[%s5997_s14 + $0x660] ss:$16 sps:$4 sm:$0xff]   ;;  %v5414_v47 = vld [vmem:[%s5997_s14 + $0x668] ss:$16 sps:$4 sm:$0xff]  }
  0xbf   : > { %3570 = vmatprep.subr.bf16.mxu0 %v5329_v48  ;;  %3914 = vmatprep.subr.bf16.mxu1 %v5332_v49  ;;  %v5419_v48 = vld [vmem:[%s5997_s14 + $0x684] ss:$16 sps:$4 sm:$0xff]   ;;  %v5422_v49 = vld [vmem:[%s5997_s14 + $0x68c] ss:$16 sps:$4 sm:$0xff]  }
  0xc2   : > { %3571 = vmatpush1.bf16.msra.mxu0 %v5327_v50  ;;  %3915 = vmatpush1.bf16.msra.mxu1 %v5330_v51  ;;  %v5417_v50 = vld [vmem:[%s5997_s14 + $0x680] ss:$16 sps:$4 sm:$0xff]   ;;  %v5420_v51 = vld [vmem:[%s5997_s14 + $0x688] ss:$16 sps:$4 sm:$0xff]  }
  0xc3   : > { %3572 = vmatprep.subr.bf16.mxu0 %v5335_v52  ;;  %3916 = vmatprep.subr.bf16.mxu1 %v5338_v53  ;;  %v5425_v52 = vld [vmem:[%s5997_s14 + $0x6a4] ss:$16 sps:$4 sm:$0xff]   ;;  %v5428_v53 = vld [vmem:[%s5997_s14 + $0x6ac] ss:$16 sps:$4 sm:$0xff]  }
  0xc6   : > { %3573 = vmatpush1.bf16.msra.mxu0 %v5333_v54  ;;  %3917 = vmatpush1.bf16.msra.mxu1 %v5336_v55  ;;  %v5423_v54 = vld [vmem:[%s5997_s14 + $0x6a0] ss:$16 sps:$4 sm:$0xff]   ;;  %v5426_v55 = vld [vmem:[%s5997_s14 + $0x6a8] ss:$16 sps:$4 sm:$0xff]  }
  0xc7   : > { %3574 = vmatprep.subr.bf16.mxu0 %v5341_v56  ;;  %3918 = vmatprep.subr.bf16.mxu1 %v5344_v57  ;;  %v5431_v56 = vld [vmem:[%s5997_s14 + $0x6c4] ss:$16 sps:$4 sm:$0xff]   ;;  %v5434_v57 = vld [vmem:[%s5997_s14 + $0x6cc] ss:$16 sps:$4 sm:$0xff]  }
  0xca   : > { %3575 = vmatpush1.bf16.msra.mxu0 %v5339_v58  ;;  %3919 = vmatpush1.bf16.msra.mxu1 %v5342_v59  ;;  %v5429_v58 = vld [vmem:[%s5997_s14 + $0x6c0] ss:$16 sps:$4 sm:$0xff]   ;;  %v5432_v59 = vld [vmem:[%s5997_s14 + $0x6c8] ss:$16 sps:$4 sm:$0xff]  }
  0xcb   : > { %3576 = vmatprep.subr.bf16.mxu0 %v5347_v60  ;;  %3920 = vmatprep.subr.bf16.mxu1 %v5350_v61  ;;  %v5437_v60 = vld [vmem:[%s5997_s14 + $0x6e4] ss:$16 sps:$4 sm:$0xff]   ;;  %v5440_v61 = vld [vmem:[%s5997_s14 + $0x6ec] ss:$16 sps:$4 sm:$0xff]  }
  0xce   : > { %3577 = vmatpush1.bf16.msra.mxu0 %v5345_v62  ;;  %3921 = vmatpush1.bf16.msra.mxu1 %v5348_v63  ;;  %v5435_v62 = vld [vmem:[%s5997_s14 + $0x6e0] ss:$16 sps:$4 sm:$0xff]   ;;  %v5438_v63 = vld [vmem:[%s5997_s14 + $0x6e8] ss:$16 sps:$4 sm:$0xff]  }
  0xcf   : > { %3578 = vmatprep.subr.bf16.mxu0 %v5353_v0  ;;  %3922 = vmatprep.subr.bf16.mxu1 %v5356_v1  ;;  %v5443_v0 = vld [vmem:[%s5997_s14 + $0x704] ss:$16 sps:$4 sm:$0xff]   ;;  %v5446_v1 = vld [vmem:[%s5997_s14 + $0x70c] ss:$16 sps:$4 sm:$0xff]  }
  0xd2   : > { %3579 = vmatpush1.bf16.msra.mxu0 %v5351_v2  ;;  %3923 = vmatpush1.bf16.msra.mxu1 %v5354_v3  ;;  %v5441_v2 = vld [vmem:[%s5997_s14 + $0x700] ss:$16 sps:$4 sm:$0xff]   ;;  %v5444_v3 = vld [vmem:[%s5997_s14 + $0x708] ss:$16 sps:$4 sm:$0xff]  }
  0xd3   : > { %3580 = vmatprep.subr.bf16.mxu0 %v5359_v4  ;;  %3924 = vmatprep.subr.bf16.mxu1 %v5362_v5  ;;  %v5449_v4 = vld [vmem:[%s5997_s14 + $0x724] ss:$16 sps:$4 sm:$0xff]   ;;  %v5452_v5 = vld [vmem:[%s5997_s14 + $0x72c] ss:$16 sps:$4 sm:$0xff]  }
  0xd6   : > { %3581 = vmatpush1.bf16.msra.mxu0 %v5357_v6  ;;  %3925 = vmatpush1.bf16.msra.mxu1 %v5360_v7  ;;  %v5447_v6 = vld [vmem:[%s5997_s14 + $0x720] ss:$16 sps:$4 sm:$0xff]   ;;  %v5450_v7 = vld [vmem:[%s5997_s14 + $0x728] ss:$16 sps:$4 sm:$0xff]  }
  0xd7   : > { %3582 = vmatprep.subr.bf16.mxu0 %v5365_v8  ;;  %3926 = vmatprep.subr.bf16.mxu1 %v5368_v9  ;;  %v5455_v8 = vld [vmem:[%s5997_s14 + $0x744] ss:$16 sps:$4 sm:$0xff]   ;;  %v5458_v9 = vld [vmem:[%s5997_s14 + $0x74c] ss:$16 sps:$4 sm:$0xff]  }
  0xda   : > { %3583 = vmatpush1.bf16.msra.mxu0 %v5363_v10  ;;  %3927 = vmatpush1.bf16.msra.mxu1 %v5366_v11  ;;  %v5453_v10 = vld [vmem:[%s5997_s14 + $0x740] ss:$16 sps:$4 sm:$0xff]   ;;  %v5456_v11 = vld [vmem:[%s5997_s14 + $0x748] ss:$16 sps:$4 sm:$0xff]  }
  0xdb   : > { %3584 = vmatprep.subr.bf16.mxu0 %v5371_v12  ;;  %3928 = vmatprep.subr.bf16.mxu1 %v5374_v13  ;;  %v5461_v12 = vld [vmem:[%s5997_s14 + $0x764] ss:$16 sps:$4 sm:$0xff]   ;;  %v5464_v13 = vld [vmem:[%s5997_s14 + $0x76c] ss:$16 sps:$4 sm:$0xff]  }
  0xde   : > { %3585 = vmatpush1.bf16.msra.mxu0 %v5369_v14  ;;  %3929 = vmatpush1.bf16.msra.mxu1 %v5372_v15  ;;  %v5459_v14 = vld [vmem:[%s5997_s14 + $0x760] ss:$16 sps:$4 sm:$0xff]   ;;  %v5462_v15 = vld [vmem:[%s5997_s14 + $0x768] ss:$16 sps:$4 sm:$0xff]  }
  0xdf   : > { %3586 = vmatprep.subr.bf16.mxu0 %v5377_v16  ;;  %3930 = vmatprep.subr.bf16.mxu1 %v5380_v17  ;;  %v5467_v16 = vld [vmem:[%s5997_s14 + $0x784] ss:$16 sps:$4 sm:$0xff]   ;;  %v5470_v17 = vld [vmem:[%s5997_s14 + $0x78c] ss:$16 sps:$4 sm:$0xff]  }
  0xe2   : > { %3587 = vmatpush1.bf16.msra.mxu0 %v5375_v18  ;;  %3931 = vmatpush1.bf16.msra.mxu1 %v5378_v19  ;;  %v5465_v18 = vld [vmem:[%s5997_s14 + $0x780] ss:$16 sps:$4 sm:$0xff]   ;;  %v5468_v19 = vld [vmem:[%s5997_s14 + $0x788] ss:$16 sps:$4 sm:$0xff]  }
  0xe3   : > { %3588 = vmatprep.subr.bf16.mxu0 %v5383_v20  ;;  %3932 = vmatprep.subr.bf16.mxu1 %v5386_v21  ;;  %v5473_v20 = vld [vmem:[%s5997_s14 + $0x7a4] ss:$16 sps:$4 sm:$0xff]   ;;  %v5476_v21 = vld [vmem:[%s5997_s14 + $0x7ac] ss:$16 sps:$4 sm:$0xff]  }
  0xe6   : > { %3589 = vmatpush1.bf16.msra.mxu0 %v5381_v22  ;;  %3933 = vmatpush1.bf16.msra.mxu1 %v5384_v23  ;;  %v5471_v22 = vld [vmem:[%s5997_s14 + $0x7a0] ss:$16 sps:$4 sm:$0xff]   ;;  %v5474_v23 = vld [vmem:[%s5997_s14 + $0x7a8] ss:$16 sps:$4 sm:$0xff]  }
  0xe7   : > { %3590 = vmatprep.subr.bf16.mxu0 %v5389_v24  ;;  %3934 = vmatprep.subr.bf16.mxu1 %v5392_v25  ;;  %v5479_v24 = vld [vmem:[%s5997_s14 + $0x7c4] ss:$16 sps:$4 sm:$0xff]   ;;  %v5482_v25 = vld [vmem:[%s5997_s14 + $0x7cc] ss:$16 sps:$4 sm:$0xff]  }
  0xea   : > { %3591 = vmatpush1.bf16.msra.mxu0 %v5387_v26  ;;  %3935 = vmatpush1.bf16.msra.mxu1 %v5390_v27  ;;  %v5477_v26 = vld [vmem:[%s5997_s14 + $0x7c0] ss:$16 sps:$4 sm:$0xff]   ;;  %v5480_v27 = vld [vmem:[%s5997_s14 + $0x7c8] ss:$16 sps:$4 sm:$0xff]  }
  0xeb   : > { %3603 = vmatprep.subr.bf16.mxu0 %v5395_v28  ;;  %3947 = vmatprep.subr.bf16.mxu1 %v5398_v29  ;;  %v5485_v28 = vld [vmem:[%s5997_s14 + $0x7e4] ss:$16 sps:$4 sm:$0xff]   ;;  %v5488_v29 = vld [vmem:[%s5997_s14 + $0x7ec] ss:$16 sps:$4 sm:$0xff]  }
  0xed   : > { %3593 = vmatmul.mubr.bf16.vlgmr.msra.gmra.mrb[0].mxu0 %v4495_v34  ;;  %3937 = vmatmul.mubr.bf16.vlgmr.msra.gmra.mrb[0].mxu1 %v4495_v34  ;;  %v5491_v34 = vld [vmem:[%s5997_s14 + $0x804] ss:$16 sps:$4 sm:$0xff]  }
  0xee   : > { %3604 = vmatpush1.bf16.msra.mxu0 %v5393_v30  ;;  %3948 = vmatpush1.bf16.msra.mxu1 %v5396_v33  ;;  %v5483_v30 = vld [vmem:[%s5997_s14 + $0x7e0] ss:$16 sps:$4 sm:$0xff]   ;;  %v5486_v33 = vld [vmem:[%s5997_s14 + $0x7e8] ss:$16 sps:$4 sm:$0xff]  }
  0xef   : > { %3605 = vmatprep.subr.bf16.mxu0 %v5401_v37  ;;  %3949 = vmatprep.subr.bf16.mxu1 %v5404_v38  ;;  %v5494_v37 = vld [vmem:[%s5997_s14 + $0x80c] ss:$16 sps:$4 sm:$0xff]   ;;  %v6291_v38 = vld [vmem:[%s5999_s15 + $0x20] sm:$0xff] }
  0xf0   : > { %3635 = vmatprep.mubr.bf16.mxu0 %v4498_v39  ;;  %3979 = vmatprep.mubr.bf16.mxu1 %v4498_v39  ;;  %v4497_v39 = vcombine.low %v6221_v35, %v6224_v36  ;;  %v5495_v35 = vld [vmem:[%s5997_s14 + $0x820] ss:$16 sps:$4 sm:$0xff]   ;;  %v5498_v36 = vld [vmem:[%s5997_s14 + $0x828] ss:$16 sps:$4 sm:$0xff]  }
  0xf2   : > { %3606 = vmatpush1.bf16.msra.mxu0 %v5399_v31  ;;  %3950 = vmatpush1.bf16.msra.mxu1 %v5402_v32  ;;  %v6296_v31 = vld [vmem:[%s5999_s15 + $0x60] sm:$0xff] }
  0xf3   : > { %3607 = vmatprep.subr.bf16.mxu0 %v5407_v40  ;;  %3951 = vmatprep.subr.bf16.mxu1 %v5410_v41  ;;  %v5489_v32 = vld [vmem:[%s5997_s14 + $0x800] ss:$16 sps:$4 sm:$0xff]   ;;  %v5492_v40 = vld [vmem:[%s5997_s14 + $0x808] ss:$16 sps:$4 sm:$0xff]   ;;  %v5497_v41 = vld [vmem:[%s5997_s14 + $0x824] ss:$16 sps:$4 sm:$0xff]  }
  0xf6   : > { %3608 = vmatpush1.bf16.msra.mxu0 %v5405_v42  ;;  %3952 = vmatpush1.bf16.msra.mxu1 %v5408_v43  ;;  %v5500_v42 = vld [vmem:[%s5997_s14 + $0x82c] ss:$16 sps:$4 sm:$0xff]   ;;  %v4500_v43 = vcombine.high %v6291_v38, %v6296_v31 }
  0xf7   : > { %3609 = vmatprep.subr.bf16.mxu0 %v5413_v44  ;;  %3953 = vmatprep.subr.bf16.mxu1 %v5416_v45  ;;  %v5503_v44 = vld [vmem:[%s5997_s14 + $0x844] ss:$16 sps:$4 sm:$0xff]   ;;  %v5506_v45 = vld [vmem:[%s5997_s14 + $0x84c] ss:$16 sps:$4 sm:$0xff]  }
  0xfa   : > { %3610 = vmatpush1.bf16.msra.mxu0 %v5411_v46  ;;  %3954 = vmatpush1.bf16.msra.mxu1 %v5414_v47  ;;  %v5501_v46 = vld [vmem:[%s5997_s14 + $0x840] ss:$16 sps:$4 sm:$0xff]   ;;  %v5504_v47 = vld [vmem:[%s5997_s14 + $0x848] ss:$16 sps:$4 sm:$0xff]  }
  0xfb   : > { %3611 = vmatprep.subr.bf16.mxu0 %v5419_v48  ;;  %3955 = vmatprep.subr.bf16.mxu1 %v5422_v49  ;;  %v5509_v48 = vld [vmem:[%s5997_s14 + $0x864] ss:$16 sps:$4 sm:$0xff]   ;;  %v5512_v49 = vld [vmem:[%s5997_s14 + $0x86c] ss:$16 sps:$4 sm:$0xff]  }
  0xfe   : > { %3612 = vmatpush1.bf16.msra.mxu0 %v5417_v50  ;;  %3956 = vmatpush1.bf16.msra.mxu1 %v5420_v51  ;;  %v5507_v50 = vld [vmem:[%s5997_s14 + $0x860] ss:$16 sps:$4 sm:$0xff]   ;;  %v5510_v51 = vld [vmem:[%s5997_s14 + $0x868] ss:$16 sps:$4 sm:$0xff]  }
  0xff   : > { %3613 = vmatprep.subr.bf16.mxu0 %v5425_v52  ;;  %3957 = vmatprep.subr.bf16.mxu1 %v5428_v53  ;;  %v5515_v52 = vld [vmem:[%s5997_s14 + $0x884] ss:$16 sps:$4 sm:$0xff]   ;;  %v5518_v53 = vld [vmem:[%s5997_s14 + $0x88c] ss:$16 sps:$4 sm:$0xff]  }
 0x102   : > { %3614 = vmatpush1.bf16.msra.mxu0 %v5423_v54  ;;  %3958 = vmatpush1.bf16.msra.mxu1 %v5426_v55  ;;  %v5513_v54 = vld [vmem:[%s5997_s14 + $0x880] ss:$16 sps:$4 sm:$0xff]   ;;  %v5516_v55 = vld [vmem:[%s5997_s14 + $0x888] ss:$16 sps:$4 sm:$0xff]  }
 0x103   : > { %3615 = vmatprep.subr.bf16.mxu0 %v5431_v56  ;;  %3959 = vmatprep.subr.bf16.mxu1 %v5434_v57  ;;  %v5521_v56 = vld [vmem:[%s5997_s14 + $0x8a4] ss:$16 sps:$4 sm:$0xff]   ;;  %v5524_v57 = vld [vmem:[%s5997_s14 + $0x8ac] ss:$16 sps:$4 sm:$0xff]  }
 0x106   : > { %3616 = vmatpush1.bf16.msra.mxu0 %v5429_v58  ;;  %3960 = vmatpush1.bf16.msra.mxu1 %v5432_v59  ;;  %v5519_v58 = vld [vmem:[%s5997_s14 + $0x8a0] ss:$16 sps:$4 sm:$0xff]   ;;  %v5522_v59 = vld [vmem:[%s5997_s14 + $0x8a8] ss:$16 sps:$4 sm:$0xff]  }
 0x107   : > { %3617 = vmatprep.subr.bf16.mxu0 %v5437_v60  ;;  %3961 = vmatprep.subr.bf16.mxu1 %v5440_v61  ;;  %v5527_v60 = vld [vmem:[%s5997_s14 + $0x8c4] ss:$16 sps:$4 sm:$0xff]   ;;  %v5530_v61 = vld [vmem:[%s5997_s14 + $0x8cc] ss:$16 sps:$4 sm:$0xff]  }
 0x10a   : > { %3618 = vmatpush1.bf16.msra.mxu0 %v5435_v62  ;;  %3962 = vmatpush1.bf16.msra.mxu1 %v5438_v63  ;;  %v5525_v62 = vld [vmem:[%s5997_s14 + $0x8c0] ss:$16 sps:$4 sm:$0xff]   ;;  %v5528_v63 = vld [vmem:[%s5997_s14 + $0x8c8] ss:$16 sps:$4 sm:$0xff]  }
 0x10b   : > { %3619 = vmatprep.subr.bf16.mxu0 %v5443_v0  ;;  %3963 = vmatprep.subr.bf16.mxu1 %v5446_v1  ;;  %v5533_v0 = vld [vmem:[%s5997_s14 + $0x8e4] ss:$16 sps:$4 sm:$0xff]   ;;  %v5536_v1 = vld [vmem:[%s5997_s14 + $0x8ec] ss:$16 sps:$4 sm:$0xff]  }
 0x10e   : > { %3620 = vmatpush1.bf16.msra.mxu0 %v5441_v2  ;;  %3964 = vmatpush1.bf16.msra.mxu1 %v5444_v3  ;;  %v5531_v2 = vld [vmem:[%s5997_s14 + $0x8e0] ss:$16 sps:$4 sm:$0xff]   ;;  %v5534_v3 = vld [vmem:[%s5997_s14 + $0x8e8] ss:$16 sps:$4 sm:$0xff]  }
 0x10f   : > { %3621 = vmatprep.subr.bf16.mxu0 %v5449_v4  ;;  %3965 = vmatprep.subr.bf16.mxu1 %v5452_v5  ;;  %v5539_v4 = vld [vmem:[%s5997_s14 + $0x904] ss:$16 sps:$4 sm:$0xff]   ;;  %v5542_v5 = vld [vmem:[%s5997_s14 + $0x90c] ss:$16 sps:$4 sm:$0xff]  }
 0x112   : > { %3622 = vmatpush1.bf16.msra.mxu0 %v5447_v6  ;;  %3966 = vmatpush1.bf16.msra.mxu1 %v5450_v7  ;;  %v5537_v6 = vld [vmem:[%s5997_s14 + $0x900] ss:$16 sps:$4 sm:$0xff]   ;;  %v5540_v7 = vld [vmem:[%s5997_s14 + $0x908] ss:$16 sps:$4 sm:$0xff]  }
 0x113   : > { %3623 = vmatprep.subr.bf16.mxu0 %v5455_v8  ;;  %3967 = vmatprep.subr.bf16.mxu1 %v5458_v9  ;;  %v5545_v8 = vld [vmem:[%s5997_s14 + $0x924] ss:$16 sps:$4 sm:$0xff]   ;;  %v5548_v9 = vld [vmem:[%s5997_s14 + $0x92c] ss:$16 sps:$4 sm:$0xff]  }
 0x116   : > { %3624 = vmatpush1.bf16.msra.mxu0 %v5453_v10  ;;  %3968 = vmatpush1.bf16.msra.mxu1 %v5456_v11  ;;  %v5543_v10 = vld [vmem:[%s5997_s14 + $0x920] ss:$16 sps:$4 sm:$0xff]   ;;  %v5546_v11 = vld [vmem:[%s5997_s14 + $0x928] ss:$16 sps:$4 sm:$0xff]  }
 0x117   : > { %3625 = vmatprep.subr.bf16.mxu0 %v5461_v12  ;;  %3969 = vmatprep.subr.bf16.mxu1 %v5464_v13  ;;  %v5551_v12 = vld [vmem:[%s5997_s14 + $0x944] ss:$16 sps:$4 sm:$0xff]   ;;  %v5554_v13 = vld [vmem:[%s5997_s14 + $0x94c] ss:$16 sps:$4 sm:$0xff]  }
 0x11a   : > { %3626 = vmatpush1.bf16.msra.mxu0 %v5459_v14  ;;  %3970 = vmatpush1.bf16.msra.mxu1 %v5462_v15  ;;  %v5549_v14 = vld [vmem:[%s5997_s14 + $0x940] ss:$16 sps:$4 sm:$0xff]   ;;  %v5552_v15 = vld [vmem:[%s5997_s14 + $0x948] ss:$16 sps:$4 sm:$0xff]  }
 0x11b   : > { %3627 = vmatprep.subr.bf16.mxu0 %v5467_v16  ;;  %3971 = vmatprep.subr.bf16.mxu1 %v5470_v17  ;;  %v5557_v16 = vld [vmem:[%s5997_s14 + $0x964] ss:$16 sps:$4 sm:$0xff]   ;;  %v5560_v17 = vld [vmem:[%s5997_s14 + $0x96c] ss:$16 sps:$4 sm:$0xff]  }
 0x11e   : > { %3628 = vmatpush1.bf16.msra.mxu0 %v5465_v18  ;;  %3972 = vmatpush1.bf16.msra.mxu1 %v5468_v19  ;;  %v5555_v18 = vld [vmem:[%s5997_s14 + $0x960] ss:$16 sps:$4 sm:$0xff]   ;;  %v5558_v19 = vld [vmem:[%s5997_s14 + $0x968] ss:$16 sps:$4 sm:$0xff]  }
 0x11f   : > { %3629 = vmatprep.subr.bf16.mxu0 %v5473_v20  ;;  %3973 = vmatprep.subr.bf16.mxu1 %v5476_v21  ;;  %v5563_v20 = vld [vmem:[%s5997_s14 + $0x984] ss:$16 sps:$4 sm:$0xff]   ;;  %v5566_v21 = vld [vmem:[%s5997_s14 + $0x98c] ss:$16 sps:$4 sm:$0xff]  }
 0x122   : > { %3630 = vmatpush1.bf16.msra.mxu0 %v5471_v22  ;;  %3974 = vmatpush1.bf16.msra.mxu1 %v5474_v23  ;;  %v5561_v22 = vld [vmem:[%s5997_s14 + $0x980] ss:$16 sps:$4 sm:$0xff]   ;;  %v5564_v23 = vld [vmem:[%s5997_s14 + $0x988] ss:$16 sps:$4 sm:$0xff]  }
 0x123   : > { %3631 = vmatprep.subr.bf16.mxu0 %v5479_v24  ;;  %3975 = vmatprep.subr.bf16.mxu1 %v5482_v25  ;;  %v5569_v24 = vld [vmem:[%s5997_s14 + $0x9a4] ss:$16 sps:$4 sm:$0xff]   ;;  %v5572_v25 = vld [vmem:[%s5997_s14 + $0x9ac] ss:$16 sps:$4 sm:$0xff]  }
 0x126   : > { %3632 = vmatpush1.bf16.msra.mxu0 %v5477_v26  ;;  %3976 = vmatpush1.bf16.msra.mxu1 %v5480_v27  ;;  %v5567_v26 = vld [vmem:[%s5997_s14 + $0x9a0] ss:$16 sps:$4 sm:$0xff]   ;;  %v5570_v27 = vld [vmem:[%s5997_s14 + $0x9a8] ss:$16 sps:$4 sm:$0xff]  }
 0x127   : > { %3633 = vmatprep.subr.bf16.mxu0 %v5485_v28  ;;  %3977 = vmatprep.subr.bf16.mxu1 %v5488_v29  ;;  %v5575_v28 = vld [vmem:[%s5997_s14 + $0x9c4] ss:$16 sps:$4 sm:$0xff]   ;;  %v5578_v29 = vld [vmem:[%s5997_s14 + $0x9cc] ss:$16 sps:$4 sm:$0xff]  }
 0x12a   : > { %3634 = vmatpush1.bf16.msra.mxu0 %v5483_v30  ;;  %3978 = vmatpush1.bf16.msra.mxu1 %v5486_v33  ;;  %v5573_v30 = vld [vmem:[%s5997_s14 + $0x9c0] ss:$16 sps:$4 sm:$0xff]   ;;  %v5576_v33 = vld [vmem:[%s5997_s14 + $0x9c8] ss:$16 sps:$4 sm:$0xff]  }
 0x12b   : > { %3646 = vmatprep.subr.bf16.mxu0 %v5491_v34  ;;  %3990 = vmatprep.subr.bf16.mxu1 %v5494_v37  ;;  %v5581_v34 = vld [vmem:[%s5997_s14 + $0x9e4] ss:$16 sps:$4 sm:$0xff]   ;;  %v5584_v37 = vld [vmem:[%s5997_s14 + $0x9ec] ss:$16 sps:$4 sm:$0xff]  }
 0x12d   : > { %3636 = vmatmul.mubr.bf16.vlgmr.msra.gmra.mrb[0].mxu0 %v4497_v39  ;;  %3980 = vmatmul.mubr.bf16.vlgmr.msra.gmra.mrb[0].mxu1 %v4497_v39  ;;  %v5579_v39 = vld [vmem:[%s5997_s14 + $0x9e0] ss:$16 sps:$4 sm:$0xff]  }
 0x12e   : > { %3647 = vmatpush1.bf16.msra.mxu0 %v5489_v32  ;;  %3991 = vmatpush1.bf16.msra.mxu1 %v5492_v40  ;;  %v5582_v32 = vld [vmem:[%s5997_s14 + $0x9e8] ss:$16 sps:$4 sm:$0xff]   ;;  %v5587_v40 = vld [vmem:[%s5997_s14 + $0xa04] ss:$16 sps:$4 sm:$0xff]  }
 0x12f   : > { %3648 = vmatprep.subr.bf16.mxu0 %v5497_v41  ;;  %3992 = vmatprep.subr.bf16.mxu1 %v5500_v42  ;;  %v5590_v41 = vld [vmem:[%s5997_s14 + $0xa0c] ss:$16 sps:$4 sm:$0xff]  }
 0x130   : > { %3678 = vmatprep.mubr.bf16.mxu0 %v4500_v43  ;;  %4022 = vmatprep.mubr.bf16.mxu1 %v4500_v43  ;;  %v6365_v42 = vld [vmem:[%s5999_s15 + $0x28] sm:$0xff] }
 0x131   : > { %v6368_v43 = vld [vmem:[%s5999_s15 + $0x68] sm:$0xff] }
 0x132   : > { %3649 = vmatpush1.bf16.msra.mxu0 %v5495_v35  ;;  %3993 = vmatpush1.bf16.msra.mxu1 %v5498_v36  ;;  %v4499_v35 = vcombine.low %v6291_v38, %v6296_v31  ;;  %v5585_v36 = vld [vmem:[%s5997_s14 + $0xa00] ss:$16 sps:$4 sm:$0xff]   ;;  %v5594_v31 = vld [vmem:[%s5997_s14 + $0xa28] ss:$16 sps:$4 sm:$0xff]  }
 0x133   : > { %3650 = vmatprep.subr.bf16.mxu0 %v5503_v44  ;;  %3994 = vmatprep.subr.bf16.mxu1 %v5506_v45  ;;  %v5588_v44 = vld [vmem:[%s5997_s14 + $0xa08] ss:$16 sps:$4 sm:$0xff]   ;;  %v5593_v45 = vld [vmem:[%s5997_s14 + $0xa24] ss:$16 sps:$4 sm:$0xff]   ;;  %v5591_v38 = vld [vmem:[%s5997_s14 + $0xa20] ss:$16 sps:$4 sm:$0xff]  }
 0x136   : > { %3651 = vmatpush1.bf16.msra.mxu0 %v5501_v46  ;;  %3995 = vmatpush1.bf16.msra.mxu1 %v5504_v47  ;;  %v5596_v46 = vld [vmem:[%s5997_s14 + $0xa2c] ss:$16 sps:$4 sm:$0xff]   ;;  %v4502_v47 = vcombine.high %v6365_v42, %v6368_v43 }
 0x137   : > { %3652 = vmatprep.subr.bf16.mxu0 %v5509_v48  ;;  %3996 = vmatprep.subr.bf16.mxu1 %v5512_v49  ;;  %v5599_v48 = vld [vmem:[%s5997_s14 + $0xa44] ss:$16 sps:$4 sm:$0xff]   ;;  %v5602_v49 = vld [vmem:[%s5997_s14 + $0xa4c] ss:$16 sps:$4 sm:$0xff]  }
 0x13a   : > { %3653 = vmatpush1.bf16.msra.mxu0 %v5507_v50  ;;  %3997 = vmatpush1.bf16.msra.mxu1 %v5510_v51  ;;  %v5597_v50 = vld [vmem:[%s5997_s14 + $0xa40] ss:$16 sps:$4 sm:$0xff]   ;;  %v5600_v51 = vld [vmem:[%s5997_s14 + $0xa48] ss:$16 sps:$4 sm:$0xff]  }
 0x13b   : > { %3654 = vmatprep.subr.bf16.mxu0 %v5515_v52  ;;  %3998 = vmatprep.subr.bf16.mxu1 %v5518_v53  ;;  %v5605_v52 = vld [vmem:[%s5997_s14 + $0xa64] ss:$16 sps:$4 sm:$0xff]   ;;  %v5608_v53 = vld [vmem:[%s5997_s14 + $0xa6c] ss:$16 sps:$4 sm:$0xff]  }
 0x13e   : > { %3655 = vmatpush1.bf16.msra.mxu0 %v5513_v54  ;;  %3999 = vmatpush1.bf16.msra.mxu1 %v5516_v55  ;;  %v5603_v54 = vld [vmem:[%s5997_s14 + $0xa60] ss:$16 sps:$4 sm:$0xff]   ;;  %v5606_v55 = vld [vmem:[%s5997_s14 + $0xa68] ss:$16 sps:$4 sm:$0xff]  }
 0x13f   : > { %3656 = vmatprep.subr.bf16.mxu0 %v5521_v56  ;;  %4000 = vmatprep.subr.bf16.mxu1 %v5524_v57  ;;  %v5611_v56 = vld [vmem:[%s5997_s14 + $0xa84] ss:$16 sps:$4 sm:$0xff]   ;;  %v5614_v57 = vld [vmem:[%s5997_s14 + $0xa8c] ss:$16 sps:$4 sm:$0xff]  }
 0x142   : > { %3657 = vmatpush1.bf16.msra.mxu0 %v5519_v58  ;;  %4001 = vmatpush1.bf16.msra.mxu1 %v5522_v59  ;;  %v5609_v58 = vld [vmem:[%s5997_s14 + $0xa80] ss:$16 sps:$4 sm:$0xff]   ;;  %v5612_v59 = vld [vmem:[%s5997_s14 + $0xa88] ss:$16 sps:$4 sm:$0xff]  }
 0x143   : > { %3658 = vmatprep.subr.bf16.mxu0 %v5527_v60  ;;  %4002 = vmatprep.subr.bf16.mxu1 %v5530_v61  ;;  %v5617_v60 = vld [vmem:[%s5997_s14 + $0xaa4] ss:$16 sps:$4 sm:$0xff]   ;;  %v5620_v61 = vld [vmem:[%s5997_s14 + $0xaac] ss:$16 sps:$4 sm:$0xff]  }
 0x146   : > { %3659 = vmatpush1.bf16.msra.mxu0 %v5525_v62  ;;  %4003 = vmatpush1.bf16.msra.mxu1 %v5528_v63  ;;  %v5615_v62 = vld [vmem:[%s5997_s14 + $0xaa0] ss:$16 sps:$4 sm:$0xff]   ;;  %v5618_v63 = vld [vmem:[%s5997_s14 + $0xaa8] ss:$16 sps:$4 sm:$0xff]  }
 0x147   : > { %3660 = vmatprep.subr.bf16.mxu0 %v5533_v0  ;;  %4004 = vmatprep.subr.bf16.mxu1 %v5536_v1  ;;  %v5623_v0 = vld [vmem:[%s5997_s14 + $0xac4] ss:$16 sps:$4 sm:$0xff]   ;;  %v5626_v1 = vld [vmem:[%s5997_s14 + $0xacc] ss:$16 sps:$4 sm:$0xff]  }
 0x14a   : > { %3661 = vmatpush1.bf16.msra.mxu0 %v5531_v2  ;;  %4005 = vmatpush1.bf16.msra.mxu1 %v5534_v3  ;;  %v5621_v2 = vld [vmem:[%s5997_s14 + $0xac0] ss:$16 sps:$4 sm:$0xff]   ;;  %v5624_v3 = vld [vmem:[%s5997_s14 + $0xac8] ss:$16 sps:$4 sm:$0xff]  }
 0x14b   : > { %3662 = vmatprep.subr.bf16.mxu0 %v5539_v4  ;;  %4006 = vmatprep.subr.bf16.mxu1 %v5542_v5  ;;  %v5629_v4 = vld [vmem:[%s5997_s14 + $0xae4] ss:$16 sps:$4 sm:$0xff]   ;;  %v5632_v5 = vld [vmem:[%s5997_s14 + $0xaec] ss:$16 sps:$4 sm:$0xff]  }
 0x14e   : > { %3663 = vmatpush1.bf16.msra.mxu0 %v5537_v6  ;;  %4007 = vmatpush1.bf16.msra.mxu1 %v5540_v7  ;;  %v5627_v6 = vld [vmem:[%s5997_s14 + $0xae0] ss:$16 sps:$4 sm:$0xff]   ;;  %v5630_v7 = vld [vmem:[%s5997_s14 + $0xae8] ss:$16 sps:$4 sm:$0xff]  }
 0x14f   : > { %3664 = vmatprep.subr.bf16.mxu0 %v5545_v8  ;;  %4008 = vmatprep.subr.bf16.mxu1 %v5548_v9  ;;  %v5635_v8 = vld [vmem:[%s5997_s14 + $0xb04] ss:$16 sps:$4 sm:$0xff]   ;;  %v5638_v9 = vld [vmem:[%s5997_s14 + $0xb0c] ss:$16 sps:$4 sm:$0xff]  }
 0x152   : > { %3665 = vmatpush1.bf16.msra.mxu0 %v5543_v10  ;;  %4009 = vmatpush1.bf16.msra.mxu1 %v5546_v11  ;;  %v5633_v10 = vld [vmem:[%s5997_s14 + $0xb00] ss:$16 sps:$4 sm:$0xff]   ;;  %v5636_v11 = vld [vmem:[%s5997_s14 + $0xb08] ss:$16 sps:$4 sm:$0xff]  }
 0x153   : > { %3666 = vmatprep.subr.bf16.mxu0 %v5551_v12  ;;  %4010 = vmatprep.subr.bf16.mxu1 %v5554_v13  ;;  %v5641_v12 = vld [vmem:[%s5997_s14 + $0xb24] ss:$16 sps:$4 sm:$0xff]   ;;  %v5644_v13 = vld [vmem:[%s5997_s14 + $0xb2c] ss:$16 sps:$4 sm:$0xff]  }
 0x156   : > { %3667 = vmatpush1.bf16.msra.mxu0 %v5549_v14  ;;  %4011 = vmatpush1.bf16.msra.mxu1 %v5552_v15  ;;  %v5639_v14 = vld [vmem:[%s5997_s14 + $0xb20] ss:$16 sps:$4 sm:$0xff]   ;;  %v5642_v15 = vld [vmem:[%s5997_s14 + $0xb28] ss:$16 sps:$4 sm:$0xff]  }
 0x157   : > { %3668 = vmatprep.subr.bf16.mxu0 %v5557_v16  ;;  %4012 = vmatprep.subr.bf16.mxu1 %v5560_v17  ;;  %v5647_v16 = vld [vmem:[%s5997_s14 + $0xb44] ss:$16 sps:$4 sm:$0xff]   ;;  %v5650_v17 = vld [vmem:[%s5997_s14 + $0xb4c] ss:$16 sps:$4 sm:$0xff]  }
 0x15a   : > { %3669 = vmatpush1.bf16.msra.mxu0 %v5555_v18  ;;  %4013 = vmatpush1.bf16.msra.mxu1 %v5558_v19  ;;  %v5645_v18 = vld [vmem:[%s5997_s14 + $0xb40] ss:$16 sps:$4 sm:$0xff]   ;;  %v5648_v19 = vld [vmem:[%s5997_s14 + $0xb48] ss:$16 sps:$4 sm:$0xff]  }
 0x15b   : > { %3670 = vmatprep.subr.bf16.mxu0 %v5563_v20  ;;  %4014 = vmatprep.subr.bf16.mxu1 %v5566_v21  ;;  %v5653_v20 = vld [vmem:[%s5997_s14 + $0xb64] ss:$16 sps:$4 sm:$0xff]   ;;  %v5656_v21 = vld [vmem:[%s5997_s14 + $0xb6c] ss:$16 sps:$4 sm:$0xff]  }
 0x15e   : > { %3671 = vmatpush1.bf16.msra.mxu0 %v5561_v22  ;;  %4015 = vmatpush1.bf16.msra.mxu1 %v5564_v23  ;;  %v5651_v22 = vld [vmem:[%s5997_s14 + $0xb60] ss:$16 sps:$4 sm:$0xff]   ;;  %v5654_v23 = vld [vmem:[%s5997_s14 + $0xb68] ss:$16 sps:$4 sm:$0xff]  }
 0x15f   : > { %3672 = vmatprep.subr.bf16.mxu0 %v5569_v24  ;;  %4016 = vmatprep.subr.bf16.mxu1 %v5572_v25  ;;  %v5659_v24 = vld [vmem:[%s5997_s14 + $0xb84] ss:$16 sps:$4 sm:$0xff]   ;;  %v5662_v25 = vld [vmem:[%s5997_s14 + $0xb8c] ss:$16 sps:$4 sm:$0xff]  }
 0x162   : > { %3673 = vmatpush1.bf16.msra.mxu0 %v5567_v26  ;;  %4017 = vmatpush1.bf16.msra.mxu1 %v5570_v27  ;;  %v5657_v26 = vld [vmem:[%s5997_s14 + $0xb80] ss:$16 sps:$4 sm:$0xff]   ;;  %v5660_v27 = vld [vmem:[%s5997_s14 + $0xb88] ss:$16 sps:$4 sm:$0xff]  }
 0x163   : > { %3674 = vmatprep.subr.bf16.mxu0 %v5575_v28  ;;  %4018 = vmatprep.subr.bf16.mxu1 %v5578_v29  ;;  %v5665_v28 = vld [vmem:[%s5997_s14 + $0xba4] ss:$16 sps:$4 sm:$0xff]   ;;  %v5668_v29 = vld [vmem:[%s5997_s14 + $0xbac] ss:$16 sps:$4 sm:$0xff]  }
 0x166   : > { %3675 = vmatpush1.bf16.msra.mxu0 %v5573_v30  ;;  %4019 = vmatpush1.bf16.msra.mxu1 %v5576_v33  ;;  %v5663_v30 = vld [vmem:[%s5997_s14 + $0xba0] ss:$16 sps:$4 sm:$0xff]   ;;  %v5666_v33 = vld [vmem:[%s5997_s14 + $0xba8] ss:$16 sps:$4 sm:$0xff]  }
 0x167   : > { %3676 = vmatprep.subr.bf16.mxu0 %v5581_v34  ;;  %4020 = vmatprep.subr.bf16.mxu1 %v5584_v37  ;;  %v5671_v34 = vld [vmem:[%s5997_s14 + $0xbc4] ss:$16 sps:$4 sm:$0xff]   ;;  %v5674_v37 = vld [vmem:[%s5997_s14 + $0xbcc] ss:$16 sps:$4 sm:$0xff]  }
 0x16a   : > { %3677 = vmatpush1.bf16.msra.mxu0 %v5579_v39  ;;  %4021 = vmatpush1.bf16.msra.mxu1 %v5582_v32  ;;  %v5669_v39 = vld [vmem:[%s5997_s14 + $0xbc0] ss:$16 sps:$4 sm:$0xff]   ;;  %v5672_v32 = vld [vmem:[%s5997_s14 + $0xbc8] ss:$16 sps:$4 sm:$0xff]  }
 0x16b   : > { %3689 = vmatprep.subr.bf16.mxu0 %v5587_v40  ;;  %4033 = vmatprep.subr.bf16.mxu1 %v5590_v41  ;;  %v5677_v40 = vld [vmem:[%s5997_s14 + $0xbe4] ss:$16 sps:$4 sm:$0xff]   ;;  %v5680_v41 = vld [vmem:[%s5997_s14 + $0xbec] ss:$16 sps:$4 sm:$0xff]  }
 0x16d   : > { %3679 = vmatmul.mubr.bf16.vlgmr.msra.gmra.mrb[0].mxu0 %v4499_v35  ;;  %4023 = vmatmul.mubr.bf16.vlgmr.msra.gmra.mrb[0].mxu1 %v4499_v35  ;;  %v5675_v35 = vld [vmem:[%s5997_s14 + $0xbe0] ss:$16 sps:$4 sm:$0xff]  }
 0x16e   : > { %3690 = vmatpush1.bf16.msra.mxu0 %v5585_v36  ;;  %4034 = vmatpush1.bf16.msra.mxu1 %v5588_v44  ;;  %v5678_v36 = vld [vmem:[%s5997_s14 + $0xbe8] ss:$16 sps:$4 sm:$0xff]   ;;  %v5683_v44 = vld [vmem:[%s5997_s14 + $0xc04] ss:$16 sps:$4 sm:$0xff]  }
 0x16f   : > { %3691 = vmatprep.subr.bf16.mxu0 %v5593_v45  ;;  %4035 = vmatprep.subr.bf16.mxu1 %v5596_v46  ;;  %v5686_v45 = vld [vmem:[%s5997_s14 + $0xc0c] ss:$16 sps:$4 sm:$0xff]   ;;  %v4501_v46 = vcombine.low %v6365_v42, %v6368_v43  ;;  %v5687_v43 = vld [vmem:[%s5997_s14 + $0xc20] ss:$16 sps:$4 sm:$0xff]  }
 0x170   : > { %3721 = vmatprep.mubr.bf16.mxu0 %v4502_v47  ;;  %4065 = vmatprep.mubr.bf16.mxu1 %v4502_v47  ;;  %v6441_v47 = vld [vmem:[%s5999_s15 + $0x30] sm:$0xff] }
 0x172   : > { %3692 = vmatpush1.bf16.msra.mxu0 %v5591_v38  ;;  %4036 = vmatpush1.bf16.msra.mxu1 %v5594_v31  ;;  %v6444_v38 = vld [vmem:[%s5999_s15 + $0x70] sm:$0xff] }
 0x173   : > { %3693 = vmatprep.subr.bf16.mxu0 %v5599_v48  ;;  %4037 = vmatprep.subr.bf16.mxu1 %v5602_v49  ;;  %v5681_v31 = vld [vmem:[%s5997_s14 + $0xc00] ss:$16 sps:$4 sm:$0xff]   ;;  %v5684_v48 = vld [vmem:[%s5997_s14 + $0xc08] ss:$16 sps:$4 sm:$0xff]   ;;  %v5689_v49 = vld [vmem:[%s5997_s14 + $0xc24] ss:$16 sps:$4 sm:$0xff]   ;;  %v4504_v42 = vcombine.high %v6441_v47, %v6444_v38 }
 0x176   : > { %3694 = vmatpush1.bf16.msra.mxu0 %v5597_v50  ;;  %4038 = vmatpush1.bf16.msra.mxu1 %v5600_v51  ;;  %v5692_v50 = vld [vmem:[%s5997_s14 + $0xc2c] ss:$16 sps:$4 sm:$0xff]   ;;  %v5690_v51 = vld [vmem:[%s5997_s14 + $0xc28] ss:$16 sps:$4 sm:$0xff]  }
 0x177   : > { %3695 = vmatprep.subr.bf16.mxu0 %v5605_v52  ;;  %4039 = vmatprep.subr.bf16.mxu1 %v5608_v53  ;;  %v5695_v52 = vld [vmem:[%s5997_s14 + $0xc44] ss:$16 sps:$4 sm:$0xff]   ;;  %v5698_v53 = vld [vmem:[%s5997_s14 + $0xc4c] ss:$16 sps:$4 sm:$0xff]  }
 0x17a   : > { %3696 = vmatpush1.bf16.msra.mxu0 %v5603_v54  ;;  %4040 = vmatpush1.bf16.msra.mxu1 %v5606_v55  ;;  %v5693_v54 = vld [vmem:[%s5997_s14 + $0xc40] ss:$16 sps:$4 sm:$0xff]   ;;  %v5696_v55 = vld [vmem:[%s5997_s14 + $0xc48] ss:$16 sps:$4 sm:$0xff]  }
 0x17b   : > { %3697 = vmatprep.subr.bf16.mxu0 %v5611_v56  ;;  %4041 = vmatprep.subr.bf16.mxu1 %v5614_v57  ;;  %v5701_v56 = vld [vmem:[%s5997_s14 + $0xc64] ss:$16 sps:$4 sm:$0xff]   ;;  %v5704_v57 = vld [vmem:[%s5997_s14 + $0xc6c] ss:$16 sps:$4 sm:$0xff]  }
 0x17e   : > { %3698 = vmatpush1.bf16.msra.mxu0 %v5609_v58  ;;  %4042 = vmatpush1.bf16.msra.mxu1 %v5612_v59  ;;  %v5699_v58 = vld [vmem:[%s5997_s14 + $0xc60] ss:$16 sps:$4 sm:$0xff]   ;;  %v5702_v59 = vld [vmem:[%s5997_s14 + $0xc68] ss:$16 sps:$4 sm:$0xff]  }
 0x17f   : > { %3699 = vmatprep.subr.bf16.mxu0 %v5617_v60  ;;  %4043 = vmatprep.subr.bf16.mxu1 %v5620_v61  ;;  %v5707_v60 = vld [vmem:[%s5997_s14 + $0xc84] ss:$16 sps:$4 sm:$0xff]   ;;  %v5710_v61 = vld [vmem:[%s5997_s14 + $0xc8c] ss:$16 sps:$4 sm:$0xff]  }
 0x182   : > { %3700 = vmatpush1.bf16.msra.mxu0 %v5615_v62  ;;  %4044 = vmatpush1.bf16.msra.mxu1 %v5618_v63  ;;  %v5705_v62 = vld [vmem:[%s5997_s14 + $0xc80] ss:$16 sps:$4 sm:$0xff]   ;;  %v5708_v63 = vld [vmem:[%s5997_s14 + $0xc88] ss:$16 sps:$4 sm:$0xff]  }
 0x183   : > { %3701 = vmatprep.subr.bf16.mxu0 %v5623_v0  ;;  %4045 = vmatprep.subr.bf16.mxu1 %v5626_v1  ;;  %v5713_v0 = vld [vmem:[%s5997_s14 + $0xca4] ss:$16 sps:$4 sm:$0xff]   ;;  %v5716_v1 = vld [vmem:[%s5997_s14 + $0xcac] ss:$16 sps:$4 sm:$0xff]  }
 0x186   : > { %3702 = vmatpush1.bf16.msra.mxu0 %v5621_v2  ;;  %4046 = vmatpush1.bf16.msra.mxu1 %v5624_v3  ;;  %v5711_v2 = vld [vmem:[%s5997_s14 + $0xca0] ss:$16 sps:$4 sm:$0xff]   ;;  %v5714_v3 = vld [vmem:[%s5997_s14 + $0xca8] ss:$16 sps:$4 sm:$0xff]  }
 0x187   : > { %3703 = vmatprep.subr.bf16.mxu0 %v5629_v4  ;;  %4047 = vmatprep.subr.bf16.mxu1 %v5632_v5  ;;  %v5719_v4 = vld [vmem:[%s5997_s14 + $0xcc4] ss:$16 sps:$4 sm:$0xff]   ;;  %v5722_v5 = vld [vmem:[%s5997_s14 + $0xccc] ss:$16 sps:$4 sm:$0xff]  }
 0x18a   : > { %3704 = vmatpush1.bf16.msra.mxu0 %v5627_v6  ;;  %4048 = vmatpush1.bf16.msra.mxu1 %v5630_v7  ;;  %v5717_v6 = vld [vmem:[%s5997_s14 + $0xcc0] ss:$16 sps:$4 sm:$0xff]   ;;  %v5720_v7 = vld [vmem:[%s5997_s14 + $0xcc8] ss:$16 sps:$4 sm:$0xff]  }
 0x18b   : > { %3705 = vmatprep.subr.bf16.mxu0 %v5635_v8  ;;  %4049 = vmatprep.subr.bf16.mxu1 %v5638_v9  ;;  %v5725_v8 = vld [vmem:[%s5997_s14 + $0xce4] ss:$16 sps:$4 sm:$0xff]   ;;  %v5728_v9 = vld [vmem:[%s5997_s14 + $0xcec] ss:$16 sps:$4 sm:$0xff]  }
 0x18e   : > { %3706 = vmatpush1.bf16.msra.mxu0 %v5633_v10  ;;  %4050 = vmatpush1.bf16.msra.mxu1 %v5636_v11  ;;  %v5723_v10 = vld [vmem:[%s5997_s14 + $0xce0] ss:$16 sps:$4 sm:$0xff]   ;;  %v5726_v11 = vld [vmem:[%s5997_s14 + $0xce8] ss:$16 sps:$4 sm:$0xff]  }
 0x18f   : > { %3707 = vmatprep.subr.bf16.mxu0 %v5641_v12  ;;  %4051 = vmatprep.subr.bf16.mxu1 %v5644_v13  ;;  %v5731_v12 = vld [vmem:[%s5997_s14 + $0xd04] ss:$16 sps:$4 sm:$0xff]   ;;  %v5734_v13 = vld [vmem:[%s5997_s14 + $0xd0c] ss:$16 sps:$4 sm:$0xff]  }
 0x192   : > { %3708 = vmatpush1.bf16.msra.mxu0 %v5639_v14  ;;  %4052 = vmatpush1.bf16.msra.mxu1 %v5642_v15  ;;  %v5729_v14 = vld [vmem:[%s5997_s14 + $0xd00] ss:$16 sps:$4 sm:$0xff]   ;;  %v5732_v15 = vld [vmem:[%s5997_s14 + $0xd08] ss:$16 sps:$4 sm:$0xff]  }
 0x193   : > { %3709 = vmatprep.subr.bf16.mxu0 %v5647_v16  ;;  %4053 = vmatprep.subr.bf16.mxu1 %v5650_v17  ;;  %v5737_v16 = vld [vmem:[%s5997_s14 + $0xd24] ss:$16 sps:$4 sm:$0xff]   ;;  %v5740_v17 = vld [vmem:[%s5997_s14 + $0xd2c] ss:$16 sps:$4 sm:$0xff]  }
 0x196   : > { %3710 = vmatpush1.bf16.msra.mxu0 %v5645_v18  ;;  %4054 = vmatpush1.bf16.msra.mxu1 %v5648_v19  ;;  %v5735_v18 = vld [vmem:[%s5997_s14 + $0xd20] ss:$16 sps:$4 sm:$0xff]   ;;  %v5738_v19 = vld [vmem:[%s5997_s14 + $0xd28] ss:$16 sps:$4 sm:$0xff]  }
 0x197   : > { %3711 = vmatprep.subr.bf16.mxu0 %v5653_v20  ;;  %4055 = vmatprep.subr.bf16.mxu1 %v5656_v21  ;;  %v5743_v20 = vld [vmem:[%s5997_s14 + $0xd44] ss:$16 sps:$4 sm:$0xff]   ;;  %v5746_v21 = vld [vmem:[%s5997_s14 + $0xd4c] ss:$16 sps:$4 sm:$0xff]  }
 0x19a   : > { %3712 = vmatpush1.bf16.msra.mxu0 %v5651_v22  ;;  %4056 = vmatpush1.bf16.msra.mxu1 %v5654_v23  ;;  %v5741_v22 = vld [vmem:[%s5997_s14 + $0xd40] ss:$16 sps:$4 sm:$0xff]   ;;  %v5744_v23 = vld [vmem:[%s5997_s14 + $0xd48] ss:$16 sps:$4 sm:$0xff]  }
 0x19b   : > { %3713 = vmatprep.subr.bf16.mxu0 %v5659_v24  ;;  %4057 = vmatprep.subr.bf16.mxu1 %v5662_v25  ;;  %v5749_v24 = vld [vmem:[%s5997_s14 + $0xd64] ss:$16 sps:$4 sm:$0xff]   ;;  %v5752_v25 = vld [vmem:[%s5997_s14 + $0xd6c] ss:$16 sps:$4 sm:$0xff]  }
 0x19e   : > { %3714 = vmatpush1.bf16.msra.mxu0 %v5657_v26  ;;  %4058 = vmatpush1.bf16.msra.mxu1 %v5660_v27  ;;  %v5747_v26 = vld [vmem:[%s5997_s14 + $0xd60] ss:$16 sps:$4 sm:$0xff]   ;;  %v5750_v27 = vld [vmem:[%s5997_s14 + $0xd68] ss:$16 sps:$4 sm:$0xff]  }
 0x19f   : > { %3715 = vmatprep.subr.bf16.mxu0 %v5665_v28  ;;  %4059 = vmatprep.subr.bf16.mxu1 %v5668_v29  ;;  %v5755_v28 = vld [vmem:[%s5997_s14 + $0xd84] ss:$16 sps:$4 sm:$0xff]   ;;  %v5758_v29 = vld [vmem:[%s5997_s14 + $0xd8c] ss:$16 sps:$4 sm:$0xff]  }
 0x1a2   : > { %3716 = vmatpush1.bf16.msra.mxu0 %v5663_v30  ;;  %4060 = vmatpush1.bf16.msra.mxu1 %v5666_v33  ;;  %v5753_v30 = vld [vmem:[%s5997_s14 + $0xd80] ss:$16 sps:$4 sm:$0xff]   ;;  %v5756_v33 = vld [vmem:[%s5997_s14 + $0xd88] ss:$16 sps:$4 sm:$0xff]  }
 0x1a3   : > { %3717 = vmatprep.subr.bf16.mxu0 %v5671_v34  ;;  %4061 = vmatprep.subr.bf16.mxu1 %v5674_v37  ;;  %v5761_v34 = vld [vmem:[%s5997_s14 + $0xda4] ss:$16 sps:$4 sm:$0xff]   ;;  %v5764_v37 = vld [vmem:[%s5997_s14 + $0xdac] ss:$16 sps:$4 sm:$0xff]  }
 0x1a6   : > { %3718 = vmatpush1.bf16.msra.mxu0 %v5669_v39  ;;  %4062 = vmatpush1.bf16.msra.mxu1 %v5672_v32  ;;  %v5759_v39 = vld [vmem:[%s5997_s14 + $0xda0] ss:$16 sps:$4 sm:$0xff]   ;;  %v5762_v32 = vld [vmem:[%s5997_s14 + $0xda8] ss:$16 sps:$4 sm:$0xff]  }
 0x1a7   : > { %3719 = vmatprep.subr.bf16.mxu0 %v5677_v40  ;;  %4063 = vmatprep.subr.bf16.mxu1 %v5680_v41  ;;  %v5767_v40 = vld [vmem:[%s5997_s14 + $0xdc4] ss:$16 sps:$4 sm:$0xff]   ;;  %v5770_v41 = vld [vmem:[%s5997_s14 + $0xdcc] ss:$16 sps:$4 sm:$0xff]  }
 0x1aa   : > { %3720 = vmatpush1.bf16.msra.mxu0 %v5675_v35  ;;  %4064 = vmatpush1.bf16.msra.mxu1 %v5678_v36  ;;  %v5765_v35 = vld [vmem:[%s5997_s14 + $0xdc0] ss:$16 sps:$4 sm:$0xff]   ;;  %v5768_v36 = vld [vmem:[%s5997_s14 + $0xdc8] ss:$16 sps:$4 sm:$0xff]  }
 0x1ab   : > { %3732 = vmatprep.subr.bf16.mxu0 %v5683_v44  ;;  %4076 = vmatprep.subr.bf16.mxu1 %v5686_v45  ;;  %v5773_v44 = vld [vmem:[%s5997_s14 + $0xde4] ss:$16 sps:$4 sm:$0xff]   ;;  %v5776_v45 = vld [vmem:[%s5997_s14 + $0xdec] ss:$16 sps:$4 sm:$0xff]  }
 0x1ad   : > { %3722 = vmatmul.mubr.bf16.vlgmr.msra.gmra.mrb[0].mxu0 %v4501_v46  ;;  %4066 = vmatmul.mubr.bf16.vlgmr.msra.gmra.mrb[0].mxu1 %v4501_v46  ;;  %v5771_v46 = vld [vmem:[%s5997_s14 + $0xde0] ss:$16 sps:$4 sm:$0xff]  }
 0x1ae   : > { %3733 = vmatpush1.bf16.msra.mxu0 %v5681_v31  ;;  %4077 = vmatpush1.bf16.msra.mxu1 %v5684_v48  ;;  %v5774_v31 = vld [vmem:[%s5997_s14 + $0xde8] ss:$16 sps:$4 sm:$0xff]   ;;  %v5779_v48 = vld [vmem:[%s5997_s14 + $0xe04] ss:$16 sps:$4 sm:$0xff]  }
 0x1af   : > { %3734 = vmatprep.subr.bf16.mxu0 %v5689_v49  ;;  %4078 = vmatprep.subr.bf16.mxu1 %v5692_v50  ;;  %v5782_v49 = vld [vmem:[%s5997_s14 + $0xe0c] ss:$16 sps:$4 sm:$0xff]   ;;  %v4503_v50 = vcombine.low %v6441_v47, %v6444_v38  ;;  %v5783_v38 = vld [vmem:[%s5997_s14 + $0xe20] ss:$16 sps:$4 sm:$0xff]  }
 0x1b0   : > { %3764 = vmatprep.mubr.bf16.mxu0 %v4504_v42  ;;  %4108 = vmatprep.mubr.bf16.mxu1 %v4504_v42  ;;  %v6515_v42 = vld [vmem:[%s5999_s15 + $0x38] sm:$0xff] }
 0x1b2   : > { %3735 = vmatpush1.bf16.msra.mxu0 %v5687_v43  ;;  %4079 = vmatpush1.bf16.msra.mxu1 %v5690_v51  ;;  %v6518_v43 = vld [vmem:[%s5999_s15 + $0x78] sm:$0xff]  ;;  %v5777_v51 = vld [vmem:[%s5997_s14 + $0xe00] ss:$16 sps:$4 sm:$0xff]  }
 0x1b3   : > { %3736 = vmatprep.subr.bf16.mxu0 %v5695_v52  ;;  %4080 = vmatprep.subr.bf16.mxu1 %v5698_v53  ;;  %v5780_v52 = vld [vmem:[%s5997_s14 + $0xe08] ss:$16 sps:$4 sm:$0xff]   ;;  %v5785_v53 = vld [vmem:[%s5997_s14 + $0xe24] ss:$16 sps:$4 sm:$0xff]   ;;  %v4506_v47 = vcombine.high %v6515_v42, %v6518_v43 }
 0x1b6   : > { %3737 = vmatpush1.bf16.msra.mxu0 %v5693_v54  ;;  %4081 = vmatpush1.bf16.msra.mxu1 %v5696_v55  ;;  %v5788_v54 = vld [vmem:[%s5997_s14 + $0xe2c] ss:$16 sps:$4 sm:$0xff]   ;;  %v5786_v55 = vld [vmem:[%s5997_s14 + $0xe28] ss:$16 sps:$4 sm:$0xff]  }
 0x1b7   : > { %3738 = vmatprep.subr.bf16.mxu0 %v5701_v56  ;;  %4082 = vmatprep.subr.bf16.mxu1 %v5704_v57  ;;  %v5791_v56 = vld [vmem:[%s5997_s14 + $0xe44] ss:$16 sps:$4 sm:$0xff]   ;;  %v5794_v57 = vld [vmem:[%s5997_s14 + $0xe4c] ss:$16 sps:$4 sm:$0xff]  }
 0x1ba   : > { %3739 = vmatpush1.bf16.msra.mxu0 %v5699_v58  ;;  %4083 = vmatpush1.bf16.msra.mxu1 %v5702_v59  ;;  %v5789_v58 = vld [vmem:[%s5997_s14 + $0xe40] ss:$16 sps:$4 sm:$0xff]   ;;  %v5792_v59 = vld [vmem:[%s5997_s14 + $0xe48] ss:$16 sps:$4 sm:$0xff]  }
 0x1bb   : > { %3740 = vmatprep.subr.bf16.mxu0 %v5707_v60  ;;  %4084 = vmatprep.subr.bf16.mxu1 %v5710_v61  ;;  %v5797_v60 = vld [vmem:[%s5997_s14 + $0xe64] ss:$16 sps:$4 sm:$0xff]   ;;  %v5800_v61 = vld [vmem:[%s5997_s14 + $0xe6c] ss:$16 sps:$4 sm:$0xff]  }
 0x1be   : > { %3741 = vmatpush1.bf16.msra.mxu0 %v5705_v62  ;;  %4085 = vmatpush1.bf16.msra.mxu1 %v5708_v63  ;;  %v5795_v62 = vld [vmem:[%s5997_s14 + $0xe60] ss:$16 sps:$4 sm:$0xff]   ;;  %v5798_v63 = vld [vmem:[%s5997_s14 + $0xe68] ss:$16 sps:$4 sm:$0xff]  }
 0x1bf   : > { %3742 = vmatprep.subr.bf16.mxu0 %v5713_v0  ;;  %4086 = vmatprep.subr.bf16.mxu1 %v5716_v1  ;;  %v5803_v0 = vld [vmem:[%s5997_s14 + $0xe84] ss:$16 sps:$4 sm:$0xff]   ;;  %v5806_v1 = vld [vmem:[%s5997_s14 + $0xe8c] ss:$16 sps:$4 sm:$0xff]  }
 0x1c2   : > { %3743 = vmatpush1.bf16.msra.mxu0 %v5711_v2  ;;  %4087 = vmatpush1.bf16.msra.mxu1 %v5714_v3  ;;  %v5801_v2 = vld [vmem:[%s5997_s14 + $0xe80] ss:$16 sps:$4 sm:$0xff]   ;;  %v5804_v3 = vld [vmem:[%s5997_s14 + $0xe88] ss:$16 sps:$4 sm:$0xff]  }
 0x1c3   : > { %3744 = vmatprep.subr.bf16.mxu0 %v5719_v4  ;;  %4088 = vmatprep.subr.bf16.mxu1 %v5722_v5  ;;  %v5809_v4 = vld [vmem:[%s5997_s14 + $0xea4] ss:$16 sps:$4 sm:$0xff]   ;;  %v5812_v5 = vld [vmem:[%s5997_s14 + $0xeac] ss:$16 sps:$4 sm:$0xff]  }
 0x1c6   : > { %3745 = vmatpush1.bf16.msra.mxu0 %v5717_v6  ;;  %4089 = vmatpush1.bf16.msra.mxu1 %v5720_v7  ;;  %v5807_v6 = vld [vmem:[%s5997_s14 + $0xea0] ss:$16 sps:$4 sm:$0xff]   ;;  %v5810_v7 = vld [vmem:[%s5997_s14 + $0xea8] ss:$16 sps:$4 sm:$0xff]  }
 0x1c7   : > { %3746 = vmatprep.subr.bf16.mxu0 %v5725_v8  ;;  %4090 = vmatprep.subr.bf16.mxu1 %v5728_v9  ;;  %v5815_v8 = vld [vmem:[%s5997_s14 + $0xec4] ss:$16 sps:$4 sm:$0xff]   ;;  %v5818_v9 = vld [vmem:[%s5997_s14 + $0xecc] ss:$16 sps:$4 sm:$0xff]  }
 0x1ca   : > { %3747 = vmatpush1.bf16.msra.mxu0 %v5723_v10  ;;  %4091 = vmatpush1.bf16.msra.mxu1 %v5726_v11  ;;  %v5813_v10 = vld [vmem:[%s5997_s14 + $0xec0] ss:$16 sps:$4 sm:$0xff]   ;;  %v5816_v11 = vld [vmem:[%s5997_s14 + $0xec8] ss:$16 sps:$4 sm:$0xff]  }
 0x1cb   : > { %3748 = vmatprep.subr.bf16.mxu0 %v5731_v12  ;;  %4092 = vmatprep.subr.bf16.mxu1 %v5734_v13  ;;  %v5821_v12 = vld [vmem:[%s5997_s14 + $0xee4] ss:$16 sps:$4 sm:$0xff]   ;;  %v5824_v13 = vld [vmem:[%s5997_s14 + $0xeec] ss:$16 sps:$4 sm:$0xff]  }
 0x1ce   : > { %3749 = vmatpush1.bf16.msra.mxu0 %v5729_v14  ;;  %4093 = vmatpush1.bf16.msra.mxu1 %v5732_v15  ;;  %v5819_v14 = vld [vmem:[%s5997_s14 + $0xee0] ss:$16 sps:$4 sm:$0xff]   ;;  %v5822_v15 = vld [vmem:[%s5997_s14 + $0xee8] ss:$16 sps:$4 sm:$0xff]  }
 0x1cf   : > { %3750 = vmatprep.subr.bf16.mxu0 %v5737_v16  ;;  %4094 = vmatprep.subr.bf16.mxu1 %v5740_v17  ;;  %v5827_v16 = vld [vmem:[%s5997_s14 + $0xf04] ss:$16 sps:$4 sm:$0xff]   ;;  %v5830_v17 = vld [vmem:[%s5997_s14 + $0xf0c] ss:$16 sps:$4 sm:$0xff]  }
 0x1d2   : > { %3751 = vmatpush1.bf16.msra.mxu0 %v5735_v18  ;;  %4095 = vmatpush1.bf16.msra.mxu1 %v5738_v19  ;;  %v5825_v18 = vld [vmem:[%s5997_s14 + $0xf00] ss:$16 sps:$4 sm:$0xff]   ;;  %v5828_v19 = vld [vmem:[%s5997_s14 + $0xf08] ss:$16 sps:$4 sm:$0xff]  }
 0x1d3   : > { %3752 = vmatprep.subr.bf16.mxu0 %v5743_v20  ;;  %4096 = vmatprep.subr.bf16.mxu1 %v5746_v21  ;;  %v5833_v20 = vld [vmem:[%s5997_s14 + $0xf24] ss:$16 sps:$4 sm:$0xff]   ;;  %v5836_v21 = vld [vmem:[%s5997_s14 + $0xf2c] ss:$16 sps:$4 sm:$0xff]  }
 0x1d6   : > { %3753 = vmatpush1.bf16.msra.mxu0 %v5741_v22  ;;  %4097 = vmatpush1.bf16.msra.mxu1 %v5744_v23  ;;  %v5831_v22 = vld [vmem:[%s5997_s14 + $0xf20] ss:$16 sps:$4 sm:$0xff]   ;;  %v5834_v23 = vld [vmem:[%s5997_s14 + $0xf28] ss:$16 sps:$4 sm:$0xff]  }
 0x1d7   : > { %3754 = vmatprep.subr.bf16.mxu0 %v5749_v24  ;;  %4098 = vmatprep.subr.bf16.mxu1 %v5752_v25  ;;  %v5839_v24 = vld [vmem:[%s5997_s14 + $0xf44] ss:$16 sps:$4 sm:$0xff]   ;;  %v5842_v25 = vld [vmem:[%s5997_s14 + $0xf4c] ss:$16 sps:$4 sm:$0xff]  }
 0x1da   : > { %3755 = vmatpush1.bf16.msra.mxu0 %v5747_v26  ;;  %4099 = vmatpush1.bf16.msra.mxu1 %v5750_v27  ;;  %v5837_v26 = vld [vmem:[%s5997_s14 + $0xf40] ss:$16 sps:$4 sm:$0xff]   ;;  %v5840_v27 = vld [vmem:[%s5997_s14 + $0xf48] ss:$16 sps:$4 sm:$0xff]  }
 0x1db   : > { %3756 = vmatprep.subr.bf16.mxu0 %v5755_v28  ;;  %4100 = vmatprep.subr.bf16.mxu1 %v5758_v29  ;;  %v5845_v28 = vld [vmem:[%s5997_s14 + $0xf64] ss:$16 sps:$4 sm:$0xff]   ;;  %v5848_v29 = vld [vmem:[%s5997_s14 + $0xf6c] ss:$16 sps:$4 sm:$0xff]  }
 0x1de   : > { %3757 = vmatpush1.bf16.msra.mxu0 %v5753_v30  ;;  %4101 = vmatpush1.bf16.msra.mxu1 %v5756_v33  ;;  %v5843_v30 = vld [vmem:[%s5997_s14 + $0xf60] ss:$16 sps:$4 sm:$0xff]   ;;  %v5846_v33 = vld [vmem:[%s5997_s14 + $0xf68] ss:$16 sps:$4 sm:$0xff]  }
 0x1df   : > { %3758 = vmatprep.subr.bf16.mxu0 %v5761_v34  ;;  %4102 = vmatprep.subr.bf16.mxu1 %v5764_v37  ;;  %v5851_v34 = vld [vmem:[%s5997_s14 + $0xf84] ss:$16 sps:$4 sm:$0xff]   ;;  %v5854_v37 = vld [vmem:[%s5997_s14 + $0xf8c] ss:$16 sps:$4 sm:$0xff]  }
 0x1e2   : > { %3759 = vmatpush1.bf16.msra.mxu0 %v5759_v39  ;;  %4103 = vmatpush1.bf16.msra.mxu1 %v5762_v32  ;;  %v5849_v39 = vld [vmem:[%s5997_s14 + $0xf80] ss:$16 sps:$4 sm:$0xff]   ;;  %v5852_v32 = vld [vmem:[%s5997_s14 + $0xf88] ss:$16 sps:$4 sm:$0xff]  }
 0x1e3   : > { %3760 = vmatprep.subr.bf16.mxu0 %v5767_v40  ;;  %4104 = vmatprep.subr.bf16.mxu1 %v5770_v41  ;;  %v5857_v40 = vld [vmem:[%s5997_s14 + $0xfa4] ss:$16 sps:$4 sm:$0xff]   ;;  %v5860_v41 = vld [vmem:[%s5997_s14 + $0xfac] ss:$16 sps:$4 sm:$0xff]  }
 0x1e6   : > { %3761 = vmatpush1.bf16.msra.mxu0 %v5765_v35  ;;  %4105 = vmatpush1.bf16.msra.mxu1 %v5768_v36  ;;  %v5855_v35 = vld [vmem:[%s5997_s14 + $0xfa0] ss:$16 sps:$4 sm:$0xff]   ;;  %v5858_v36 = vld [vmem:[%s5997_s14 + $0xfa8] ss:$16 sps:$4 sm:$0xff]  }
 0x1e7   : > { %3762 = vmatprep.subr.bf16.mxu0 %v5773_v44  ;;  %4106 = vmatprep.subr.bf16.mxu1 %v5776_v45  ;;  %v5863_v44 = vld [vmem:[%s5997_s14 + $0xfc4] ss:$16 sps:$4 sm:$0xff]   ;;  %v5866_v45 = vld [vmem:[%s5997_s14 + $0xfcc] ss:$16 sps:$4 sm:$0xff]  }
 0x1ea   : > { %3763 = vmatpush1.bf16.msra.mxu0 %v5771_v46  ;;  %4107 = vmatpush1.bf16.msra.mxu1 %v5774_v31  ;;  %v5861_v46 = vld [vmem:[%s5997_s14 + $0xfc0] ss:$16 sps:$4 sm:$0xff]   ;;  %v5864_v31 = vld [vmem:[%s5997_s14 + $0xfc8] ss:$16 sps:$4 sm:$0xff]  }
 0x1eb   : > { %3775 = vmatprep.subr.bf16.mxu0 %v5779_v48  ;;  %4119 = vmatprep.subr.bf16.mxu1 %v5782_v49  ;;  %v5869_v48 = vld [vmem:[%s5997_s14 + $0xfe4] ss:$16 sps:$4 sm:$0xff]   ;;  %v5872_v49 = vld [vmem:[%s5997_s14 + $0xfec] ss:$16 sps:$4 sm:$0xff]  }
 0x1ed   : > { %3765 = vmatmul.mubr.bf16.vlgmr.msra.gmra.mrb[0].mxu0 %v4503_v50  ;;  %4109 = vmatmul.mubr.bf16.vlgmr.msra.gmra.mrb[0].mxu1 %v4503_v50  ;;  %v5867_v50 = vld [vmem:[%s5997_s14 + $0xfe0] ss:$16 sps:$4 sm:$0xff]  }
 0x1ee   : > { %3776 = vmatpush1.bf16.msra.mxu0 %v5777_v51  ;;  %4120 = vmatpush1.bf16.msra.mxu1 %v5780_v52  ;;  %v5870_v51 = vld [vmem:[%s5997_s14 + $0xfe8] ss:$16 sps:$4 sm:$0xff]   ;;  %v4505_v52 = vcombine.low %v6515_v42, %v6518_v43 }
 0x1ef   : > { %3777 = vmatprep.subr.bf16.mxu0 %v5785_v53  ;;  %4121 = vmatprep.subr.bf16.mxu1 %v5788_v54  ;;  %v298_v53 = vld [vmem:[#allocation2] sm:$0xff]  ;;  %v300_v54 = vld [vmem:[#allocation2 + $0x10] sm:$0xff] }
 0x1f0   : > { %3807 = vmatprep.mubr.bf16.mxu0 %v4506_v47  ;;  %4151 = vmatprep.mubr.bf16.mxu1 %v4506_v47  ;;  %v299_v47 = vld [vmem:[#allocation2 + $0x8] sm:$0xff] }
 0x1f2   : > { %3778 = vmatpush1.bf16.msra.mxu0 %v5783_v38  ;;  %4122 = vmatpush1.bf16.msra.mxu1 %v5786_v55  ;;  %v301_v38 = vld [vmem:[#allocation2 + $0x18] sm:$0xff] }
 0x1f3   : > { %3779 = vmatprep.subr.bf16.mxu0 %v5791_v56  ;;  %4123 = vmatprep.subr.bf16.mxu1 %v5794_v57  ;;  %v302_v57 = vld [vmem:[#allocation2 + $0x20] sm:$0xff] }
 0x1f6   : > { %3780 = vmatpush1.bf16.msra.mxu0 %v5789_v58  ;;  %4124 = vmatpush1.bf16.msra.mxu1 %v5792_v59  ;;  %v304_v58 = vld [vmem:[#allocation2 + $0x30] sm:$0xff] }
 0x1f7   : > { %3781 = vmatprep.subr.bf16.mxu0 %v5797_v60  ;;  %4125 = vmatprep.subr.bf16.mxu1 %v5800_v61 }
 0x1fa   : > { %3782 = vmatpush1.bf16.msra.mxu0 %v5795_v62  ;;  %4126 = vmatpush1.bf16.msra.mxu1 %v5798_v63  ;;  %v303_v63 = vld [vmem:[#allocation2 + $0x28] sm:$0xff] }
 0x1fb   : > { %3783 = vmatprep.subr.bf16.mxu0 %v5803_v0  ;;  %4127 = vmatprep.subr.bf16.mxu1 %v5806_v1  ;;  %v305_v0 = vld [vmem:[#allocation2 + $0x38] sm:$0xff] }
 0x1fe   : > { %3784 = vmatpush1.bf16.msra.mxu0 %v5801_v2  ;;  %4128 = vmatpush1.bf16.msra.mxu1 %v5804_v3 }
 0x1ff   : > { %3785 = vmatprep.subr.bf16.mxu0 %v5809_v4  ;;  %4129 = vmatprep.subr.bf16.mxu1 %v5812_v5 }
 0x202   : > { %3786 = vmatpush1.bf16.msra.mxu0 %v5807_v6  ;;  %4130 = vmatpush1.bf16.msra.mxu1 %v5810_v7 }
 0x203   : > { %3787 = vmatprep.subr.bf16.mxu0 %v5815_v8  ;;  %4131 = vmatprep.subr.bf16.mxu1 %v5818_v9  ;;  %v4192_v9 = vlaneseq (!%p5019_p10) }
 0x206   : > { %3788 = vmatpush1.bf16.msra.mxu0 %v5813_v10  ;;  %4132 = vmatpush1.bf16.msra.mxu1 %v5816_v11  ;;  %v4193_v10 = vshrl.u32 (!%p5019_p10), %v4192_v9, 7  ;;  %v4190_v11 = vld [vmem:[%s6688_s2] sm:$0xf] (!%p5019_p10) }
 0x207   : > { %3789 = vmatprep.subr.bf16.mxu0 %v5821_v12  ;;  %4133 = vmatprep.subr.bf16.mxu1 %v5824_v13 }
 0x208   : > { %v6590_v13 = vsub.s32 (!%p5019_p10), 0, %v4193_v10 }
 0x20a   : > { %3790 = vmatpush1.bf16.msra.mxu0 %v5819_v14  ;;  %4134 = vmatpush1.bf16.msra.mxu1 %v5822_v15  ;;  %v6592_v14 = vsub.s32 (!%p5019_p10), 1, %v4193_v10  ;;  %v6594_v15 = vsub.s32 (!%p5019_p10), 2, %v4193_v10 }
 0x20b   : > { %3791 = vmatprep.subr.bf16.mxu0 %v5827_v16  ;;  %4135 = vmatprep.subr.bf16.mxu1 %v5830_v17 }
 0x20e   : > { %3792 = vmatpush1.bf16.msra.mxu0 %v5825_v18  ;;  %4136 = vmatpush1.bf16.msra.mxu1 %v5828_v19  ;;  %v6596_v19 = vsub.s32 (!%p5019_p10), 3, %v4193_v10 }
 0x20f   : > { %3793 = vmatprep.subr.bf16.mxu0 %v5833_v20  ;;  %4137 = vmatprep.subr.bf16.mxu1 %v5836_v21  ;;  %v4195_v20 = vrot.slane (!%p5019_p10), %v4190_v11, %v6590_v13  ;;  %v4199_v21 = vrot.slane (!%p5019_p10), %v4190_v11, %v6592_v14 }
 0x212   : > { %3794 = vmatpush1.bf16.msra.mxu0 %v5831_v22  ;;  %4138 = vmatpush1.bf16.msra.mxu1 %v5834_v23 }
 0x213   : > { %3795 = vmatprep.subr.bf16.mxu0 %v5839_v24  ;;  %4139 = vmatprep.subr.bf16.mxu1 %v5842_v25  ;;  %v4203_v24 = vrot.slane (!%p5019_p10), %v4190_v11, %v6594_v15 }
 0x216   : > { %3796 = vmatpush1.bf16.msra.mxu0 %v5837_v26  ;;  %4140 = vmatpush1.bf16.msra.mxu1 %v5840_v27 }
 0x217   : > { %3797 = vmatprep.subr.bf16.mxu0 %v5845_v28  ;;  %4141 = vmatprep.subr.bf16.mxu1 %v5848_v29 }
 0x21a   : > { %3798 = vmatpush1.bf16.msra.mxu0 %v5843_v30  ;;  %4142 = vmatpush1.bf16.msra.mxu1 %v5846_v33 }
 0x21b   : > { %3799 = vmatprep.subr.bf16.mxu0 %v5851_v34  ;;  %4143 = vmatprep.subr.bf16.mxu1 %v5854_v37  ;;  %v4207_v37 = vrot.slane (!%p5019_p10), %v4190_v11, %v6596_v19 }
 0x21e   : > { %3800 = vmatpush1.bf16.msra.mxu0 %v5849_v39  ;;  %4144 = vmatpush1.bf16.msra.mxu1 %v5852_v32 }
 0x21f   : > { %3801 = vmatprep.subr.bf16.mxu0 %v5857_v40  ;;  %4145 = vmatprep.subr.bf16.mxu1 %v5860_v41 }
 0x222   : > { %3802 = vmatpush1.bf16.msra.mxu0 %v5855_v35  ;;  %4146 = vmatpush1.bf16.msra.mxu1 %v5858_v36 }
 0x223   : > { %3803 = vmatprep.subr.bf16.mxu0 %v5863_v44  ;;  %4147 = vmatprep.subr.bf16.mxu1 %v5866_v45 }
 0x226   : > { %3804 = vmatpush1.bf16.msra.mxu0 %v5861_v46  ;;  %4148 = vmatpush1.bf16.msra.mxu1 %v5864_v31 }
 0x227   : > { %3805 = vmatprep.subr.bf16.mxu0 %v5869_v48  ;;  %4149 = vmatprep.subr.bf16.mxu1 %v5872_v49 }
 0x22a   : > { %3806 = vmatpush1.bf16.msra.mxu0 %v5867_v50  ;;  %4150 = vmatpush1.bf16.msra.mxu1 %v5870_v51 }
 0x22d   : > { %3808 = vmatmul.mubr.bf16.vlgmr.msra.gmra.mrb[0].mxu0 %v4505_v52  ;;  %4152 = vmatmul.mubr.bf16.vlgmr.msra.gmra.mrb[0].mxu1 %v4505_v52 }
 0x300   : > { %v3809_v55 = vpop.f32.mrb[0].mxu0  ;;  %v4153_v56 = vpop.f32.mrb[0].mxu1  ;;  %4181 = sbr.rel (%p5019_p10) target bundleno = 853 (0x355), region = 71 }
 0x301   : > { %v4162_v59 = vadd.f32 %v3809_v55, %v298_v53  ;;  %v4164_v60 = vadd.f32 %v4153_v56, %v300_v54  ;;  %v3811_v61 = vpop.f32.mrb[1].mxu0  ;;  %v4155_v62 = vpop.f32.mrb[1].mxu1 }
 0x302   : > { %v4163_v1 = vadd.f32 %v3811_v61, %v299_v47  ;;  %v4165_v42 = vadd.f32 %v4155_v62, %v301_v38  ;;  %v3813_v43 = vpop.f32.mrb[2].mxu0  ;;  %v4157_v2 = vpop.f32.mrb[2].mxu1 }
 0x303   : > { %4170 = vst [vmem:[#allocation2] sm:$0xff] %v4162_v59  ;;  %4172 = vst [vmem:[#allocation2 + $0x10] sm:$0xff] %v4164_v60  ;;  %v4166_v3 = vadd.f32 %v3813_v43, %v302_v57  ;;  %v4168_v4 = vadd.f32 %v4157_v2, %v304_v58  ;;  %v3815_v5 = vpop.f32.mrb[3].mxu0  ;;  %v4159_v6 = vpop.f32.mrb[3].mxu1 }
 0x304   : > { %4171 = vst [vmem:[#allocation2 + $0x8] sm:$0xff] %v4163_v1  ;;  %4173 = vst [vmem:[#allocation2 + $0x18] sm:$0xff] %v4165_v42  ;;  %v4167_v7 = vadd.f32 %v3815_v5, %v303_v63  ;;  %v4169_v8 = vadd.f32 %v4159_v6, %v305_v0 }
 0x305   : > { %4174 = vst [vmem:[#allocation2 + $0x20] sm:$0xff] %v4166_v3  ;;  %4176 = vst [vmem:[#allocation2 + $0x30] sm:$0xff] %v4168_v4 }
 0x306   : > { %4175 = vst [vmem:[#allocation2 + $0x28] sm:$0xff] %v4167_v7  ;;  %4177 = vst [vmem:[#allocation2 + $0x38] sm:$0xff] %v4169_v8 }
 0x30a   : > { %v4182_v12 = vld [vmem:[#allocation2] sm:$0xff]  ;;  %v4184_v22 = vld [vmem:[#allocation2 + $0x10] sm:$0xff] }
 0x30b   : > { %v4183_v17 = vld [vmem:[#allocation2 + $0x8] sm:$0xff]  ;;  %v4212_v25 = vadd.f32 %v4195_v20, %v4182_v12  ;;  %v4185_v29 = vld [vmem:[#allocation2 + $0x18] sm:$0xff]  ;;  %v4214_v33 = vadd.f32 %v4203_v24, %v4184_v22 }
 0x30c   : > { %v4186_v16 = vld [vmem:[#allocation2 + $0x20] sm:$0xff]  ;;  %v4188_v23 = vld [vmem:[#allocation2 + $0x30] sm:$0xff]  ;;  %v4213_v27 = vadd.f32 %v4199_v21, %v4183_v17  ;;  %v4215_v41 = vadd.f32 %v4207_v37, %v4185_v29 }
 0x30d   : > { %v4187_v18 = vld [vmem:[#allocation2 + $0x28] sm:$0xff]  ;;  %v4216_v26 = vadd.f32 %v4195_v20, %v4186_v16  ;;  %v4189_v30 = vld [vmem:[#allocation2 + $0x38] sm:$0xff]  ;;  %v4218_v34 = vadd.f32 %v4203_v24, %v4188_v23 }
 0x30e   : > { %v4217_v28 = vadd.f32 %v4199_v21, %v4187_v18  ;;  %v4219_v35 = vadd.f32 %v4207_v37, %v4189_v30 }
 0x30f   : > { %v4233_v39 = vmul.f32 0.0, %v4216_v26  ;;  %v4235_v40 = vmul.f32 0.0, %v4218_v34 }
 0x310   : > { %v4234_v32 = vmul.f32 0.0, %v4217_v28  ;;  %v4236_v46 = vmul.f32 0.0, %v4219_v35 }
 0x311   : > { %v4237_v36 = vadd.f32 %v4233_v39, %v4212_v25  ;;  %v4251_v45 = vadd.f32 %v4235_v40, %v4214_v33 }
 0x312   : > { %v4244_v44 = vadd.f32 %v4234_v32, %v4213_v27  ;;  %v4258_v50 = vadd.f32 %v4236_v46, %v4215_v41 }
 0x313   : > { %v4238_v31 = vrot.slane %v4237_v36, 4  ;;  %v4252_v49 = vrot.slane %v4251_v45, 4 }
 0x314   : > { %v4245_v48 = vrot.slane %v4244_v44, 4  ;;  %v4259_v54 = vrot.slane %v4258_v50, 4 }
 0x315   : > { %v4239_v51 = vadd.f32 %v4238_v31, %v4237_v36  ;;  %v4253_v53 = vadd.f32 %v4252_v49, %v4251_v45 }
 0x316   : > { %v4246_v52 = vadd.f32 %v4245_v48, %v4244_v44  ;;  %v4260_v56 = vadd.f32 %v4259_v54, %v4258_v50 }
 0x317   : > { %v4240_v47 = vrot.slane %v4239_v51, 2  ;;  %v4254_v55 = vrot.slane %v4253_v53, 2 }
 0x318   : > { %v4247_v38 = vrot.slane %v4246_v52, 2  ;;  %v4261_v60 = vrot.slane %v4260_v56, 2 }
 0x319   : > { %v4241_v57 = vadd.f32 %v4240_v47, %v4239_v51  ;;  %v4255_v59 = vadd.f32 %v4254_v55, %v4253_v53 }
 0x31a   : > { %v4248_v58 = vadd.f32 %v4247_v38, %v4246_v52  ;;  %v4262_v0 = vadd.f32 %v4261_v60, %v4260_v56 }
 0x31b   : > { %v4242_v61 = vrot.slane %v4241_v57, 1  ;;  %v4256_v63 = vrot.slane %v4255_v59, 1 }
 0x31c   : > { %v4249_v62 = vrot.slane %v4248_v58, 1  ;;  %v4263_v2 = vrot.slane %v4262_v0, 1 }
 0x31d   : > { %v4243_v1 = vadd.f32 %v4242_v61, %v4241_v57  ;;  %v4257_v43 = vadd.f32 %v4256_v63, %v4255_v59 }
 0x31e   : > { %v4250_v42 = vadd.f32 %v4249_v62, %v4248_v58  ;;  %v4264_v6 = vadd.f32 %v4263_v2, %v4262_v0 }
 0x31f   : > { %v4265_v3 = vmul.f32 0.125, %v4243_v1  ;;  %v4267_v5 = vmul.f32 0.125, %v4257_v43 }
 0x320   : > { %v4266_v4 = vmul.f32 0.125, %v4250_v42  ;;  %v4268_v16 = vmul.f32 0.125, %v4264_v6 }
 0x321   : > { %v6602_v7 = vsub.f32 %v4212_v25, %v4265_v3  ;;  %v6604_v8 = vsub.f32 %v4216_v26, %v4265_v3  ;;  %v6610_v11 = vsub.f32 %v4214_v33, %v4267_v5  ;;  %v6612_v12 = vsub.f32 %v4218_v34, %v4267_v5  ;;  %v4371_v5 = vld [vmem:[%s6690_s4] sm:$0xf] }
 0x322   : > { %v6606_v9 = vsub.f32 %v4213_v27, %v4266_v4  ;;  %v6608_v10 = vsub.f32 %v4217_v28, %v4266_v4  ;;  %v6623_v24 = vsub.f32 %v4215_v41, %v4268_v16  ;;  %v6625_v25 = vsub.f32 %v4219_v35, %v4268_v16  ;;  %v4341_v4 = vld [vmem:[%s6689_s3] sm:$0xf] }
 0x323   : > { %v4281_v17 = vmul.f32 0.0, %v6604_v8  ;;  %v4285_v18 = vmul.f32 %v6602_v7, %v6602_v7  ;;  %v4283_v22 = vmul.f32 0.0, %v6612_v12  ;;  %v4287_v23 = vmul.f32 %v6610_v11, %v6610_v11 }
 0x324   : > { %v4282_v20 = vmul.f32 0.0, %v6608_v10  ;;  %v4286_v21 = vmul.f32 %v6606_v9, %v6606_v9  ;;  %v4284_v29 = vmul.f32 0.0, %v6625_v25  ;;  %v4288_v30 = vmul.f32 %v6623_v24, %v6623_v24 }
 0x325   : > { %v4289_v26 = vmul.f32 %v4281_v17, %v4281_v17  ;;  %v4291_v28 = vmul.f32 %v4283_v22, %v4283_v22  ;;  %v4346_v6 = vrot.slane %v4341_v4, %v6590_v13  ;;  %v4376_v17 = vrot.slane %v4371_v5, %v6590_v13 }
 0x326   : > { %v4290_v27 = vmul.f32 %v4282_v20, %v4282_v20  ;;  %v4292_v39 = vmul.f32 %v4284_v29, %v4284_v29  ;;  %v4380_v20 = vrot.slane %v4371_v5, %v6592_v14  ;;  %v4388_v13 = vrot.slane %v4371_v5, %v6596_v19 }
 0x327   : > { %v4293_v33 = vadd.f32 %v4289_v26, %v4285_v18  ;;  %v4307_v37 = vadd.f32 %v4291_v28, %v4287_v23  ;;  %v4350_v18 = vrot.slane %v4341_v4, %v6592_v14  ;;  %v4354_v23 = vrot.slane %v4341_v4, %v6594_v15 }
 0x328   : > { %v4300_v34 = vadd.f32 %v4290_v27, %v4286_v21  ;;  %v4314_v44 = vadd.f32 %v4292_v39, %v4288_v30  ;;  %v4384_v26 = vrot.slane %v4371_v5, %v6594_v15  ;;  %v4358_v30 = vrot.slane %v4341_v4, %v6596_v19 }
 0x329   : > { %v4294_v32 = vrot.slane %v4293_v33, 4  ;;  %v4308_v36 = vrot.slane %v4307_v37, 4 }
 0x32a   : > { %v4301_v40 = vrot.slane %v4300_v34, 4  ;;  %v4315_v46 = vrot.slane %v4314_v44, 4 }
 0x32b   : > { %v4295_v41 = vadd.f32 %v4294_v32, %v4293_v33  ;;  %v4309_v35 = vadd.f32 %v4308_v36, %v4307_v37 }
 0x32c   : > { %v4302_v45 = vadd.f32 %v4301_v40, %v4300_v34  ;;  %v4316_v50 = vadd.f32 %v4315_v46, %v4314_v44 }
 0x32d   : > { %v4296_v31 = vrot.slane %v4295_v41, 2  ;;  %v4310_v49 = vrot.slane %v4309_v35, 2 }
 0x32e   : > { %v4303_v48 = vrot.slane %v4302_v45, 2  ;;  %v4317_v54 = vrot.slane %v4316_v50, 2 }
 0x32f   : > { %v4297_v51 = vadd.f32 %v4296_v31, %v4295_v41  ;;  %v4311_v53 = vadd.f32 %v4310_v49, %v4309_v35 }
 0x330   : > { %v4304_v52 = vadd.f32 %v4303_v48, %v4302_v45  ;;  %v4318_v56 = vadd.f32 %v4317_v54, %v4316_v50 }
 0x331   : > { %v4298_v47 = vrot.slane %v4297_v51, 1  ;;  %v4312_v55 = vrot.slane %v4311_v53, 1 }
 0x332   : > { %v4305_v38 = vrot.slane %v4304_v52, 1  ;;  %v4319_v60 = vrot.slane %v4318_v56, 1 }
 0x333   : > { %v4299_v57 = vadd.f32 %v4298_v47, %v4297_v51  ;;  %v4313_v59 = vadd.f32 %v4312_v55, %v4311_v53 }
 0x334   : > { %v4306_v58 = vadd.f32 %v4305_v38, %v4304_v52  ;;  %v4320_v0 = vadd.f32 %v4319_v60, %v4318_v56 }
 0x335   : > { %v4321_v61 = vmul.f32 0.125, %v4299_v57  ;;  %v4323_v63 = vmul.f32 0.125, %v4313_v59 }
 0x336   : > { %v4322_v62 = vmul.f32 0.125, %v4306_v58  ;;  %v4324_v2 = vmul.f32 0.125, %v4320_v0 }
 0x337   : > { %v4325_v1 = vadd.f32 1e-05, %v4321_v61  ;;  %v4327_v43 = vadd.f32 1e-05, %v4323_v63 }
 0x338   : > { %v4326_v42 = vadd.f32 1e-05, %v4322_v62  ;;  %v4328_v3 = vadd.f32 1e-05, %v4324_v2 }
 0x339   : > { %5873 = vrsqrt.f32 %v4325_v1 }
 0x33a   : > { %5875 = vrsqrt.f32 %v4326_v42 }
 0x33b   : > { %5877 = vrsqrt.f32 %v4327_v43 }
 0x33c   : > { %5879 = vrsqrt.f32 %v4328_v3 }
 0x343   : > { %v5874_v16 = vpop.eup %5873 }
 0x344   : > { %v5876_v21 = vpop.eup %5875  ;;  %v4333_v22 = vmul.f32 %v5874_v16, %v6602_v7  ;;  %v4337_v27 = vmul.f32 %v5874_v16, %v6604_v8 }
 0x345   : > { %v5878_v28 = vpop.eup %5877  ;;  %v4334_v29 = vmul.f32 %v5876_v21, %v6606_v9  ;;  %v4338_v33 = vmul.f32 %v5876_v21, %v6608_v10 }
 0x346   : > { %v5880_v34 = vpop.eup %5879  ;;  %v4363_v14 = vmul.f32 %v4346_v6, %v4333_v22  ;;  %v4335_v37 = vmul.f32 %v5878_v28, %v6610_v11  ;;  %v4367_v7 = vmul.f32 %v4346_v6, %v4337_v27  ;;  %v4339_v39 = vmul.f32 %v5878_v28, %v6612_v12 }
 0x347   : > { %v4364_v32 = vmul.f32 %v4350_v18, %v4334_v29  ;;  %v4336_v15 = vmul.f32 %v5880_v34, %v6623_v24  ;;  %v4368_v8 = vmul.f32 %v4350_v18, %v4338_v33  ;;  %v4340_v40 = vmul.f32 %v5880_v34, %v6625_v25 }
 0x348   : > { %v4393_v9 = vadd.f32 %v4376_v17, %v4363_v14  ;;  %v4365_v36 = vmul.f32 %v4354_v23, %v4335_v37  ;;  %v4397_v44 = vadd.f32 %v4376_v17, %v4367_v7  ;;  %v4369_v41 = vmul.f32 %v4354_v23, %v4339_v39 }
 0x349   : > { %v4394_v19 = vadd.f32 %v4380_v20, %v4364_v32  ;;  %v4366_v45 = vmul.f32 %v4358_v30, %v4336_v15  ;;  %v4398_v10 = vadd.f32 %v4380_v20, %v4368_v8  ;;  %v4370_v35 = vmul.f32 %v4358_v30, %v4340_v40 }
 0x34a   : > { %vm4401_vm0 = vcmp.ge.f32.partialorder %v4393_v9, 0.0  ;;  %v4409_v46 = vmul.f32 0.2, %v4393_v9  ;;  %v4395_v11 = vadd.f32 %v4384_v26, %v4365_v36  ;;  %vm4405_vm1 = vcmp.ge.f32.partialorder %v4397_v44, 0.0 }
 0x34b   : > { %vm4402_vm2 = vcmp.ge.f32.partialorder %v4394_v19, 0.0  ;;  %v4410_v12 = vmul.f32 0.2, %v4394_v19  ;;  %v4396_v31 = vadd.f32 %v4388_v13, %v4366_v45  ;;  %v4413_v48 = vmul.f32 0.2, %v4397_v44 }
 0x34c   : > { %v4417_v24 = vsel %vm4401_vm0, %v4393_v9, %v4409_v46  ;;  %vm4403_vm3 = vcmp.ge.f32.partialorder %v4395_v11, 0.0  ;;  %v4411_v49 = vmul.f32 0.2, %v4395_v11  ;;  %vm4406_vm4 = vcmp.ge.f32.partialorder %v4398_v10, 0.0 }
 0x34d   : > { %4425 = vst [vmem:[%s6691_s5] sm:$0xff] %v4417_v24  ;;  %v4418_v25 = vsel %vm4402_vm2, %v4394_v19, %v4410_v12  ;;  %vm4404_vm5 = vcmp.ge.f32.partialorder %v4396_v31, 0.0  ;;  %v4412_v50 = vmul.f32 0.2, %v4396_v31  ;;  %v4421_v51 = vsel %vm4405_vm1, %v4397_v44, %v4413_v48 }
 0x34e   : > { %4426 = vst [vmem:[%s6691_s5 + $0x8] sm:$0xff] %v4418_v25  ;;  %v4419_v52 = vsel %vm4403_vm3, %v4395_v11, %v4411_v49  ;;  %4429 = vst [vmem:[%s6691_s5 + $0x20] sm:$0xff] %v4421_v51  ;;  %v4414_v53 = vmul.f32 0.2, %v4398_v10  ;;  %v4399_v54 = vadd.f32 %v4384_v26, %v4369_v41  ;;  %v4400_v47 = vadd.f32 %v4388_v13, %v4370_v35 }
 0x34f   : > { %4427 = vst [vmem:[%s6691_s5 + $0x10] sm:$0xff] %v4419_v52  ;;  %v4420_v38 = vsel %vm4404_vm5, %v4396_v31, %v4412_v50 }
 0x350   : > { %4428 = vst [vmem:[%s6691_s5 + $0x18] sm:$0xff] %v4420_v38  ;;  %v4422_v55 = vsel %vm4406_vm4, %v4398_v10, %v4414_v53  ;;  %vm4407_vm6 = vcmp.ge.f32.partialorder %v4399_v54, 0.0  ;;  %v4415_v56 = vmul.f32 0.2, %v4399_v54  ;;  %vm4408_vm7 = vcmp.ge.f32.partialorder %v4400_v47, 0.0 }
 0x351   : > { %4430 = vst [vmem:[%s6691_s5 + $0x28] sm:$0xff] %v4422_v55  ;;  %v4416_v57 = vmul.f32 0.2, %v4400_v47 }
 0x352   : > { %v4423_v58 = vsel %vm4407_vm6, %v4399_v54, %v4415_v56 }
 0x353   : > { %4431 = vst [vmem:[%s6691_s5 + $0x30] sm:$0xff] %v4423_v58  ;;  %v4424_v59 = vsel %vm4408_vm7, %v4400_v47, %v4416_v57 }
 0x354   : > { %4432 = vst [vmem:[%s6691_s5 + $0x38] sm:$0xff] %v4424_v59 }
 0x355 PF: > { %p12_p11 = scmp.ge.s32.totalorder %s5955_s22, 4   ;;  %s6692_s18 = smov %s5899_s19 }
 0x356   : > { %s6693_s19 = smov %s5964_s25  ;;  %s6694_s20 = smov %s5955_s22 }
 0x357   :  { %14 = sbr.rel (!%p12_p11) target bundleno = 2 (0x2), region = 105 }

// kernel: passive_sep_enc_forward.9
= control target key start
LH: loop header
LB: loop body
LE: loop exit
PB: predicated region body
PF: predicated region fallthrough
CT: control target
= control target key end

     0   :  { %s5939_s18 = smov 0   ;;  %s5941_s19 = smov 0   ;;  %s6695_s0 = inlined_call_operand.vmem [shape: bf16[16,8192], index: 0, kind: input, shape index: {}]   ;;  %s6696_s1 = inlined_call_operand.vmem [shape: bf16[8192,512], index: 1, kind: input, shape index: {}]   ;;  %s6697_s2 = inlined_call_operand.vmem [shape: f32[1,512], index: 2, kind: input, shape index: {}]   ;;  %s6698_s3 = inlined_call_operand.vmem [shape: f32[1,512], index: 3, kind: input, shape index: {}]   ;;  %s6699_s4 = inlined_call_operand.vmem [shape: f32[1,512], index: 4, kind: input, shape index: {}]   ;;  %s6700_s5 = inlined_call_operand.vmem [shape: f32[16,512], index: 5, kind: output, shape index: {}]  }
   0x1   :  { %s5943_s20 = smov 0  }
   0x2 LB: > { %s5955_s21 = sadd.s32 4294967295, %s5905_s20   ;;  %s5958_s22 = sadd.s32 1, %s5905_s20   ;;  %s5905_s20 = sphi %s5943_s20, %s6703_s20   ;;  %s5901_s19 = sphi %s5941_s19, %s6702_s19   ;;  %s5897_s18 = sphi %s5939_s18, %s6701_s18  }
   0x3   : > { %s19_s23 = ssub.s32 %s5905_s20, %s5958_s22  ;;  %s22_s24 = sadd.s32 1, %s5901_s19 }
   0x4   : > { %p20_p0 = scmp.eq.s32.totalorder %s19_s23, 0  ;;  %p29_p1 = scmp.ne.s32.totalorder %s5901_s19, %s5897_s18 }
   0x5   : > { %p30_p2 = scmp.eq.s32.totalorder %s5905_s20, 0  ;;  %p4481_p4 = scmp.ge.s32.totalorder %s5905_s20, 4 }
   0x6   : > { %s5967_s25 = scalar_select %p20_p0, %s5901_s19, %s22_s24  }
   0x7   : > { %p31_p3 = por %p30_p2, %p29_p1  ;;  %174 = sbr.rel (%p4481_p4) target bundleno = 26 (0x1a), region = 28 }
   0xe   : > { %177 = sbr.rel (!%p31_p3) target bundleno = 26 (0x1a), region = 32  ;;  %s179_s26 = sand.u32 (%p31_p3), 1, %s5901_s19  }
   0xf   : > { %s5023_s27 = sshll.u32 (%p31_p3), %s5905_s20, 6  ;;  %s4482_s28 = sshll.u32 (%p31_p3), %s179_s26, 7 }
  0x10   : > { %s5975_s6 = scalar_lea.vmem (%p31_p3), %s6695_s0, %s5023_s27  ;;  %s181_s7 = scalar_lea.vmem (%p31_p3), [#allocation3], %s4482_s28 }
  0x11   : > { %v197_v0 = vld [vmem:[%s5975_s6] sm:$0xff] (%p31_p3)  ;;  %v199_v1 = vld [vmem:[%s5975_s6 + $0x8] sm:$0xff] (%p31_p3)  ;;  %v201_v2 = vld [vmem:[%s5975_s6 + $0x10] sm:$0xff] (%p31_p3) }
  0x12   : > { %198 = vst [vmem:[%s181_s7] sm:$0xff] (%p31_p3), %v197_v0  ;;  %200 = vst [vmem:[%s181_s7 + $0x8] sm:$0xff] (%p31_p3), %v199_v1  ;;  %v203_v3 = vld [vmem:[%s5975_s6 + $0x18] sm:$0xff] (%p31_p3)  ;;  %v205_v4 = vld [vmem:[%s5975_s6 + $0x20] sm:$0xff] (%p31_p3) }
  0x13   : > { %202 = vst [vmem:[%s181_s7 + $0x10] sm:$0xff] (%p31_p3), %v201_v2  ;;  %v207_v5 = vld [vmem:[%s5975_s6 + $0x28] sm:$0xff] (%p31_p3)  ;;  %204 = vst [vmem:[%s181_s7 + $0x18] sm:$0xff] (%p31_p3), %v203_v3  ;;  %v209_v6 = vld [vmem:[%s5975_s6 + $0x30] sm:$0xff] (%p31_p3) }
  0x14   : > { %206 = vst [vmem:[%s181_s7 + $0x20] sm:$0xff] (%p31_p3), %v205_v4  ;;  %208 = vst [vmem:[%s181_s7 + $0x28] sm:$0xff] (%p31_p3), %v207_v5  ;;  %v211_v7 = vld [vmem:[%s5975_s6 + $0x38] sm:$0xff] (%p31_p3)  ;;  %v213_v8 = vld [vmem:[%s5975_s6 + $0x100] sm:$0xff] (%p31_p3) }
  0x15   : > { %210 = vst [vmem:[%s181_s7 + $0x30] sm:$0xff] %v209_v6  ;;  %212 = vst [vmem:[%s181_s7 + $0x38] sm:$0xff] %v211_v7  ;;  %v215_v9 = vld [vmem:[%s5975_s6 + $0x108] sm:$0xff]  ;;  %v217_v10 = vld [vmem:[%s5975_s6 + $0x110] sm:$0xff] }
  0x16   : > { %214 = vst [vmem:[%s181_s7 + $0x40] sm:$0xff] %v213_v8  ;;  %v219_v11 = vld [vmem:[%s5975_s6 + $0x118] sm:$0xff]  ;;  %216 = vst [vmem:[%s181_s7 + $0x48] sm:$0xff] %v215_v9  ;;  %v221_v12 = vld [vmem:[%s5975_s6 + $0x120] sm:$0xff] }
  0x17   : > { %218 = vst [vmem:[%s181_s7 + $0x50] sm:$0xff] %v217_v10  ;;  %220 = vst [vmem:[%s181_s7 + $0x58] sm:$0xff] %v219_v11  ;;  %v223_v13 = vld [vmem:[%s5975_s6 + $0x128] sm:$0xff]  ;;  %v225_v14 = vld [vmem:[%s5975_s6 + $0x130] sm:$0xff] }
  0x18   : > { %222 = vst [vmem:[%s181_s7 + $0x60] sm:$0xff] %v221_v12  ;;  %224 = vst [vmem:[%s181_s7 + $0x68] sm:$0xff] %v223_v13  ;;  %v227_v15 = vld [vmem:[%s5975_s6 + $0x138] sm:$0xff] }
  0x19   : > { %226 = vst [vmem:[%s181_s7 + $0x70] sm:$0xff] %v225_v14  ;;  %228 = vst [vmem:[%s181_s7 + $0x78] sm:$0xff] %v227_v15 }
  0x1a PF: > { %p4485_p5 = scmp.ge.s32.totalorder %s5905_s20, 1  ;;  %p243_p6 = scmp.lt.s32.totalorder %s5905_s20, 5 }
  0x1c   : > { %p244_p7 = pnand %p4485_p5, %p243_p6 }
  0x1d   : > { %s250_s8 = sand.u32 (!%p244_p7), 1, %s5897_s18   ;;  %s4487_s9 = sshll.u32 (!%p244_p7), %s5955_s21, 8 }
  0x1e   : > { %247 = sbr.rel (%p244_p7) target bundleno = 853 (0x355), region = 59  ;;  %s4486_s10 = sshll.u32 (!%p244_p7), %s250_s8, 7 }
  0x1f   : > { %p280_p8 = scmp.lt.s32.totalorder (!%p244_p7), %s4487_s9, 1023  ;;  %s6002_s15 = scalar_lea.vmem (!%p244_p7), [#allocation3], %s4486_s10 }
  0x20   : > { %p4490_p9 = scmp.ne.s32.totalorder (!%p244_p7), %s5955_s21, 0 }
  0x25   : > { %s6705_s9 = smov (!%p280_p8, %s4487_s9), 1023  ;;  %289 = sbr.rel (%p4490_p9) target bundleno = 44 (0x2c), region = 67 }
  0x26   : > { %s5024_s11 = sshll.u32 %s6705_s9, 4  ;;  %v5907_v16 = vmov (!%p4490_p9), 0.0  }
  0x27   : > { %s6000_s14 = scalar_lea.vmem %s6696_s1, %s5024_s11  ;;  %290 = vst [vmem:[#allocation2] sm:$0xff] (!%p4490_p9), %v5907_v16  ;;  %291 = vst [vmem:[#allocation2 + $0x8] sm:$0xff] (!%p4490_p9), %v5907_v16 }
  0x28   : > { %292 = vst [vmem:[#allocation2 + $0x10] sm:$0xff] (!%p4490_p9), %v5907_v16  ;;  %293 = vst [vmem:[#allocation2 + $0x18] sm:$0xff] (!%p4490_p9), %v5907_v16 }
  0x29   : > { %294 = vst [vmem:[#allocation2 + $0x20] sm:$0xff] (!%p4490_p9), %v5907_v16  ;;  %295 = vst [vmem:[#allocation2 + $0x28] sm:$0xff] (!%p4490_p9), %v5907_v16 }
  0x2a   : > { %296 = vst [vmem:[#allocation2 + $0x30] sm:$0xff] (!%p4490_p9), %v5907_v16  ;;  %297 = vst [vmem:[#allocation2 + $0x38] sm:$0xff] (!%p4490_p9), %v5907_v16 }
  0x2c PF: > { %v5107_v17 = vld [vmem:[%s6000_s14 + $0x4] ss:$16 sps:$4 sm:$0xff]   ;;  %v5109_v18 = vld [vmem:[%s6000_s14 + $0xc] ss:$16 sps:$4 sm:$0xff]   ;;  %v5111_v19 = vld [vmem:[%s6000_s14] ss:$16 sps:$4 sm:$0xff]  }
  0x2d   : > { %3474 = vmatprep.subr.bf16.mxu0 %v5107_v17  ;;  %v5112_v20 = vld [vmem:[%s6000_s14 + $0x8] ss:$16 sps:$4 sm:$0xff]   ;;  %3818 = vmatprep.subr.bf16.mxu1 %v5109_v18  ;;  %v5113_v21 = vld [vmem:[%s6000_s14 + $0x24] ss:$16 sps:$4 sm:$0xff]   ;;  %v5115_v22 = vld [vmem:[%s6000_s14 + $0x2c] ss:$16 sps:$4 sm:$0xff]  }
  0x2e   : > { %3475 = vmatpush1.bf16.msra.mxu0 %v5111_v19  ;;  %3819 = vmatpush1.bf16.msra.mxu1 %v5112_v20  ;;  %v5117_v23 = vld [vmem:[%s6000_s14 + $0x20] ss:$16 sps:$4 sm:$0xff]   ;;  %v5118_v24 = vld [vmem:[%s6000_s14 + $0x28] ss:$16 sps:$4 sm:$0xff]   ;;  %v5119_v25 = vld [vmem:[%s6000_s14 + $0x44] ss:$16 sps:$4 sm:$0xff]  }
  0x2f   : > { %3476 = vmatprep.subr.bf16.mxu0 %v5113_v21  ;;  %3820 = vmatprep.subr.bf16.mxu1 %v5115_v22  ;;  %v5121_v26 = vld [vmem:[%s6000_s14 + $0x4c] ss:$16 sps:$4 sm:$0xff]   ;;  %v5123_v27 = vld [vmem:[%s6000_s14 + $0x40] ss:$16 sps:$4 sm:$0xff]   ;;  %v5124_v28 = vld [vmem:[%s6000_s14 + $0x48] ss:$16 sps:$4 sm:$0xff]  }
  0x30   : > { %v5125_v29 = vld [vmem:[%s6000_s14 + $0x64] ss:$16 sps:$4 sm:$0xff]   ;;  %v5127_v30 = vld [vmem:[%s6000_s14 + $0x6c] ss:$16 sps:$4 sm:$0xff]   ;;  %v5129_v31 = vld [vmem:[%s6000_s14 + $0x60] ss:$16 sps:$4 sm:$0xff]  }
  0x31   : > { %v5130_v32 = vld [vmem:[%s6000_s14 + $0x68] ss:$16 sps:$4 sm:$0xff]   ;;  %v5131_v33 = vld [vmem:[%s6000_s14 + $0x84] ss:$16 sps:$4 sm:$0xff]   ;;  %v5133_v34 = vld [vmem:[%s6000_s14 + $0x8c] ss:$16 sps:$4 sm:$0xff]  }
  0x32   : > { %3477 = vmatpush1.bf16.msra.mxu0 %v5117_v23  ;;  %3821 = vmatpush1.bf16.msra.mxu1 %v5118_v24  ;;  %v5135_v35 = vld [vmem:[%s6000_s14 + $0x80] ss:$16 sps:$4 sm:$0xff]   ;;  %v5136_v36 = vld [vmem:[%s6000_s14 + $0x88] ss:$16 sps:$4 sm:$0xff]   ;;  %v5137_v37 = vld [vmem:[%s6000_s14 + $0xa4] ss:$16 sps:$4 sm:$0xff]  }
  0x33   : > { %3478 = vmatprep.subr.bf16.mxu0 %v5119_v25  ;;  %3822 = vmatprep.subr.bf16.mxu1 %v5121_v26  ;;  %v5139_v38 = vld [vmem:[%s6000_s14 + $0xac] ss:$16 sps:$4 sm:$0xff]   ;;  %v5141_v39 = vld [vmem:[%s6000_s14 + $0xa0] ss:$16 sps:$4 sm:$0xff]   ;;  %v5142_v40 = vld [vmem:[%s6000_s14 + $0xa8] ss:$16 sps:$4 sm:$0xff]  }
  0x34   : > { %v5143_v41 = vld [vmem:[%s6000_s14 + $0xc4] ss:$16 sps:$4 sm:$0xff]   ;;  %v5145_v42 = vld [vmem:[%s6000_s14 + $0xcc] ss:$16 sps:$4 sm:$0xff]   ;;  %v5147_v43 = vld [vmem:[%s6000_s14 + $0xc0] ss:$16 sps:$4 sm:$0xff]  }
  0x35   : > { %v5148_v44 = vld [vmem:[%s6000_s14 + $0xc8] ss:$16 sps:$4 sm:$0xff]   ;;  %v5149_v45 = vld [vmem:[%s6000_s14 + $0xe4] ss:$16 sps:$4 sm:$0xff]   ;;  %v5151_v46 = vld [vmem:[%s6000_s14 + $0xec] ss:$16 sps:$4 sm:$0xff]  }
  0x36   : > { %3479 = vmatpush1.bf16.msra.mxu0 %v5123_v27  ;;  %3823 = vmatpush1.bf16.msra.mxu1 %v5124_v28  ;;  %v5153_v47 = vld [vmem:[%s6000_s14 + $0xe0] ss:$16 sps:$4 sm:$0xff]   ;;  %v5154_v48 = vld [vmem:[%s6000_s14 + $0xe8] ss:$16 sps:$4 sm:$0xff]   ;;  %v5155_v49 = vld [vmem:[%s6000_s14 + $0x104] ss:$16 sps:$4 sm:$0xff]  }
  0x37   : > { %3480 = vmatprep.subr.bf16.mxu0 %v5125_v29  ;;  %3824 = vmatprep.subr.bf16.mxu1 %v5127_v30  ;;  %v5157_v50 = vld [vmem:[%s6000_s14 + $0x10c] ss:$16 sps:$4 sm:$0xff]   ;;  %v5159_v51 = vld [vmem:[%s6000_s14 + $0x100] ss:$16 sps:$4 sm:$0xff]   ;;  %v5160_v52 = vld [vmem:[%s6000_s14 + $0x108] ss:$16 sps:$4 sm:$0xff]  }
  0x38   : > { %v5161_v53 = vld [vmem:[%s6000_s14 + $0x124] ss:$16 sps:$4 sm:$0xff]   ;;  %v5163_v54 = vld [vmem:[%s6000_s14 + $0x12c] ss:$16 sps:$4 sm:$0xff]   ;;  %v5165_v55 = vld [vmem:[%s6000_s14 + $0x120] ss:$16 sps:$4 sm:$0xff]  }
  0x39   : > { %v5166_v56 = vld [vmem:[%s6000_s14 + $0x128] ss:$16 sps:$4 sm:$0xff]   ;;  %v5167_v57 = vld [vmem:[%s6000_s14 + $0x144] ss:$16 sps:$4 sm:$0xff]   ;;  %v5169_v58 = vld [vmem:[%s6000_s14 + $0x14c] ss:$16 sps:$4 sm:$0xff]  }
  0x3a   : > { %3481 = vmatpush1.bf16.msra.mxu0 %v5129_v31  ;;  %3825 = vmatpush1.bf16.msra.mxu1 %v5130_v32  ;;  %v5171_v59 = vld [vmem:[%s6000_s14 + $0x140] ss:$16 sps:$4 sm:$0xff]   ;;  %v5172_v60 = vld [vmem:[%s6000_s14 + $0x148] ss:$16 sps:$4 sm:$0xff]   ;;  %v5173_v61 = vld [vmem:[%s6000_s14 + $0x164] ss:$16 sps:$4 sm:$0xff]  }
  0x3b   : > { %3482 = vmatprep.subr.bf16.mxu0 %v5131_v33  ;;  %3826 = vmatprep.subr.bf16.mxu1 %v5133_v34  ;;  %v5175_v62 = vld [vmem:[%s6000_s14 + $0x16c] ss:$16 sps:$4 sm:$0xff]   ;;  %v306_v63 = vld [vmem:[%s6002_s15] sm:$0xff]  ;;  %v5178_v2 = vld [vmem:[%s6000_s14 + $0x168] ss:$16 sps:$4 sm:$0xff]   ;;  %p5019_p10 = scmp.ne.s32.totalorder %s5955_s21, 3 }
  0x3c   : > { %v314_v0 = vld [vmem:[%s6002_s15 + $0x40] sm:$0xff]  ;;  %v5181_v5 = vld [vmem:[%s6000_s14 + $0x18c] ss:$16 sps:$4 sm:$0xff]   ;;  %v5184_v7 = vld [vmem:[%s6000_s14 + $0x188] ss:$16 sps:$4 sm:$0xff]  }
  0x3d   : > { %v5177_v1 = vld [vmem:[%s6000_s14 + $0x160] ss:$16 sps:$4 sm:$0xff]   ;;  %v4492_v3 = vcombine.high %v306_v63, %v314_v0  ;;  %v5179_v4 = vld [vmem:[%s6000_s14 + $0x184] ss:$16 sps:$4 sm:$0xff]   ;;  %v5187_v9 = vld [vmem:[%s6000_s14 + $0x1ac] ss:$16 sps:$4 sm:$0xff]   ;;  %v4491_v22 = vcombine.low %v306_v63, %v314_v0 }
  0x3e   : > { %3483 = vmatpush1.bf16.msra.mxu0 %v5135_v35  ;;  %3827 = vmatpush1.bf16.msra.mxu1 %v5136_v36  ;;  %v5183_v6 = vld [vmem:[%s6000_s14 + $0x180] ss:$16 sps:$4 sm:$0xff]   ;;  %v5185_v8 = vld [vmem:[%s6000_s14 + $0x1a4] ss:$16 sps:$4 sm:$0xff]   ;;  %v5190_v11 = vld [vmem:[%s6000_s14 + $0x1a8] ss:$16 sps:$4 sm:$0xff]  }
  0x3f   : > { %3484 = vmatprep.subr.bf16.mxu0 %v5137_v37  ;;  %3828 = vmatprep.subr.bf16.mxu1 %v5139_v38  ;;  %v5189_v10 = vld [vmem:[%s6000_s14 + $0x1a0] ss:$16 sps:$4 sm:$0xff]   ;;  %v5191_v12 = vld [vmem:[%s6000_s14 + $0x1c4] ss:$16 sps:$4 sm:$0xff]   ;;  %v5193_v13 = vld [vmem:[%s6000_s14 + $0x1cc] ss:$16 sps:$4 sm:$0xff]  }
  0x40   : > { %3506 = vmatprep.mubr.bf16.mxu0 %v4492_v3  ;;  %3850 = vmatprep.mubr.bf16.mxu1 %v4492_v3  ;;  %v5195_v14 = vld [vmem:[%s6000_s14 + $0x1c0] ss:$16 sps:$4 sm:$0xff]   ;;  %v5196_v15 = vld [vmem:[%s6000_s14 + $0x1c8] ss:$16 sps:$4 sm:$0xff]   ;;  %v5197_v16 = vld [vmem:[%s6000_s14 + $0x1e4] ss:$16 sps:$4 sm:$0xff]  }
  0x41   : > { %v5199_v17 = vld [vmem:[%s6000_s14 + $0x1ec] ss:$16 sps:$4 sm:$0xff]   ;;  %v5201_v18 = vld [vmem:[%s6000_s14 + $0x1e0] ss:$16 sps:$4 sm:$0xff]   ;;  %v5202_v19 = vld [vmem:[%s6000_s14 + $0x1e8] ss:$16 sps:$4 sm:$0xff]  }
  0x42   : > { %3485 = vmatpush1.bf16.msra.mxu0 %v5141_v39  ;;  %3829 = vmatpush1.bf16.msra.mxu1 %v5142_v40  ;;  %v5205_v20 = vld [vmem:[%s6000_s14 + $0x204] ss:$16 sps:$4 sm:$0xff]   ;;  %v5208_v21 = vld [vmem:[%s6000_s14 + $0x20c] ss:$16 sps:$4 sm:$0xff]   ;;  %v5203_v23 = vld [vmem:[%s6000_s14 + $0x200] ss:$16 sps:$4 sm:$0xff]  }
  0x43   : > { %3486 = vmatprep.subr.bf16.mxu0 %v5143_v41  ;;  %3830 = vmatprep.subr.bf16.mxu1 %v5145_v42  ;;  %v5206_v24 = vld [vmem:[%s6000_s14 + $0x208] ss:$16 sps:$4 sm:$0xff]   ;;  %v5211_v25 = vld [vmem:[%s6000_s14 + $0x224] ss:$16 sps:$4 sm:$0xff]   ;;  %v5214_v26 = vld [vmem:[%s6000_s14 + $0x22c] ss:$16 sps:$4 sm:$0xff]  }
  0x44   : > { %v5209_v27 = vld [vmem:[%s6000_s14 + $0x220] ss:$16 sps:$4 sm:$0xff]   ;;  %v5212_v28 = vld [vmem:[%s6000_s14 + $0x228] ss:$16 sps:$4 sm:$0xff]   ;;  %v5217_v29 = vld [vmem:[%s6000_s14 + $0x244] ss:$16 sps:$4 sm:$0xff]  }
  0x45   : > { %v5220_v30 = vld [vmem:[%s6000_s14 + $0x24c] ss:$16 sps:$4 sm:$0xff]   ;;  %v5215_v31 = vld [vmem:[%s6000_s14 + $0x240] ss:$16 sps:$4 sm:$0xff]   ;;  %v5218_v32 = vld [vmem:[%s6000_s14 + $0x248] ss:$16 sps:$4 sm:$0xff]  }
  0x46   : > { %3487 = vmatpush1.bf16.msra.mxu0 %v5147_v43  ;;  %3831 = vmatpush1.bf16.msra.mxu1 %v5148_v44  ;;  %v5223_v33 = vld [vmem:[%s6000_s14 + $0x264] ss:$16 sps:$4 sm:$0xff]   ;;  %v5226_v34 = vld [vmem:[%s6000_s14 + $0x26c] ss:$16 sps:$4 sm:$0xff]   ;;  %v5221_v35 = vld [vmem:[%s6000_s14 + $0x260] ss:$16 sps:$4 sm:$0xff]  }
  0x47   : > { %3488 = vmatprep.subr.bf16.mxu0 %v5149_v45  ;;  %3832 = vmatprep.subr.bf16.mxu1 %v5151_v46  ;;  %v5224_v36 = vld [vmem:[%s6000_s14 + $0x268] ss:$16 sps:$4 sm:$0xff]   ;;  %v5229_v37 = vld [vmem:[%s6000_s14 + $0x284] ss:$16 sps:$4 sm:$0xff]   ;;  %v5232_v38 = vld [vmem:[%s6000_s14 + $0x28c] ss:$16 sps:$4 sm:$0xff]  }
  0x48   : > { %v5227_v39 = vld [vmem:[%s6000_s14 + $0x280] ss:$16 sps:$4 sm:$0xff]   ;;  %v5230_v40 = vld [vmem:[%s6000_s14 + $0x288] ss:$16 sps:$4 sm:$0xff]   ;;  %v5235_v41 = vld [vmem:[%s6000_s14 + $0x2a4] ss:$16 sps:$4 sm:$0xff]  }
  0x49   : > { %v5238_v42 = vld [vmem:[%s6000_s14 + $0x2ac] ss:$16 sps:$4 sm:$0xff]   ;;  %v5233_v43 = vld [vmem:[%s6000_s14 + $0x2a0] ss:$16 sps:$4 sm:$0xff]   ;;  %v5236_v44 = vld [vmem:[%s6000_s14 + $0x2a8] ss:$16 sps:$4 sm:$0xff]  }
  0x4a   : > { %3489 = vmatpush1.bf16.msra.mxu0 %v5153_v47  ;;  %3833 = vmatpush1.bf16.msra.mxu1 %v5154_v48  ;;  %v5241_v45 = vld [vmem:[%s6000_s14 + $0x2c4] ss:$16 sps:$4 sm:$0xff]   ;;  %v5244_v46 = vld [vmem:[%s6000_s14 + $0x2cc] ss:$16 sps:$4 sm:$0xff]   ;;  %v5260_v63 = vld [vmem:[%s6000_s14 + $0x328] ss:$16 sps:$4 sm:$0xff]  }
  0x4b   : > { %3490 = vmatprep.subr.bf16.mxu0 %v5155_v49  ;;  %3834 = vmatprep.subr.bf16.mxu1 %v5157_v50  ;;  %v6098_v47 = vld [vmem:[%s6002_s15 + $0x8] sm:$0xff]  ;;  %v5239_v49 = vld [vmem:[%s6000_s14 + $0x2c0] ss:$16 sps:$4 sm:$0xff]   ;;  %v5265_v0 = vld [vmem:[%s6000_s14 + $0x344] ss:$16 sps:$4 sm:$0xff]  }
  0x4c   : > { %v6101_v48 = vld [vmem:[%s6002_s15 + $0x48] sm:$0xff] }
  0x4d   : > { %v5242_v50 = vld [vmem:[%s6000_s14 + $0x2c8] ss:$16 sps:$4 sm:$0xff]  }
  0x4e   : > { %3491 = vmatpush1.bf16.msra.mxu0 %v5159_v51  ;;  %3835 = vmatpush1.bf16.msra.mxu1 %v5160_v52  ;;  %v4494_v51 = vcombine.high %v6098_v47, %v6101_v48  ;;  %v5247_v52 = vld [vmem:[%s6000_s14 + $0x2e4] ss:$16 sps:$4 sm:$0xff]   ;;  %v5266_v3 = vld [vmem:[%s6000_s14 + $0x348] ss:$16 sps:$4 sm:$0xff]  }
  0x4f   : > { %3492 = vmatprep.subr.bf16.mxu0 %v5161_v53  ;;  %3836 = vmatprep.subr.bf16.mxu1 %v5163_v54  ;;  %v5250_v53 = vld [vmem:[%s6000_s14 + $0x2ec] ss:$16 sps:$4 sm:$0xff]   ;;  %v5245_v54 = vld [vmem:[%s6000_s14 + $0x2e0] ss:$16 sps:$4 sm:$0xff]  }
  0x52   : > { %3493 = vmatpush1.bf16.msra.mxu0 %v5165_v55  ;;  %3837 = vmatpush1.bf16.msra.mxu1 %v5166_v56  ;;  %v5248_v55 = vld [vmem:[%s6000_s14 + $0x2e8] ss:$16 sps:$4 sm:$0xff]   ;;  %v5253_v56 = vld [vmem:[%s6000_s14 + $0x304] ss:$16 sps:$4 sm:$0xff]  }
  0x53   : > { %3494 = vmatprep.subr.bf16.mxu0 %v5167_v57  ;;  %3838 = vmatprep.subr.bf16.mxu1 %v5169_v58  ;;  %v5256_v57 = vld [vmem:[%s6000_s14 + $0x30c] ss:$16 sps:$4 sm:$0xff]   ;;  %v5251_v58 = vld [vmem:[%s6000_s14 + $0x300] ss:$16 sps:$4 sm:$0xff]  }
  0x56   : > { %3495 = vmatpush1.bf16.msra.mxu0 %v5171_v59  ;;  %3839 = vmatpush1.bf16.msra.mxu1 %v5172_v60  ;;  %v5254_v59 = vld [vmem:[%s6000_s14 + $0x308] ss:$16 sps:$4 sm:$0xff]   ;;  %v5259_v60 = vld [vmem:[%s6000_s14 + $0x324] ss:$16 sps:$4 sm:$0xff]  }
  0x57   : > { %3496 = vmatprep.subr.bf16.mxu0 %v5173_v61  ;;  %3840 = vmatprep.subr.bf16.mxu1 %v5175_v62  ;;  %v5262_v61 = vld [vmem:[%s6000_s14 + $0x32c] ss:$16 sps:$4 sm:$0xff]   ;;  %v5257_v62 = vld [vmem:[%s6000_s14 + $0x320] ss:$16 sps:$4 sm:$0xff]  }
  0x5a   : > { %3497 = vmatpush1.bf16.msra.mxu0 %v5177_v1  ;;  %3841 = vmatpush1.bf16.msra.mxu1 %v5178_v2  ;;  %v5268_v1 = vld [vmem:[%s6000_s14 + $0x34c] ss:$16 sps:$4 sm:$0xff]   ;;  %v5263_v2 = vld [vmem:[%s6000_s14 + $0x340] ss:$16 sps:$4 sm:$0xff]  }
  0x5b   : > { %3498 = vmatprep.subr.bf16.mxu0 %v5179_v4  ;;  %3842 = vmatprep.subr.bf16.mxu1 %v5181_v5  ;;  %v5271_v4 = vld [vmem:[%s6000_s14 + $0x364] ss:$16 sps:$4 sm:$0xff]   ;;  %v5274_v5 = vld [vmem:[%s6000_s14 + $0x36c] ss:$16 sps:$4 sm:$0xff]  }
  0x5e   : > { %3499 = vmatpush1.bf16.msra.mxu0 %v5183_v6  ;;  %3843 = vmatpush1.bf16.msra.mxu1 %v5184_v7  ;;  %v5269_v6 = vld [vmem:[%s6000_s14 + $0x360] ss:$16 sps:$4 sm:$0xff]   ;;  %v5272_v7 = vld [vmem:[%s6000_s14 + $0x368] ss:$16 sps:$4 sm:$0xff]  }
  0x5f   : > { %3500 = vmatprep.subr.bf16.mxu0 %v5185_v8  ;;  %3844 = vmatprep.subr.bf16.mxu1 %v5187_v9  ;;  %v5277_v8 = vld [vmem:[%s6000_s14 + $0x384] ss:$16 sps:$4 sm:$0xff]   ;;  %v5280_v9 = vld [vmem:[%s6000_s14 + $0x38c] ss:$16 sps:$4 sm:$0xff]  }
  0x62   : > { %3501 = vmatpush1.bf16.msra.mxu0 %v5189_v10  ;;  %3845 = vmatpush1.bf16.msra.mxu1 %v5190_v11  ;;  %v5275_v10 = vld [vmem:[%s6000_s14 + $0x380] ss:$16 sps:$4 sm:$0xff]   ;;  %v5278_v11 = vld [vmem:[%s6000_s14 + $0x388] ss:$16 sps:$4 sm:$0xff]  }
  0x63   : > { %3502 = vmatprep.subr.bf16.mxu0 %v5191_v12  ;;  %3846 = vmatprep.subr.bf16.mxu1 %v5193_v13  ;;  %v5283_v12 = vld [vmem:[%s6000_s14 + $0x3a4] ss:$16 sps:$4 sm:$0xff]   ;;  %v5286_v13 = vld [vmem:[%s6000_s14 + $0x3ac] ss:$16 sps:$4 sm:$0xff]  }
  0x66   : > { %3503 = vmatpush1.bf16.msra.mxu0 %v5195_v14  ;;  %3847 = vmatpush1.bf16.msra.mxu1 %v5196_v15  ;;  %v5281_v14 = vld [vmem:[%s6000_s14 + $0x3a0] ss:$16 sps:$4 sm:$0xff]   ;;  %v5284_v15 = vld [vmem:[%s6000_s14 + $0x3a8] ss:$16 sps:$4 sm:$0xff]  }
  0x67   : > { %3504 = vmatprep.subr.bf16.mxu0 %v5197_v16  ;;  %3848 = vmatprep.subr.bf16.mxu1 %v5199_v17  ;;  %v5289_v16 = vld [vmem:[%s6000_s14 + $0x3c4] ss:$16 sps:$4 sm:$0xff]   ;;  %v5292_v17 = vld [vmem:[%s6000_s14 + $0x3cc] ss:$16 sps:$4 sm:$0xff]  }
  0x6a   : > { %3505 = vmatpush1.bf16.msra.mxu0 %v5201_v18  ;;  %3849 = vmatpush1.bf16.msra.mxu1 %v5202_v19  ;;  %v5287_v18 = vld [vmem:[%s6000_s14 + $0x3c0] ss:$16 sps:$4 sm:$0xff]   ;;  %v5290_v19 = vld [vmem:[%s6000_s14 + $0x3c8] ss:$16 sps:$4 sm:$0xff]  }
  0x6b   : > { %3517 = vmatprep.subr.bf16.mxu0 %v5205_v20  ;;  %3861 = vmatprep.subr.bf16.mxu1 %v5208_v21  ;;  %v5295_v20 = vld [vmem:[%s6000_s14 + $0x3e4] ss:$16 sps:$4 sm:$0xff]   ;;  %v5298_v21 = vld [vmem:[%s6000_s14 + $0x3ec] ss:$16 sps:$4 sm:$0xff]  }
  0x6d   : > { %3507 = vmatmul.mubr.bf16.vlgmr.msra.gmra.mrb[0].mxu0 %v4491_v22  ;;  %3851 = vmatmul.mubr.bf16.vlgmr.msra.gmra.mrb[0].mxu1 %v4491_v22  ;;  %v5293_v22 = vld [vmem:[%s6000_s14 + $0x3e0] ss:$16 sps:$4 sm:$0xff]  }
  0x6e   : > { %3518 = vmatpush1.bf16.msra.mxu0 %v5203_v23  ;;  %3862 = vmatpush1.bf16.msra.mxu1 %v5206_v24  ;;  %v5296_v23 = vld [vmem:[%s6000_s14 + $0x3e8] ss:$16 sps:$4 sm:$0xff]   ;;  %v5301_v24 = vld [vmem:[%s6000_s14 + $0x404] ss:$16 sps:$4 sm:$0xff]  }
  0x6f   : > { %3519 = vmatprep.subr.bf16.mxu0 %v5211_v25  ;;  %3863 = vmatprep.subr.bf16.mxu1 %v5214_v26  ;;  %v5304_v25 = vld [vmem:[%s6000_s14 + $0x40c] ss:$16 sps:$4 sm:$0xff]   ;;  %v4493_v26 = vcombine.low %v6098_v47, %v6101_v48  ;;  %v5326_v47 = vld [vmem:[%s6000_s14 + $0x488] ss:$16 sps:$4 sm:$0xff]   ;;  %v5331_v48 = vld [vmem:[%s6000_s14 + $0x4a4] ss:$16 sps:$4 sm:$0xff]  }
  0x70   : > { %3549 = vmatprep.mubr.bf16.mxu0 %v4494_v51  ;;  %3893 = vmatprep.mubr.bf16.mxu1 %v4494_v51  ;;  %v5332_v51 = vld [vmem:[%s6000_s14 + $0x4a8] ss:$16 sps:$4 sm:$0xff]  }
  0x72   : > { %3520 = vmatpush1.bf16.msra.mxu0 %v5209_v27  ;;  %3864 = vmatpush1.bf16.msra.mxu1 %v5212_v28  ;;  %v5299_v27 = vld [vmem:[%s6000_s14 + $0x400] ss:$16 sps:$4 sm:$0xff]   ;;  %v5302_v28 = vld [vmem:[%s6000_s14 + $0x408] ss:$16 sps:$4 sm:$0xff]  }
  0x73   : > { %3521 = vmatprep.subr.bf16.mxu0 %v5217_v29  ;;  %3865 = vmatprep.subr.bf16.mxu1 %v5220_v30  ;;  %v5307_v29 = vld [vmem:[%s6000_s14 + $0x424] ss:$16 sps:$4 sm:$0xff]   ;;  %v5310_v30 = vld [vmem:[%s6000_s14 + $0x42c] ss:$16 sps:$4 sm:$0xff]  }
  0x76   : > { %3522 = vmatpush1.bf16.msra.mxu0 %v5215_v31  ;;  %3866 = vmatpush1.bf16.msra.mxu1 %v5218_v32  ;;  %v6152_v31 = vld [vmem:[%s6002_s15 + $0x10] sm:$0xff] }
  0x77   : > { %3523 = vmatprep.subr.bf16.mxu0 %v5223_v33  ;;  %3867 = vmatprep.subr.bf16.mxu1 %v5226_v34  ;;  %v6155_v32 = vld [vmem:[%s6002_s15 + $0x50] sm:$0xff] }
  0x78   : > { %v4496_v33 = vcombine.high %v6152_v31, %v6155_v32  ;;  %v5305_v34 = vld [vmem:[%s6000_s14 + $0x420] ss:$16 sps:$4 sm:$0xff]  }
  0x7a   : > { %3524 = vmatpush1.bf16.msra.mxu0 %v5221_v35  ;;  %3868 = vmatpush1.bf16.msra.mxu1 %v5224_v36  ;;  %v5308_v35 = vld [vmem:[%s6000_s14 + $0x428] ss:$16 sps:$4 sm:$0xff]   ;;  %v5313_v36 = vld [vmem:[%s6000_s14 + $0x444] ss:$16 sps:$4 sm:$0xff]  }
  0x7b   : > { %3525 = vmatprep.subr.bf16.mxu0 %v5229_v37  ;;  %3869 = vmatprep.subr.bf16.mxu1 %v5232_v38  ;;  %v5316_v37 = vld [vmem:[%s6000_s14 + $0x44c] ss:$16 sps:$4 sm:$0xff]   ;;  %v5311_v38 = vld [vmem:[%s6000_s14 + $0x440] ss:$16 sps:$4 sm:$0xff]  }
  0x7e   : > { %3526 = vmatpush1.bf16.msra.mxu0 %v5227_v39  ;;  %3870 = vmatpush1.bf16.msra.mxu1 %v5230_v40  ;;  %v5314_v39 = vld [vmem:[%s6000_s14 + $0x448] ss:$16 sps:$4 sm:$0xff]   ;;  %v5319_v40 = vld [vmem:[%s6000_s14 + $0x464] ss:$16 sps:$4 sm:$0xff]  }
  0x7f   : > { %3527 = vmatprep.subr.bf16.mxu0 %v5235_v41  ;;  %3871 = vmatprep.subr.bf16.mxu1 %v5238_v42  ;;  %v5322_v41 = vld [vmem:[%s6000_s14 + $0x46c] ss:$16 sps:$4 sm:$0xff]   ;;  %v5317_v42 = vld [vmem:[%s6000_s14 + $0x460] ss:$16 sps:$4 sm:$0xff]  }
  0x82   : > { %3528 = vmatpush1.bf16.msra.mxu0 %v5233_v43  ;;  %3872 = vmatpush1.bf16.msra.mxu1 %v5236_v44  ;;  %v5320_v43 = vld [vmem:[%s6000_s14 + $0x468] ss:$16 sps:$4 sm:$0xff]   ;;  %v5325_v44 = vld [vmem:[%s6000_s14 + $0x484] ss:$16 sps:$4 sm:$0xff]  }
  0x83   : > { %3529 = vmatprep.subr.bf16.mxu0 %v5241_v45  ;;  %3873 = vmatprep.subr.bf16.mxu1 %v5244_v46  ;;  %v5328_v45 = vld [vmem:[%s6000_s14 + $0x48c] ss:$16 sps:$4 sm:$0xff]   ;;  %v5323_v46 = vld [vmem:[%s6000_s14 + $0x480] ss:$16 sps:$4 sm:$0xff]  }
  0x86   : > { %3530 = vmatpush1.bf16.msra.mxu0 %v5239_v49  ;;  %3874 = vmatpush1.bf16.msra.mxu1 %v5242_v50  ;;  %v5334_v49 = vld [vmem:[%s6000_s14 + $0x4ac] ss:$16 sps:$4 sm:$0xff]   ;;  %v5329_v50 = vld [vmem:[%s6000_s14 + $0x4a0] ss:$16 sps:$4 sm:$0xff]  }
  0x87   : > { %3531 = vmatprep.subr.bf16.mxu0 %v5247_v52  ;;  %3875 = vmatprep.subr.bf16.mxu1 %v5250_v53  ;;  %v5337_v52 = vld [vmem:[%s6000_s14 + $0x4c4] ss:$16 sps:$4 sm:$0xff]   ;;  %v5340_v53 = vld [vmem:[%s6000_s14 + $0x4cc] ss:$16 sps:$4 sm:$0xff]  }
  0x8a   : > { %3532 = vmatpush1.bf16.msra.mxu0 %v5245_v54  ;;  %3876 = vmatpush1.bf16.msra.mxu1 %v5248_v55  ;;  %v5335_v54 = vld [vmem:[%s6000_s14 + $0x4c0] ss:$16 sps:$4 sm:$0xff]   ;;  %v5338_v55 = vld [vmem:[%s6000_s14 + $0x4c8] ss:$16 sps:$4 sm:$0xff]  }
  0x8b   : > { %3533 = vmatprep.subr.bf16.mxu0 %v5253_v56  ;;  %3877 = vmatprep.subr.bf16.mxu1 %v5256_v57  ;;  %v5343_v56 = vld [vmem:[%s6000_s14 + $0x4e4] ss:$16 sps:$4 sm:$0xff]   ;;  %v5346_v57 = vld [vmem:[%s6000_s14 + $0x4ec] ss:$16 sps:$4 sm:$0xff]  }
  0x8e   : > { %3534 = vmatpush1.bf16.msra.mxu0 %v5251_v58  ;;  %3878 = vmatpush1.bf16.msra.mxu1 %v5254_v59  ;;  %v5341_v58 = vld [vmem:[%s6000_s14 + $0x4e0] ss:$16 sps:$4 sm:$0xff]   ;;  %v5344_v59 = vld [vmem:[%s6000_s14 + $0x4e8] ss:$16 sps:$4 sm:$0xff]  }
  0x8f   : > { %3535 = vmatprep.subr.bf16.mxu0 %v5259_v60  ;;  %3879 = vmatprep.subr.bf16.mxu1 %v5262_v61  ;;  %v5349_v60 = vld [vmem:[%s6000_s14 + $0x504] ss:$16 sps:$4 sm:$0xff]   ;;  %v5352_v61 = vld [vmem:[%s6000_s14 + $0x50c] ss:$16 sps:$4 sm:$0xff]  }
  0x92   : > { %3536 = vmatpush1.bf16.msra.mxu0 %v5257_v62  ;;  %3880 = vmatpush1.bf16.msra.mxu1 %v5260_v63  ;;  %v5347_v62 = vld [vmem:[%s6000_s14 + $0x500] ss:$16 sps:$4 sm:$0xff]   ;;  %v5350_v63 = vld [vmem:[%s6000_s14 + $0x508] ss:$16 sps:$4 sm:$0xff]  }
  0x93   : > { %3537 = vmatprep.subr.bf16.mxu0 %v5265_v0  ;;  %3881 = vmatprep.subr.bf16.mxu1 %v5268_v1  ;;  %v5355_v0 = vld [vmem:[%s6000_s14 + $0x524] ss:$16 sps:$4 sm:$0xff]   ;;  %v5358_v1 = vld [vmem:[%s6000_s14 + $0x52c] ss:$16 sps:$4 sm:$0xff]  }
  0x96   : > { %3538 = vmatpush1.bf16.msra.mxu0 %v5263_v2  ;;  %3882 = vmatpush1.bf16.msra.mxu1 %v5266_v3  ;;  %v5353_v2 = vld [vmem:[%s6000_s14 + $0x520] ss:$16 sps:$4 sm:$0xff]   ;;  %v5356_v3 = vld [vmem:[%s6000_s14 + $0x528] ss:$16 sps:$4 sm:$0xff]  }
  0x97   : > { %3539 = vmatprep.subr.bf16.mxu0 %v5271_v4  ;;  %3883 = vmatprep.subr.bf16.mxu1 %v5274_v5  ;;  %v5361_v4 = vld [vmem:[%s6000_s14 + $0x544] ss:$16 sps:$4 sm:$0xff]   ;;  %v5364_v5 = vld [vmem:[%s6000_s14 + $0x54c] ss:$16 sps:$4 sm:$0xff]  }
  0x9a   : > { %3540 = vmatpush1.bf16.msra.mxu0 %v5269_v6  ;;  %3884 = vmatpush1.bf16.msra.mxu1 %v5272_v7  ;;  %v5359_v6 = vld [vmem:[%s6000_s14 + $0x540] ss:$16 sps:$4 sm:$0xff]   ;;  %v5362_v7 = vld [vmem:[%s6000_s14 + $0x548] ss:$16 sps:$4 sm:$0xff]  }
  0x9b   : > { %3541 = vmatprep.subr.bf16.mxu0 %v5277_v8  ;;  %3885 = vmatprep.subr.bf16.mxu1 %v5280_v9  ;;  %v5367_v8 = vld [vmem:[%s6000_s14 + $0x564] ss:$16 sps:$4 sm:$0xff]   ;;  %v5370_v9 = vld [vmem:[%s6000_s14 + $0x56c] ss:$16 sps:$4 sm:$0xff]  }
  0x9e   : > { %3542 = vmatpush1.bf16.msra.mxu0 %v5275_v10  ;;  %3886 = vmatpush1.bf16.msra.mxu1 %v5278_v11  ;;  %v5365_v10 = vld [vmem:[%s6000_s14 + $0x560] ss:$16 sps:$4 sm:$0xff]   ;;  %v5368_v11 = vld [vmem:[%s6000_s14 + $0x568] ss:$16 sps:$4 sm:$0xff]  }
  0x9f   : > { %3543 = vmatprep.subr.bf16.mxu0 %v5283_v12  ;;  %3887 = vmatprep.subr.bf16.mxu1 %v5286_v13  ;;  %v5373_v12 = vld [vmem:[%s6000_s14 + $0x584] ss:$16 sps:$4 sm:$0xff]   ;;  %v5376_v13 = vld [vmem:[%s6000_s14 + $0x58c] ss:$16 sps:$4 sm:$0xff]  }
  0xa2   : > { %3544 = vmatpush1.bf16.msra.mxu0 %v5281_v14  ;;  %3888 = vmatpush1.bf16.msra.mxu1 %v5284_v15  ;;  %v5371_v14 = vld [vmem:[%s6000_s14 + $0x580] ss:$16 sps:$4 sm:$0xff]   ;;  %v5374_v15 = vld [vmem:[%s6000_s14 + $0x588] ss:$16 sps:$4 sm:$0xff]  }
  0xa3   : > { %3545 = vmatprep.subr.bf16.mxu0 %v5289_v16  ;;  %3889 = vmatprep.subr.bf16.mxu1 %v5292_v17  ;;  %v5379_v16 = vld [vmem:[%s6000_s14 + $0x5a4] ss:$16 sps:$4 sm:$0xff]   ;;  %v5382_v17 = vld [vmem:[%s6000_s14 + $0x5ac] ss:$16 sps:$4 sm:$0xff]  }
  0xa6   : > { %3546 = vmatpush1.bf16.msra.mxu0 %v5287_v18  ;;  %3890 = vmatpush1.bf16.msra.mxu1 %v5290_v19  ;;  %v5377_v18 = vld [vmem:[%s6000_s14 + $0x5a0] ss:$16 sps:$4 sm:$0xff]   ;;  %v5380_v19 = vld [vmem:[%s6000_s14 + $0x5a8] ss:$16 sps:$4 sm:$0xff]  }
  0xa7   : > { %3547 = vmatprep.subr.bf16.mxu0 %v5295_v20  ;;  %3891 = vmatprep.subr.bf16.mxu1 %v5298_v21  ;;  %v5385_v20 = vld [vmem:[%s6000_s14 + $0x5c4] ss:$16 sps:$4 sm:$0xff]   ;;  %v5388_v21 = vld [vmem:[%s6000_s14 + $0x5cc] ss:$16 sps:$4 sm:$0xff]  }
  0xaa   : > { %3548 = vmatpush1.bf16.msra.mxu0 %v5293_v22  ;;  %3892 = vmatpush1.bf16.msra.mxu1 %v5296_v23  ;;  %v5383_v22 = vld [vmem:[%s6000_s14 + $0x5c0] ss:$16 sps:$4 sm:$0xff]   ;;  %v5386_v23 = vld [vmem:[%s6000_s14 + $0x5c8] ss:$16 sps:$4 sm:$0xff]  }
  0xab   : > { %3560 = vmatprep.subr.bf16.mxu0 %v5301_v24  ;;  %3904 = vmatprep.subr.bf16.mxu1 %v5304_v25  ;;  %v5391_v24 = vld [vmem:[%s6000_s14 + $0x5e4] ss:$16 sps:$4 sm:$0xff]   ;;  %v5394_v25 = vld [vmem:[%s6000_s14 + $0x5ec] ss:$16 sps:$4 sm:$0xff]  }
  0xad   : > { %3550 = vmatmul.mubr.bf16.vlgmr.msra.gmra.mrb[0].mxu0 %v4493_v26  ;;  %3894 = vmatmul.mubr.bf16.vlgmr.msra.gmra.mrb[0].mxu1 %v4493_v26  ;;  %v5389_v26 = vld [vmem:[%s6000_s14 + $0x5e0] ss:$16 sps:$4 sm:$0xff]  }
  0xae   : > { %3561 = vmatpush1.bf16.msra.mxu0 %v5299_v27  ;;  %3905 = vmatpush1.bf16.msra.mxu1 %v5302_v28  ;;  %v5392_v27 = vld [vmem:[%s6000_s14 + $0x5e8] ss:$16 sps:$4 sm:$0xff]   ;;  %v5397_v28 = vld [vmem:[%s6000_s14 + $0x604] ss:$16 sps:$4 sm:$0xff]  }
  0xaf   : > { %3562 = vmatprep.subr.bf16.mxu0 %v5307_v29  ;;  %3906 = vmatprep.subr.bf16.mxu1 %v5310_v30  ;;  %v5400_v29 = vld [vmem:[%s6000_s14 + $0x60c] ss:$16 sps:$4 sm:$0xff]   ;;  %v5395_v30 = vld [vmem:[%s6000_s14 + $0x600] ss:$16 sps:$4 sm:$0xff]  }
  0xb0   : > { %3592 = vmatprep.mubr.bf16.mxu0 %v4496_v33  ;;  %3936 = vmatprep.mubr.bf16.mxu1 %v4496_v33  ;;  %v5398_v33 = vld [vmem:[%s6000_s14 + $0x608] ss:$16 sps:$4 sm:$0xff]  }
  0xb2   : > { %3563 = vmatpush1.bf16.msra.mxu0 %v5305_v34  ;;  %3907 = vmatpush1.bf16.msra.mxu1 %v5308_v35  ;;  %v4495_v34 = vcombine.low %v6152_v31, %v6155_v32  ;;  %v6224_v35 = vld [vmem:[%s6002_s15 + $0x18] sm:$0xff]  ;;  %v5401_v31 = vld [vmem:[%s6000_s14 + $0x620] ss:$16 sps:$4 sm:$0xff]  }
  0xb3   : > { %3564 = vmatprep.subr.bf16.mxu0 %v5313_v36  ;;  %3908 = vmatprep.subr.bf16.mxu1 %v5316_v37  ;;  %v6227_v36 = vld [vmem:[%s6002_s15 + $0x58] sm:$0xff]  ;;  %v5403_v37 = vld [vmem:[%s6000_s14 + $0x624] ss:$16 sps:$4 sm:$0xff]  }
  0xb4   : > { %v5404_v32 = vld [vmem:[%s6000_s14 + $0x628] ss:$16 sps:$4 sm:$0xff]  }
  0xb6   : > { %3565 = vmatpush1.bf16.msra.mxu0 %v5311_v38  ;;  %3909 = vmatpush1.bf16.msra.mxu1 %v5314_v39  ;;  %v5406_v38 = vld [vmem:[%s6000_s14 + $0x62c] ss:$16 sps:$4 sm:$0xff]   ;;  %v4498_v39 = vcombine.high %v6224_v35, %v6227_v36 }
  0xb7   : > { %3566 = vmatprep.subr.bf16.mxu0 %v5319_v40  ;;  %3910 = vmatprep.subr.bf16.mxu1 %v5322_v41  ;;  %v5409_v40 = vld [vmem:[%s6000_s14 + $0x644] ss:$16 sps:$4 sm:$0xff]   ;;  %v5412_v41 = vld [vmem:[%s6000_s14 + $0x64c] ss:$16 sps:$4 sm:$0xff]  }
  0xba   : > { %3567 = vmatpush1.bf16.msra.mxu0 %v5317_v42  ;;  %3911 = vmatpush1.bf16.msra.mxu1 %v5320_v43  ;;  %v5407_v42 = vld [vmem:[%s6000_s14 + $0x640] ss:$16 sps:$4 sm:$0xff]   ;;  %v5410_v43 = vld [vmem:[%s6000_s14 + $0x648] ss:$16 sps:$4 sm:$0xff]  }
  0xbb   : > { %3568 = vmatprep.subr.bf16.mxu0 %v5325_v44  ;;  %3912 = vmatprep.subr.bf16.mxu1 %v5328_v45  ;;  %v5415_v44 = vld [vmem:[%s6000_s14 + $0x664] ss:$16 sps:$4 sm:$0xff]   ;;  %v5418_v45 = vld [vmem:[%s6000_s14 + $0x66c] ss:$16 sps:$4 sm:$0xff]  }
  0xbe   : > { %3569 = vmatpush1.bf16.msra.mxu0 %v5323_v46  ;;  %3913 = vmatpush1.bf16.msra.mxu1 %v5326_v47  ;;  %v5413_v46 = vld [vmem:[%s6000_s14 + $0x660] ss:$16 sps:$4 sm:$0xff]   ;;  %v5416_v47 = vld [vmem:[%s6000_s14 + $0x668] ss:$16 sps:$4 sm:$0xff]  }
  0xbf   : > { %3570 = vmatprep.subr.bf16.mxu0 %v5331_v48  ;;  %3914 = vmatprep.subr.bf16.mxu1 %v5334_v49  ;;  %v5421_v48 = vld [vmem:[%s6000_s14 + $0x684] ss:$16 sps:$4 sm:$0xff]   ;;  %v5424_v49 = vld [vmem:[%s6000_s14 + $0x68c] ss:$16 sps:$4 sm:$0xff]  }
  0xc2   : > { %3571 = vmatpush1.bf16.msra.mxu0 %v5329_v50  ;;  %3915 = vmatpush1.bf16.msra.mxu1 %v5332_v51  ;;  %v5419_v50 = vld [vmem:[%s6000_s14 + $0x680] ss:$16 sps:$4 sm:$0xff]   ;;  %v5422_v51 = vld [vmem:[%s6000_s14 + $0x688] ss:$16 sps:$4 sm:$0xff]  }
  0xc3   : > { %3572 = vmatprep.subr.bf16.mxu0 %v5337_v52  ;;  %3916 = vmatprep.subr.bf16.mxu1 %v5340_v53  ;;  %v5427_v52 = vld [vmem:[%s6000_s14 + $0x6a4] ss:$16 sps:$4 sm:$0xff]   ;;  %v5430_v53 = vld [vmem:[%s6000_s14 + $0x6ac] ss:$16 sps:$4 sm:$0xff]  }
  0xc6   : > { %3573 = vmatpush1.bf16.msra.mxu0 %v5335_v54  ;;  %3917 = vmatpush1.bf16.msra.mxu1 %v5338_v55  ;;  %v5425_v54 = vld [vmem:[%s6000_s14 + $0x6a0] ss:$16 sps:$4 sm:$0xff]   ;;  %v5428_v55 = vld [vmem:[%s6000_s14 + $0x6a8] ss:$16 sps:$4 sm:$0xff]  }
  0xc7   : > { %3574 = vmatprep.subr.bf16.mxu0 %v5343_v56  ;;  %3918 = vmatprep.subr.bf16.mxu1 %v5346_v57  ;;  %v5433_v56 = vld [vmem:[%s6000_s14 + $0x6c4] ss:$16 sps:$4 sm:$0xff]   ;;  %v5436_v57 = vld [vmem:[%s6000_s14 + $0x6cc] ss:$16 sps:$4 sm:$0xff]  }
  0xca   : > { %3575 = vmatpush1.bf16.msra.mxu0 %v5341_v58  ;;  %3919 = vmatpush1.bf16.msra.mxu1 %v5344_v59  ;;  %v5431_v58 = vld [vmem:[%s6000_s14 + $0x6c0] ss:$16 sps:$4 sm:$0xff]   ;;  %v5434_v59 = vld [vmem:[%s6000_s14 + $0x6c8] ss:$16 sps:$4 sm:$0xff]  }
  0xcb   : > { %3576 = vmatprep.subr.bf16.mxu0 %v5349_v60  ;;  %3920 = vmatprep.subr.bf16.mxu1 %v5352_v61  ;;  %v5439_v60 = vld [vmem:[%s6000_s14 + $0x6e4] ss:$16 sps:$4 sm:$0xff]   ;;  %v5442_v61 = vld [vmem:[%s6000_s14 + $0x6ec] ss:$16 sps:$4 sm:$0xff]  }
  0xce   : > { %3577 = vmatpush1.bf16.msra.mxu0 %v5347_v62  ;;  %3921 = vmatpush1.bf16.msra.mxu1 %v5350_v63  ;;  %v5437_v62 = vld [vmem:[%s6000_s14 + $0x6e0] ss:$16 sps:$4 sm:$0xff]   ;;  %v5440_v63 = vld [vmem:[%s6000_s14 + $0x6e8] ss:$16 sps:$4 sm:$0xff]  }
  0xcf   : > { %3578 = vmatprep.subr.bf16.mxu0 %v5355_v0  ;;  %3922 = vmatprep.subr.bf16.mxu1 %v5358_v1  ;;  %v5445_v0 = vld [vmem:[%s6000_s14 + $0x704] ss:$16 sps:$4 sm:$0xff]   ;;  %v5448_v1 = vld [vmem:[%s6000_s14 + $0x70c] ss:$16 sps:$4 sm:$0xff]  }
  0xd2   : > { %3579 = vmatpush1.bf16.msra.mxu0 %v5353_v2  ;;  %3923 = vmatpush1.bf16.msra.mxu1 %v5356_v3  ;;  %v5443_v2 = vld [vmem:[%s6000_s14 + $0x700] ss:$16 sps:$4 sm:$0xff]   ;;  %v5446_v3 = vld [vmem:[%s6000_s14 + $0x708] ss:$16 sps:$4 sm:$0xff]  }
  0xd3   : > { %3580 = vmatprep.subr.bf16.mxu0 %v5361_v4  ;;  %3924 = vmatprep.subr.bf16.mxu1 %v5364_v5  ;;  %v5451_v4 = vld [vmem:[%s6000_s14 + $0x724] ss:$16 sps:$4 sm:$0xff]   ;;  %v5454_v5 = vld [vmem:[%s6000_s14 + $0x72c] ss:$16 sps:$4 sm:$0xff]  }
  0xd6   : > { %3581 = vmatpush1.bf16.msra.mxu0 %v5359_v6  ;;  %3925 = vmatpush1.bf16.msra.mxu1 %v5362_v7  ;;  %v5449_v6 = vld [vmem:[%s6000_s14 + $0x720] ss:$16 sps:$4 sm:$0xff]   ;;  %v5452_v7 = vld [vmem:[%s6000_s14 + $0x728] ss:$16 sps:$4 sm:$0xff]  }
  0xd7   : > { %3582 = vmatprep.subr.bf16.mxu0 %v5367_v8  ;;  %3926 = vmatprep.subr.bf16.mxu1 %v5370_v9  ;;  %v5457_v8 = vld [vmem:[%s6000_s14 + $0x744] ss:$16 sps:$4 sm:$0xff]   ;;  %v5460_v9 = vld [vmem:[%s6000_s14 + $0x74c] ss:$16 sps:$4 sm:$0xff]  }
  0xda   : > { %3583 = vmatpush1.bf16.msra.mxu0 %v5365_v10  ;;  %3927 = vmatpush1.bf16.msra.mxu1 %v5368_v11  ;;  %v5455_v10 = vld [vmem:[%s6000_s14 + $0x740] ss:$16 sps:$4 sm:$0xff]   ;;  %v5458_v11 = vld [vmem:[%s6000_s14 + $0x748] ss:$16 sps:$4 sm:$0xff]  }
  0xdb   : > { %3584 = vmatprep.subr.bf16.mxu0 %v5373_v12  ;;  %3928 = vmatprep.subr.bf16.mxu1 %v5376_v13  ;;  %v5463_v12 = vld [vmem:[%s6000_s14 + $0x764] ss:$16 sps:$4 sm:$0xff]   ;;  %v5466_v13 = vld [vmem:[%s6000_s14 + $0x76c] ss:$16 sps:$4 sm:$0xff]  }
  0xde   : > { %3585 = vmatpush1.bf16.msra.mxu0 %v5371_v14  ;;  %3929 = vmatpush1.bf16.msra.mxu1 %v5374_v15  ;;  %v5461_v14 = vld [vmem:[%s6000_s14 + $0x760] ss:$16 sps:$4 sm:$0xff]   ;;  %v5464_v15 = vld [vmem:[%s6000_s14 + $0x768] ss:$16 sps:$4 sm:$0xff]  }
  0xdf   : > { %3586 = vmatprep.subr.bf16.mxu0 %v5379_v16  ;;  %3930 = vmatprep.subr.bf16.mxu1 %v5382_v17  ;;  %v5469_v16 = vld [vmem:[%s6000_s14 + $0x784] ss:$16 sps:$4 sm:$0xff]   ;;  %v5472_v17 = vld [vmem:[%s6000_s14 + $0x78c] ss:$16 sps:$4 sm:$0xff]  }
  0xe2   : > { %3587 = vmatpush1.bf16.msra.mxu0 %v5377_v18  ;;  %3931 = vmatpush1.bf16.msra.mxu1 %v5380_v19  ;;  %v5467_v18 = vld [vmem:[%s6000_s14 + $0x780] ss:$16 sps:$4 sm:$0xff]   ;;  %v5470_v19 = vld [vmem:[%s6000_s14 + $0x788] ss:$16 sps:$4 sm:$0xff]  }
  0xe3   : > { %3588 = vmatprep.subr.bf16.mxu0 %v5385_v20  ;;  %3932 = vmatprep.subr.bf16.mxu1 %v5388_v21  ;;  %v5475_v20 = vld [vmem:[%s6000_s14 + $0x7a4] ss:$16 sps:$4 sm:$0xff]   ;;  %v5478_v21 = vld [vmem:[%s6000_s14 + $0x7ac] ss:$16 sps:$4 sm:$0xff]  }
  0xe6   : > { %3589 = vmatpush1.bf16.msra.mxu0 %v5383_v22  ;;  %3933 = vmatpush1.bf16.msra.mxu1 %v5386_v23  ;;  %v5473_v22 = vld [vmem:[%s6000_s14 + $0x7a0] ss:$16 sps:$4 sm:$0xff]   ;;  %v5476_v23 = vld [vmem:[%s6000_s14 + $0x7a8] ss:$16 sps:$4 sm:$0xff]  }
  0xe7   : > { %3590 = vmatprep.subr.bf16.mxu0 %v5391_v24  ;;  %3934 = vmatprep.subr.bf16.mxu1 %v5394_v25  ;;  %v5481_v24 = vld [vmem:[%s6000_s14 + $0x7c4] ss:$16 sps:$4 sm:$0xff]   ;;  %v5484_v25 = vld [vmem:[%s6000_s14 + $0x7cc] ss:$16 sps:$4 sm:$0xff]  }
  0xea   : > { %3591 = vmatpush1.bf16.msra.mxu0 %v5389_v26  ;;  %3935 = vmatpush1.bf16.msra.mxu1 %v5392_v27  ;;  %v5479_v26 = vld [vmem:[%s6000_s14 + $0x7c0] ss:$16 sps:$4 sm:$0xff]   ;;  %v5482_v27 = vld [vmem:[%s6000_s14 + $0x7c8] ss:$16 sps:$4 sm:$0xff]  }
  0xeb   : > { %3603 = vmatprep.subr.bf16.mxu0 %v5397_v28  ;;  %3947 = vmatprep.subr.bf16.mxu1 %v5400_v29  ;;  %v5487_v28 = vld [vmem:[%s6000_s14 + $0x7e4] ss:$16 sps:$4 sm:$0xff]   ;;  %v5490_v29 = vld [vmem:[%s6000_s14 + $0x7ec] ss:$16 sps:$4 sm:$0xff]  }
  0xed   : > { %3593 = vmatmul.mubr.bf16.vlgmr.msra.gmra.mrb[0].mxu0 %v4495_v34  ;;  %3937 = vmatmul.mubr.bf16.vlgmr.msra.gmra.mrb[0].mxu1 %v4495_v34  ;;  %v5493_v34 = vld [vmem:[%s6000_s14 + $0x804] ss:$16 sps:$4 sm:$0xff]  }
  0xee   : > { %3604 = vmatpush1.bf16.msra.mxu0 %v5395_v30  ;;  %3948 = vmatpush1.bf16.msra.mxu1 %v5398_v33  ;;  %v5485_v30 = vld [vmem:[%s6000_s14 + $0x7e0] ss:$16 sps:$4 sm:$0xff]   ;;  %v5488_v33 = vld [vmem:[%s6000_s14 + $0x7e8] ss:$16 sps:$4 sm:$0xff]  }
  0xef   : > { %3605 = vmatprep.subr.bf16.mxu0 %v5403_v37  ;;  %3949 = vmatprep.subr.bf16.mxu1 %v5406_v38  ;;  %v5496_v37 = vld [vmem:[%s6000_s14 + $0x80c] ss:$16 sps:$4 sm:$0xff]   ;;  %v6294_v38 = vld [vmem:[%s6002_s15 + $0x20] sm:$0xff] }
  0xf0   : > { %3635 = vmatprep.mubr.bf16.mxu0 %v4498_v39  ;;  %3979 = vmatprep.mubr.bf16.mxu1 %v4498_v39  ;;  %v4497_v39 = vcombine.low %v6224_v35, %v6227_v36  ;;  %v5497_v35 = vld [vmem:[%s6000_s14 + $0x820] ss:$16 sps:$4 sm:$0xff]   ;;  %v5500_v36 = vld [vmem:[%s6000_s14 + $0x828] ss:$16 sps:$4 sm:$0xff]  }
  0xf2   : > { %3606 = vmatpush1.bf16.msra.mxu0 %v5401_v31  ;;  %3950 = vmatpush1.bf16.msra.mxu1 %v5404_v32  ;;  %v6299_v31 = vld [vmem:[%s6002_s15 + $0x60] sm:$0xff] }
  0xf3   : > { %3607 = vmatprep.subr.bf16.mxu0 %v5409_v40  ;;  %3951 = vmatprep.subr.bf16.mxu1 %v5412_v41  ;;  %v5491_v32 = vld [vmem:[%s6000_s14 + $0x800] ss:$16 sps:$4 sm:$0xff]   ;;  %v5494_v40 = vld [vmem:[%s6000_s14 + $0x808] ss:$16 sps:$4 sm:$0xff]   ;;  %v5499_v41 = vld [vmem:[%s6000_s14 + $0x824] ss:$16 sps:$4 sm:$0xff]  }
  0xf6   : > { %3608 = vmatpush1.bf16.msra.mxu0 %v5407_v42  ;;  %3952 = vmatpush1.bf16.msra.mxu1 %v5410_v43  ;;  %v5502_v42 = vld [vmem:[%s6000_s14 + $0x82c] ss:$16 sps:$4 sm:$0xff]   ;;  %v4500_v43 = vcombine.high %v6294_v38, %v6299_v31 }
  0xf7   : > { %3609 = vmatprep.subr.bf16.mxu0 %v5415_v44  ;;  %3953 = vmatprep.subr.bf16.mxu1 %v5418_v45  ;;  %v5505_v44 = vld [vmem:[%s6000_s14 + $0x844] ss:$16 sps:$4 sm:$0xff]   ;;  %v5508_v45 = vld [vmem:[%s6000_s14 + $0x84c] ss:$16 sps:$4 sm:$0xff]  }
  0xfa   : > { %3610 = vmatpush1.bf16.msra.mxu0 %v5413_v46  ;;  %3954 = vmatpush1.bf16.msra.mxu1 %v5416_v47  ;;  %v5503_v46 = vld [vmem:[%s6000_s14 + $0x840] ss:$16 sps:$4 sm:$0xff]   ;;  %v5506_v47 = vld [vmem:[%s6000_s14 + $0x848] ss:$16 sps:$4 sm:$0xff]  }
  0xfb   : > { %3611 = vmatprep.subr.bf16.mxu0 %v5421_v48  ;;  %3955 = vmatprep.subr.bf16.mxu1 %v5424_v49  ;;  %v5511_v48 = vld [vmem:[%s6000_s14 + $0x864] ss:$16 sps:$4 sm:$0xff]   ;;  %v5514_v49 = vld [vmem:[%s6000_s14 + $0x86c] ss:$16 sps:$4 sm:$0xff]  }
  0xfe   : > { %3612 = vmatpush1.bf16.msra.mxu0 %v5419_v50  ;;  %3956 = vmatpush1.bf16.msra.mxu1 %v5422_v51  ;;  %v5509_v50 = vld [vmem:[%s6000_s14 + $0x860] ss:$16 sps:$4 sm:$0xff]   ;;  %v5512_v51 = vld [vmem:[%s6000_s14 + $0x868] ss:$16 sps:$4 sm:$0xff]  }
  0xff   : > { %3613 = vmatprep.subr.bf16.mxu0 %v5427_v52  ;;  %3957 = vmatprep.subr.bf16.mxu1 %v5430_v53  ;;  %v5517_v52 = vld [vmem:[%s6000_s14 + $0x884] ss:$16 sps:$4 sm:$0xff]   ;;  %v5520_v53 = vld [vmem:[%s6000_s14 + $0x88c] ss:$16 sps:$4 sm:$0xff]  }
 0x102   : > { %3614 = vmatpush1.bf16.msra.mxu0 %v5425_v54  ;;  %3958 = vmatpush1.bf16.msra.mxu1 %v5428_v55  ;;  %v5515_v54 = vld [vmem:[%s6000_s14 + $0x880] ss:$16 sps:$4 sm:$0xff]   ;;  %v5518_v55 = vld [vmem:[%s6000_s14 + $0x888] ss:$16 sps:$4 sm:$0xff]  }
 0x103   : > { %3615 = vmatprep.subr.bf16.mxu0 %v5433_v56  ;;  %3959 = vmatprep.subr.bf16.mxu1 %v5436_v57  ;;  %v5523_v56 = vld [vmem:[%s6000_s14 + $0x8a4] ss:$16 sps:$4 sm:$0xff]   ;;  %v5526_v57 = vld [vmem:[%s6000_s14 + $0x8ac] ss:$16 sps:$4 sm:$0xff]  }
 0x106   : > { %3616 = vmatpush1.bf16.msra.mxu0 %v5431_v58  ;;  %3960 = vmatpush1.bf16.msra.mxu1 %v5434_v59  ;;  %v5521_v58 = vld [vmem:[%s6000_s14 + $0x8a0] ss:$16 sps:$4 sm:$0xff]   ;;  %v5524_v59 = vld [vmem:[%s6000_s14 + $0x8a8] ss:$16 sps:$4 sm:$0xff]  }
 0x107   : > { %3617 = vmatprep.subr.bf16.mxu0 %v5439_v60  ;;  %3961 = vmatprep.subr.bf16.mxu1 %v5442_v61  ;;  %v5529_v60 = vld [vmem:[%s6000_s14 + $0x8c4] ss:$16 sps:$4 sm:$0xff]   ;;  %v5532_v61 = vld [vmem:[%s6000_s14 + $0x8cc] ss:$16 sps:$4 sm:$0xff]  }
 0x10a   : > { %3618 = vmatpush1.bf16.msra.mxu0 %v5437_v62  ;;  %3962 = vmatpush1.bf16.msra.mxu1 %v5440_v63  ;;  %v5527_v62 = vld [vmem:[%s6000_s14 + $0x8c0] ss:$16 sps:$4 sm:$0xff]   ;;  %v5530_v63 = vld [vmem:[%s6000_s14 + $0x8c8] ss:$16 sps:$4 sm:$0xff]  }
 0x10b   : > { %3619 = vmatprep.subr.bf16.mxu0 %v5445_v0  ;;  %3963 = vmatprep.subr.bf16.mxu1 %v5448_v1  ;;  %v5535_v0 = vld [vmem:[%s6000_s14 + $0x8e4] ss:$16 sps:$4 sm:$0xff]   ;;  %v5538_v1 = vld [vmem:[%s6000_s14 + $0x8ec] ss:$16 sps:$4 sm:$0xff]  }
 0x10e   : > { %3620 = vmatpush1.bf16.msra.mxu0 %v5443_v2  ;;  %3964 = vmatpush1.bf16.msra.mxu1 %v5446_v3  ;;  %v5533_v2 = vld [vmem:[%s6000_s14 + $0x8e0] ss:$16 sps:$4 sm:$0xff]   ;;  %v5536_v3 = vld [vmem:[%s6000_s14 + $0x8e8] ss:$16 sps:$4 sm:$0xff]  }
 0x10f   : > { %3621 = vmatprep.subr.bf16.mxu0 %v5451_v4  ;;  %3965 = vmatprep.subr.bf16.mxu1 %v5454_v5  ;;  %v5541_v4 = vld [vmem:[%s6000_s14 + $0x904] ss:$16 sps:$4 sm:$0xff]   ;;  %v5544_v5 = vld [vmem:[%s6000_s14 + $0x90c] ss:$16 sps:$4 sm:$0xff]  }
 0x112   : > { %3622 = vmatpush1.bf16.msra.mxu0 %v5449_v6  ;;  %3966 = vmatpush1.bf16.msra.mxu1 %v5452_v7  ;;  %v5539_v6 = vld [vmem:[%s6000_s14 + $0x900] ss:$16 sps:$4 sm:$0xff]   ;;  %v5542_v7 = vld [vmem:[%s6000_s14 + $0x908] ss:$16 sps:$4 sm:$0xff]  }
 0x113   : > { %3623 = vmatprep.subr.bf16.mxu0 %v5457_v8  ;;  %3967 = vmatprep.subr.bf16.mxu1 %v5460_v9  ;;  %v5547_v8 = vld [vmem:[%s6000_s14 + $0x924] ss:$16 sps:$4 sm:$0xff]   ;;  %v5550_v9 = vld [vmem:[%s6000_s14 + $0x92c] ss:$16 sps:$4 sm:$0xff]  }
 0x116   : > { %3624 = vmatpush1.bf16.msra.mxu0 %v5455_v10  ;;  %3968 = vmatpush1.bf16.msra.mxu1 %v5458_v11  ;;  %v5545_v10 = vld [vmem:[%s6000_s14 + $0x920] ss:$16 sps:$4 sm:$0xff]   ;;  %v5548_v11 = vld [vmem:[%s6000_s14 + $0x928] ss:$16 sps:$4 sm:$0xff]  }
 0x117   : > { %3625 = vmatprep.subr.bf16.mxu0 %v5463_v12  ;;  %3969 = vmatprep.subr.bf16.mxu1 %v5466_v13  ;;  %v5553_v12 = vld [vmem:[%s6000_s14 + $0x944] ss:$16 sps:$4 sm:$0xff]   ;;  %v5556_v13 = vld [vmem:[%s6000_s14 + $0x94c] ss:$16 sps:$4 sm:$0xff]  }
 0x11a   : > { %3626 = vmatpush1.bf16.msra.mxu0 %v5461_v14  ;;  %3970 = vmatpush1.bf16.msra.mxu1 %v5464_v15  ;;  %v5551_v14 = vld [vmem:[%s6000_s14 + $0x940] ss:$16 sps:$4 sm:$0xff]   ;;  %v5554_v15 = vld [vmem:[%s6000_s14 + $0x948] ss:$16 sps:$4 sm:$0xff]  }
 0x11b   : > { %3627 = vmatprep.subr.bf16.mxu0 %v5469_v16  ;;  %3971 = vmatprep.subr.bf16.mxu1 %v5472_v17  ;;  %v5559_v16 = vld [vmem:[%s6000_s14 + $0x964] ss:$16 sps:$4 sm:$0xff]   ;;  %v5562_v17 = vld [vmem:[%s6000_s14 + $0x96c] ss:$16 sps:$4 sm:$0xff]  }
 0x11e   : > { %3628 = vmatpush1.bf16.msra.mxu0 %v5467_v18  ;;  %3972 = vmatpush1.bf16.msra.mxu1 %v5470_v19  ;;  %v5557_v18 = vld [vmem:[%s6000_s14 + $0x960] ss:$16 sps:$4 sm:$0xff]   ;;  %v5560_v19 = vld [vmem:[%s6000_s14 + $0x968] ss:$16 sps:$4 sm:$0xff]  }
 0x11f   : > { %3629 = vmatprep.subr.bf16.mxu0 %v5475_v20  ;;  %3973 = vmatprep.subr.bf16.mxu1 %v5478_v21  ;;  %v5565_v20 = vld [vmem:[%s6000_s14 + $0x984] ss:$16 sps:$4 sm:$0xff]   ;;  %v5568_v21 = vld [vmem:[%s6000_s14 + $0x98c] ss:$16 sps:$4 sm:$0xff]  }
 0x122   : > { %3630 = vmatpush1.bf16.msra.mxu0 %v5473_v22  ;;  %3974 = vmatpush1.bf16.msra.mxu1 %v5476_v23  ;;  %v5563_v22 = vld [vmem:[%s6000_s14 + $0x980] ss:$16 sps:$4 sm:$0xff]   ;;  %v5566_v23 = vld [vmem:[%s6000_s14 + $0x988] ss:$16 sps:$4 sm:$0xff]  }
 0x123   : > { %3631 = vmatprep.subr.bf16.mxu0 %v5481_v24  ;;  %3975 = vmatprep.subr.bf16.mxu1 %v5484_v25  ;;  %v5571_v24 = vld [vmem:[%s6000_s14 + $0x9a4] ss:$16 sps:$4 sm:$0xff]   ;;  %v5574_v25 = vld [vmem:[%s6000_s14 + $0x9ac] ss:$16 sps:$4 sm:$0xff]  }
 0x126   : > { %3632 = vmatpush1.bf16.msra.mxu0 %v5479_v26  ;;  %3976 = vmatpush1.bf16.msra.mxu1 %v5482_v27  ;;  %v5569_v26 = vld [vmem:[%s6000_s14 + $0x9a0] ss:$16 sps:$4 sm:$0xff]   ;;  %v5572_v27 = vld [vmem:[%s6000_s14 + $0x9a8] ss:$16 sps:$4 sm:$0xff]  }
 0x127   : > { %3633 = vmatprep.subr.bf16.mxu0 %v5487_v28  ;;  %3977 = vmatprep.subr.bf16.mxu1 %v5490_v29  ;;  %v5577_v28 = vld [vmem:[%s6000_s14 + $0x9c4] ss:$16 sps:$4 sm:$0xff]   ;;  %v5580_v29 = vld [vmem:[%s6000_s14 + $0x9cc] ss:$16 sps:$4 sm:$0xff]  }
 0x12a   : > { %3634 = vmatpush1.bf16.msra.mxu0 %v5485_v30  ;;  %3978 = vmatpush1.bf16.msra.mxu1 %v5488_v33  ;;  %v5575_v30 = vld [vmem:[%s6000_s14 + $0x9c0] ss:$16 sps:$4 sm:$0xff]   ;;  %v5578_v33 = vld [vmem:[%s6000_s14 + $0x9c8] ss:$16 sps:$4 sm:$0xff]  }
 0x12b   : > { %3646 = vmatprep.subr.bf16.mxu0 %v5493_v34  ;;  %3990 = vmatprep.subr.bf16.mxu1 %v5496_v37  ;;  %v5583_v34 = vld [vmem:[%s6000_s14 + $0x9e4] ss:$16 sps:$4 sm:$0xff]   ;;  %v5586_v37 = vld [vmem:[%s6000_s14 + $0x9ec] ss:$16 sps:$4 sm:$0xff]  }
 0x12d   : > { %3636 = vmatmul.mubr.bf16.vlgmr.msra.gmra.mrb[0].mxu0 %v4497_v39  ;;  %3980 = vmatmul.mubr.bf16.vlgmr.msra.gmra.mrb[0].mxu1 %v4497_v39  ;;  %v5581_v39 = vld [vmem:[%s6000_s14 + $0x9e0] ss:$16 sps:$4 sm:$0xff]  }
 0x12e   : > { %3647 = vmatpush1.bf16.msra.mxu0 %v5491_v32  ;;  %3991 = vmatpush1.bf16.msra.mxu1 %v5494_v40  ;;  %v5584_v32 = vld [vmem:[%s6000_s14 + $0x9e8] ss:$16 sps:$4 sm:$0xff]   ;;  %v5589_v40 = vld [vmem:[%s6000_s14 + $0xa04] ss:$16 sps:$4 sm:$0xff]  }
 0x12f   : > { %3648 = vmatprep.subr.bf16.mxu0 %v5499_v41  ;;  %3992 = vmatprep.subr.bf16.mxu1 %v5502_v42  ;;  %v5592_v41 = vld [vmem:[%s6000_s14 + $0xa0c] ss:$16 sps:$4 sm:$0xff]  }
 0x130   : > { %3678 = vmatprep.mubr.bf16.mxu0 %v4500_v43  ;;  %4022 = vmatprep.mubr.bf16.mxu1 %v4500_v43  ;;  %v6368_v42 = vld [vmem:[%s6002_s15 + $0x28] sm:$0xff] }
 0x131   : > { %v6371_v43 = vld [vmem:[%s6002_s15 + $0x68] sm:$0xff] }
 0x132   : > { %3649 = vmatpush1.bf16.msra.mxu0 %v5497_v35  ;;  %3993 = vmatpush1.bf16.msra.mxu1 %v5500_v36  ;;  %v4499_v35 = vcombine.low %v6294_v38, %v6299_v31  ;;  %v5587_v36 = vld [vmem:[%s6000_s14 + $0xa00] ss:$16 sps:$4 sm:$0xff]   ;;  %v5596_v31 = vld [vmem:[%s6000_s14 + $0xa28] ss:$16 sps:$4 sm:$0xff]  }
 0x133   : > { %3650 = vmatprep.subr.bf16.mxu0 %v5505_v44  ;;  %3994 = vmatprep.subr.bf16.mxu1 %v5508_v45  ;;  %v5590_v44 = vld [vmem:[%s6000_s14 + $0xa08] ss:$16 sps:$4 sm:$0xff]   ;;  %v5595_v45 = vld [vmem:[%s6000_s14 + $0xa24] ss:$16 sps:$4 sm:$0xff]   ;;  %v5593_v38 = vld [vmem:[%s6000_s14 + $0xa20] ss:$16 sps:$4 sm:$0xff]  }
 0x136   : > { %3651 = vmatpush1.bf16.msra.mxu0 %v5503_v46  ;;  %3995 = vmatpush1.bf16.msra.mxu1 %v5506_v47  ;;  %v5598_v46 = vld [vmem:[%s6000_s14 + $0xa2c] ss:$16 sps:$4 sm:$0xff]   ;;  %v4502_v47 = vcombine.high %v6368_v42, %v6371_v43 }
 0x137   : > { %3652 = vmatprep.subr.bf16.mxu0 %v5511_v48  ;;  %3996 = vmatprep.subr.bf16.mxu1 %v5514_v49  ;;  %v5601_v48 = vld [vmem:[%s6000_s14 + $0xa44] ss:$16 sps:$4 sm:$0xff]   ;;  %v5604_v49 = vld [vmem:[%s6000_s14 + $0xa4c] ss:$16 sps:$4 sm:$0xff]  }
 0x13a   : > { %3653 = vmatpush1.bf16.msra.mxu0 %v5509_v50  ;;  %3997 = vmatpush1.bf16.msra.mxu1 %v5512_v51  ;;  %v5599_v50 = vld [vmem:[%s6000_s14 + $0xa40] ss:$16 sps:$4 sm:$0xff]   ;;  %v5602_v51 = vld [vmem:[%s6000_s14 + $0xa48] ss:$16 sps:$4 sm:$0xff]  }
 0x13b   : > { %3654 = vmatprep.subr.bf16.mxu0 %v5517_v52  ;;  %3998 = vmatprep.subr.bf16.mxu1 %v5520_v53  ;;  %v5607_v52 = vld [vmem:[%s6000_s14 + $0xa64] ss:$16 sps:$4 sm:$0xff]   ;;  %v5610_v53 = vld [vmem:[%s6000_s14 + $0xa6c] ss:$16 sps:$4 sm:$0xff]  }
 0x13e   : > { %3655 = vmatpush1.bf16.msra.mxu0 %v5515_v54  ;;  %3999 = vmatpush1.bf16.msra.mxu1 %v5518_v55  ;;  %v5605_v54 = vld [vmem:[%s6000_s14 + $0xa60] ss:$16 sps:$4 sm:$0xff]   ;;  %v5608_v55 = vld [vmem:[%s6000_s14 + $0xa68] ss:$16 sps:$4 sm:$0xff]  }
 0x13f   : > { %3656 = vmatprep.subr.bf16.mxu0 %v5523_v56  ;;  %4000 = vmatprep.subr.bf16.mxu1 %v5526_v57  ;;  %v5613_v56 = vld [vmem:[%s6000_s14 + $0xa84] ss:$16 sps:$4 sm:$0xff]   ;;  %v5616_v57 = vld [vmem:[%s6000_s14 + $0xa8c] ss:$16 sps:$4 sm:$0xff]  }
 0x142   : > { %3657 = vmatpush1.bf16.msra.mxu0 %v5521_v58  ;;  %4001 = vmatpush1.bf16.msra.mxu1 %v5524_v59  ;;  %v5611_v58 = vld [vmem:[%s6000_s14 + $0xa80] ss:$16 sps:$4 sm:$0xff]   ;;  %v5614_v59 = vld [vmem:[%s6000_s14 + $0xa88] ss:$16 sps:$4 sm:$0xff]  }
 0x143   : > { %3658 = vmatprep.subr.bf16.mxu0 %v5529_v60  ;;  %4002 = vmatprep.subr.bf16.mxu1 %v5532_v61  ;;  %v5619_v60 = vld [vmem:[%s6000_s14 + $0xaa4] ss:$16 sps:$4 sm:$0xff]   ;;  %v5622_v61 = vld [vmem:[%s6000_s14 + $0xaac] ss:$16 sps:$4 sm:$0xff]  }
 0x146   : > { %3659 = vmatpush1.bf16.msra.mxu0 %v5527_v62  ;;  %4003 = vmatpush1.bf16.msra.mxu1 %v5530_v63  ;;  %v5617_v62 = vld [vmem:[%s6000_s14 + $0xaa0] ss:$16 sps:$4 sm:$0xff]   ;;  %v5620_v63 = vld [vmem:[%s6000_s14 + $0xaa8] ss:$16 sps:$4 sm:$0xff]  }
 0x147   : > { %3660 = vmatprep.subr.bf16.mxu0 %v5535_v0  ;;  %4004 = vmatprep.subr.bf16.mxu1 %v5538_v1  ;;  %v5625_v0 = vld [vmem:[%s6000_s14 + $0xac4] ss:$16 sps:$4 sm:$0xff]   ;;  %v5628_v1 = vld [vmem:[%s6000_s14 + $0xacc] ss:$16 sps:$4 sm:$0xff]  }
 0x14a   : > { %3661 = vmatpush1.bf16.msra.mxu0 %v5533_v2  ;;  %4005 = vmatpush1.bf16.msra.mxu1 %v5536_v3  ;;  %v5623_v2 = vld [vmem:[%s6000_s14 + $0xac0] ss:$16 sps:$4 sm:$0xff]   ;;  %v5626_v3 = vld [vmem:[%s6000_s14 + $0xac8] ss:$16 sps:$4 sm:$0xff]  }
 0x14b   : > { %3662 = vmatprep.subr.bf16.mxu0 %v5541_v4  ;;  %4006 = vmatprep.subr.bf16.mxu1 %v5544_v5  ;;  %v5631_v4 = vld [vmem:[%s6000_s14 + $0xae4] ss:$16 sps:$4 sm:$0xff]   ;;  %v5634_v5 = vld [vmem:[%s6000_s14 + $0xaec] ss:$16 sps:$4 sm:$0xff]  }
 0x14e   : > { %3663 = vmatpush1.bf16.msra.mxu0 %v5539_v6  ;;  %4007 = vmatpush1.bf16.msra.mxu1 %v5542_v7  ;;  %v5629_v6 = vld [vmem:[%s6000_s14 + $0xae0] ss:$16 sps:$4 sm:$0xff]   ;;  %v5632_v7 = vld [vmem:[%s6000_s14 + $0xae8] ss:$16 sps:$4 sm:$0xff]  }
 0x14f   : > { %3664 = vmatprep.subr.bf16.mxu0 %v5547_v8  ;;  %4008 = vmatprep.subr.bf16.mxu1 %v5550_v9  ;;  %v5637_v8 = vld [vmem:[%s6000_s14 + $0xb04] ss:$16 sps:$4 sm:$0xff]   ;;  %v5640_v9 = vld [vmem:[%s6000_s14 + $0xb0c] ss:$16 sps:$4 sm:$0xff]  }
 0x152   : > { %3665 = vmatpush1.bf16.msra.mxu0 %v5545_v10  ;;  %4009 = vmatpush1.bf16.msra.mxu1 %v5548_v11  ;;  %v5635_v10 = vld [vmem:[%s6000_s14 + $0xb00] ss:$16 sps:$4 sm:$0xff]   ;;  %v5638_v11 = vld [vmem:[%s6000_s14 + $0xb08] ss:$16 sps:$4 sm:$0xff]  }
 0x153   : > { %3666 = vmatprep.subr.bf16.mxu0 %v5553_v12  ;;  %4010 = vmatprep.subr.bf16.mxu1 %v5556_v13  ;;  %v5643_v12 = vld [vmem:[%s6000_s14 + $0xb24] ss:$16 sps:$4 sm:$0xff]   ;;  %v5646_v13 = vld [vmem:[%s6000_s14 + $0xb2c] ss:$16 sps:$4 sm:$0xff]  }
 0x156   : > { %3667 = vmatpush1.bf16.msra.mxu0 %v5551_v14  ;;  %4011 = vmatpush1.bf16.msra.mxu1 %v5554_v15  ;;  %v5641_v14 = vld [vmem:[%s6000_s14 + $0xb20] ss:$16 sps:$4 sm:$0xff]   ;;  %v5644_v15 = vld [vmem:[%s6000_s14 + $0xb28] ss:$16 sps:$4 sm:$0xff]  }
 0x157   : > { %3668 = vmatprep.subr.bf16.mxu0 %v5559_v16  ;;  %4012 = vmatprep.subr.bf16.mxu1 %v5562_v17  ;;  %v5649_v16 = vld [vmem:[%s6000_s14 + $0xb44] ss:$16 sps:$4 sm:$0xff]   ;;  %v5652_v17 = vld [vmem:[%s6000_s14 + $0xb4c] ss:$16 sps:$4 sm:$0xff]  }
 0x15a   : > { %3669 = vmatpush1.bf16.msra.mxu0 %v5557_v18  ;;  %4013 = vmatpush1.bf16.msra.mxu1 %v5560_v19  ;;  %v5647_v18 = vld [vmem:[%s6000_s14 + $0xb40] ss:$16 sps:$4 sm:$0xff]   ;;  %v5650_v19 = vld [vmem:[%s6000_s14 + $0xb48] ss:$16 sps:$4 sm:$0xff]  }
 0x15b   : > { %3670 = vmatprep.subr.bf16.mxu0 %v5565_v20  ;;  %4014 = vmatprep.subr.bf16.mxu1 %v5568_v21  ;;  %v5655_v20 = vld [vmem:[%s6000_s14 + $0xb64] ss:$16 sps:$4 sm:$0xff]   ;;  %v5658_v21 = vld [vmem:[%s6000_s14 + $0xb6c] ss:$16 sps:$4 sm:$0xff]  }
 0x15e   : > { %3671 = vmatpush1.bf16.msra.mxu0 %v5563_v22  ;;  %4015 = vmatpush1.bf16.msra.mxu1 %v5566_v23  ;;  %v5653_v22 = vld [vmem:[%s6000_s14 + $0xb60] ss:$16 sps:$4 sm:$0xff]   ;;  %v5656_v23 = vld [vmem:[%s6000_s14 + $0xb68] ss:$16 sps:$4 sm:$0xff]  }
 0x15f   : > { %3672 = vmatprep.subr.bf16.mxu0 %v5571_v24  ;;  %4016 = vmatprep.subr.bf16.mxu1 %v5574_v25  ;;  %v5661_v24 = vld [vmem:[%s6000_s14 + $0xb84] ss:$16 sps:$4 sm:$0xff]   ;;  %v5664_v25 = vld [vmem:[%s6000_s14 + $0xb8c] ss:$16 sps:$4 sm:$0xff]  }
 0x162   : > { %3673 = vmatpush1.bf16.msra.mxu0 %v5569_v26  ;;  %4017 = vmatpush1.bf16.msra.mxu1 %v5572_v27  ;;  %v5659_v26 = vld [vmem:[%s6000_s14 + $0xb80] ss:$16 sps:$4 sm:$0xff]   ;;  %v5662_v27 = vld [vmem:[%s6000_s14 + $0xb88] ss:$16 sps:$4 sm:$0xff]  }
 0x163   : > { %3674 = vmatprep.subr.bf16.mxu0 %v5577_v28  ;;  %4018 = vmatprep.subr.bf16.mxu1 %v5580_v29  ;;  %v5667_v28 = vld [vmem:[%s6000_s14 + $0xba4] ss:$16 sps:$4 sm:$0xff]   ;;  %v5670_v29 = vld [vmem:[%s6000_s14 + $0xbac] ss:$16 sps:$4 sm:$0xff]  }
 0x166   : > { %3675 = vmatpush1.bf16.msra.mxu0 %v5575_v30  ;;  %4019 = vmatpush1.bf16.msra.mxu1 %v5578_v33  ;;  %v5665_v30 = vld [vmem:[%s6000_s14 + $0xba0] ss:$16 sps:$4 sm:$0xff]   ;;  %v5668_v33 = vld [vmem:[%s6000_s14 + $0xba8] ss:$16 sps:$4 sm:$0xff]  }
 0x167   : > { %3676 = vmatprep.subr.bf16.mxu0 %v5583_v34  ;;  %4020 = vmatprep.subr.bf16.mxu1 %v5586_v37  ;;  %v5673_v34 = vld [vmem:[%s6000_s14 + $0xbc4] ss:$16 sps:$4 sm:$0xff]   ;;  %v5676_v37 = vld [vmem:[%s6000_s14 + $0xbcc] ss:$16 sps:$4 sm:$0xff]  }
 0x16a   : > { %3677 = vmatpush1.bf16.msra.mxu0 %v5581_v39  ;;  %4021 = vmatpush1.bf16.msra.mxu1 %v5584_v32  ;;  %v5671_v39 = vld [vmem:[%s6000_s14 + $0xbc0] ss:$16 sps:$4 sm:$0xff]   ;;  %v5674_v32 = vld [vmem:[%s6000_s14 + $0xbc8] ss:$16 sps:$4 sm:$0xff]  }
 0x16b   : > { %3689 = vmatprep.subr.bf16.mxu0 %v5589_v40  ;;  %4033 = vmatprep.subr.bf16.mxu1 %v5592_v41  ;;  %v5679_v40 = vld [vmem:[%s6000_s14 + $0xbe4] ss:$16 sps:$4 sm:$0xff]   ;;  %v5682_v41 = vld [vmem:[%s6000_s14 + $0xbec] ss:$16 sps:$4 sm:$0xff]  }
 0x16d   : > { %3679 = vmatmul.mubr.bf16.vlgmr.msra.gmra.mrb[0].mxu0 %v4499_v35  ;;  %4023 = vmatmul.mubr.bf16.vlgmr.msra.gmra.mrb[0].mxu1 %v4499_v35  ;;  %v5677_v35 = vld [vmem:[%s6000_s14 + $0xbe0] ss:$16 sps:$4 sm:$0xff]  }
 0x16e   : > { %3690 = vmatpush1.bf16.msra.mxu0 %v5587_v36  ;;  %4034 = vmatpush1.bf16.msra.mxu1 %v5590_v44  ;;  %v5680_v36 = vld [vmem:[%s6000_s14 + $0xbe8] ss:$16 sps:$4 sm:$0xff]   ;;  %v5685_v44 = vld [vmem:[%s6000_s14 + $0xc04] ss:$16 sps:$4 sm:$0xff]  }
 0x16f   : > { %3691 = vmatprep.subr.bf16.mxu0 %v5595_v45  ;;  %4035 = vmatprep.subr.bf16.mxu1 %v5598_v46  ;;  %v5688_v45 = vld [vmem:[%s6000_s14 + $0xc0c] ss:$16 sps:$4 sm:$0xff]   ;;  %v4501_v46 = vcombine.low %v6368_v42, %v6371_v43  ;;  %v5689_v43 = vld [vmem:[%s6000_s14 + $0xc20] ss:$16 sps:$4 sm:$0xff]  }
 0x170   : > { %3721 = vmatprep.mubr.bf16.mxu0 %v4502_v47  ;;  %4065 = vmatprep.mubr.bf16.mxu1 %v4502_v47  ;;  %v6444_v47 = vld [vmem:[%s6002_s15 + $0x30] sm:$0xff] }
 0x172   : > { %3692 = vmatpush1.bf16.msra.mxu0 %v5593_v38  ;;  %4036 = vmatpush1.bf16.msra.mxu1 %v5596_v31  ;;  %v6447_v38 = vld [vmem:[%s6002_s15 + $0x70] sm:$0xff] }
 0x173   : > { %3693 = vmatprep.subr.bf16.mxu0 %v5601_v48  ;;  %4037 = vmatprep.subr.bf16.mxu1 %v5604_v49  ;;  %v5683_v31 = vld [vmem:[%s6000_s14 + $0xc00] ss:$16 sps:$4 sm:$0xff]   ;;  %v5686_v48 = vld [vmem:[%s6000_s14 + $0xc08] ss:$16 sps:$4 sm:$0xff]   ;;  %v5691_v49 = vld [vmem:[%s6000_s14 + $0xc24] ss:$16 sps:$4 sm:$0xff]   ;;  %v4504_v42 = vcombine.high %v6444_v47, %v6447_v38 }
 0x176   : > { %3694 = vmatpush1.bf16.msra.mxu0 %v5599_v50  ;;  %4038 = vmatpush1.bf16.msra.mxu1 %v5602_v51  ;;  %v5694_v50 = vld [vmem:[%s6000_s14 + $0xc2c] ss:$16 sps:$4 sm:$0xff]   ;;  %v5692_v51 = vld [vmem:[%s6000_s14 + $0xc28] ss:$16 sps:$4 sm:$0xff]  }
 0x177   : > { %3695 = vmatprep.subr.bf16.mxu0 %v5607_v52  ;;  %4039 = vmatprep.subr.bf16.mxu1 %v5610_v53  ;;  %v5697_v52 = vld [vmem:[%s6000_s14 + $0xc44] ss:$16 sps:$4 sm:$0xff]   ;;  %v5700_v53 = vld [vmem:[%s6000_s14 + $0xc4c] ss:$16 sps:$4 sm:$0xff]  }
 0x17a   : > { %3696 = vmatpush1.bf16.msra.mxu0 %v5605_v54  ;;  %4040 = vmatpush1.bf16.msra.mxu1 %v5608_v55  ;;  %v5695_v54 = vld [vmem:[%s6000_s14 + $0xc40] ss:$16 sps:$4 sm:$0xff]   ;;  %v5698_v55 = vld [vmem:[%s6000_s14 + $0xc48] ss:$16 sps:$4 sm:$0xff]  }
 0x17b   : > { %3697 = vmatprep.subr.bf16.mxu0 %v5613_v56  ;;  %4041 = vmatprep.subr.bf16.mxu1 %v5616_v57  ;;  %v5703_v56 = vld [vmem:[%s6000_s14 + $0xc64] ss:$16 sps:$4 sm:$0xff]   ;;  %v5706_v57 = vld [vmem:[%s6000_s14 + $0xc6c] ss:$16 sps:$4 sm:$0xff]  }
 0x17e   : > { %3698 = vmatpush1.bf16.msra.mxu0 %v5611_v58  ;;  %4042 = vmatpush1.bf16.msra.mxu1 %v5614_v59  ;;  %v5701_v58 = vld [vmem:[%s6000_s14 + $0xc60] ss:$16 sps:$4 sm:$0xff]   ;;  %v5704_v59 = vld [vmem:[%s6000_s14 + $0xc68] ss:$16 sps:$4 sm:$0xff]  }
 0x17f   : > { %3699 = vmatprep.subr.bf16.mxu0 %v5619_v60  ;;  %4043 = vmatprep.subr.bf16.mxu1 %v5622_v61  ;;  %v5709_v60 = vld [vmem:[%s6000_s14 + $0xc84] ss:$16 sps:$4 sm:$0xff]   ;;  %v5712_v61 = vld [vmem:[%s6000_s14 + $0xc8c] ss:$16 sps:$4 sm:$0xff]  }
 0x182   : > { %3700 = vmatpush1.bf16.msra.mxu0 %v5617_v62  ;;  %4044 = vmatpush1.bf16.msra.mxu1 %v5620_v63  ;;  %v5707_v62 = vld [vmem:[%s6000_s14 + $0xc80] ss:$16 sps:$4 sm:$0xff]   ;;  %v5710_v63 = vld [vmem:[%s6000_s14 + $0xc88] ss:$16 sps:$4 sm:$0xff]  }
 0x183   : > { %3701 = vmatprep.subr.bf16.mxu0 %v5625_v0  ;;  %4045 = vmatprep.subr.bf16.mxu1 %v5628_v1  ;;  %v5715_v0 = vld [vmem:[%s6000_s14 + $0xca4] ss:$16 sps:$4 sm:$0xff]   ;;  %v5718_v1 = vld [vmem:[%s6000_s14 + $0xcac] ss:$16 sps:$4 sm:$0xff]  }
 0x186   : > { %3702 = vmatpush1.bf16.msra.mxu0 %v5623_v2  ;;  %4046 = vmatpush1.bf16.msra.mxu1 %v5626_v3  ;;  %v5713_v2 = vld [vmem:[%s6000_s14 + $0xca0] ss:$16 sps:$4 sm:$0xff]   ;;  %v5716_v3 = vld [vmem:[%s6000_s14 + $0xca8] ss:$16 sps:$4 sm:$0xff]  }
 0x187   : > { %3703 = vmatprep.subr.bf16.mxu0 %v5631_v4  ;;  %4047 = vmatprep.subr.bf16.mxu1 %v5634_v5  ;;  %v5721_v4 = vld [vmem:[%s6000_s14 + $0xcc4] ss:$16 sps:$4 sm:$0xff]   ;;  %v5724_v5 = vld [vmem:[%s6000_s14 + $0xccc] ss:$16 sps:$4 sm:$0xff]  }
 0x18a   : > { %3704 = vmatpush1.bf16.msra.mxu0 %v5629_v6  ;;  %4048 = vmatpush1.bf16.msra.mxu1 %v5632_v7  ;;  %v5719_v6 = vld [vmem:[%s6000_s14 + $0xcc0] ss:$16 sps:$4 sm:$0xff]   ;;  %v5722_v7 = vld [vmem:[%s6000_s14 + $0xcc8] ss:$16 sps:$4 sm:$0xff]  }
 0x18b   : > { %3705 = vmatprep.subr.bf16.mxu0 %v5637_v8  ;;  %4049 = vmatprep.subr.bf16.mxu1 %v5640_v9  ;;  %v5727_v8 = vld [vmem:[%s6000_s14 + $0xce4] ss:$16 sps:$4 sm:$0xff]   ;;  %v5730_v9 = vld [vmem:[%s6000_s14 + $0xcec] ss:$16 sps:$4 sm:$0xff]  }
 0x18e   : > { %3706 = vmatpush1.bf16.msra.mxu0 %v5635_v10  ;;  %4050 = vmatpush1.bf16.msra.mxu1 %v5638_v11  ;;  %v5725_v10 = vld [vmem:[%s6000_s14 + $0xce0] ss:$16 sps:$4 sm:$0xff]   ;;  %v5728_v11 = vld [vmem:[%s6000_s14 + $0xce8] ss:$16 sps:$4 sm:$0xff]  }
 0x18f   : > { %3707 = vmatprep.subr.bf16.mxu0 %v5643_v12  ;;  %4051 = vmatprep.subr.bf16.mxu1 %v5646_v13  ;;  %v5733_v12 = vld [vmem:[%s6000_s14 + $0xd04] ss:$16 sps:$4 sm:$0xff]   ;;  %v5736_v13 = vld [vmem:[%s6000_s14 + $0xd0c] ss:$16 sps:$4 sm:$0xff]  }
 0x192   : > { %3708 = vmatpush1.bf16.msra.mxu0 %v5641_v14  ;;  %4052 = vmatpush1.bf16.msra.mxu1 %v5644_v15  ;;  %v5731_v14 = vld [vmem:[%s6000_s14 + $0xd00] ss:$16 sps:$4 sm:$0xff]   ;;  %v5734_v15 = vld [vmem:[%s6000_s14 + $0xd08] ss:$16 sps:$4 sm:$0xff]  }
 0x193   : > { %3709 = vmatprep.subr.bf16.mxu0 %v5649_v16  ;;  %4053 = vmatprep.subr.bf16.mxu1 %v5652_v17  ;;  %v5739_v16 = vld [vmem:[%s6000_s14 + $0xd24] ss:$16 sps:$4 sm:$0xff]   ;;  %v5742_v17 = vld [vmem:[%s6000_s14 + $0xd2c] ss:$16 sps:$4 sm:$0xff]  }
 0x196   : > { %3710 = vmatpush1.bf16.msra.mxu0 %v5647_v18  ;;  %4054 = vmatpush1.bf16.msra.mxu1 %v5650_v19  ;;  %v5737_v18 = vld [vmem:[%s6000_s14 + $0xd20] ss:$16 sps:$4 sm:$0xff]   ;;  %v5740_v19 = vld [vmem:[%s6000_s14 + $0xd28] ss:$16 sps:$4 sm:$0xff]  }
 0x197   : > { %3711 = vmatprep.subr.bf16.mxu0 %v5655_v20  ;;  %4055 = vmatprep.subr.bf16.mxu1 %v5658_v21  ;;  %v5745_v20 = vld [vmem:[%s6000_s14 + $0xd44] ss:$16 sps:$4 sm:$0xff]   ;;  %v5748_v21 = vld [vmem:[%s6000_s14 + $0xd4c] ss:$16 sps:$4 sm:$0xff]  }
 0x19a   : > { %3712 = vmatpush1.bf16.msra.mxu0 %v5653_v22  ;;  %4056 = vmatpush1.bf16.msra.mxu1 %v5656_v23  ;;  %v5743_v22 = vld [vmem:[%s6000_s14 + $0xd40] ss:$16 sps:$4 sm:$0xff]   ;;  %v5746_v23 = vld [vmem:[%s6000_s14 + $0xd48] ss:$16 sps:$4 sm:$0xff]  }
 0x19b   : > { %3713 = vmatprep.subr.bf16.mxu0 %v5661_v24  ;;  %4057 = vmatprep.subr.bf16.mxu1 %v5664_v25  ;;  %v5751_v24 = vld [vmem:[%s6000_s14 + $0xd64] ss:$16 sps:$4 sm:$0xff]   ;;  %v5754_v25 = vld [vmem:[%s6000_s14 + $0xd6c] ss:$16 sps:$4 sm:$0xff]  }
 0x19e   : > { %3714 = vmatpush1.bf16.msra.mxu0 %v5659_v26  ;;  %4058 = vmatpush1.bf16.msra.mxu1 %v5662_v27  ;;  %v5749_v26 = vld [vmem:[%s6000_s14 + $0xd60] ss:$16 sps:$4 sm:$0xff]   ;;  %v5752_v27 = vld [vmem:[%s6000_s14 + $0xd68] ss:$16 sps:$4 sm:$0xff]  }
 0x19f   : > { %3715 = vmatprep.subr.bf16.mxu0 %v5667_v28  ;;  %4059 = vmatprep.subr.bf16.mxu1 %v5670_v29  ;;  %v5757_v28 = vld [vmem:[%s6000_s14 + $0xd84] ss:$16 sps:$4 sm:$0xff]   ;;  %v5760_v29 = vld [vmem:[%s6000_s14 + $0xd8c] ss:$16 sps:$4 sm:$0xff]  }
 0x1a2   : > { %3716 = vmatpush1.bf16.msra.mxu0 %v5665_v30  ;;  %4060 = vmatpush1.bf16.msra.mxu1 %v5668_v33  ;;  %v5755_v30 = vld [vmem:[%s6000_s14 + $0xd80] ss:$16 sps:$4 sm:$0xff]   ;;  %v5758_v33 = vld [vmem:[%s6000_s14 + $0xd88] ss:$16 sps:$4 sm:$0xff]  }
 0x1a3   : > { %3717 = vmatprep.subr.bf16.mxu0 %v5673_v34  ;;  %4061 = vmatprep.subr.bf16.mxu1 %v5676_v37  ;;  %v5763_v34 = vld [vmem:[%s6000_s14 + $0xda4] ss:$16 sps:$4 sm:$0xff]   ;;  %v5766_v37 = vld [vmem:[%s6000_s14 + $0xdac] ss:$16 sps:$4 sm:$0xff]  }
 0x1a6   : > { %3718 = vmatpush1.bf16.msra.mxu0 %v5671_v39  ;;  %4062 = vmatpush1.bf16.msra.mxu1 %v5674_v32  ;;  %v5761_v39 = vld [vmem:[%s6000_s14 + $0xda0] ss:$16 sps:$4 sm:$0xff]   ;;  %v5764_v32 = vld [vmem:[%s6000_s14 + $0xda8] ss:$16 sps:$4 sm:$0xff]  }
 0x1a7   : > { %3719 = vmatprep.subr.bf16.mxu0 %v5679_v40  ;;  %4063 = vmatprep.subr.bf16.mxu1 %v5682_v41  ;;  %v5769_v40 = vld [vmem:[%s6000_s14 + $0xdc4] ss:$16 sps:$4 sm:$0xff]   ;;  %v5772_v41 = vld [vmem:[%s6000_s14 + $0xdcc] ss:$16 sps:$4 sm:$0xff]  }
 0x1aa   : > { %3720 = vmatpush1.bf16.msra.mxu0 %v5677_v35  ;;  %4064 = vmatpush1.bf16.msra.mxu1 %v5680_v36  ;;  %v5767_v35 = vld [vmem:[%s6000_s14 + $0xdc0] ss:$16 sps:$4 sm:$0xff]   ;;  %v5770_v36 = vld [vmem:[%s6000_s14 + $0xdc8] ss:$16 sps:$4 sm:$0xff]  }
 0x1ab   : > { %3732 = vmatprep.subr.bf16.mxu0 %v5685_v44  ;;  %4076 = vmatprep.subr.bf16.mxu1 %v5688_v45  ;;  %v5775_v44 = vld [vmem:[%s6000_s14 + $0xde4] ss:$16 sps:$4 sm:$0xff]   ;;  %v5778_v45 = vld [vmem:[%s6000_s14 + $0xdec] ss:$16 sps:$4 sm:$0xff]  }
 0x1ad   : > { %3722 = vmatmul.mubr.bf16.vlgmr.msra.gmra.mrb[0].mxu0 %v4501_v46  ;;  %4066 = vmatmul.mubr.bf16.vlgmr.msra.gmra.mrb[0].mxu1 %v4501_v46  ;;  %v5773_v46 = vld [vmem:[%s6000_s14 + $0xde0] ss:$16 sps:$4 sm:$0xff]  }
 0x1ae   : > { %3733 = vmatpush1.bf16.msra.mxu0 %v5683_v31  ;;  %4077 = vmatpush1.bf16.msra.mxu1 %v5686_v48  ;;  %v5776_v31 = vld [vmem:[%s6000_s14 + $0xde8] ss:$16 sps:$4 sm:$0xff]   ;;  %v5781_v48 = vld [vmem:[%s6000_s14 + $0xe04] ss:$16 sps:$4 sm:$0xff]  }
 0x1af   : > { %3734 = vmatprep.subr.bf16.mxu0 %v5691_v49  ;;  %4078 = vmatprep.subr.bf16.mxu1 %v5694_v50  ;;  %v5784_v49 = vld [vmem:[%s6000_s14 + $0xe0c] ss:$16 sps:$4 sm:$0xff]   ;;  %v4503_v50 = vcombine.low %v6444_v47, %v6447_v38  ;;  %v5785_v38 = vld [vmem:[%s6000_s14 + $0xe20] ss:$16 sps:$4 sm:$0xff]  }
 0x1b0   : > { %3764 = vmatprep.mubr.bf16.mxu0 %v4504_v42  ;;  %4108 = vmatprep.mubr.bf16.mxu1 %v4504_v42  ;;  %v6518_v42 = vld [vmem:[%s6002_s15 + $0x38] sm:$0xff] }
 0x1b2   : > { %3735 = vmatpush1.bf16.msra.mxu0 %v5689_v43  ;;  %4079 = vmatpush1.bf16.msra.mxu1 %v5692_v51  ;;  %v6521_v43 = vld [vmem:[%s6002_s15 + $0x78] sm:$0xff]  ;;  %v5779_v51 = vld [vmem:[%s6000_s14 + $0xe00] ss:$16 sps:$4 sm:$0xff]  }
 0x1b3   : > { %3736 = vmatprep.subr.bf16.mxu0 %v5697_v52  ;;  %4080 = vmatprep.subr.bf16.mxu1 %v5700_v53  ;;  %v5782_v52 = vld [vmem:[%s6000_s14 + $0xe08] ss:$16 sps:$4 sm:$0xff]   ;;  %v5787_v53 = vld [vmem:[%s6000_s14 + $0xe24] ss:$16 sps:$4 sm:$0xff]   ;;  %v4506_v47 = vcombine.high %v6518_v42, %v6521_v43 }
 0x1b6   : > { %3737 = vmatpush1.bf16.msra.mxu0 %v5695_v54  ;;  %4081 = vmatpush1.bf16.msra.mxu1 %v5698_v55  ;;  %v5790_v54 = vld [vmem:[%s6000_s14 + $0xe2c] ss:$16 sps:$4 sm:$0xff]   ;;  %v5788_v55 = vld [vmem:[%s6000_s14 + $0xe28] ss:$16 sps:$4 sm:$0xff]  }
 0x1b7   : > { %3738 = vmatprep.subr.bf16.mxu0 %v5703_v56  ;;  %4082 = vmatprep.subr.bf16.mxu1 %v5706_v57  ;;  %v5793_v56 = vld [vmem:[%s6000_s14 + $0xe44] ss:$16 sps:$4 sm:$0xff]   ;;  %v5796_v57 = vld [vmem:[%s6000_s14 + $0xe4c] ss:$16 sps:$4 sm:$0xff]  }
 0x1ba   : > { %3739 = vmatpush1.bf16.msra.mxu0 %v5701_v58  ;;  %4083 = vmatpush1.bf16.msra.mxu1 %v5704_v59  ;;  %v5791_v58 = vld [vmem:[%s6000_s14 + $0xe40] ss:$16 sps:$4 sm:$0xff]   ;;  %v5794_v59 = vld [vmem:[%s6000_s14 + $0xe48] ss:$16 sps:$4 sm:$0xff]  }
 0x1bb   : > { %3740 = vmatprep.subr.bf16.mxu0 %v5709_v60  ;;  %4084 = vmatprep.subr.bf16.mxu1 %v5712_v61  ;;  %v5799_v60 = vld [vmem:[%s6000_s14 + $0xe64] ss:$16 sps:$4 sm:$0xff]   ;;  %v5802_v61 = vld [vmem:[%s6000_s14 + $0xe6c] ss:$16 sps:$4 sm:$0xff]  }
 0x1be   : > { %3741 = vmatpush1.bf16.msra.mxu0 %v5707_v62  ;;  %4085 = vmatpush1.bf16.msra.mxu1 %v5710_v63  ;;  %v5797_v62 = vld [vmem:[%s6000_s14 + $0xe60] ss:$16 sps:$4 sm:$0xff]   ;;  %v5800_v63 = vld [vmem:[%s6000_s14 + $0xe68] ss:$16 sps:$4 sm:$0xff]  }
 0x1bf   : > { %3742 = vmatprep.subr.bf16.mxu0 %v5715_v0  ;;  %4086 = vmatprep.subr.bf16.mxu1 %v5718_v1  ;;  %v5805_v0 = vld [vmem:[%s6000_s14 + $0xe84] ss:$16 sps:$4 sm:$0xff]   ;;  %v5808_v1 = vld [vmem:[%s6000_s14 + $0xe8c] ss:$16 sps:$4 sm:$0xff]  }
 0x1c2   : > { %3743 = vmatpush1.bf16.msra.mxu0 %v5713_v2  ;;  %4087 = vmatpush1.bf16.msra.mxu1 %v5716_v3  ;;  %v5803_v2 = vld [vmem:[%s6000_s14 + $0xe80] ss:$16 sps:$4 sm:$0xff]   ;;  %v5806_v3 = vld [vmem:[%s6000_s14 + $0xe88] ss:$16 sps:$4 sm:$0xff]  }
 0x1c3   : > { %3744 = vmatprep.subr.bf16.mxu0 %v5721_v4  ;;  %4088 = vmatprep.subr.bf16.mxu1 %v5724_v5  ;;  %v5811_v4 = vld [vmem:[%s6000_s14 + $0xea4] ss:$16 sps:$4 sm:$0xff]   ;;  %v5814_v5 = vld [vmem:[%s6000_s14 + $0xeac] ss:$16 sps:$4 sm:$0xff]  }
 0x1c6   : > { %3745 = vmatpush1.bf16.msra.mxu0 %v5719_v6  ;;  %4089 = vmatpush1.bf16.msra.mxu1 %v5722_v7  ;;  %v5809_v6 = vld [vmem:[%s6000_s14 + $0xea0] ss:$16 sps:$4 sm:$0xff]   ;;  %v5812_v7 = vld [vmem:[%s6000_s14 + $0xea8] ss:$16 sps:$4 sm:$0xff]  }
 0x1c7   : > { %3746 = vmatprep.subr.bf16.mxu0 %v5727_v8  ;;  %4090 = vmatprep.subr.bf16.mxu1 %v5730_v9  ;;  %v5817_v8 = vld [vmem:[%s6000_s14 + $0xec4] ss:$16 sps:$4 sm:$0xff]   ;;  %v5820_v9 = vld [vmem:[%s6000_s14 + $0xecc] ss:$16 sps:$4 sm:$0xff]  }
 0x1ca   : > { %3747 = vmatpush1.bf16.msra.mxu0 %v5725_v10  ;;  %4091 = vmatpush1.bf16.msra.mxu1 %v5728_v11  ;;  %v5815_v10 = vld [vmem:[%s6000_s14 + $0xec0] ss:$16 sps:$4 sm:$0xff]   ;;  %v5818_v11 = vld [vmem:[%s6000_s14 + $0xec8] ss:$16 sps:$4 sm:$0xff]  }
 0x1cb   : > { %3748 = vmatprep.subr.bf16.mxu0 %v5733_v12  ;;  %4092 = vmatprep.subr.bf16.mxu1 %v5736_v13  ;;  %v5823_v12 = vld [vmem:[%s6000_s14 + $0xee4] ss:$16 sps:$4 sm:$0xff]   ;;  %v5826_v13 = vld [vmem:[%s6000_s14 + $0xeec] ss:$16 sps:$4 sm:$0xff]  }
 0x1ce   : > { %3749 = vmatpush1.bf16.msra.mxu0 %v5731_v14  ;;  %4093 = vmatpush1.bf16.msra.mxu1 %v5734_v15  ;;  %v5821_v14 = vld [vmem:[%s6000_s14 + $0xee0] ss:$16 sps:$4 sm:$0xff]   ;;  %v5824_v15 = vld [vmem:[%s6000_s14 + $0xee8] ss:$16 sps:$4 sm:$0xff]  }
 0x1cf   : > { %3750 = vmatprep.subr.bf16.mxu0 %v5739_v16  ;;  %4094 = vmatprep.subr.bf16.mxu1 %v5742_v17  ;;  %v5829_v16 = vld [vmem:[%s6000_s14 + $0xf04] ss:$16 sps:$4 sm:$0xff]   ;;  %v5832_v17 = vld [vmem:[%s6000_s14 + $0xf0c] ss:$16 sps:$4 sm:$0xff]  }
 0x1d2   : > { %3751 = vmatpush1.bf16.msra.mxu0 %v5737_v18  ;;  %4095 = vmatpush1.bf16.msra.mxu1 %v5740_v19  ;;  %v5827_v18 = vld [vmem:[%s6000_s14 + $0xf00] ss:$16 sps:$4 sm:$0xff]   ;;  %v5830_v19 = vld [vmem:[%s6000_s14 + $0xf08] ss:$16 sps:$4 sm:$0xff]  }
 0x1d3   : > { %3752 = vmatprep.subr.bf16.mxu0 %v5745_v20  ;;  %4096 = vmatprep.subr.bf16.mxu1 %v5748_v21  ;;  %v5835_v20 = vld [vmem:[%s6000_s14 + $0xf24] ss:$16 sps:$4 sm:$0xff]   ;;  %v5838_v21 = vld [vmem:[%s6000_s14 + $0xf2c] ss:$16 sps:$4 sm:$0xff]  }
 0x1d6   : > { %3753 = vmatpush1.bf16.msra.mxu0 %v5743_v22  ;;  %4097 = vmatpush1.bf16.msra.mxu1 %v5746_v23  ;;  %v5833_v22 = vld [vmem:[%s6000_s14 + $0xf20] ss:$16 sps:$4 sm:$0xff]   ;;  %v5836_v23 = vld [vmem:[%s6000_s14 + $0xf28] ss:$16 sps:$4 sm:$0xff]  }
 0x1d7   : > { %3754 = vmatprep.subr.bf16.mxu0 %v5751_v24  ;;  %4098 = vmatprep.subr.bf16.mxu1 %v5754_v25  ;;  %v5841_v24 = vld [vmem:[%s6000_s14 + $0xf44] ss:$16 sps:$4 sm:$0xff]   ;;  %v5844_v25 = vld [vmem:[%s6000_s14 + $0xf4c] ss:$16 sps:$4 sm:$0xff]  }
 0x1da   : > { %3755 = vmatpush1.bf16.msra.mxu0 %v5749_v26  ;;  %4099 = vmatpush1.bf16.msra.mxu1 %v5752_v27  ;;  %v5839_v26 = vld [vmem:[%s6000_s14 + $0xf40] ss:$16 sps:$4 sm:$0xff]   ;;  %v5842_v27 = vld [vmem:[%s6000_s14 + $0xf48] ss:$16 sps:$4 sm:$0xff]  }
 0x1db   : > { %3756 = vmatprep.subr.bf16.mxu0 %v5757_v28  ;;  %4100 = vmatprep.subr.bf16.mxu1 %v5760_v29  ;;  %v5847_v28 = vld [vmem:[%s6000_s14 + $0xf64] ss:$16 sps:$4 sm:$0xff]   ;;  %v5850_v29 = vld [vmem:[%s6000_s14 + $0xf6c] ss:$16 sps:$4 sm:$0xff]  }
 0x1de   : > { %3757 = vmatpush1.bf16.msra.mxu0 %v5755_v30  ;;  %4101 = vmatpush1.bf16.msra.mxu1 %v5758_v33  ;;  %v5845_v30 = vld [vmem:[%s6000_s14 + $0xf60] ss:$16 sps:$4 sm:$0xff]   ;;  %v5848_v33 = vld [vmem:[%s6000_s14 + $0xf68] ss:$16 sps:$4 sm:$0xff]  }
 0x1df   : > { %3758 = vmatprep.subr.bf16.mxu0 %v5763_v34  ;;  %4102 = vmatprep.subr.bf16.mxu1 %v5766_v37  ;;  %v5853_v34 = vld [vmem:[%s6000_s14 + $0xf84] ss:$16 sps:$4 sm:$0xff]   ;;  %v5856_v37 = vld [vmem:[%s6000_s14 + $0xf8c] ss:$16 sps:$4 sm:$0xff]  }
 0x1e2   : > { %3759 = vmatpush1.bf16.msra.mxu0 %v5761_v39  ;;  %4103 = vmatpush1.bf16.msra.mxu1 %v5764_v32  ;;  %v5851_v39 = vld [vmem:[%s6000_s14 + $0xf80] ss:$16 sps:$4 sm:$0xff]   ;;  %v5854_v32 = vld [vmem:[%s6000_s14 + $0xf88] ss:$16 sps:$4 sm:$0xff]  }
 0x1e3   : > { %3760 = vmatprep.subr.bf16.mxu0 %v5769_v40  ;;  %4104 = vmatprep.subr.bf16.mxu1 %v5772_v41  ;;  %v5859_v40 = vld [vmem:[%s6000_s14 + $0xfa4] ss:$16 sps:$4 sm:$0xff]   ;;  %v5862_v41 = vld [vmem:[%s6000_s14 + $0xfac] ss:$16 sps:$4 sm:$0xff]  }
 0x1e6   : > { %3761 = vmatpush1.bf16.msra.mxu0 %v5767_v35  ;;  %4105 = vmatpush1.bf16.msra.mxu1 %v5770_v36  ;;  %v5857_v35 = vld [vmem:[%s6000_s14 + $0xfa0] ss:$16 sps:$4 sm:$0xff]   ;;  %v5860_v36 = vld [vmem:[%s6000_s14 + $0xfa8] ss:$16 sps:$4 sm:$0xff]  }
 0x1e7   : > { %3762 = vmatprep.subr.bf16.mxu0 %v5775_v44  ;;  %4106 = vmatprep.subr.bf16.mxu1 %v5778_v45  ;;  %v5865_v44 = vld [vmem:[%s6000_s14 + $0xfc4] ss:$16 sps:$4 sm:$0xff]   ;;  %v5868_v45 = vld [vmem:[%s6000_s14 + $0xfcc] ss:$16 sps:$4 sm:$0xff]  }
 0x1ea   : > { %3763 = vmatpush1.bf16.msra.mxu0 %v5773_v46  ;;  %4107 = vmatpush1.bf16.msra.mxu1 %v5776_v31  ;;  %v5863_v46 = vld [vmem:[%s6000_s14 + $0xfc0] ss:$16 sps:$4 sm:$0xff]   ;;  %v5866_v31 = vld [vmem:[%s6000_s14 + $0xfc8] ss:$16 sps:$4 sm:$0xff]  }
 0x1eb   : > { %3775 = vmatprep.subr.bf16.mxu0 %v5781_v48  ;;  %4119 = vmatprep.subr.bf16.mxu1 %v5784_v49  ;;  %v5871_v48 = vld [vmem:[%s6000_s14 + $0xfe4] ss:$16 sps:$4 sm:$0xff]   ;;  %v5874_v49 = vld [vmem:[%s6000_s14 + $0xfec] ss:$16 sps:$4 sm:$0xff]  }
 0x1ed   : > { %3765 = vmatmul.mubr.bf16.vlgmr.msra.gmra.mrb[0].mxu0 %v4503_v50  ;;  %4109 = vmatmul.mubr.bf16.vlgmr.msra.gmra.mrb[0].mxu1 %v4503_v50  ;;  %v5869_v50 = vld [vmem:[%s6000_s14 + $0xfe0] ss:$16 sps:$4 sm:$0xff]  }
 0x1ee   : > { %3776 = vmatpush1.bf16.msra.mxu0 %v5779_v51  ;;  %4120 = vmatpush1.bf16.msra.mxu1 %v5782_v52  ;;  %v5872_v51 = vld [vmem:[%s6000_s14 + $0xfe8] ss:$16 sps:$4 sm:$0xff]   ;;  %v4505_v52 = vcombine.low %v6518_v42, %v6521_v43 }
 0x1ef   : > { %3777 = vmatprep.subr.bf16.mxu0 %v5787_v53  ;;  %4121 = vmatprep.subr.bf16.mxu1 %v5790_v54  ;;  %v298_v53 = vld [vmem:[#allocation2] sm:$0xff]  ;;  %v300_v54 = vld [vmem:[#allocation2 + $0x10] sm:$0xff] }
 0x1f0   : > { %3807 = vmatprep.mubr.bf16.mxu0 %v4506_v47  ;;  %4151 = vmatprep.mubr.bf16.mxu1 %v4506_v47  ;;  %v299_v47 = vld [vmem:[#allocation2 + $0x8] sm:$0xff] }
 0x1f2   : > { %3778 = vmatpush1.bf16.msra.mxu0 %v5785_v38  ;;  %4122 = vmatpush1.bf16.msra.mxu1 %v5788_v55  ;;  %v301_v38 = vld [vmem:[#allocation2 + $0x18] sm:$0xff] }
 0x1f3   : > { %3779 = vmatprep.subr.bf16.mxu0 %v5793_v56  ;;  %4123 = vmatprep.subr.bf16.mxu1 %v5796_v57  ;;  %v302_v57 = vld [vmem:[#allocation2 + $0x20] sm:$0xff] }
 0x1f6   : > { %3780 = vmatpush1.bf16.msra.mxu0 %v5791_v58  ;;  %4124 = vmatpush1.bf16.msra.mxu1 %v5794_v59  ;;  %v304_v58 = vld [vmem:[#allocation2 + $0x30] sm:$0xff] }
 0x1f7   : > { %3781 = vmatprep.subr.bf16.mxu0 %v5799_v60  ;;  %4125 = vmatprep.subr.bf16.mxu1 %v5802_v61 }
 0x1fa   : > { %3782 = vmatpush1.bf16.msra.mxu0 %v5797_v62  ;;  %4126 = vmatpush1.bf16.msra.mxu1 %v5800_v63  ;;  %v303_v63 = vld [vmem:[#allocation2 + $0x28] sm:$0xff] }
 0x1fb   : > { %3783 = vmatprep.subr.bf16.mxu0 %v5805_v0  ;;  %4127 = vmatprep.subr.bf16.mxu1 %v5808_v1  ;;  %v305_v0 = vld [vmem:[#allocation2 + $0x38] sm:$0xff] }
 0x1fe   : > { %3784 = vmatpush1.bf16.msra.mxu0 %v5803_v2  ;;  %4128 = vmatpush1.bf16.msra.mxu1 %v5806_v3 }
 0x1ff   : > { %3785 = vmatprep.subr.bf16.mxu0 %v5811_v4  ;;  %4129 = vmatprep.subr.bf16.mxu1 %v5814_v5 }
 0x202   : > { %3786 = vmatpush1.bf16.msra.mxu0 %v5809_v6  ;;  %4130 = vmatpush1.bf16.msra.mxu1 %v5812_v7 }
 0x203   : > { %3787 = vmatprep.subr.bf16.mxu0 %v5817_v8  ;;  %4131 = vmatprep.subr.bf16.mxu1 %v5820_v9  ;;  %v4192_v9 = vlaneseq (!%p5019_p10) }
 0x206   : > { %3788 = vmatpush1.bf16.msra.mxu0 %v5815_v10  ;;  %4132 = vmatpush1.bf16.msra.mxu1 %v5818_v11  ;;  %v4193_v10 = vshrl.u32 (!%p5019_p10), %v4192_v9, 7  ;;  %v4190_v11 = vld [vmem:[%s6697_s2] sm:$0xf] (!%p5019_p10) }
 0x207   : > { %3789 = vmatprep.subr.bf16.mxu0 %v5823_v12  ;;  %4133 = vmatprep.subr.bf16.mxu1 %v5826_v13 }
 0x208   : > { %v6593_v13 = vsub.s32 (!%p5019_p10), 0, %v4193_v10  ;;  %vm4223_vm0 = vcmp.lt.s32.totalorder (!%p5019_p10), %v4193_v10, 2 }
 0x20a   : > { %3790 = vmatpush1.bf16.msra.mxu0 %v5821_v14  ;;  %4134 = vmatpush1.bf16.msra.mxu1 %v5824_v15  ;;  %v6595_v14 = vsub.s32 (!%p5019_p10), 1, %v4193_v10  ;;  %v6597_v15 = vsub.s32 (!%p5019_p10), 2, %v4193_v10 }
 0x20b   : > { %3791 = vmatprep.subr.bf16.mxu0 %v5829_v16  ;;  %4135 = vmatprep.subr.bf16.mxu1 %v5832_v17 }
 0x20e   : > { %3792 = vmatpush1.bf16.msra.mxu0 %v5827_v18  ;;  %4136 = vmatpush1.bf16.msra.mxu1 %v5830_v19  ;;  %v6599_v19 = vsub.s32 (!%p5019_p10), 3, %v4193_v10 }
 0x20f   : > { %3793 = vmatprep.subr.bf16.mxu0 %v5835_v20  ;;  %4137 = vmatprep.subr.bf16.mxu1 %v5838_v21  ;;  %v4195_v20 = vrot.slane (!%p5019_p10), %v4190_v11, %v6593_v13  ;;  %v4199_v21 = vrot.slane (!%p5019_p10), %v4190_v11, %v6595_v14 }
 0x212   : > { %3794 = vmatpush1.bf16.msra.mxu0 %v5833_v22  ;;  %4138 = vmatpush1.bf16.msra.mxu1 %v5836_v23 }
 0x213   : > { %3795 = vmatprep.subr.bf16.mxu0 %v5841_v24  ;;  %4139 = vmatprep.subr.bf16.mxu1 %v5844_v25  ;;  %v5908_v24 = vmov (!%p5019_p10), 0.0  }
 0x214   : > { %v6603_v25 = vsel (!%p5019_p10), %vm4223_vm0, 1.0, %v5908_v24 }
 0x216   : > { %3796 = vmatpush1.bf16.msra.mxu0 %v5839_v26  ;;  %4140 = vmatpush1.bf16.msra.mxu1 %v5842_v27  ;;  %v4203_v26 = vrot.slane (!%p5019_p10), %v4190_v11, %v6597_v15 }
 0x217   : > { %3797 = vmatprep.subr.bf16.mxu0 %v5847_v28  ;;  %4141 = vmatprep.subr.bf16.mxu1 %v5850_v29 }
 0x21a   : > { %3798 = vmatpush1.bf16.msra.mxu0 %v5845_v30  ;;  %4142 = vmatpush1.bf16.msra.mxu1 %v5848_v33 }
 0x21b   : > { %3799 = vmatprep.subr.bf16.mxu0 %v5853_v34  ;;  %4143 = vmatprep.subr.bf16.mxu1 %v5856_v37 }
 0x21e   : > { %3800 = vmatpush1.bf16.msra.mxu0 %v5851_v39  ;;  %4144 = vmatpush1.bf16.msra.mxu1 %v5854_v32  ;;  %v4207_v32 = vrot.slane (!%p5019_p10), %v4190_v11, %v6599_v19 }
 0x21f   : > { %3801 = vmatprep.subr.bf16.mxu0 %v5859_v40  ;;  %4145 = vmatprep.subr.bf16.mxu1 %v5862_v41 }
 0x222   : > { %3802 = vmatpush1.bf16.msra.mxu0 %v5857_v35  ;;  %4146 = vmatpush1.bf16.msra.mxu1 %v5860_v36 }
 0x223   : > { %3803 = vmatprep.subr.bf16.mxu0 %v5865_v44  ;;  %4147 = vmatprep.subr.bf16.mxu1 %v5868_v45 }
 0x226   : > { %3804 = vmatpush1.bf16.msra.mxu0 %v5863_v46  ;;  %4148 = vmatpush1.bf16.msra.mxu1 %v5866_v31 }
 0x227   : > { %3805 = vmatprep.subr.bf16.mxu0 %v5871_v48  ;;  %4149 = vmatprep.subr.bf16.mxu1 %v5874_v49 }
 0x22a   : > { %3806 = vmatpush1.bf16.msra.mxu0 %v5869_v50  ;;  %4150 = vmatpush1.bf16.msra.mxu1 %v5872_v51 }
 0x22d   : > { %3808 = vmatmul.mubr.bf16.vlgmr.msra.gmra.mrb[0].mxu0 %v4505_v52  ;;  %4152 = vmatmul.mubr.bf16.vlgmr.msra.gmra.mrb[0].mxu1 %v4505_v52 }
 0x300   : > { %v3809_v55 = vpop.f32.mrb[0].mxu0  ;;  %v4153_v56 = vpop.f32.mrb[0].mxu1  ;;  %4181 = sbr.rel (%p5019_p10) target bundleno = 853 (0x355), region = 71 }
 0x301   : > { %v4162_v59 = vadd.f32 %v3809_v55, %v298_v53  ;;  %v4164_v60 = vadd.f32 %v4153_v56, %v300_v54  ;;  %v3811_v61 = vpop.f32.mrb[1].mxu0  ;;  %v4155_v62 = vpop.f32.mrb[1].mxu1 }
 0x302   : > { %v4163_v1 = vadd.f32 %v3811_v61, %v299_v47  ;;  %v4165_v42 = vadd.f32 %v4155_v62, %v301_v38  ;;  %v3813_v43 = vpop.f32.mrb[2].mxu0  ;;  %v4157_v2 = vpop.f32.mrb[2].mxu1 }
 0x303   : > { %4170 = vst [vmem:[#allocation2] sm:$0xff] %v4162_v59  ;;  %4172 = vst [vmem:[#allocation2 + $0x10] sm:$0xff] %v4164_v60  ;;  %v4166_v3 = vadd.f32 %v3813_v43, %v302_v57  ;;  %v4168_v4 = vadd.f32 %v4157_v2, %v304_v58  ;;  %v3815_v5 = vpop.f32.mrb[3].mxu0  ;;  %v4159_v6 = vpop.f32.mrb[3].mxu1 }
 0x304   : > { %4171 = vst [vmem:[#allocation2 + $0x8] sm:$0xff] %v4163_v1  ;;  %4173 = vst [vmem:[#allocation2 + $0x18] sm:$0xff] %v4165_v42  ;;  %v4167_v7 = vadd.f32 %v3815_v5, %v303_v63  ;;  %v4169_v8 = vadd.f32 %v4159_v6, %v305_v0 }
 0x305   : > { %4174 = vst [vmem:[#allocation2 + $0x20] sm:$0xff] %v4166_v3  ;;  %4176 = vst [vmem:[#allocation2 + $0x30] sm:$0xff] %v4168_v4 }
 0x306   : > { %4175 = vst [vmem:[#allocation2 + $0x28] sm:$0xff] %v4167_v7  ;;  %4177 = vst [vmem:[#allocation2 + $0x38] sm:$0xff] %v4169_v8 }
 0x30a   : > { %v4182_v12 = vld [vmem:[#allocation2] sm:$0xff]  ;;  %v4184_v22 = vld [vmem:[#allocation2 + $0x10] sm:$0xff] }
 0x30b   : > { %v4183_v17 = vld [vmem:[#allocation2 + $0x8] sm:$0xff]  ;;  %v4212_v27 = vadd.f32 %v4195_v20, %v4182_v12  ;;  %v4185_v33 = vld [vmem:[#allocation2 + $0x18] sm:$0xff]  ;;  %v4214_v37 = vadd.f32 %v4203_v26, %v4184_v22 }
 0x30c   : > { %v4186_v16 = vld [vmem:[#allocation2 + $0x20] sm:$0xff]  ;;  %v4188_v23 = vld [vmem:[#allocation2 + $0x30] sm:$0xff]  ;;  %v4213_v29 = vadd.f32 %v4199_v21, %v4183_v17  ;;  %v4215_v46 = vadd.f32 %v4207_v32, %v4185_v33 }
 0x30d   : > { %v4187_v18 = vld [vmem:[#allocation2 + $0x28] sm:$0xff]  ;;  %v4216_v28 = vadd.f32 %v4195_v20, %v4186_v16  ;;  %v4189_v34 = vld [vmem:[#allocation2 + $0x38] sm:$0xff]  ;;  %v4218_v39 = vadd.f32 %v4203_v26, %v4188_v23  ;;  %v4229_v40 = vmul.f32 %v6603_v25, %v4212_v27  ;;  %v4231_v44 = vmul.f32 %v6603_v25, %v4214_v37 }
 0x30e   : > { %v4217_v30 = vadd.f32 %v4199_v21, %v4187_v18  ;;  %v4230_v35 = vmul.f32 %v6603_v25, %v4213_v29  ;;  %v4219_v31 = vadd.f32 %v4207_v32, %v4189_v34  ;;  %v4232_v51 = vmul.f32 %v6603_v25, %v4215_v46 }
 0x30f   : > { %v4233_v41 = vmul.f32 0.0, %v4216_v28  ;;  %v4235_v45 = vmul.f32 0.0, %v4218_v39 }
 0x310   : > { %v4234_v36 = vmul.f32 0.0, %v4217_v30  ;;  %v4236_v52 = vmul.f32 0.0, %v4219_v31 }
 0x311   : > { %v4237_v48 = vadd.f32 %v4233_v41, %v4229_v40  ;;  %v4251_v50 = vadd.f32 %v4235_v45, %v4231_v44 }
 0x312   : > { %v4244_v49 = vadd.f32 %v4234_v36, %v4230_v35  ;;  %v4258_v38 = vadd.f32 %v4236_v52, %v4232_v51 }
 0x313   : > { %v4238_v53 = vrot.slane %v4237_v48, 4  ;;  %v4252_v47 = vrot.slane %v4251_v50, 4 }
 0x314   : > { %v4245_v54 = vrot.slane %v4244_v49, 4  ;;  %v4259_v58 = vrot.slane %v4258_v38, 4 }
 0x315   : > { %v4239_v55 = vadd.f32 %v4238_v53, %v4237_v48  ;;  %v4253_v57 = vadd.f32 %v4252_v47, %v4251_v50 }
 0x316   : > { %v4246_v56 = vadd.f32 %v4245_v54, %v4244_v49  ;;  %v4260_v62 = vadd.f32 %v4259_v58, %v4258_v38 }
 0x317   : > { %v4240_v59 = vrot.slane %v4239_v55, 2  ;;  %v4254_v61 = vrot.slane %v4253_v57, 2 }
 0x318   : > { %v4247_v60 = vrot.slane %v4246_v56, 2  ;;  %v4261_v42 = vrot.slane %v4260_v62, 2 }
 0x319   : > { %v4241_v63 = vadd.f32 %v4240_v59, %v4239_v55  ;;  %v4255_v1 = vadd.f32 %v4254_v61, %v4253_v57 }
 0x31a   : > { %v4248_v0 = vadd.f32 %v4247_v60, %v4246_v56  ;;  %v4262_v4 = vadd.f32 %v4261_v42, %v4260_v62 }
 0x31b   : > { %v4242_v43 = vrot.slane %v4241_v63, 1  ;;  %v4256_v3 = vrot.slane %v4255_v1, 1 }
 0x31c   : > { %v4249_v2 = vrot.slane %v4248_v0, 1  ;;  %v4263_v8 = vrot.slane %v4262_v4, 1 }
 0x31d   : > { %v4243_v5 = vadd.f32 %v4242_v43, %v4241_v63  ;;  %v4257_v7 = vadd.f32 %v4256_v3, %v4255_v1 }
 0x31e   : > { %v4250_v6 = vadd.f32 %v4249_v2, %v4248_v0  ;;  %v4264_v12 = vadd.f32 %v4263_v8, %v4262_v4 }
 0x31f   : > { %v4265_v9 = vmul.f32 0.5, %v4243_v5  ;;  %v4267_v11 = vmul.f32 0.5, %v4257_v7 }
 0x320   : > { %v4266_v10 = vmul.f32 0.5, %v4250_v6  ;;  %v4268_v23 = vmul.f32 0.5, %v4264_v12 }
 0x321   : > { %v6611_v16 = vsub.f32 %v4212_v27, %v4265_v9  ;;  %v6613_v17 = vsub.f32 %v4216_v28, %v4265_v9  ;;  %v6619_v21 = vsub.f32 %v4214_v37, %v4267_v11  ;;  %v6621_v22 = vsub.f32 %v4218_v39, %v4267_v11 }
 0x322   : > { %v6615_v18 = vsub.f32 %v4213_v29, %v4266_v10  ;;  %v6617_v20 = vsub.f32 %v4217_v30, %v4266_v10  ;;  %v6632_v33 = vsub.f32 %v4215_v46, %v4268_v23  ;;  %v6634_v34 = vsub.f32 %v4219_v31, %v4268_v23 }
 0x323   : > { %v4277_v24 = vmul.f32 %v6603_v25, %v6611_v16  ;;  %v4281_v26 = vmul.f32 0.0, %v6613_v17  ;;  %v4279_v29 = vmul.f32 %v6603_v25, %v6619_v21  ;;  %v4283_v30 = vmul.f32 0.0, %v6621_v22 }
 0x324   : > { %v4278_v27 = vmul.f32 %v6603_v25, %v6615_v18  ;;  %v4282_v28 = vmul.f32 0.0, %v6617_v20  ;;  %v4280_v36 = vmul.f32 %v6603_v25, %v6632_v33  ;;  %v4284_v44 = vmul.f32 0.0, %v6634_v34 }
 0x325   : > { %v4285_v37 = vmul.f32 %v4277_v24, %v4277_v24  ;;  %v4289_v39 = vmul.f32 %v4281_v26, %v4281_v26  ;;  %v4287_v41 = vmul.f32 %v4279_v29, %v4279_v29  ;;  %v4291_v35 = vmul.f32 %v4283_v30, %v4283_v30  ;;  %v4341_v24 = vld [vmem:[%s6698_s3] sm:$0xf] }
 0x326   : > { %v4286_v32 = vmul.f32 %v4278_v27, %v4278_v27  ;;  %v4290_v40 = vmul.f32 %v4282_v28, %v4282_v28  ;;  %v4288_v50 = vmul.f32 %v4280_v36, %v4280_v36  ;;  %v4292_v51 = vmul.f32 %v4284_v44, %v4284_v44  ;;  %v4371_v26 = vld [vmem:[%s6699_s4] sm:$0xf] }
 0x327   : > { %v4293_v45 = vadd.f32 %v4289_v39, %v4285_v37  ;;  %v4307_v49 = vadd.f32 %v4291_v35, %v4287_v41  ;;  %v4346_v27 = vrot.slane %v4341_v24, %v6593_v13  ;;  %v4376_v29 = vrot.slane %v4371_v26, %v6593_v13 }
 0x328   : > { %v4300_v48 = vadd.f32 %v4290_v40, %v4286_v32  ;;  %v4314_v53 = vadd.f32 %v4292_v51, %v4288_v50  ;;  %v4350_v30 = vrot.slane %v4341_v24, %v6595_v14  ;;  %v4380_v37 = vrot.slane %v4371_v26, %v6595_v14 }
 0x329   : > { %v4294_v46 = vrot.slane %v4293_v45, 4  ;;  %v4308_v31 = vrot.slane %v4307_v49, 4  ;;  %v4354_v40 = vrot.slane %v4341_v24, %v6597_v15  ;;  %v4384_v41 = vrot.slane %v4371_v26, %v6597_v15 }
 0x32a   : > { %v4301_v52 = vrot.slane %v4300_v48, 4  ;;  %v4315_v55 = vrot.slane %v4314_v53, 4  ;;  %v4388_v13 = vrot.slane %v4371_v26, %v6599_v19 }
 0x32b   : > { %v4295_v54 = vadd.f32 %v4294_v46, %v4293_v45  ;;  %v4309_v38 = vadd.f32 %v4308_v31, %v4307_v49  ;;  %v4358_v45 = vrot.slane %v4341_v24, %v6599_v19 }
 0x32c   : > { %v4302_v47 = vadd.f32 %v4301_v52, %v4300_v48  ;;  %v4316_v59 = vadd.f32 %v4315_v55, %v4314_v53 }
 0x32d   : > { %v4296_v56 = vrot.slane %v4295_v54, 2  ;;  %v4310_v58 = vrot.slane %v4309_v38, 2 }
 0x32e   : > { %v4303_v57 = vrot.slane %v4302_v47, 2  ;;  %v4317_v62 = vrot.slane %v4316_v59, 2 }
 0x32f   : > { %v4297_v25 = vadd.f32 %v4296_v56, %v4295_v54  ;;  %v4311_v61 = vadd.f32 %v4310_v58, %v4309_v38 }
 0x330   : > { %v4304_v60 = vadd.f32 %v4303_v57, %v4302_v47  ;;  %v4318_v42 = vadd.f32 %v4317_v62, %v4316_v59 }
 0x331   : > { %v4298_v63 = vrot.slane %v4297_v25, 1  ;;  %v4312_v1 = vrot.slane %v4311_v61, 1 }
 0x332   : > { %v4305_v0 = vrot.slane %v4304_v60, 1  ;;  %v4319_v4 = vrot.slane %v4318_v42, 1 }
 0x333   : > { %v4299_v43 = vadd.f32 %v4298_v63, %v4297_v25  ;;  %v4313_v3 = vadd.f32 %v4312_v1, %v4311_v61 }
 0x334   : > { %v4306_v2 = vadd.f32 %v4305_v0, %v4304_v60  ;;  %v4320_v8 = vadd.f32 %v4319_v4, %v4318_v42 }
 0x335   : > { %v4321_v5 = vmul.f32 0.5, %v4299_v43  ;;  %v4323_v7 = vmul.f32 0.5, %v4313_v3 }
 0x336   : > { %v4322_v6 = vmul.f32 0.5, %v4306_v2  ;;  %v4324_v12 = vmul.f32 0.5, %v4320_v8 }
 0x337   : > { %v4325_v9 = vadd.f32 1e-05, %v4321_v5  ;;  %v4327_v11 = vadd.f32 1e-05, %v4323_v7 }
 0x338   : > { %v4326_v10 = vadd.f32 1e-05, %v4322_v6  ;;  %v4328_v23 = vadd.f32 1e-05, %v4324_v12 }
 0x339   : > { %5875 = vrsqrt.f32 %v4325_v9 }
 0x33a   : > { %5877 = vrsqrt.f32 %v4326_v10 }
 0x33b   : > { %5879 = vrsqrt.f32 %v4327_v11 }
 0x33c   : > { %5881 = vrsqrt.f32 %v4328_v23 }
 0x343   : > { %v5876_v28 = vpop.eup %5875 }
 0x344   : > { %v5878_v39 = vpop.eup %5877  ;;  %v4333_v32 = vmul.f32 %v5876_v28, %v6611_v16  ;;  %v4337_v35 = vmul.f32 %v5876_v28, %v6613_v17 }
 0x345   : > { %v5880_v36 = vpop.eup %5879  ;;  %v4334_v44 = vmul.f32 %v5878_v39, %v6615_v18  ;;  %v4338_v48 = vmul.f32 %v5878_v39, %v6617_v20 }
 0x346   : > { %v5882_v49 = vpop.eup %5881  ;;  %v4363_v14 = vmul.f32 %v4346_v27, %v4333_v32  ;;  %v4335_v50 = vmul.f32 %v5880_v36, %v6619_v21  ;;  %v4367_v16 = vmul.f32 %v4346_v27, %v4337_v35  ;;  %v4339_v51 = vmul.f32 %v5880_v36, %v6621_v22 }
 0x347   : > { %v4364_v46 = vmul.f32 %v4350_v30, %v4334_v44  ;;  %v4336_v15 = vmul.f32 %v5882_v49, %v6632_v33  ;;  %v4368_v17 = vmul.f32 %v4350_v30, %v4338_v48  ;;  %v4340_v52 = vmul.f32 %v5882_v49, %v6634_v34 }
 0x348   : > { %v4393_v18 = vadd.f32 %v4376_v29, %v4363_v14  ;;  %v4365_v31 = vmul.f32 %v4354_v40, %v4335_v50  ;;  %v4397_v53 = vadd.f32 %v4376_v29, %v4367_v16  ;;  %v4369_v54 = vmul.f32 %v4354_v40, %v4339_v51 }
 0x349   : > { %v4394_v19 = vadd.f32 %v4380_v37, %v4364_v46  ;;  %v4366_v47 = vmul.f32 %v4358_v45, %v4336_v15  ;;  %v4398_v20 = vadd.f32 %v4380_v37, %v4368_v17  ;;  %v4370_v38 = vmul.f32 %v4358_v45, %v4340_v52 }
 0x34a   : > { %vm4401_vm1 = vcmp.ge.f32.partialorder %v4393_v18, 0.0  ;;  %v4409_v55 = vmul.f32 0.2, %v4393_v18  ;;  %v4395_v21 = vadd.f32 %v4384_v41, %v4365_v31  ;;  %vm4405_vm2 = vcmp.ge.f32.partialorder %v4397_v53, 0.0 }
 0x34b   : > { %vm4402_vm3 = vcmp.ge.f32.partialorder %v4394_v19, 0.0  ;;  %v4410_v22 = vmul.f32 0.2, %v4394_v19  ;;  %v4396_v56 = vadd.f32 %v4388_v13, %v4366_v47  ;;  %v4413_v57 = vmul.f32 0.2, %v4397_v53 }
 0x34c   : > { %v4417_v33 = vsel %vm4401_vm1, %v4393_v18, %v4409_v55  ;;  %vm4403_vm4 = vcmp.ge.f32.partialorder %v4395_v21, 0.0  ;;  %v4411_v58 = vmul.f32 0.2, %v4395_v21  ;;  %vm4406_vm5 = vcmp.ge.f32.partialorder %v4398_v20, 0.0 }
 0x34d   : > { %4425 = vst [vmem:[%s6700_s5] sm:$0xff] %v4417_v33  ;;  %v4418_v34 = vsel %vm4402_vm3, %v4394_v19, %v4410_v22  ;;  %vm4404_vm6 = vcmp.ge.f32.partialorder %v4396_v56, 0.0  ;;  %v4412_v59 = vmul.f32 0.2, %v4396_v56  ;;  %v4421_v25 = vsel %vm4405_vm2, %v4397_v53, %v4413_v57 }
 0x34e   : > { %4426 = vst [vmem:[%s6700_s5 + $0x8] sm:$0xff] %v4418_v34  ;;  %v4419_v60 = vsel %vm4403_vm4, %v4395_v21, %v4411_v58  ;;  %4429 = vst [vmem:[%s6700_s5 + $0x20] sm:$0xff] %v4421_v25  ;;  %v4414_v61 = vmul.f32 0.2, %v4398_v20  ;;  %v4399_v62 = vadd.f32 %v4384_v41, %v4369_v54  ;;  %v4400_v63 = vadd.f32 %v4388_v13, %v4370_v38 }
 0x34f   : > { %4427 = vst [vmem:[%s6700_s5 + $0x10] sm:$0xff] %v4419_v60  ;;  %v4420_v0 = vsel %vm4404_vm6, %v4396_v56, %v4412_v59 }
 0x350   : > { %4428 = vst [vmem:[%s6700_s5 + $0x18] sm:$0xff] %v4420_v0  ;;  %v4422_v1 = vsel %vm4406_vm5, %v4398_v20, %v4414_v61  ;;  %vm4407_vm7 = vcmp.ge.f32.partialorder %v4399_v62, 0.0  ;;  %v4415_v42 = vmul.f32 0.2, %v4399_v62  ;;  %vm4408_vm8 = vcmp.ge.f32.partialorder %v4400_v63, 0.0 }
 0x351   : > { %4430 = vst [vmem:[%s6700_s5 + $0x28] sm:$0xff] %v4422_v1  ;;  %v4416_v43 = vmul.f32 0.2, %v4400_v63 }
 0x352   : > { %v4423_v2 = vsel %vm4407_vm7, %v4399_v62, %v4415_v42 }
 0x353   : > { %4431 = vst [vmem:[%s6700_s5 + $0x30] sm:$0xff] %v4423_v2  ;;  %v4424_v3 = vsel %vm4408_vm8, %v4400_v63, %v4416_v43 }
 0x354   : > { %4432 = vst [vmem:[%s6700_s5 + $0x38] sm:$0xff] %v4424_v3 }
 0x355 PF: > { %p12_p11 = scmp.ge.s32.totalorder %s5958_s22, 6   ;;  %s6701_s18 = smov %s5901_s19 }
 0x356   : > { %s6702_s19 = smov %s5967_s25  ;;  %s6703_s20 = smov %s5958_s22 }
 0x357   :  { %14 = sbr.rel (!%p12_p11) target bundleno = 2 (0x2), region = 105 }

</bundles_post_ra>
